<compile_context>
chip_gen: v7x
topology: tpu7x:2x2x1
jax: 0.10.0
libtpu: 0.0.40
codegen_flags: <defaults>
</compile_context>

<pallas_src>
import functools

import numpy as np
import jax
import jax.numpy as jnp
from jax.experimental import pallas as pl
from jax.experimental.pallas import tpu as pltpu


# ----------------------------------------------------------------------------
# Fused kernel: BiLSTM recurrence + hidden2tag + Viterbi decode for one batch block.
# ----------------------------------------------------------------------------
def bilstm_crf_kernel(xp_ref, whh_f_ref, whh_b_ref, wtag_f_ref, wtag_b_ref, btag_ref,
                      trans_ref, feats_ref, score_ref, path_ref, hf_scr, hb_scr,
                      *, start_idx, stop_idx):
    B_blk, T, _ = xp_ref.shape            # xp: (B_blk, T, 8*H2) = fwd gates | bwd gates
    H2, G = whh_f_ref.shape               # G = 4*H2
    NT = trans_ref.shape[0]

    whh_f = whh_f_ref[...]                # (H2, 4*H2) bf16
    whh_b = whh_b_ref[...]

    def lstm_step(h, c, xg, whh):
        # xg: (B_blk, 4*H2) precomputed x @ W_ih + b ; one fused MXU matmul per step.
        g = xg + jnp.dot(h.astype(jnp.bfloat16), whh, preferred_element_type=jnp.float32)
        i_g = jax.nn.sigmoid(g[:, 0 * H2:1 * H2])
        f_g = jax.nn.sigmoid(g[:, 1 * H2:2 * H2])
        g_g = jnp.tanh(g[:, 2 * H2:3 * H2])
        o_g = jax.nn.sigmoid(g[:, 3 * H2:4 * H2])
        c_new = f_g * c + i_g * g_g
        h_new = o_g * jnp.tanh(c_new)
        return h_new, c_new

    h_f = jnp.zeros((B_blk, H2), jnp.float32)
    c_f = jnp.zeros((B_blk, H2), jnp.float32)
    h_b = jnp.zeros((B_blk, H2), jnp.float32)
    c_b = jnp.zeros((B_blk, H2), jnp.float32)

    # Interleave forward step t and backward step T-1-t (independent chains -> 2x ILP on the
    # latency-bound recurrence).  Hidden states go straight into time-major VMEM scratch.
    for t in range(T):
        tb = T - 1 - t
        row_f = xp_ref[:, t, :]                        # (B_blk, 8*H2)
        row_b = xp_ref[:, tb, :]
        h_f, c_f = lstm_step(h_f, c_f, row_f[:, 0:G], whh_f)
        h_b, c_b = lstm_step(h_b, c_b, row_b[:, G:2 * G], whh_b)
        hf_scr[t * B_blk:(t + 1) * B_blk, :] = h_f
        hb_scr[tb * B_blk:(tb + 1) * B_blk, :] = h_b

    # hidden2tag over all timesteps at once (rows are time-major: row = t*B_blk + b).
    feats_flat = (jnp.dot(hf_scr[...].astype(jnp.bfloat16), wtag_f_ref[...],
                          preferred_element_type=jnp.float32)
                  + jnp.dot(hb_scr[...].astype(jnp.bfloat16), wtag_b_ref[...],
                            preferred_element_type=jnp.float32)
                  + btag_ref[...])                      # (T*B_blk, NT)

    # ---------------- Viterbi decode, batched over the block ----------------
    trans = trans_ref[...]                                            # (NT, NT): [next, prev]
    lane = jax.lax.broadcasted_iota(jnp.int32, (B_blk, NT), 1)        # tag index (hoisted)
    lane3 = jax.lax.broadcasted_iota(jnp.int32, (B_blk, NT, NT), 2)   # prev-tag index (hoisted)

    fv = jnp.where(lane == start_idx, 0.0, -10000.0)                  # (B_blk, NT)
    bp_rows = []
    for t in range(T):
        feat_t = feats_flat[t * B_blk:(t + 1) * B_blk, :]             # (B_blk, NT)
        feats_ref[:, t, :] = feat_t                                   # auxiliary output
        m = fv[:, None, :] + trans[None, :, :]                        # (B_blk, next, prev)
        vmax = jnp.max(m, axis=-1)                                    # (B_blk, NT)
        bp = jnp.min(jnp.where(m == vmax[:, :, None], lane3, NT), axis=-1)  # first argmax
        bp_rows.append(bp)
        fv = vmax + feat_t

    terminal = fv + trans[stop_idx:stop_idx + 1, :]                   # (B_blk, NT)
    score = jnp.max(terminal, axis=-1, keepdims=True)                 # (B_blk, 1)
    best = jnp.min(jnp.where(terminal == score, lane, NT),
                   axis=-1, keepdims=True)                            # (B_blk, 1) int32

    tags = [None] * T
    tags[T - 1] = best
    for t in range(T - 1, 0, -1):
        best = jnp.sum(jnp.where(lane == best, bp_rows[t], 0), axis=-1, keepdims=True)
        tags[t - 1] = best
    # TODO(synk): reference asserts bp_rows[0][tags[0]] == START_TAG host-side; not re-checked here.

    time_lane = jax.lax.broadcasted_iota(jnp.int32, (B_blk, T), 1)
    path = jnp.zeros((B_blk, T), jnp.int32)
    for t in range(T):
        path = path + jnp.where(time_lane == t, tags[t], 0)

    score_ref[...] = score.reshape(B_blk, 1, 1)
    path_ref[...] = path.reshape(B_blk, 1, T)


def bilstm_crf_forward(tokens, emb_table, wih_f, whh_f, b_f, wih_b, whh_b, b_b,
                       wtag_f, wtag_b, btag, transitions, *, start_idx, stop_idx, block_b=None):
    B, T = tokens.shape
    H2 = whh_f.shape[0]
    NT = transitions.shape[0]
    if block_b is None:
        block_b = B if B <= 8 else 8
    assert B % block_b == 0, "batch must be divisible by the batch block size"
    num_blocks = B // block_b

    # Fold embedding lookup + per-gate input projection + bias into one gathered table:
    # lane layout of a row = [fwd i|f|g|o (4*H2) | bwd i|f|g|o (4*H2)] = 8*H2 = 128 lanes.
    proj_table = jnp.concatenate(
        [emb_table @ wih_f + b_f, emb_table @ wih_b + b_b], axis=-1)  # (V, 8*H2)
    xp = jnp.take(proj_table, tokens, axis=0)                         # (B, T, 8*H2) f32

    whh_f16 = whh_f.astype(jnp.bfloat16)
    whh_b16 = whh_b.astype(jnp.bfloat16)
    wtag_f16 = wtag_f.astype(jnp.bfloat16)
    wtag_b16 = wtag_b.astype(jnp.bfloat16)

    kern = functools.partial(bilstm_crf_kernel, start_idx=start_idx, stop_idx=stop_idx)
    feats, score, path = pl.pallas_call(
        kern,
        out_shape=(jax.ShapeDtypeStruct((B, T, NT), jnp.float32),     # feats (aux, for checks)
                   jax.ShapeDtypeStruct((B, 1, 1), jnp.float32),      # path score
                   jax.ShapeDtypeStruct((B, 1, T), jnp.int32)),       # best path
        grid=(num_blocks,),
        in_specs=[
            pl.BlockSpec((block_b, T, 8 * H2), lambda i: (i, 0, 0)),  # xp
            pl.BlockSpec((H2, 4 * H2), lambda i: (0, 0)),             # whh fwd (gate-stacked)
            pl.BlockSpec((H2, 4 * H2), lambda i: (0, 0)),             # whh bwd
            pl.BlockSpec((H2, NT), lambda i: (0, 0)),                 # hidden2tag (fwd half)
            pl.BlockSpec((H2, NT), lambda i: (0, 0)),                 # hidden2tag (bwd half)
            pl.BlockSpec((1, NT), lambda i: (0, 0)),                  # hidden2tag bias
            pl.BlockSpec((NT, NT), lambda i: (0, 0)),                 # CRF transitions
        ],
        out_specs=(pl.BlockSpec((block_b, T, NT), lambda i: (i, 0, 0)),
                   pl.BlockSpec((block_b, 1, 1), lambda i: (i, 0, 0)),
                   pl.BlockSpec((block_b, 1, T), lambda i: (i, 0, 0))),
        scratch_shapes=[pltpu.VMEM((T * block_b, H2), jnp.float32),   # fwd hidden states
                        pltpu.VMEM((T * block_b, H2), jnp.float32)],  # bwd hidden states
        compiler_params=pltpu.CompilerParams(dimension_semantics=("parallel",)),
    )(xp, whh_f16, whh_b16, wtag_f16, wtag_b16, btag, transitions)
    return feats, score.reshape(B), path.reshape(B, T)


# ----------------------------------------------------------------------------
# Pure-numpy references for correctness checks.
# ----------------------------------------------------------------------------
def _sigmoid(x):
    return 1.0 / (1.0 + np.exp(-x))


def ref_bilstm_feats(emb, wih_f, whh_f, b_f, wih_b, whh_b, b_b, wtag_f, wtag_b, btag):
    emb = np.asarray(emb, np.float64)
    wih_f, whh_f, b_f, wih_b, whh_b, b_b, wtag_f, wtag_b, btag = [
        np.asarray(a, np.float64)
        for a in (wih_f, whh_f, b_f, wih_b, whh_b, b_b, wtag_f, wtag_b, btag)]
    B, T, E = emb.shape
    H2 = whh_f.shape[0]
    NT = btag.shape[1]
    out = np.zeros((B, T, NT))
    for b in range(B):
        x = emb[b]

        def run(wih, whh, bias, reverse):
            h = np.zeros(H2)
            c = np.zeros(H2)
            hs = np.zeros((T, H2))
            order = range(T - 1, -1, -1) if reverse else range(T)
            for t in order:
                g = x[t] @ wih + h @ whh + bias[0]
                i_g = _sigmoid(g[0 * H2:1 * H2])
                f_g = _sigmoid(g[1 * H2:2 * H2])
                g_g = np.tanh(g[2 * H2:3 * H2])
                o_g = _sigmoid(g[3 * H2:4 * H2])
                c = f_g * c + i_g * g_g
                h = o_g * np.tanh(c)
                hs[t] = h
            return hs

        hf = run(wih_f, whh_f, b_f, False)
        hb = run(wih_b, whh_b, b_b, True)
        out[b] = hf @ wtag_f + hb @ wtag_b + btag[0]
    return out


def ref_viterbi(feats, trans, start_idx, stop_idx):
    feats = np.asarray(feats, np.float32)
    trans = np.asarray(trans, np.float32)
    B, T, NT = feats.shape
    scores = np.zeros(B, np.float32)
    paths = np.zeros((B, T), np.int32)
    for b in range(B):
        fv = np.full(NT, -10000.0, np.float32)
        fv[start_idx] = 0.0
        bps = np.zeros((T, NT), np.int32)
        for t in range(T):
            m = fv[None, :] + trans                 # [next, prev]
            bps[t] = np.argmax(m, axis=1)
            fv = m.max(axis=1) + feats[b, t]
        term = fv + trans[stop_idx]
        best = int(np.argmax(term))
        scores[b] = term[best]
        path = np.zeros(T, np.int32)
        path[T - 1] = best
        for t in range(T - 1, 0, -1):
            best = bps[t, best]
            path[t - 1] = best
        paths[b] = path
    return scores, paths


if __name__ == "__main__":
    # Model hyper-params (small, consistent with the module's __init__).
    V, E, H = 20, 16, 32            # vocab, embedding_dim, hidden_dim
    H2 = H // 2
    tag2idx = {"B": 0, "I": 1, "O": 2, "<START>": 3, "<STOP>": 4}
    NT = len(tag2idx)
    B, T = 8, 8                     # batch split into 2 "parallel" blocks of 4 (feeds v7x's 2 TCs)
    start_idx, stop_idx = tag2idx["<START>"], tag2idx["<STOP>"]

    key = jax.random.PRNGKey(0)
    ks = jax.random.split(key, 12)

    def u(k, shape, scale):
        return jax.random.uniform(k, shape, jnp.float32, -scale, scale)

    def bf16r(x):                   # round weights to bf16-representable values (kernel uses bf16)
        return x.astype(jnp.bfloat16).astype(jnp.float32)

    s_lstm = 1.0 / np.sqrt(H2)
    s_lin = 1.0 / np.sqrt(H)
    emb_table = jax.random.normal(ks[0], (V, E), jnp.float32)         # nn.Embedding weight
    wih_f = u(ks[1], (E, 4 * H2), s_lstm)                             # LSTM fwd input weights (gates stacked)
    whh_f = bf16r(u(ks[2], (H2, 4 * H2), s_lstm))
    b_f = u(ks[3], (1, 4 * H2), s_lstm)                               # b_ih + b_hh combined
    wih_b = u(ks[4], (E, 4 * H2), s_lstm)                             # LSTM reverse direction
    whh_b = bf16r(u(ks[5], (H2, 4 * H2), s_lstm))
    b_b = u(ks[6], (1, 4 * H2), s_lstm)
    wtag_f = bf16r(u(ks[7], (H2, NT), s_lin))                         # hidden2tag split (fwd / bwd halves)
    wtag_b = bf16r(u(ks[8], (H2, NT), s_lin))
    btag = u(ks[9], (1, NT), s_lin)
    transitions = jax.random.normal(ks[10], (NT, NT), jnp.float32)
    transitions = transitions.at[start_idx, :].set(-10000.0)
    transitions = transitions.at[:, stop_idx].set(-10000.0)

    tokens = jax.random.randint(ks[11], (B, T), 0, V)

    # Fused Pallas kernel: BiLSTM + hidden2tag + Viterbi decode in one pallas_call.
    feats, score, path = bilstm_crf_forward(
        tokens, emb_table, wih_f, whh_f, b_f, wih_b, whh_b, b_b,
        wtag_f, wtag_b, btag, transitions,
        start_idx=start_idx, stop_idx=stop_idx, block_b=4)
    jax.block_until_ready((feats, score, path))

    # Sanity checks against pure-numpy references.
    emb = np.asarray(jnp.take(emb_table, tokens, axis=0))             # (B, T, E)
    feats_ref = ref_bilstm_feats(emb, wih_f, whh_f, b_f, wih_b, whh_b, b_b,
                                 wtag_f, wtag_b, btag)
    np.testing.assert_allclose(np.asarray(feats), feats_ref, rtol=5e-2, atol=5e-2)
    ref_score, ref_path = ref_viterbi(np.asarray(feats), np.asarray(transitions),
                                      start_idx, stop_idx)
    np.testing.assert_allclose(np.asarray(score), ref_score, rtol=1e-4, atol=1e-3)
    assert np.array_equal(np.asarray(path), ref_path)

    print("KERNEL_OK")
</pallas_src>

<mosaic_0001>
module attributes {stable_mosaic.version = 11 : i64} {
  func.func @bilstm_crf_kernel(%arg0: i32, %arg1: memref<4x8x128xf32, #tpu.memory_space<vmem>>, %arg2: memref<16x64xbf16, #tpu.memory_space<vmem>>, %arg3: memref<16x64xbf16, #tpu.memory_space<vmem>>, %arg4: memref<16x5xbf16, #tpu.memory_space<vmem>>, %arg5: memref<16x5xbf16, #tpu.memory_space<vmem>>, %arg6: memref<1x5xf32, #tpu.memory_space<vmem>>, %arg7: memref<5x5xf32, #tpu.memory_space<vmem>>, %arg8: memref<4x8x5xf32, #tpu.memory_space<vmem>>, %arg9: memref<4x1x1xf32, #tpu.memory_space<vmem>>, %arg10: memref<4x1x8xi32, #tpu.memory_space<vmem>>, %arg11: memref<32x16xf32, #tpu.memory_space<vmem>>, %arg12: memref<32x16xf32, #tpu.memory_space<vmem>>) attributes {dimension_semantics = [#tpu.dimension_semantics<parallel>], iteration_bounds = array<i64: 2>, scalar_prefetch = 0 : i64, scratch_operands = 2 : i64, tpu.core_type = #tpu.core_type<tc>, window_params = [{transform_indices = @transform_0, window_bounds = array<i64: 4, 8, 128>}, {pipeline_mode = #tpu.pipeline_mode<synchronous>, transform_indices = @transform_1, window_bounds = array<i64: 16, 64>}, {pipeline_mode = #tpu.pipeline_mode<synchronous>, transform_indices = @transform_2, window_bounds = array<i64: 16, 64>}, {pipeline_mode = #tpu.pipeline_mode<synchronous>, transform_indices = @transform_3, window_bounds = array<i64: 16, 5>}, {pipeline_mode = #tpu.pipeline_mode<synchronous>, transform_indices = @transform_4, window_bounds = array<i64: 16, 5>}, {pipeline_mode = #tpu.pipeline_mode<synchronous>, transform_indices = @transform_5, window_bounds = array<i64: 1, 5>}, {pipeline_mode = #tpu.pipeline_mode<synchronous>, transform_indices = @transform_6, window_bounds = array<i64: 5, 5>}, {transform_indices = @transform_7, window_bounds = array<i64: 4, 8, 5>}, {transform_indices = @transform_8, window_bounds = array<i64: 4, 1, 1>}, {transform_indices = @transform_9, window_bounds = array<i64: 4, 1, 8>}]} {
    %c0 = arith.constant 0 : index
    %c0_0 = arith.constant 0 : index
    %0 = vector.load %arg2[%c0, %c0_0] : memref<16x64xbf16, #tpu.memory_space<vmem>>, vector<16x64xbf16>
    %c0_1 = arith.constant 0 : index
    %c0_2 = arith.constant 0 : index
    %1 = vector.load %arg3[%c0_1, %c0_2] : memref<16x64xbf16, #tpu.memory_space<vmem>>, vector<16x64xbf16>
    %cst = arith.constant 0.000000e+00 : f32
    %2 = vector.broadcast %cst : f32 to vector<4x16xf32>
    %cst_3 = arith.constant 0.000000e+00 : f32
    %3 = vector.broadcast %cst_3 : f32 to vector<4x16xf32>
    %cst_4 = arith.constant 0.000000e+00 : f32
    %4 = vector.broadcast %cst_4 : f32 to vector<4x16xf32>
    %cst_5 = arith.constant 0.000000e+00 : f32
    %5 = vector.broadcast %cst_5 : f32 to vector<4x16xf32>
    %c0_6 = arith.constant 0 : index
    %c0_7 = arith.constant 0 : index
    %c0_8 = arith.constant 0 : index
    %6 = vector.load %arg1[%c0_6, %c0_7, %c0_8] : memref<4x8x128xf32, #tpu.memory_space<vmem>>, vector<4x1x128xf32>
    %7 = vector.shape_cast %6 : vector<4x1x128xf32> to vector<4x128xf32>
    %c0_9 = arith.constant 0 : index
    %c7 = arith.constant 7 : index
    %c0_10 = arith.constant 0 : index
    %8 = vector.load %arg1[%c0_9, %c7, %c0_10] : memref<4x8x128xf32, #tpu.memory_space<vmem>>, vector<4x1x128xf32>
    %9 = vector.shape_cast %8 : vector<4x1x128xf32> to vector<4x128xf32>
    %10 = vector.extract_strided_slice %7 {offsets = [0, 0], sizes = [4, 64], strides = [1, 1]} : vector<4x128xf32> to vector<4x64xf32>
    %11 = arith.truncf %2 : vector<4x16xf32> to vector<4x16xbf16>
    %cst_11 = arith.constant dense<0.000000e+00> : vector<4x64xf32>
    %12 = tpu.matmul %11, %0, %cst_11 {dimension_numbers = #tpu.dot_dimension_numbers<[1], [0], [0], [1], [0, 0, 1, 1], [], []>} : vector<4x16xbf16>, vector<16x64xbf16>, vector<4x64xf32> -> vector<4x64xf32>
    %13 = arith.addf %10, %12 : vector<4x64xf32>
    %14 = vector.extract_strided_slice %13 {offsets = [0, 0], sizes = [4, 16], strides = [1, 1]} : vector<4x64xf32> to vector<4x16xf32>
    %15 = arith.negf %14 : vector<4x16xf32>
    %16 = math.exp %15 : vector<4x16xf32>
    %cst_12 = arith.constant 1.000000e+00 : f32
    %17 = vector.broadcast %cst_12 : f32 to vector<4x16xf32>
    %18 = arith.addf %17, %16 : vector<4x16xf32>
    %19 = arith.divf %17, %18 : vector<4x16xf32>
    %20 = vector.extract_strided_slice %13 {offsets = [0, 16], sizes = [4, 16], strides = [1, 1]} : vector<4x64xf32> to vector<4x16xf32>
    %21 = arith.negf %20 : vector<4x16xf32>
    %22 = math.exp %21 : vector<4x16xf32>
    %cst_13 = arith.constant 1.000000e+00 : f32
    %23 = vector.broadcast %cst_13 : f32 to vector<4x16xf32>
    %24 = arith.addf %23, %22 : vector<4x16xf32>
    %25 = arith.divf %23, %24 : vector<4x16xf32>
    %26 = vector.extract_strided_slice %13 {offsets = [0, 32], sizes = [4, 16], strides = [1, 1]} : vector<4x64xf32> to vector<4x16xf32>
    %27 = math.tanh %26 : vector<4x16xf32>
    %28 = vector.extract_strided_slice %13 {offsets = [0, 48], sizes = [4, 16], strides = [1, 1]} : vector<4x64xf32> to vector<4x16xf32>
    %29 = arith.negf %28 : vector<4x16xf32>
    %30 = math.exp %29 : vector<4x16xf32>
    %cst_14 = arith.constant 1.000000e+00 : f32
    %31 = vector.broadcast %cst_14 : f32 to vector<4x16xf32>
    %32 = arith.addf %31, %30 : vector<4x16xf32>
    %33 = arith.divf %31, %32 : vector<4x16xf32>
    %34 = arith.mulf %25, %3 : vector<4x16xf32>
    %35 = arith.mulf %19, %27 : vector<4x16xf32>
    %36 = arith.addf %34, %35 : vector<4x16xf32>
    %37 = math.tanh %36 : vector<4x16xf32>
    %38 = arith.mulf %33, %37 : vector<4x16xf32>
    %39 = vector.extract_strided_slice %9 {offsets = [0, 64], sizes = [4, 64], strides = [1, 1]} : vector<4x128xf32> to vector<4x64xf32>
    %40 = arith.truncf %4 : vector<4x16xf32> to vector<4x16xbf16>
    %cst_15 = arith.constant dense<0.000000e+00> : vector<4x64xf32>
    %41 = tpu.matmul %40, %1, %cst_15 {dimension_numbers = #tpu.dot_dimension_numbers<[1], [0], [0], [1], [0, 0, 1, 1], [], []>} : vector<4x16xbf16>, vector<16x64xbf16>, vector<4x64xf32> -> vector<4x64xf32>
    %42 = arith.addf %39, %41 : vector<4x64xf32>
    %43 = vector.extract_strided_slice %42 {offsets = [0, 0], sizes = [4, 16], strides = [1, 1]} : vector<4x64xf32> to vector<4x16xf32>
    %44 = arith.negf %43 : vector<4x16xf32>
    %45 = math.exp %44 : vector<4x16xf32>
    %cst_16 = arith.constant 1.000000e+00 : f32
    %46 = vector.broadcast %cst_16 : f32 to vector<4x16xf32>
    %47 = arith.addf %46, %45 : vector<4x16xf32>
    %48 = arith.divf %46, %47 : vector<4x16xf32>
    %49 = vector.extract_strided_slice %42 {offsets = [0, 16], sizes = [4, 16], strides = [1, 1]} : vector<4x64xf32> to vector<4x16xf32>
    %50 = arith.negf %49 : vector<4x16xf32>
    %51 = math.exp %50 : vector<4x16xf32>
    %cst_17 = arith.constant 1.000000e+00 : f32
    %52 = vector.broadcast %cst_17 : f32 to vector<4x16xf32>
    %53 = arith.addf %52, %51 : vector<4x16xf32>
    %54 = arith.divf %52, %53 : vector<4x16xf32>
    %55 = vector.extract_strided_slice %42 {offsets = [0, 32], sizes = [4, 16], strides = [1, 1]} : vector<4x64xf32> to vector<4x16xf32>
    %56 = math.tanh %55 : vector<4x16xf32>
    %57 = vector.extract_strided_slice %42 {offsets = [0, 48], sizes = [4, 16], strides = [1, 1]} : vector<4x64xf32> to vector<4x16xf32>
    %58 = arith.negf %57 : vector<4x16xf32>
    %59 = math.exp %58 : vector<4x16xf32>
    %cst_18 = arith.constant 1.000000e+00 : f32
    %60 = vector.broadcast %cst_18 : f32 to vector<4x16xf32>
    %61 = arith.addf %60, %59 : vector<4x16xf32>
    %62 = arith.divf %60, %61 : vector<4x16xf32>
    %63 = arith.mulf %54, %5 : vector<4x16xf32>
    %64 = arith.mulf %48, %56 : vector<4x16xf32>
    %65 = arith.addf %63, %64 : vector<4x16xf32>
    %66 = math.tanh %65 : vector<4x16xf32>
    %67 = arith.mulf %62, %66 : vector<4x16xf32>
    %c0_19 = arith.constant 0 : index
    %c0_20 = arith.constant 0 : index
    %68 = vector.load %arg11[%c0_19, %c0_20] : memref<32x16xf32, #tpu.memory_space<vmem>>, vector<4x16xf32>
    tpu.vector_store %arg11[%c0_19, %c0_20], %38 {strides = array<i32>} : memref<32x16xf32, #tpu.memory_space<vmem>>, vector<4x16xf32>,
    %c28 = arith.constant 28 : index
    %c0_21 = arith.constant 0 : index
    %69 = vector.load %arg12[%c28, %c0_21] : memref<32x16xf32, #tpu.memory_space<vmem>>, vector<4x16xf32>
    tpu.vector_store %arg12[%c28, %c0_21], %67 {strides = array<i32>} : memref<32x16xf32, #tpu.memory_space<vmem>>, vector<4x16xf32>,
    %c0_22 = arith.constant 0 : index
    %c1 = arith.constant 1 : index
    %c0_23 = arith.constant 0 : index
    %70 = vector.load %arg1[%c0_22, %c1, %c0_23] : memref<4x8x128xf32, #tpu.memory_space<vmem>>, vector<4x1x128xf32>
    %71 = vector.shape_cast %70 : vector<4x1x128xf32> to vector<4x128xf32>
    %c0_24 = arith.constant 0 : index
    %c6 = arith.constant 6 : index
    %c0_25 = arith.constant 0 : index
    %72 = vector.load %arg1[%c0_24, %c6, %c0_25] : memref<4x8x128xf32, #tpu.memory_space<vmem>>, vector<4x1x128xf32>
    %73 = vector.shape_cast %72 : vector<4x1x128xf32> to vector<4x128xf32>
    %74 = vector.extract_strided_slice %71 {offsets = [0, 0], sizes = [4, 64], strides = [1, 1]} : vector<4x128xf32> to vector<4x64xf32>
    %75 = arith.truncf %38 : vector<4x16xf32> to vector<4x16xbf16>
    %cst_26 = arith.constant dense<0.000000e+00> : vector<4x64xf32>
    %76 = tpu.matmul %75, %0, %cst_26 {dimension_numbers = #tpu.dot_dimension_numbers<[1], [0], [0], [1], [0, 0, 1, 1], [], []>} : vector<4x16xbf16>, vector<16x64xbf16>, vector<4x64xf32> -> vector<4x64xf32>
    %77 = arith.addf %74, %76 : vector<4x64xf32>
    %78 = vector.extract_strided_slice %77 {offsets = [0, 0], sizes = [4, 16], strides = [1, 1]} : vector<4x64xf32> to vector<4x16xf32>
    %79 = arith.negf %78 : vector<4x16xf32>
    %80 = math.exp %79 : vector<4x16xf32>
    %cst_27 = arith.constant 1.000000e+00 : f32
    %81 = vector.broadcast %cst_27 : f32 to vector<4x16xf32>
    %82 = arith.addf %81, %80 : vector<4x16xf32>
    %83 = arith.divf %81, %82 : vector<4x16xf32>
    %84 = vector.extract_strided_slice %77 {offsets = [0, 16], sizes = [4, 16], strides = [1, 1]} : vector<4x64xf32> to vector<4x16xf32>
    %85 = arith.negf %84 : vector<4x16xf32>
    %86 = math.exp %85 : vector<4x16xf32>
    %cst_28 = arith.constant 1.000000e+00 : f32
    %87 = vector.broadcast %cst_28 : f32 to vector<4x16xf32>
    %88 = arith.addf %87, %86 : vector<4x16xf32>
    %89 = arith.divf %87, %88 : vector<4x16xf32>
    %90 = vector.extract_strided_slice %77 {offsets = [0, 32], sizes = [4, 16], strides = [1, 1]} : vector<4x64xf32> to vector<4x16xf32>
    %91 = math.tanh %90 : vector<4x16xf32>
    %92 = vector.extract_strided_slice %77 {offsets = [0, 48], sizes = [4, 16], strides = [1, 1]} : vector<4x64xf32> to vector<4x16xf32>
    %93 = arith.negf %92 : vector<4x16xf32>
    %94 = math.exp %93 : vector<4x16xf32>
    %cst_29 = arith.constant 1.000000e+00 : f32
    %95 = vector.broadcast %cst_29 : f32 to vector<4x16xf32>
    %96 = arith.addf %95, %94 : vector<4x16xf32>
    %97 = arith.divf %95, %96 : vector<4x16xf32>
    %98 = arith.mulf %89, %36 : vector<4x16xf32>
    %99 = arith.mulf %83, %91 : vector<4x16xf32>
    %100 = arith.addf %98, %99 : vector<4x16xf32>
    %101 = math.tanh %100 : vector<4x16xf32>
    %102 = arith.mulf %97, %101 : vector<4x16xf32>
    %103 = vector.extract_strided_slice %73 {offsets = [0, 64], sizes = [4, 64], strides = [1, 1]} : vector<4x128xf32> to vector<4x64xf32>
    %104 = arith.truncf %67 : vector<4x16xf32> to vector<4x16xbf16>
    %cst_30 = arith.constant dense<0.000000e+00> : vector<4x64xf32>
    %105 = tpu.matmul %104, %1, %cst_30 {dimension_numbers = #tpu.dot_dimension_numbers<[1], [0], [0], [1], [0, 0, 1, 1], [], []>} : vector<4x16xbf16>, vector<16x64xbf16>, vector<4x64xf32> -> vector<4x64xf32>
    %106 = arith.addf %103, %105 : vector<4x64xf32>
    %107 = vector.extract_strided_slice %106 {offsets = [0, 0], sizes = [4, 16], strides = [1, 1]} : vector<4x64xf32> to vector<4x16xf32>
    %108 = arith.negf %107 : vector<4x16xf32>
    %109 = math.exp %108 : vector<4x16xf32>
    %cst_31 = arith.constant 1.000000e+00 : f32
    %110 = vector.broadcast %cst_31 : f32 to vector<4x16xf32>
    %111 = arith.addf %110, %109 : vector<4x16xf32>
    %112 = arith.divf %110, %111 : vector<4x16xf32>
    %113 = vector.extract_strided_slice %106 {offsets = [0, 16], sizes = [4, 16], strides = [1, 1]} : vector<4x64xf32> to vector<4x16xf32>
    %114 = arith.negf %113 : vector<4x16xf32>
    %115 = math.exp %114 : vector<4x16xf32>
    %cst_32 = arith.constant 1.000000e+00 : f32
    %116 = vector.broadcast %cst_32 : f32 to vector<4x16xf32>
    %117 = arith.addf %116, %115 : vector<4x16xf32>
    %118 = arith.divf %116, %117 : vector<4x16xf32>
    %119 = vector.extract_strided_slice %106 {offsets = [0, 32], sizes = [4, 16], strides = [1, 1]} : vector<4x64xf32> to vector<4x16xf32>
    %120 = math.tanh %119 : vector<4x16xf32>
    %121 = vector.extract_strided_slice %106 {offsets = [0, 48], sizes = [4, 16], strides = [1, 1]} : vector<4x64xf32> to vector<4x16xf32>
    %122 = arith.negf %121 : vector<4x16xf32>
    %123 = math.exp %122 : vector<4x16xf32>
    %cst_33 = arith.constant 1.000000e+00 : f32
    %124 = vector.broadcast %cst_33 : f32 to vector<4x16xf32>
    %125 = arith.addf %124, %123 : vector<4x16xf32>
    %126 = arith.divf %124, %125 : vector<4x16xf32>
    %127 = arith.mulf %118, %65 : vector<4x16xf32>
    %128 = arith.mulf %112, %120 : vector<4x16xf32>
    %129 = arith.addf %127, %128 : vector<4x16xf32>
    %130 = math.tanh %129 : vector<4x16xf32>
    %131 = arith.mulf %126, %130 : vector<4x16xf32>
    %c4 = arith.constant 4 : index
    %c0_34 = arith.constant 0 : index
    %132 = vector.load %arg11[%c4, %c0_34] : memref<32x16xf32, #tpu.memory_space<vmem>>, vector<4x16xf32>
    tpu.vector_store %arg11[%c4, %c0_34], %102 {strides = array<i32>} : memref<32x16xf32, #tpu.memory_space<vmem>>, vector<4x16xf32>,
    %c24 = arith.constant 24 : index
    %c0_35 = arith.constant 0 : index
    %133 = vector.load %arg12[%c24, %c0_35] : memref<32x16xf32, #tpu.memory_space<vmem>>, vector<4x16xf32>
    tpu.vector_store %arg12[%c24, %c0_35], %131 {strides = array<i32>} : memref<32x16xf32, #tpu.memory_space<vmem>>, vector<4x16xf32>,
    %c0_36 = arith.constant 0 : index
    %c2 = arith.constant 2 : index
    %c0_37 = arith.constant 0 : index
    %134 = vector.load %arg1[%c0_36, %c2, %c0_37] : memref<4x8x128xf32, #tpu.memory_space<vmem>>, vector<4x1x128xf32>
    %135 = vector.shape_cast %134 : vector<4x1x128xf32> to vector<4x128xf32>
    %c0_38 = arith.constant 0 : index
    %c5 = arith.constant 5 : index
    %c0_39 = arith.constant 0 : index
    %136 = vector.load %arg1[%c0_38, %c5, %c0_39] : memref<4x8x128xf32, #tpu.memory_space<vmem>>, vector<4x1x128xf32>
    %137 = vector.shape_cast %136 : vector<4x1x128xf32> to vector<4x128xf32>
    %138 = vector.extract_strided_slice %135 {offsets = [0, 0], sizes = [4, 64], strides = [1, 1]} : vector<4x128xf32> to vector<4x64xf32>
    %139 = arith.truncf %102 : vector<4x16xf32> to vector<4x16xbf16>
    %cst_40 = arith.constant dense<0.000000e+00> : vector<4x64xf32>
    %140 = tpu.matmul %139, %0, %cst_40 {dimension_numbers = #tpu.dot_dimension_numbers<[1], [0], [0], [1], [0, 0, 1, 1], [], []>} : vector<4x16xbf16>, vector<16x64xbf16>, vector<4x64xf32> -> vector<4x64xf32>
    %141 = arith.addf %138, %140 : vector<4x64xf32>
    %142 = vector.extract_strided_slice %141 {offsets = [0, 0], sizes = [4, 16], strides = [1, 1]} : vector<4x64xf32> to vector<4x16xf32>
    %143 = arith.negf %142 : vector<4x16xf32>
    %144 = math.exp %143 : vector<4x16xf32>
    %cst_41 = arith.constant 1.000000e+00 : f32
    %145 = vector.broadcast %cst_41 : f32 to vector<4x16xf32>
    %146 = arith.addf %145, %144 : vector<4x16xf32>
    %147 = arith.divf %145, %146 : vector<4x16xf32>
    %148 = vector.extract_strided_slice %141 {offsets = [0, 16], sizes = [4, 16], strides = [1, 1]} : vector<4x64xf32> to vector<4x16xf32>
    %149 = arith.negf %148 : vector<4x16xf32>
    %150 = math.exp %149 : vector<4x16xf32>
    %cst_42 = arith.constant 1.000000e+00 : f32
    %151 = vector.broadcast %cst_42 : f32 to vector<4x16xf32>
    %152 = arith.addf %151, %150 : vector<4x16xf32>
    %153 = arith.divf %151, %152 : vector<4x16xf32>
    %154 = vector.extract_strided_slice %141 {offsets = [0, 32], sizes = [4, 16], strides = [1, 1]} : vector<4x64xf32> to vector<4x16xf32>
    %155 = math.tanh %154 : vector<4x16xf32>
    %156 = vector.extract_strided_slice %141 {offsets = [0, 48], sizes = [4, 16], strides = [1, 1]} : vector<4x64xf32> to vector<4x16xf32>
    %157 = arith.negf %156 : vector<4x16xf32>
    %158 = math.exp %157 : vector<4x16xf32>
    %cst_43 = arith.constant 1.000000e+00 : f32
    %159 = vector.broadcast %cst_43 : f32 to vector<4x16xf32>
    %160 = arith.addf %159, %158 : vector<4x16xf32>
    %161 = arith.divf %159, %160 : vector<4x16xf32>
    %162 = arith.mulf %153, %100 : vector<4x16xf32>
    %163 = arith.mulf %147, %155 : vector<4x16xf32>
    %164 = arith.addf %162, %163 : vector<4x16xf32>
    %165 = math.tanh %164 : vector<4x16xf32>
    %166 = arith.mulf %161, %165 : vector<4x16xf32>
    %167 = vector.extract_strided_slice %137 {offsets = [0, 64], sizes = [4, 64], strides = [1, 1]} : vector<4x128xf32> to vector<4x64xf32>
    %168 = arith.truncf %131 : vector<4x16xf32> to vector<4x16xbf16>
    %cst_44 = arith.constant dense<0.000000e+00> : vector<4x64xf32>
    %169 = tpu.matmul %168, %1, %cst_44 {dimension_numbers = #tpu.dot_dimension_numbers<[1], [0], [0], [1], [0, 0, 1, 1], [], []>} : vector<4x16xbf16>, vector<16x64xbf16>, vector<4x64xf32> -> vector<4x64xf32>
    %170 = arith.addf %167, %169 : vector<4x64xf32>
    %171 = vector.extract_strided_slice %170 {offsets = [0, 0], sizes = [4, 16], strides = [1, 1]} : vector<4x64xf32> to vector<4x16xf32>
    %172 = arith.negf %171 : vector<4x16xf32>
    %173 = math.exp %172 : vector<4x16xf32>
    %cst_45 = arith.constant 1.000000e+00 : f32
    %174 = vector.broadcast %cst_45 : f32 to vector<4x16xf32>
    %175 = arith.addf %174, %173 : vector<4x16xf32>
    %176 = arith.divf %174, %175 : vector<4x16xf32>
    %177 = vector.extract_strided_slice %170 {offsets = [0, 16], sizes = [4, 16], strides = [1, 1]} : vector<4x64xf32> to vector<4x16xf32>
    %178 = arith.negf %177 : vector<4x16xf32>
    %179 = math.exp %178 : vector<4x16xf32>
    %cst_46 = arith.constant 1.000000e+00 : f32
    %180 = vector.broadcast %cst_46 : f32 to vector<4x16xf32>
    %181 = arith.addf %180, %179 : vector<4x16xf32>
    %182 = arith.divf %180, %181 : vector<4x16xf32>
    %183 = vector.extract_strided_slice %170 {offsets = [0, 32], sizes = [4, 16], strides = [1, 1]} : vector<4x64xf32> to vector<4x16xf32>
    %184 = math.tanh %183 : vector<4x16xf32>
    %185 = vector.extract_strided_slice %170 {offsets = [0, 48], sizes = [4, 16], strides = [1, 1]} : vector<4x64xf32> to vector<4x16xf32>
    %186 = arith.negf %185 : vector<4x16xf32>
    %187 = math.exp %186 : vector<4x16xf32>
    %cst_47 = arith.constant 1.000000e+00 : f32
    %188 = vector.broadcast %cst_47 : f32 to vector<4x16xf32>
    %189 = arith.addf %188, %187 : vector<4x16xf32>
    %190 = arith.divf %188, %189 : vector<4x16xf32>
    %191 = arith.mulf %182, %129 : vector<4x16xf32>
    %192 = arith.mulf %176, %184 : vector<4x16xf32>
    %193 = arith.addf %191, %192 : vector<4x16xf32>
    %194 = math.tanh %193 : vector<4x16xf32>
    %195 = arith.mulf %190, %194 : vector<4x16xf32>
    %c8 = arith.constant 8 : index
    %c0_48 = arith.constant 0 : index
    %196 = vector.load %arg11[%c8, %c0_48] : memref<32x16xf32, #tpu.memory_space<vmem>>, vector<4x16xf32>
    tpu.vector_store %arg11[%c8, %c0_48], %166 {strides = array<i32>} : memref<32x16xf32, #tpu.memory_space<vmem>>, vector<4x16xf32>,
    %c20 = arith.constant 20 : index
    %c0_49 = arith.constant 0 : index
    %197 = vector.load %arg12[%c20, %c0_49] : memref<32x16xf32, #tpu.memory_space<vmem>>, vector<4x16xf32>
    tpu.vector_store %arg12[%c20, %c0_49], %195 {strides = array<i32>} : memref<32x16xf32, #tpu.memory_space<vmem>>, vector<4x16xf32>,
    %c0_50 = arith.constant 0 : index
    %c3 = arith.constant 3 : index
    %c0_51 = arith.constant 0 : index
    %198 = vector.load %arg1[%c0_50, %c3, %c0_51] : memref<4x8x128xf32, #tpu.memory_space<vmem>>, vector<4x1x128xf32>
    %199 = vector.shape_cast %198 : vector<4x1x128xf32> to vector<4x128xf32>
    %c0_52 = arith.constant 0 : index
    %c4_53 = arith.constant 4 : index
    %c0_54 = arith.constant 0 : index
    %200 = vector.load %arg1[%c0_52, %c4_53, %c0_54] : memref<4x8x128xf32, #tpu.memory_space<vmem>>, vector<4x1x128xf32>
    %201 = vector.shape_cast %200 : vector<4x1x128xf32> to vector<4x128xf32>
    %202 = vector.extract_strided_slice %199 {offsets = [0, 0], sizes = [4, 64], strides = [1, 1]} : vector<4x128xf32> to vector<4x64xf32>
    %203 = arith.truncf %166 : vector<4x16xf32> to vector<4x16xbf16>
    %cst_55 = arith.constant dense<0.000000e+00> : vector<4x64xf32>
    %204 = tpu.matmul %203, %0, %cst_55 {dimension_numbers = #tpu.dot_dimension_numbers<[1], [0], [0], [1], [0, 0, 1, 1], [], []>} : vector<4x16xbf16>, vector<16x64xbf16>, vector<4x64xf32> -> vector<4x64xf32>
    %205 = arith.addf %202, %204 : vector<4x64xf32>
    %206 = vector.extract_strided_slice %205 {offsets = [0, 0], sizes = [4, 16], strides = [1, 1]} : vector<4x64xf32> to vector<4x16xf32>
    %207 = arith.negf %206 : vector<4x16xf32>
    %208 = math.exp %207 : vector<4x16xf32>
    %cst_56 = arith.constant 1.000000e+00 : f32
    %209 = vector.broadcast %cst_56 : f32 to vector<4x16xf32>
    %210 = arith.addf %209, %208 : vector<4x16xf32>
    %211 = arith.divf %209, %210 : vector<4x16xf32>
    %212 = vector.extract_strided_slice %205 {offsets = [0, 16], sizes = [4, 16], strides = [1, 1]} : vector<4x64xf32> to vector<4x16xf32>
    %213 = arith.negf %212 : vector<4x16xf32>
    %214 = math.exp %213 : vector<4x16xf32>
    %cst_57 = arith.constant 1.000000e+00 : f32
    %215 = vector.broadcast %cst_57 : f32 to vector<4x16xf32>
    %216 = arith.addf %215, %214 : vector<4x16xf32>
    %217 = arith.divf %215, %216 : vector<4x16xf32>
    %218 = vector.extract_strided_slice %205 {offsets = [0, 32], sizes = [4, 16], strides = [1, 1]} : vector<4x64xf32> to vector<4x16xf32>
    %219 = math.tanh %218 : vector<4x16xf32>
    %220 = vector.extract_strided_slice %205 {offsets = [0, 48], sizes = [4, 16], strides = [1, 1]} : vector<4x64xf32> to vector<4x16xf32>
    %221 = arith.negf %220 : vector<4x16xf32>
    %222 = math.exp %221 : vector<4x16xf32>
    %cst_58 = arith.constant 1.000000e+00 : f32
    %223 = vector.broadcast %cst_58 : f32 to vector<4x16xf32>
    %224 = arith.addf %223, %222 : vector<4x16xf32>
    %225 = arith.divf %223, %224 : vector<4x16xf32>
    %226 = arith.mulf %217, %164 : vector<4x16xf32>
    %227 = arith.mulf %211, %219 : vector<4x16xf32>
    %228 = arith.addf %226, %227 : vector<4x16xf32>
    %229 = math.tanh %228 : vector<4x16xf32>
    %230 = arith.mulf %225, %229 : vector<4x16xf32>
    %231 = vector.extract_strided_slice %201 {offsets = [0, 64], sizes = [4, 64], strides = [1, 1]} : vector<4x128xf32> to vector<4x64xf32>
    %232 = arith.truncf %195 : vector<4x16xf32> to vector<4x16xbf16>
    %cst_59 = arith.constant dense<0.000000e+00> : vector<4x64xf32>
    %233 = tpu.matmul %232, %1, %cst_59 {dimension_numbers = #tpu.dot_dimension_numbers<[1], [0], [0], [1], [0, 0, 1, 1], [], []>} : vector<4x16xbf16>, vector<16x64xbf16>, vector<4x64xf32> -> vector<4x64xf32>
    %234 = arith.addf %231, %233 : vector<4x64xf32>
    %235 = vector.extract_strided_slice %234 {offsets = [0, 0], sizes = [4, 16], strides = [1, 1]} : vector<4x64xf32> to vector<4x16xf32>
    %236 = arith.negf %235 : vector<4x16xf32>
    %237 = math.exp %236 : vector<4x16xf32>
    %cst_60 = arith.constant 1.000000e+00 : f32
    %238 = vector.broadcast %cst_60 : f32 to vector<4x16xf32>
    %239 = arith.addf %238, %237 : vector<4x16xf32>
    %240 = arith.divf %238, %239 : vector<4x16xf32>
    %241 = vector.extract_strided_slice %234 {offsets = [0, 16], sizes = [4, 16], strides = [1, 1]} : vector<4x64xf32> to vector<4x16xf32>
    %242 = arith.negf %241 : vector<4x16xf32>
    %243 = math.exp %242 : vector<4x16xf32>
    %cst_61 = arith.constant 1.000000e+00 : f32
    %244 = vector.broadcast %cst_61 : f32 to vector<4x16xf32>
    %245 = arith.addf %244, %243 : vector<4x16xf32>
    %246 = arith.divf %244, %245 : vector<4x16xf32>
    %247 = vector.extract_strided_slice %234 {offsets = [0, 32], sizes = [4, 16], strides = [1, 1]} : vector<4x64xf32> to vector<4x16xf32>
    %248 = math.tanh %247 : vector<4x16xf32>
    %249 = vector.extract_strided_slice %234 {offsets = [0, 48], sizes = [4, 16], strides = [1, 1]} : vector<4x64xf32> to vector<4x16xf32>
    %250 = arith.negf %249 : vector<4x16xf32>
    %251 = math.exp %250 : vector<4x16xf32>
    %cst_62 = arith.constant 1.000000e+00 : f32
    %252 = vector.broadcast %cst_62 : f32 to vector<4x16xf32>
    %253 = arith.addf %252, %251 : vector<4x16xf32>
    %254 = arith.divf %252, %253 : vector<4x16xf32>
    %255 = arith.mulf %246, %193 : vector<4x16xf32>
    %256 = arith.mulf %240, %248 : vector<4x16xf32>
    %257 = arith.addf %255, %256 : vector<4x16xf32>
    %258 = math.tanh %257 : vector<4x16xf32>
    %259 = arith.mulf %254, %258 : vector<4x16xf32>
    %c12 = arith.constant 12 : index
    %c0_63 = arith.constant 0 : index
    %260 = vector.load %arg11[%c12, %c0_63] : memref<32x16xf32, #tpu.memory_space<vmem>>, vector<4x16xf32>
    tpu.vector_store %arg11[%c12, %c0_63], %230 {strides = array<i32>} : memref<32x16xf32, #tpu.memory_space<vmem>>, vector<4x16xf32>,
    %c16 = arith.constant 16 : index
    %c0_64 = arith.constant 0 : index
    %261 = vector.load %arg12[%c16, %c0_64] : memref<32x16xf32, #tpu.memory_space<vmem>>, vector<4x16xf32>
    tpu.vector_store %arg12[%c16, %c0_64], %259 {strides = array<i32>} : memref<32x16xf32, #tpu.memory_space<vmem>>, vector<4x16xf32>,
    %c0_65 = arith.constant 0 : index
    %c4_66 = arith.constant 4 : index
    %c0_67 = arith.constant 0 : index
    %262 = vector.load %arg1[%c0_65, %c4_66, %c0_67] : memref<4x8x128xf32, #tpu.memory_space<vmem>>, vector<4x1x128xf32>
    %263 = vector.shape_cast %262 : vector<4x1x128xf32> to vector<4x128xf32>
    %c0_68 = arith.constant 0 : index
    %c3_69 = arith.constant 3 : index
    %c0_70 = arith.constant 0 : index
    %264 = vector.load %arg1[%c0_68, %c3_69, %c0_70] : memref<4x8x128xf32, #tpu.memory_space<vmem>>, vector<4x1x128xf32>
    %265 = vector.shape_cast %264 : vector<4x1x128xf32> to vector<4x128xf32>
    %266 = vector.extract_strided_slice %263 {offsets = [0, 0], sizes = [4, 64], strides = [1, 1]} : vector<4x128xf32> to vector<4x64xf32>
    %267 = arith.truncf %230 : vector<4x16xf32> to vector<4x16xbf16>
    %cst_71 = arith.constant dense<0.000000e+00> : vector<4x64xf32>
    %268 = tpu.matmul %267, %0, %cst_71 {dimension_numbers = #tpu.dot_dimension_numbers<[1], [0], [0], [1], [0, 0, 1, 1], [], []>} : vector<4x16xbf16>, vector<16x64xbf16>, vector<4x64xf32> -> vector<4x64xf32>
    %269 = arith.addf %266, %268 : vector<4x64xf32>
    %270 = vector.extract_strided_slice %269 {offsets = [0, 0], sizes = [4, 16], strides = [1, 1]} : vector<4x64xf32> to vector<4x16xf32>
    %271 = arith.negf %270 : vector<4x16xf32>
    %272 = math.exp %271 : vector<4x16xf32>
    %cst_72 = arith.constant 1.000000e+00 : f32
    %273 = vector.broadcast %cst_72 : f32 to vector<4x16xf32>
    %274 = arith.addf %273, %272 : vector<4x16xf32>
    %275 = arith.divf %273, %274 : vector<4x16xf32>
    %276 = vector.extract_strided_slice %269 {offsets = [0, 16], sizes = [4, 16], strides = [1, 1]} : vector<4x64xf32> to vector<4x16xf32>
    %277 = arith.negf %276 : vector<4x16xf32>
    %278 = math.exp %277 : vector<4x16xf32>
    %cst_73 = arith.constant 1.000000e+00 : f32
    %279 = vector.broadcast %cst_73 : f32 to vector<4x16xf32>
    %280 = arith.addf %279, %278 : vector<4x16xf32>
    %281 = arith.divf %279, %280 : vector<4x16xf32>
    %282 = vector.extract_strided_slice %269 {offsets = [0, 32], sizes = [4, 16], strides = [1, 1]} : vector<4x64xf32> to vector<4x16xf32>
    %283 = math.tanh %282 : vector<4x16xf32>
    %284 = vector.extract_strided_slice %269 {offsets = [0, 48], sizes = [4, 16], strides = [1, 1]} : vector<4x64xf32> to vector<4x16xf32>
    %285 = arith.negf %284 : vector<4x16xf32>
    %286 = math.exp %285 : vector<4x16xf32>
    %cst_74 = arith.constant 1.000000e+00 : f32
    %287 = vector.broadcast %cst_74 : f32 to vector<4x16xf32>
    %288 = arith.addf %287, %286 : vector<4x16xf32>
    %289 = arith.divf %287, %288 : vector<4x16xf32>
    %290 = arith.mulf %281, %228 : vector<4x16xf32>
    %291 = arith.mulf %275, %283 : vector<4x16xf32>
    %292 = arith.addf %290, %291 : vector<4x16xf32>
    %293 = math.tanh %292 : vector<4x16xf32>
    %294 = arith.mulf %289, %293 : vector<4x16xf32>
    %295 = vector.extract_strided_slice %265 {offsets = [0, 64], sizes = [4, 64], strides = [1, 1]} : vector<4x128xf32> to vector<4x64xf32>
    %296 = arith.truncf %259 : vector<4x16xf32> to vector<4x16xbf16>
    %cst_75 = arith.constant dense<0.000000e+00> : vector<4x64xf32>
    %297 = tpu.matmul %296, %1, %cst_75 {dimension_numbers = #tpu.dot_dimension_numbers<[1], [0], [0], [1], [0, 0, 1, 1], [], []>} : vector<4x16xbf16>, vector<16x64xbf16>, vector<4x64xf32> -> vector<4x64xf32>
    %298 = arith.addf %295, %297 : vector<4x64xf32>
    %299 = vector.extract_strided_slice %298 {offsets = [0, 0], sizes = [4, 16], strides = [1, 1]} : vector<4x64xf32> to vector<4x16xf32>
    %300 = arith.negf %299 : vector<4x16xf32>
    %301 = math.exp %300 : vector<4x16xf32>
    %cst_76 = arith.constant 1.000000e+00 : f32
    %302 = vector.broadcast %cst_76 : f32 to vector<4x16xf32>
    %303 = arith.addf %302, %301 : vector<4x16xf32>
    %304 = arith.divf %302, %303 : vector<4x16xf32>
    %305 = vector.extract_strided_slice %298 {offsets = [0, 16], sizes = [4, 16], strides = [1, 1]} : vector<4x64xf32> to vector<4x16xf32>
    %306 = arith.negf %305 : vector<4x16xf32>
    %307 = math.exp %306 : vector<4x16xf32>
    %cst_77 = arith.constant 1.000000e+00 : f32
    %308 = vector.broadcast %cst_77 : f32 to vector<4x16xf32>
    %309 = arith.addf %308, %307 : vector<4x16xf32>
    %310 = arith.divf %308, %309 : vector<4x16xf32>
    %311 = vector.extract_strided_slice %298 {offsets = [0, 32], sizes = [4, 16], strides = [1, 1]} : vector<4x64xf32> to vector<4x16xf32>
    %312 = math.tanh %311 : vector<4x16xf32>
    %313 = vector.extract_strided_slice %298 {offsets = [0, 48], sizes = [4, 16], strides = [1, 1]} : vector<4x64xf32> to vector<4x16xf32>
    %314 = arith.negf %313 : vector<4x16xf32>
    %315 = math.exp %314 : vector<4x16xf32>
    %cst_78 = arith.constant 1.000000e+00 : f32
    %316 = vector.broadcast %cst_78 : f32 to vector<4x16xf32>
    %317 = arith.addf %316, %315 : vector<4x16xf32>
    %318 = arith.divf %316, %317 : vector<4x16xf32>
    %319 = arith.mulf %310, %257 : vector<4x16xf32>
    %320 = arith.mulf %304, %312 : vector<4x16xf32>
    %321 = arith.addf %319, %320 : vector<4x16xf32>
    %322 = math.tanh %321 : vector<4x16xf32>
    %323 = arith.mulf %318, %322 : vector<4x16xf32>
    %c16_79 = arith.constant 16 : index
    %c0_80 = arith.constant 0 : index
    %324 = vector.load %arg11[%c16_79, %c0_80] : memref<32x16xf32, #tpu.memory_space<vmem>>, vector<4x16xf32>
    tpu.vector_store %arg11[%c16_79, %c0_80], %294 {strides = array<i32>} : memref<32x16xf32, #tpu.memory_space<vmem>>, vector<4x16xf32>,
    %c12_81 = arith.constant 12 : index
    %c0_82 = arith.constant 0 : index
    %325 = vector.load %arg12[%c12_81, %c0_82] : memref<32x16xf32, #tpu.memory_space<vmem>>, vector<4x16xf32>
    tpu.vector_store %arg12[%c12_81, %c0_82], %323 {strides = array<i32>} : memref<32x16xf32, #tpu.memory_space<vmem>>, vector<4x16xf32>,
    %c0_83 = arith.constant 0 : index
    %c5_84 = arith.constant 5 : index
    %c0_85 = arith.constant 0 : index
    %326 = vector.load %arg1[%c0_83, %c5_84, %c0_85] : memref<4x8x128xf32, #tpu.memory_space<vmem>>, vector<4x1x128xf32>
    %327 = vector.shape_cast %326 : vector<4x1x128xf32> to vector<4x128xf32>
    %c0_86 = arith.constant 0 : index
    %c2_87 = arith.constant 2 : index
    %c0_88 = arith.constant 0 : index
    %328 = vector.load %arg1[%c0_86, %c2_87, %c0_88] : memref<4x8x128xf32, #tpu.memory_space<vmem>>, vector<4x1x128xf32>
    %329 = vector.shape_cast %328 : vector<4x1x128xf32> to vector<4x128xf32>
    %330 = vector.extract_strided_slice %327 {offsets = [0, 0], sizes = [4, 64], strides = [1, 1]} : vector<4x128xf32> to vector<4x64xf32>
    %331 = arith.truncf %294 : vector<4x16xf32> to vector<4x16xbf16>
    %cst_89 = arith.constant dense<0.000000e+00> : vector<4x64xf32>
    %332 = tpu.matmul %331, %0, %cst_89 {dimension_numbers = #tpu.dot_dimension_numbers<[1], [0], [0], [1], [0, 0, 1, 1], [], []>} : vector<4x16xbf16>, vector<16x64xbf16>, vector<4x64xf32> -> vector<4x64xf32>
    %333 = arith.addf %330, %332 : vector<4x64xf32>
    %334 = vector.extract_strided_slice %333 {offsets = [0, 0], sizes = [4, 16], strides = [1, 1]} : vector<4x64xf32> to vector<4x16xf32>
    %335 = arith.negf %334 : vector<4x16xf32>
    %336 = math.exp %335 : vector<4x16xf32>
    %cst_90 = arith.constant 1.000000e+00 : f32
    %337 = vector.broadcast %cst_90 : f32 to vector<4x16xf32>
    %338 = arith.addf %337, %336 : vector<4x16xf32>
    %339 = arith.divf %337, %338 : vector<4x16xf32>
    %340 = vector.extract_strided_slice %333 {offsets = [0, 16], sizes = [4, 16], strides = [1, 1]} : vector<4x64xf32> to vector<4x16xf32>
    %341 = arith.negf %340 : vector<4x16xf32>
    %342 = math.exp %341 : vector<4x16xf32>
    %cst_91 = arith.constant 1.000000e+00 : f32
    %343 = vector.broadcast %cst_91 : f32 to vector<4x16xf32>
    %344 = arith.addf %343, %342 : vector<4x16xf32>
    %345 = arith.divf %343, %344 : vector<4x16xf32>
    %346 = vector.extract_strided_slice %333 {offsets = [0, 32], sizes = [4, 16], strides = [1, 1]} : vector<4x64xf32> to vector<4x16xf32>
    %347 = math.tanh %346 : vector<4x16xf32>
    %348 = vector.extract_strided_slice %333 {offsets = [0, 48], sizes = [4, 16], strides = [1, 1]} : vector<4x64xf32> to vector<4x16xf32>
    %349 = arith.negf %348 : vector<4x16xf32>
    %350 = math.exp %349 : vector<4x16xf32>
    %cst_92 = arith.constant 1.000000e+00 : f32
    %351 = vector.broadcast %cst_92 : f32 to vector<4x16xf32>
    %352 = arith.addf %351, %350 : vector<4x16xf32>
    %353 = arith.divf %351, %352 : vector<4x16xf32>
    %354 = arith.mulf %345, %292 : vector<4x16xf32>
    %355 = arith.mulf %339, %347 : vector<4x16xf32>
    %356 = arith.addf %354, %355 : vector<4x16xf32>
    %357 = math.tanh %356 : vector<4x16xf32>
    %358 = arith.mulf %353, %357 : vector<4x16xf32>
    %359 = vector.extract_strided_slice %329 {offsets = [0, 64], sizes = [4, 64], strides = [1, 1]} : vector<4x128xf32> to vector<4x64xf32>
    %360 = arith.truncf %323 : vector<4x16xf32> to vector<4x16xbf16>
    %cst_93 = arith.constant dense<0.000000e+00> : vector<4x64xf32>
    %361 = tpu.matmul %360, %1, %cst_93 {dimension_numbers = #tpu.dot_dimension_numbers<[1], [0], [0], [1], [0, 0, 1, 1], [], []>} : vector<4x16xbf16>, vector<16x64xbf16>, vector<4x64xf32> -> vector<4x64xf32>
    %362 = arith.addf %359, %361 : vector<4x64xf32>
    %363 = vector.extract_strided_slice %362 {offsets = [0, 0], sizes = [4, 16], strides = [1, 1]} : vector<4x64xf32> to vector<4x16xf32>
    %364 = arith.negf %363 : vector<4x16xf32>
    %365 = math.exp %364 : vector<4x16xf32>
    %cst_94 = arith.constant 1.000000e+00 : f32
    %366 = vector.broadcast %cst_94 : f32 to vector<4x16xf32>
    %367 = arith.addf %366, %365 : vector<4x16xf32>
    %368 = arith.divf %366, %367 : vector<4x16xf32>
    %369 = vector.extract_strided_slice %362 {offsets = [0, 16], sizes = [4, 16], strides = [1, 1]} : vector<4x64xf32> to vector<4x16xf32>
    %370 = arith.negf %369 : vector<4x16xf32>
    %371 = math.exp %370 : vector<4x16xf32>
    %cst_95 = arith.constant 1.000000e+00 : f32
    %372 = vector.broadcast %cst_95 : f32 to vector<4x16xf32>
    %373 = arith.addf %372, %371 : vector<4x16xf32>
    %374 = arith.divf %372, %373 : vector<4x16xf32>
    %375 = vector.extract_strided_slice %362 {offsets = [0, 32], sizes = [4, 16], strides = [1, 1]} : vector<4x64xf32> to vector<4x16xf32>
    %376 = math.tanh %375 : vector<4x16xf32>
    %377 = vector.extract_strided_slice %362 {offsets = [0, 48], sizes = [4, 16], strides = [1, 1]} : vector<4x64xf32> to vector<4x16xf32>
    %378 = arith.negf %377 : vector<4x16xf32>
    %379 = math.exp %378 : vector<4x16xf32>
    %cst_96 = arith.constant 1.000000e+00 : f32
    %380 = vector.broadcast %cst_96 : f32 to vector<4x16xf32>
    %381 = arith.addf %380, %379 : vector<4x16xf32>
    %382 = arith.divf %380, %381 : vector<4x16xf32>
    %383 = arith.mulf %374, %321 : vector<4x16xf32>
    %384 = arith.mulf %368, %376 : vector<4x16xf32>
    %385 = arith.addf %383, %384 : vector<4x16xf32>
    %386 = math.tanh %385 : vector<4x16xf32>
    %387 = arith.mulf %382, %386 : vector<4x16xf32>
    %c20_97 = arith.constant 20 : index
    %c0_98 = arith.constant 0 : index
    %388 = vector.load %arg11[%c20_97, %c0_98] : memref<32x16xf32, #tpu.memory_space<vmem>>, vector<4x16xf32>
    tpu.vector_store %arg11[%c20_97, %c0_98], %358 {strides = array<i32>} : memref<32x16xf32, #tpu.memory_space<vmem>>, vector<4x16xf32>,
    %c8_99 = arith.constant 8 : index
    %c0_100 = arith.constant 0 : index
    %389 = vector.load %arg12[%c8_99, %c0_100] : memref<32x16xf32, #tpu.memory_space<vmem>>, vector<4x16xf32>
    tpu.vector_store %arg12[%c8_99, %c0_100], %387 {strides = array<i32>} : memref<32x16xf32, #tpu.memory_space<vmem>>, vector<4x16xf32>,
    %c0_101 = arith.constant 0 : index
    %c6_102 = arith.constant 6 : index
    %c0_103 = arith.constant 0 : index
    %390 = vector.load %arg1[%c0_101, %c6_102, %c0_103] : memref<4x8x128xf32, #tpu.memory_space<vmem>>, vector<4x1x128xf32>
    %391 = vector.shape_cast %390 : vector<4x1x128xf32> to vector<4x128xf32>
    %c0_104 = arith.constant 0 : index
    %c1_105 = arith.constant 1 : index
    %c0_106 = arith.constant 0 : index
    %392 = vector.load %arg1[%c0_104, %c1_105, %c0_106] : memref<4x8x128xf32, #tpu.memory_space<vmem>>, vector<4x1x128xf32>
    %393 = vector.shape_cast %392 : vector<4x1x128xf32> to vector<4x128xf32>
    %394 = vector.extract_strided_slice %391 {offsets = [0, 0], sizes = [4, 64], strides = [1, 1]} : vector<4x128xf32> to vector<4x64xf32>
    %395 = arith.truncf %358 : vector<4x16xf32> to vector<4x16xbf16>
    %cst_107 = arith.constant dense<0.000000e+00> : vector<4x64xf32>
    %396 = tpu.matmul %395, %0, %cst_107 {dimension_numbers = #tpu.dot_dimension_numbers<[1], [0], [0], [1], [0, 0, 1, 1], [], []>} : vector<4x16xbf16>, vector<16x64xbf16>, vector<4x64xf32> -> vector<4x64xf32>
    %397 = arith.addf %394, %396 : vector<4x64xf32>
    %398 = vector.extract_strided_slice %397 {offsets = [0, 0], sizes = [4, 16], strides = [1, 1]} : vector<4x64xf32> to vector<4x16xf32>
    %399 = arith.negf %398 : vector<4x16xf32>
    %400 = math.exp %399 : vector<4x16xf32>
    %cst_108 = arith.constant 1.000000e+00 : f32
    %401 = vector.broadcast %cst_108 : f32 to vector<4x16xf32>
    %402 = arith.addf %401, %400 : vector<4x16xf32>
    %403 = arith.divf %401, %402 : vector<4x16xf32>
    %404 = vector.extract_strided_slice %397 {offsets = [0, 16], sizes = [4, 16], strides = [1, 1]} : vector<4x64xf32> to vector<4x16xf32>
    %405 = arith.negf %404 : vector<4x16xf32>
    %406 = math.exp %405 : vector<4x16xf32>
    %cst_109 = arith.constant 1.000000e+00 : f32
    %407 = vector.broadcast %cst_109 : f32 to vector<4x16xf32>
    %408 = arith.addf %407, %406 : vector<4x16xf32>
    %409 = arith.divf %407, %408 : vector<4x16xf32>
    %410 = vector.extract_strided_slice %397 {offsets = [0, 32], sizes = [4, 16], strides = [1, 1]} : vector<4x64xf32> to vector<4x16xf32>
    %411 = math.tanh %410 : vector<4x16xf32>
    %412 = vector.extract_strided_slice %397 {offsets = [0, 48], sizes = [4, 16], strides = [1, 1]} : vector<4x64xf32> to vector<4x16xf32>
    %413 = arith.negf %412 : vector<4x16xf32>
    %414 = math.exp %413 : vector<4x16xf32>
    %cst_110 = arith.constant 1.000000e+00 : f32
    %415 = vector.broadcast %cst_110 : f32 to vector<4x16xf32>
    %416 = arith.addf %415, %414 : vector<4x16xf32>
    %417 = arith.divf %415, %416 : vector<4x16xf32>
    %418 = arith.mulf %409, %356 : vector<4x16xf32>
    %419 = arith.mulf %403, %411 : vector<4x16xf32>
    %420 = arith.addf %418, %419 : vector<4x16xf32>
    %421 = math.tanh %420 : vector<4x16xf32>
    %422 = arith.mulf %417, %421 : vector<4x16xf32>
    %423 = vector.extract_strided_slice %393 {offsets = [0, 64], sizes = [4, 64], strides = [1, 1]} : vector<4x128xf32> to vector<4x64xf32>
    %424 = arith.truncf %387 : vector<4x16xf32> to vector<4x16xbf16>
    %cst_111 = arith.constant dense<0.000000e+00> : vector<4x64xf32>
    %425 = tpu.matmul %424, %1, %cst_111 {dimension_numbers = #tpu.dot_dimension_numbers<[1], [0], [0], [1], [0, 0, 1, 1], [], []>} : vector<4x16xbf16>, vector<16x64xbf16>, vector<4x64xf32> -> vector<4x64xf32>
    %426 = arith.addf %423, %425 : vector<4x64xf32>
    %427 = vector.extract_strided_slice %426 {offsets = [0, 0], sizes = [4, 16], strides = [1, 1]} : vector<4x64xf32> to vector<4x16xf32>
    %428 = arith.negf %427 : vector<4x16xf32>
    %429 = math.exp %428 : vector<4x16xf32>
    %cst_112 = arith.constant 1.000000e+00 : f32
    %430 = vector.broadcast %cst_112 : f32 to vector<4x16xf32>
    %431 = arith.addf %430, %429 : vector<4x16xf32>
    %432 = arith.divf %430, %431 : vector<4x16xf32>
    %433 = vector.extract_strided_slice %426 {offsets = [0, 16], sizes = [4, 16], strides = [1, 1]} : vector<4x64xf32> to vector<4x16xf32>
    %434 = arith.negf %433 : vector<4x16xf32>
    %435 = math.exp %434 : vector<4x16xf32>
    %cst_113 = arith.constant 1.000000e+00 : f32
    %436 = vector.broadcast %cst_113 : f32 to vector<4x16xf32>
    %437 = arith.addf %436, %435 : vector<4x16xf32>
    %438 = arith.divf %436, %437 : vector<4x16xf32>
    %439 = vector.extract_strided_slice %426 {offsets = [0, 32], sizes = [4, 16], strides = [1, 1]} : vector<4x64xf32> to vector<4x16xf32>
    %440 = math.tanh %439 : vector<4x16xf32>
    %441 = vector.extract_strided_slice %426 {offsets = [0, 48], sizes = [4, 16], strides = [1, 1]} : vector<4x64xf32> to vector<4x16xf32>
    %442 = arith.negf %441 : vector<4x16xf32>
    %443 = math.exp %442 : vector<4x16xf32>
    %cst_114 = arith.constant 1.000000e+00 : f32
    %444 = vector.broadcast %cst_114 : f32 to vector<4x16xf32>
    %445 = arith.addf %444, %443 : vector<4x16xf32>
    %446 = arith.divf %444, %445 : vector<4x16xf32>
    %447 = arith.mulf %438, %385 : vector<4x16xf32>
    %448 = arith.mulf %432, %440 : vector<4x16xf32>
    %449 = arith.addf %447, %448 : vector<4x16xf32>
    %450 = math.tanh %449 : vector<4x16xf32>
    %451 = arith.mulf %446, %450 : vector<4x16xf32>
    %c24_115 = arith.constant 24 : index
    %c0_116 = arith.constant 0 : index
    %452 = vector.load %arg11[%c24_115, %c0_116] : memref<32x16xf32, #tpu.memory_space<vmem>>, vector<4x16xf32>
    tpu.vector_store %arg11[%c24_115, %c0_116], %422 {strides = array<i32>} : memref<32x16xf32, #tpu.memory_space<vmem>>, vector<4x16xf32>,
    %c4_117 = arith.constant 4 : index
    %c0_118 = arith.constant 0 : index
    %453 = vector.load %arg12[%c4_117, %c0_118] : memref<32x16xf32, #tpu.memory_space<vmem>>, vector<4x16xf32>
    tpu.vector_store %arg12[%c4_117, %c0_118], %451 {strides = array<i32>} : memref<32x16xf32, #tpu.memory_space<vmem>>, vector<4x16xf32>,
    %c0_119 = arith.constant 0 : index
    %c7_120 = arith.constant 7 : index
    %c0_121 = arith.constant 0 : index
    %454 = vector.load %arg1[%c0_119, %c7_120, %c0_121] : memref<4x8x128xf32, #tpu.memory_space<vmem>>, vector<4x1x128xf32>
    %455 = vector.shape_cast %454 : vector<4x1x128xf32> to vector<4x128xf32>
    %c0_122 = arith.constant 0 : index
    %c0_123 = arith.constant 0 : index
    %c0_124 = arith.constant 0 : index
    %456 = vector.load %arg1[%c0_122, %c0_123, %c0_124] : memref<4x8x128xf32, #tpu.memory_space<vmem>>, vector<4x1x128xf32>
    %457 = vector.shape_cast %456 : vector<4x1x128xf32> to vector<4x128xf32>
    %458 = vector.extract_strided_slice %455 {offsets = [0, 0], sizes = [4, 64], strides = [1, 1]} : vector<4x128xf32> to vector<4x64xf32>
    %459 = arith.truncf %422 : vector<4x16xf32> to vector<4x16xbf16>
    %cst_125 = arith.constant dense<0.000000e+00> : vector<4x64xf32>
    %460 = tpu.matmul %459, %0, %cst_125 {dimension_numbers = #tpu.dot_dimension_numbers<[1], [0], [0], [1], [0, 0, 1, 1], [], []>} : vector<4x16xbf16>, vector<16x64xbf16>, vector<4x64xf32> -> vector<4x64xf32>
    %461 = arith.addf %458, %460 : vector<4x64xf32>
    %462 = vector.extract_strided_slice %461 {offsets = [0, 0], sizes = [4, 16], strides = [1, 1]} : vector<4x64xf32> to vector<4x16xf32>
    %463 = arith.negf %462 : vector<4x16xf32>
    %464 = math.exp %463 : vector<4x16xf32>
    %cst_126 = arith.constant 1.000000e+00 : f32
    %465 = vector.broadcast %cst_126 : f32 to vector<4x16xf32>
    %466 = arith.addf %465, %464 : vector<4x16xf32>
    %467 = arith.divf %465, %466 : vector<4x16xf32>
    %468 = vector.extract_strided_slice %461 {offsets = [0, 16], sizes = [4, 16], strides = [1, 1]} : vector<4x64xf32> to vector<4x16xf32>
    %469 = arith.negf %468 : vector<4x16xf32>
    %470 = math.exp %469 : vector<4x16xf32>
    %cst_127 = arith.constant 1.000000e+00 : f32
    %471 = vector.broadcast %cst_127 : f32 to vector<4x16xf32>
    %472 = arith.addf %471, %470 : vector<4x16xf32>
    %473 = arith.divf %471, %472 : vector<4x16xf32>
    %474 = vector.extract_strided_slice %461 {offsets = [0, 32], sizes = [4, 16], strides = [1, 1]} : vector<4x64xf32> to vector<4x16xf32>
    %475 = math.tanh %474 : vector<4x16xf32>
    %476 = vector.extract_strided_slice %461 {offsets = [0, 48], sizes = [4, 16], strides = [1, 1]} : vector<4x64xf32> to vector<4x16xf32>
    %477 = arith.negf %476 : vector<4x16xf32>
    %478 = math.exp %477 : vector<4x16xf32>
    %cst_128 = arith.constant 1.000000e+00 : f32
    %479 = vector.broadcast %cst_128 : f32 to vector<4x16xf32>
    %480 = arith.addf %479, %478 : vector<4x16xf32>
    %481 = arith.divf %479, %480 : vector<4x16xf32>
    %482 = arith.mulf %473, %420 : vector<4x16xf32>
    %483 = arith.mulf %467, %475 : vector<4x16xf32>
    %484 = arith.addf %482, %483 : vector<4x16xf32>
    %485 = math.tanh %484 : vector<4x16xf32>
    %486 = arith.mulf %481, %485 : vector<4x16xf32>
    %487 = vector.extract_strided_slice %457 {offsets = [0, 64], sizes = [4, 64], strides = [1, 1]} : vector<4x128xf32> to vector<4x64xf32>
    %488 = arith.truncf %451 : vector<4x16xf32> to vector<4x16xbf16>
    %cst_129 = arith.constant dense<0.000000e+00> : vector<4x64xf32>
    %489 = tpu.matmul %488, %1, %cst_129 {dimension_numbers = #tpu.dot_dimension_numbers<[1], [0], [0], [1], [0, 0, 1, 1], [], []>} : vector<4x16xbf16>, vector<16x64xbf16>, vector<4x64xf32> -> vector<4x64xf32>
    %490 = arith.addf %487, %489 : vector<4x64xf32>
    %491 = vector.extract_strided_slice %490 {offsets = [0, 0], sizes = [4, 16], strides = [1, 1]} : vector<4x64xf32> to vector<4x16xf32>
    %492 = arith.negf %491 : vector<4x16xf32>
    %493 = math.exp %492 : vector<4x16xf32>
    %cst_130 = arith.constant 1.000000e+00 : f32
    %494 = vector.broadcast %cst_130 : f32 to vector<4x16xf32>
    %495 = arith.addf %494, %493 : vector<4x16xf32>
    %496 = arith.divf %494, %495 : vector<4x16xf32>
    %497 = vector.extract_strided_slice %490 {offsets = [0, 16], sizes = [4, 16], strides = [1, 1]} : vector<4x64xf32> to vector<4x16xf32>
    %498 = arith.negf %497 : vector<4x16xf32>
    %499 = math.exp %498 : vector<4x16xf32>
    %cst_131 = arith.constant 1.000000e+00 : f32
    %500 = vector.broadcast %cst_131 : f32 to vector<4x16xf32>
    %501 = arith.addf %500, %499 : vector<4x16xf32>
    %502 = arith.divf %500, %501 : vector<4x16xf32>
    %503 = vector.extract_strided_slice %490 {offsets = [0, 32], sizes = [4, 16], strides = [1, 1]} : vector<4x64xf32> to vector<4x16xf32>
    %504 = math.tanh %503 : vector<4x16xf32>
    %505 = vector.extract_strided_slice %490 {offsets = [0, 48], sizes = [4, 16], strides = [1, 1]} : vector<4x64xf32> to vector<4x16xf32>
    %506 = arith.negf %505 : vector<4x16xf32>
    %507 = math.exp %506 : vector<4x16xf32>
    %cst_132 = arith.constant 1.000000e+00 : f32
    %508 = vector.broadcast %cst_132 : f32 to vector<4x16xf32>
    %509 = arith.addf %508, %507 : vector<4x16xf32>
    %510 = arith.divf %508, %509 : vector<4x16xf32>
    %511 = arith.mulf %502, %449 : vector<4x16xf32>
    %512 = arith.mulf %496, %504 : vector<4x16xf32>
    %513 = arith.addf %511, %512 : vector<4x16xf32>
    %514 = math.tanh %513 : vector<4x16xf32>
    %515 = arith.mulf %510, %514 : vector<4x16xf32>
    %c28_133 = arith.constant 28 : index
    %c0_134 = arith.constant 0 : index
    %516 = vector.load %arg11[%c28_133, %c0_134] : memref<32x16xf32, #tpu.memory_space<vmem>>, vector<4x16xf32>
    tpu.vector_store %arg11[%c28_133, %c0_134], %486 {strides = array<i32>} : memref<32x16xf32, #tpu.memory_space<vmem>>, vector<4x16xf32>,
    %c0_135 = arith.constant 0 : index
    %c0_136 = arith.constant 0 : index
    %517 = vector.load %arg12[%c0_135, %c0_136] : memref<32x16xf32, #tpu.memory_space<vmem>>, vector<4x16xf32>
    tpu.vector_store %arg12[%c0_135, %c0_136], %515 {strides = array<i32>} : memref<32x16xf32, #tpu.memory_space<vmem>>, vector<4x16xf32>,
    %c0_137 = arith.constant 0 : index
    %c0_138 = arith.constant 0 : index
    %518 = vector.load %arg11[%c0_137, %c0_138] : memref<32x16xf32, #tpu.memory_space<vmem>>, vector<32x16xf32>
    %519 = arith.truncf %518 : vector<32x16xf32> to vector<32x16xbf16>
    %c0_139 = arith.constant 0 : index
    %c0_140 = arith.constant 0 : index
    %520 = vector.load %arg4[%c0_139, %c0_140] : memref<16x5xbf16, #tpu.memory_space<vmem>>, vector<16x5xbf16>
    %cst_141 = arith.constant dense<0.000000e+00> : vector<32x5xf32>
    %521 = tpu.matmul %519, %520, %cst_141 {dimension_numbers = #tpu.dot_dimension_numbers<[1], [0], [0], [1], [0, 0, 1, 1], [], []>} : vector<32x16xbf16>, vector<16x5xbf16>, vector<32x5xf32> -> vector<32x5xf32>
    %c0_142 = arith.constant 0 : index
    %c0_143 = arith.constant 0 : index
    %522 = vector.load %arg12[%c0_142, %c0_143] : memref<32x16xf32, #tpu.memory_space<vmem>>, vector<32x16xf32>
    %523 = arith.truncf %522 : vector<32x16xf32> to vector<32x16xbf16>
    %c0_144 = arith.constant 0 : index
    %c0_145 = arith.constant 0 : index
    %524 = vector.load %arg5[%c0_144, %c0_145] : memref<16x5xbf16, #tpu.memory_space<vmem>>, vector<16x5xbf16>
    %cst_146 = arith.constant dense<0.000000e+00> : vector<32x5xf32>
    %525 = tpu.matmul %523, %524, %cst_146 {dimension_numbers = #tpu.dot_dimension_numbers<[1], [0], [0], [1], [0, 0, 1, 1], [], []>} : vector<32x16xbf16>, vector<16x5xbf16>, vector<32x5xf32> -> vector<32x5xf32>
    %526 = arith.addf %521, %525 : vector<32x5xf32>
    %c0_147 = arith.constant 0 : index
    %c0_148 = arith.constant 0 : index
    %527 = vector.load %arg6[%c0_147, %c0_148] : memref<1x5xf32, #tpu.memory_space<vmem>>, vector<1x5xf32>
    %528 = vector.broadcast %527 : vector<1x5xf32> to vector<32x5xf32>
    %529 = arith.addf %526, %528 : vector<32x5xf32>
    %c0_149 = arith.constant 0 : index
    %c0_150 = arith.constant 0 : index
    %530 = vector.load %arg7[%c0_149, %c0_150] : memref<5x5xf32, #tpu.memory_space<vmem>>, vector<5x5xf32>
    %531 = tpu.iota {dimensions = array<i32: 1>} : vector<4x5xi32>
    %532 = tpu.iota {dimensions = array<i32: 2>} : vector<4x5x5xi32>
    %c3_i32 = arith.constant 3 : i32
    %533 = vector.broadcast %c3_i32 : i32 to vector<4x5xi32>
    %534 = arith.cmpi eq, %531, %533 : vector<4x5xi32>
    %cst_151 = arith.constant 0.000000e+00 : f32
    %cst_152 = arith.constant -1.000000e+04 : f32
    %535 = vector.broadcast %cst_151 : f32 to vector<4x5xf32>
    %536 = vector.broadcast %cst_152 : f32 to vector<4x5xf32>
    %537 = arith.select %534, %535, %536 : vector<4x5xi1>, vector<4x5xf32>
    %538 = vector.extract_strided_slice %529 {offsets = [0, 0], sizes = [4, 5], strides = [1, 1]} : vector<32x5xf32> to vector<4x5xf32>
    %c0_153 = arith.constant 0 : index
    %c0_154 = arith.constant 0 : index
    %c0_155 = arith.constant 0 : index
    %539 = vector.load %arg8[%c0_153, %c0_154, %c0_155] : memref<4x8x5xf32, #tpu.memory_space<vmem>>, vector<4x1x5xf32>
    %540 = vector.shape_cast %539 : vector<4x1x5xf32> to vector<4x5xf32>
    %541 = vector.shape_cast %538 : vector<4x5xf32> to vector<4x1x5xf32>
    tpu.vector_store %arg8[%c0_153, %c0_154, %c0_155], %541 {strides = array<i32>} : memref<4x8x5xf32, #tpu.memory_space<vmem>>, vector<4x1x5xf32>,
    %542 = vector.shape_cast %537 : vector<4x5xf32> to vector<4x1x5xf32>
    %543 = vector.shape_cast %530 : vector<5x5xf32> to vector<1x5x5xf32>
    %544 = vector.broadcast %542 : vector<4x1x5xf32> to vector<4x5x5xf32>
    %545 = vector.broadcast %543 : vector<1x5x5xf32> to vector<4x5x5xf32>
    %546 = arith.addf %544, %545 : vector<4x5x5xf32>
    %cst_156 = arith.constant dense<0xFF800000> : vector<4x5xf32>
    %547 = vector.multi_reduction <maximumf>, %546, %cst_156 [2] : vector<4x5x5xf32> to vector<4x5xf32>
    %548 = arith.addf %547, %538 : vector<4x5xf32>
    %549 = vector.extract_strided_slice %529 {offsets = [4, 0], sizes = [4, 5], strides = [1, 1]} : vector<32x5xf32> to vector<4x5xf32>
    %c0_157 = arith.constant 0 : index
    %c1_158 = arith.constant 1 : index
    %c0_159 = arith.constant 0 : index
    %550 = vector.load %arg8[%c0_157, %c1_158, %c0_159] : memref<4x8x5xf32, #tpu.memory_space<vmem>>, vector<4x1x5xf32>
    %551 = vector.shape_cast %550 : vector<4x1x5xf32> to vector<4x5xf32>
    %552 = vector.shape_cast %549 : vector<4x5xf32> to vector<4x1x5xf32>
    tpu.vector_store %arg8[%c0_157, %c1_158, %c0_159], %552 {strides = array<i32>} : memref<4x8x5xf32, #tpu.memory_space<vmem>>, vector<4x1x5xf32>,
    %553 = vector.shape_cast %548 : vector<4x5xf32> to vector<4x1x5xf32>
    %554 = vector.shape_cast %530 : vector<5x5xf32> to vector<1x5x5xf32>
    %555 = vector.broadcast %553 : vector<4x1x5xf32> to vector<4x5x5xf32>
    %556 = vector.broadcast %554 : vector<1x5x5xf32> to vector<4x5x5xf32>
    %557 = arith.addf %555, %556 : vector<4x5x5xf32>
    %cst_160 = arith.constant dense<0xFF800000> : vector<4x5xf32>
    %558 = vector.multi_reduction <maximumf>, %557, %cst_160 [2] : vector<4x5x5xf32> to vector<4x5xf32>
    %559 = vector.shape_cast %558 : vector<4x5xf32> to vector<4x5x1xf32>
    %560 = vector.broadcast %559 : vector<4x5x1xf32> to vector<4x5x5xf32>
    %561 = arith.cmpf oeq, %557, %560 : vector<4x5x5xf32>
    %c5_i32 = arith.constant 5 : i32
    %562 = vector.broadcast %c5_i32 : i32 to vector<4x5x5xi32>
    %563 = arith.select %561, %532, %562 : vector<4x5x5xi1>, vector<4x5x5xi32>
    %cst_161 = arith.constant dense<2147483647> : vector<4x5xi32>
    %564 = vector.multi_reduction <minsi>, %563, %cst_161 [2] : vector<4x5x5xi32> to vector<4x5xi32>
    %565 = arith.addf %558, %549 : vector<4x5xf32>
    %566 = vector.extract_strided_slice %529 {offsets = [8, 0], sizes = [4, 5], strides = [1, 1]} : vector<32x5xf32> to vector<4x5xf32>
    %c0_162 = arith.constant 0 : index
    %c2_163 = arith.constant 2 : index
    %c0_164 = arith.constant 0 : index
    %567 = vector.load %arg8[%c0_162, %c2_163, %c0_164] : memref<4x8x5xf32, #tpu.memory_space<vmem>>, vector<4x1x5xf32>
    %568 = vector.shape_cast %567 : vector<4x1x5xf32> to vector<4x5xf32>
    %569 = vector.shape_cast %566 : vector<4x5xf32> to vector<4x1x5xf32>
    tpu.vector_store %arg8[%c0_162, %c2_163, %c0_164], %569 {strides = array<i32>} : memref<4x8x5xf32, #tpu.memory_space<vmem>>, vector<4x1x5xf32>,
    %570 = vector.shape_cast %565 : vector<4x5xf32> to vector<4x1x5xf32>
    %571 = vector.shape_cast %530 : vector<5x5xf32> to vector<1x5x5xf32>
    %572 = vector.broadcast %570 : vector<4x1x5xf32> to vector<4x5x5xf32>
    %573 = vector.broadcast %571 : vector<1x5x5xf32> to vector<4x5x5xf32>
    %574 = arith.addf %572, %573 : vector<4x5x5xf32>
    %cst_165 = arith.constant dense<0xFF800000> : vector<4x5xf32>
    %575 = vector.multi_reduction <maximumf>, %574, %cst_165 [2] : vector<4x5x5xf32> to vector<4x5xf32>
    %576 = vector.shape_cast %575 : vector<4x5xf32> to vector<4x5x1xf32>
    %577 = vector.broadcast %576 : vector<4x5x1xf32> to vector<4x5x5xf32>
    %578 = arith.cmpf oeq, %574, %577 : vector<4x5x5xf32>
    %c5_i32_166 = arith.constant 5 : i32
    %579 = vector.broadcast %c5_i32_166 : i32 to vector<4x5x5xi32>
    %580 = arith.select %578, %532, %579 : vector<4x5x5xi1>, vector<4x5x5xi32>
    %cst_167 = arith.constant dense<2147483647> : vector<4x5xi32>
    %581 = vector.multi_reduction <minsi>, %580, %cst_167 [2] : vector<4x5x5xi32> to vector<4x5xi32>
    %582 = arith.addf %575, %566 : vector<4x5xf32>
    %583 = vector.extract_strided_slice %529 {offsets = [12, 0], sizes = [4, 5], strides = [1, 1]} : vector<32x5xf32> to vector<4x5xf32>
    %c0_168 = arith.constant 0 : index
    %c3_169 = arith.constant 3 : index
    %c0_170 = arith.constant 0 : index
    %584 = vector.load %arg8[%c0_168, %c3_169, %c0_170] : memref<4x8x5xf32, #tpu.memory_space<vmem>>, vector<4x1x5xf32>
    %585 = vector.shape_cast %584 : vector<4x1x5xf32> to vector<4x5xf32>
    %586 = vector.shape_cast %583 : vector<4x5xf32> to vector<4x1x5xf32>
    tpu.vector_store %arg8[%c0_168, %c3_169, %c0_170], %586 {strides = array<i32>} : memref<4x8x5xf32, #tpu.memory_space<vmem>>, vector<4x1x5xf32>,
    %587 = vector.shape_cast %582 : vector<4x5xf32> to vector<4x1x5xf32>
    %588 = vector.shape_cast %530 : vector<5x5xf32> to vector<1x5x5xf32>
    %589 = vector.broadcast %587 : vector<4x1x5xf32> to vector<4x5x5xf32>
    %590 = vector.broadcast %588 : vector<1x5x5xf32> to vector<4x5x5xf32>
    %591 = arith.addf %589, %590 : vector<4x5x5xf32>
    %cst_171 = arith.constant dense<0xFF800000> : vector<4x5xf32>
    %592 = vector.multi_reduction <maximumf>, %591, %cst_171 [2] : vector<4x5x5xf32> to vector<4x5xf32>
    %593 = vector.shape_cast %592 : vector<4x5xf32> to vector<4x5x1xf32>
    %594 = vector.broadcast %593 : vector<4x5x1xf32> to vector<4x5x5xf32>
    %595 = arith.cmpf oeq, %591, %594 : vector<4x5x5xf32>
    %c5_i32_172 = arith.constant 5 : i32
    %596 = vector.broadcast %c5_i32_172 : i32 to vector<4x5x5xi32>
    %597 = arith.select %595, %532, %596 : vector<4x5x5xi1>, vector<4x5x5xi32>
    %cst_173 = arith.constant dense<2147483647> : vector<4x5xi32>
    %598 = vector.multi_reduction <minsi>, %597, %cst_173 [2] : vector<4x5x5xi32> to vector<4x5xi32>
    %599 = arith.addf %592, %583 : vector<4x5xf32>
    %600 = vector.extract_strided_slice %529 {offsets = [16, 0], sizes = [4, 5], strides = [1, 1]} : vector<32x5xf32> to vector<4x5xf32>
    %c0_174 = arith.constant 0 : index
    %c4_175 = arith.constant 4 : index
    %c0_176 = arith.constant 0 : index
    %601 = vector.load %arg8[%c0_174, %c4_175, %c0_176] : memref<4x8x5xf32, #tpu.memory_space<vmem>>, vector<4x1x5xf32>
    %602 = vector.shape_cast %601 : vector<4x1x5xf32> to vector<4x5xf32>
    %603 = vector.shape_cast %600 : vector<4x5xf32> to vector<4x1x5xf32>
    tpu.vector_store %arg8[%c0_174, %c4_175, %c0_176], %603 {strides = array<i32>} : memref<4x8x5xf32, #tpu.memory_space<vmem>>, vector<4x1x5xf32>,
    %604 = vector.shape_cast %599 : vector<4x5xf32> to vector<4x1x5xf32>
    %605 = vector.shape_cast %530 : vector<5x5xf32> to vector<1x5x5xf32>
    %606 = vector.broadcast %604 : vector<4x1x5xf32> to vector<4x5x5xf32>
    %607 = vector.broadcast %605 : vector<1x5x5xf32> to vector<4x5x5xf32>
    %608 = arith.addf %606, %607 : vector<4x5x5xf32>
    %cst_177 = arith.constant dense<0xFF800000> : vector<4x5xf32>
    %609 = vector.multi_reduction <maximumf>, %608, %cst_177 [2] : vector<4x5x5xf32> to vector<4x5xf32>
    %610 = vector.shape_cast %609 : vector<4x5xf32> to vector<4x5x1xf32>
    %611 = vector.broadcast %610 : vector<4x5x1xf32> to vector<4x5x5xf32>
    %612 = arith.cmpf oeq, %608, %611 : vector<4x5x5xf32>
    %c5_i32_178 = arith.constant 5 : i32
    %613 = vector.broadcast %c5_i32_178 : i32 to vector<4x5x5xi32>
    %614 = arith.select %612, %532, %613 : vector<4x5x5xi1>, vector<4x5x5xi32>
    %cst_179 = arith.constant dense<2147483647> : vector<4x5xi32>
    %615 = vector.multi_reduction <minsi>, %614, %cst_179 [2] : vector<4x5x5xi32> to vector<4x5xi32>
    %616 = arith.addf %609, %600 : vector<4x5xf32>
    %617 = vector.extract_strided_slice %529 {offsets = [20, 0], sizes = [4, 5], strides = [1, 1]} : vector<32x5xf32> to vector<4x5xf32>
    %c0_180 = arith.constant 0 : index
    %c5_181 = arith.constant 5 : index
    %c0_182 = arith.constant 0 : index
    %618 = vector.load %arg8[%c0_180, %c5_181, %c0_182] : memref<4x8x5xf32, #tpu.memory_space<vmem>>, vector<4x1x5xf32>
    %619 = vector.shape_cast %618 : vector<4x1x5xf32> to vector<4x5xf32>
    %620 = vector.shape_cast %617 : vector<4x5xf32> to vector<4x1x5xf32>
    tpu.vector_store %arg8[%c0_180, %c5_181, %c0_182], %620 {strides = array<i32>} : memref<4x8x5xf32, #tpu.memory_space<vmem>>, vector<4x1x5xf32>,
    %621 = vector.shape_cast %616 : vector<4x5xf32> to vector<4x1x5xf32>
    %622 = vector.shape_cast %530 : vector<5x5xf32> to vector<1x5x5xf32>
    %623 = vector.broadcast %621 : vector<4x1x5xf32> to vector<4x5x5xf32>
    %624 = vector.broadcast %622 : vector<1x5x5xf32> to vector<4x5x5xf32>
    %625 = arith.addf %623, %624 : vector<4x5x5xf32>
    %cst_183 = arith.constant dense<0xFF800000> : vector<4x5xf32>
    %626 = vector.multi_reduction <maximumf>, %625, %cst_183 [2] : vector<4x5x5xf32> to vector<4x5xf32>
    %627 = vector.shape_cast %626 : vector<4x5xf32> to vector<4x5x1xf32>
    %628 = vector.broadcast %627 : vector<4x5x1xf32> to vector<4x5x5xf32>
    %629 = arith.cmpf oeq, %625, %628 : vector<4x5x5xf32>
    %c5_i32_184 = arith.constant 5 : i32
    %630 = vector.broadcast %c5_i32_184 : i32 to vector<4x5x5xi32>
    %631 = arith.select %629, %532, %630 : vector<4x5x5xi1>, vector<4x5x5xi32>
    %cst_185 = arith.constant dense<2147483647> : vector<4x5xi32>
    %632 = vector.multi_reduction <minsi>, %631, %cst_185 [2] : vector<4x5x5xi32> to vector<4x5xi32>
    %633 = arith.addf %626, %617 : vector<4x5xf32>
    %634 = vector.extract_strided_slice %529 {offsets = [24, 0], sizes = [4, 5], strides = [1, 1]} : vector<32x5xf32> to vector<4x5xf32>
    %c0_186 = arith.constant 0 : index
    %c6_187 = arith.constant 6 : index
    %c0_188 = arith.constant 0 : index
    %635 = vector.load %arg8[%c0_186, %c6_187, %c0_188] : memref<4x8x5xf32, #tpu.memory_space<vmem>>, vector<4x1x5xf32>
    %636 = vector.shape_cast %635 : vector<4x1x5xf32> to vector<4x5xf32>
    %637 = vector.shape_cast %634 : vector<4x5xf32> to vector<4x1x5xf32>
    tpu.vector_store %arg8[%c0_186, %c6_187, %c0_188], %637 {strides = array<i32>} : memref<4x8x5xf32, #tpu.memory_space<vmem>>, vector<4x1x5xf32>,
    %638 = vector.shape_cast %633 : vector<4x5xf32> to vector<4x1x5xf32>
    %639 = vector.shape_cast %530 : vector<5x5xf32> to vector<1x5x5xf32>
    %640 = vector.broadcast %638 : vector<4x1x5xf32> to vector<4x5x5xf32>
    %641 = vector.broadcast %639 : vector<1x5x5xf32> to vector<4x5x5xf32>
    %642 = arith.addf %640, %641 : vector<4x5x5xf32>
    %cst_189 = arith.constant dense<0xFF800000> : vector<4x5xf32>
    %643 = vector.multi_reduction <maximumf>, %642, %cst_189 [2] : vector<4x5x5xf32> to vector<4x5xf32>
    %644 = vector.shape_cast %643 : vector<4x5xf32> to vector<4x5x1xf32>
    %645 = vector.broadcast %644 : vector<4x5x1xf32> to vector<4x5x5xf32>
    %646 = arith.cmpf oeq, %642, %645 : vector<4x5x5xf32>
    %c5_i32_190 = arith.constant 5 : i32
    %647 = vector.broadcast %c5_i32_190 : i32 to vector<4x5x5xi32>
    %648 = arith.select %646, %532, %647 : vector<4x5x5xi1>, vector<4x5x5xi32>
    %cst_191 = arith.constant dense<2147483647> : vector<4x5xi32>
    %649 = vector.multi_reduction <minsi>, %648, %cst_191 [2] : vector<4x5x5xi32> to vector<4x5xi32>
    %650 = arith.addf %643, %634 : vector<4x5xf32>
    %651 = vector.extract_strided_slice %529 {offsets = [28, 0], sizes = [4, 5], strides = [1, 1]} : vector<32x5xf32> to vector<4x5xf32>
    %c0_192 = arith.constant 0 : index
    %c7_193 = arith.constant 7 : index
    %c0_194 = arith.constant 0 : index
    %652 = vector.load %arg8[%c0_192, %c7_193, %c0_194] : memref<4x8x5xf32, #tpu.memory_space<vmem>>, vector<4x1x5xf32>
    %653 = vector.shape_cast %652 : vector<4x1x5xf32> to vector<4x5xf32>
    %654 = vector.shape_cast %651 : vector<4x5xf32> to vector<4x1x5xf32>
    tpu.vector_store %arg8[%c0_192, %c7_193, %c0_194], %654 {strides = array<i32>} : memref<4x8x5xf32, #tpu.memory_space<vmem>>, vector<4x1x5xf32>,
    %655 = vector.shape_cast %650 : vector<4x5xf32> to vector<4x1x5xf32>
    %656 = vector.shape_cast %530 : vector<5x5xf32> to vector<1x5x5xf32>
    %657 = vector.broadcast %655 : vector<4x1x5xf32> to vector<4x5x5xf32>
    %658 = vector.broadcast %656 : vector<1x5x5xf32> to vector<4x5x5xf32>
    %659 = arith.addf %657, %658 : vector<4x5x5xf32>
    %cst_195 = arith.constant dense<0xFF800000> : vector<4x5xf32>
    %660 = vector.multi_reduction <maximumf>, %659, %cst_195 [2] : vector<4x5x5xf32> to vector<4x5xf32>
    %661 = vector.shape_cast %660 : vector<4x5xf32> to vector<4x5x1xf32>
    %662 = vector.broadcast %661 : vector<4x5x1xf32> to vector<4x5x5xf32>
    %663 = arith.cmpf oeq, %659, %662 : vector<4x5x5xf32>
    %c5_i32_196 = arith.constant 5 : i32
    %664 = vector.broadcast %c5_i32_196 : i32 to vector<4x5x5xi32>
    %665 = arith.select %663, %532, %664 : vector<4x5x5xi1>, vector<4x5x5xi32>
    %cst_197 = arith.constant dense<2147483647> : vector<4x5xi32>
    %666 = vector.multi_reduction <minsi>, %665, %cst_197 [2] : vector<4x5x5xi32> to vector<4x5xi32>
    %667 = arith.addf %660, %651 : vector<4x5xf32>
    %668 = vector.extract_strided_slice %530 {offsets = [4, 0], sizes = [1, 5], strides = [1, 1]} : vector<5x5xf32> to vector<1x5xf32>
    %669 = vector.broadcast %668 : vector<1x5xf32> to vector<4x5xf32>
    %670 = arith.addf %667, %669 : vector<4x5xf32>
    %cst_198 = arith.constant dense<0xFF800000> : vector<4xf32>
    %671 = vector.multi_reduction <maximumf>, %670, %cst_198 [1] : vector<4x5xf32> to vector<4xf32>
    %672 = vector.shape_cast %671 : vector<4xf32> to vector<4x1xf32>
    %673 = vector.broadcast %672 : vector<4x1xf32> to vector<4x5xf32>
    %674 = arith.cmpf oeq, %670, %673 : vector<4x5xf32>
    %c5_i32_199 = arith.constant 5 : i32
    %675 = vector.broadcast %c5_i32_199 : i32 to vector<4x5xi32>
    %676 = arith.select %674, %531, %675 : vector<4x5xi1>, vector<4x5xi32>
    %cst_200 = arith.constant dense<2147483647> : vector<4xi32>
    %677 = vector.multi_reduction <minsi>, %676, %cst_200 [1] : vector<4x5xi32> to vector<4xi32>
    %678 = vector.shape_cast %677 : vector<4xi32> to vector<4x1xi32>
    %679 = vector.broadcast %678 : vector<4x1xi32> to vector<4x5xi32>
    %680 = arith.cmpi eq, %531, %679 : vector<4x5xi32>
    %c0_i32 = arith.constant 0 : i32
    %681 = vector.broadcast %c0_i32 : i32 to vector<4x5xi32>
    %682 = arith.select %680, %666, %681 : vector<4x5xi1>, vector<4x5xi32>
    %cst_201 = arith.constant dense<0> : vector<4xi32>
    %683 = vector.multi_reduction <add>, %682, %cst_201 [1] : vector<4x5xi32> to vector<4xi32>
    %684 = vector.shape_cast %683 : vector<4xi32> to vector<4x1xi32>
    %685 = vector.broadcast %684 : vector<4x1xi32> to vector<4x5xi32>
    %686 = arith.cmpi eq, %531, %685 : vector<4x5xi32>
    %c0_i32_202 = arith.constant 0 : i32
    %687 = vector.broadcast %c0_i32_202 : i32 to vector<4x5xi32>
    %688 = arith.select %686, %649, %687 : vector<4x5xi1>, vector<4x5xi32>
    %cst_203 = arith.constant dense<0> : vector<4xi32>
    %689 = vector.multi_reduction <add>, %688, %cst_203 [1] : vector<4x5xi32> to vector<4xi32>
    %690 = vector.shape_cast %689 : vector<4xi32> to vector<4x1xi32>
    %691 = vector.broadcast %690 : vector<4x1xi32> to vector<4x5xi32>
    %692 = arith.cmpi eq, %531, %691 : vector<4x5xi32>
    %c0_i32_204 = arith.constant 0 : i32
    %693 = vector.broadcast %c0_i32_204 : i32 to vector<4x5xi32>
    %694 = arith.select %692, %632, %693 : vector<4x5xi1>, vector<4x5xi32>
    %cst_205 = arith.constant dense<0> : vector<4xi32>
    %695 = vector.multi_reduction <add>, %694, %cst_205 [1] : vector<4x5xi32> to vector<4xi32>
    %696 = vector.shape_cast %695 : vector<4xi32> to vector<4x1xi32>
    %697 = vector.broadcast %696 : vector<4x1xi32> to vector<4x5xi32>
    %698 = arith.cmpi eq, %531, %697 : vector<4x5xi32>
    %c0_i32_206 = arith.constant 0 : i32
    %699 = vector.broadcast %c0_i32_206 : i32 to vector<4x5xi32>
    %700 = arith.select %698, %615, %699 : vector<4x5xi1>, vector<4x5xi32>
    %cst_207 = arith.constant dense<0> : vector<4xi32>
    %701 = vector.multi_reduction <add>, %700, %cst_207 [1] : vector<4x5xi32> to vector<4xi32>
    %702 = vector.shape_cast %701 : vector<4xi32> to vector<4x1xi32>
    %703 = vector.broadcast %702 : vector<4x1xi32> to vector<4x5xi32>
    %704 = arith.cmpi eq, %531, %703 : vector<4x5xi32>
    %c0_i32_208 = arith.constant 0 : i32
    %705 = vector.broadcast %c0_i32_208 : i32 to vector<4x5xi32>
    %706 = arith.select %704, %598, %705 : vector<4x5xi1>, vector<4x5xi32>
    %cst_209 = arith.constant dense<0> : vector<4xi32>
    %707 = vector.multi_reduction <add>, %706, %cst_209 [1] : vector<4x5xi32> to vector<4xi32>
    %708 = vector.shape_cast %707 : vector<4xi32> to vector<4x1xi32>
    %709 = vector.broadcast %708 : vector<4x1xi32> to vector<4x5xi32>
    %710 = arith.cmpi eq, %531, %709 : vector<4x5xi32>
    %c0_i32_210 = arith.constant 0 : i32
    %711 = vector.broadcast %c0_i32_210 : i32 to vector<4x5xi32>
    %712 = arith.select %710, %581, %711 : vector<4x5xi1>, vector<4x5xi32>
    %cst_211 = arith.constant dense<0> : vector<4xi32>
    %713 = vector.multi_reduction <add>, %712, %cst_211 [1] : vector<4x5xi32> to vector<4xi32>
    %714 = vector.shape_cast %713 : vector<4xi32> to vector<4x1xi32>
    %715 = vector.broadcast %714 : vector<4x1xi32> to vector<4x5xi32>
    %716 = arith.cmpi eq, %531, %715 : vector<4x5xi32>
    %c0_i32_212 = arith.constant 0 : i32
    %717 = vector.broadcast %c0_i32_212 : i32 to vector<4x5xi32>
    %718 = arith.select %716, %564, %717 : vector<4x5xi1>, vector<4x5xi32>
    %cst_213 = arith.constant dense<0> : vector<4xi32>
    %719 = vector.multi_reduction <add>, %718, %cst_213 [1] : vector<4x5xi32> to vector<4xi32>
    %720 = vector.shape_cast %719 : vector<4xi32> to vector<4x1xi32>
    %721 = tpu.iota {dimensions = array<i32: 1>} : vector<4x8xi32>
    %c0_i32_214 = arith.constant 0 : i32
    %722 = vector.broadcast %c0_i32_214 : i32 to vector<4x8xi32>
    %c0_i32_215 = arith.constant 0 : i32
    %723 = vector.broadcast %c0_i32_215 : i32 to vector<4x8xi32>
    %724 = arith.cmpi eq, %721, %723 : vector<4x8xi32>
    %c0_i32_216 = arith.constant 0 : i32
    %725 = vector.shape_cast %720 : vector<4x1xi32> to vector<4x1xi32>
    %726 = vector.broadcast %725 : vector<4x1xi32> to vector<4x8xi32>
    %727 = vector.broadcast %c0_i32_216 : i32 to vector<4x8xi32>
    %728 = arith.select %724, %726, %727 : vector<4x8xi1>, vector<4x8xi32>
    %729 = arith.addi %722, %728 : vector<4x8xi32>
    %c1_i32 = arith.constant 1 : i32
    %730 = vector.broadcast %c1_i32 : i32 to vector<4x8xi32>
    %731 = arith.cmpi eq, %721, %730 : vector<4x8xi32>
    %c0_i32_217 = arith.constant 0 : i32
    %732 = vector.shape_cast %714 : vector<4x1xi32> to vector<4x1xi32>
    %733 = vector.broadcast %732 : vector<4x1xi32> to vector<4x8xi32>
    %734 = vector.broadcast %c0_i32_217 : i32 to vector<4x8xi32>
    %735 = arith.select %731, %733, %734 : vector<4x8xi1>, vector<4x8xi32>
    %736 = arith.addi %729, %735 : vector<4x8xi32>
    %c2_i32 = arith.constant 2 : i32
    %737 = vector.broadcast %c2_i32 : i32 to vector<4x8xi32>
    %738 = arith.cmpi eq, %721, %737 : vector<4x8xi32>
    %c0_i32_218 = arith.constant 0 : i32
    %739 = vector.shape_cast %708 : vector<4x1xi32> to vector<4x1xi32>
    %740 = vector.broadcast %739 : vector<4x1xi32> to vector<4x8xi32>
    %741 = vector.broadcast %c0_i32_218 : i32 to vector<4x8xi32>
    %742 = arith.select %738, %740, %741 : vector<4x8xi1>, vector<4x8xi32>
    %743 = arith.addi %736, %742 : vector<4x8xi32>
    %c3_i32_219 = arith.constant 3 : i32
    %744 = vector.broadcast %c3_i32_219 : i32 to vector<4x8xi32>
    %745 = arith.cmpi eq, %721, %744 : vector<4x8xi32>
    %c0_i32_220 = arith.constant 0 : i32
    %746 = vector.shape_cast %702 : vector<4x1xi32> to vector<4x1xi32>
    %747 = vector.broadcast %746 : vector<4x1xi32> to vector<4x8xi32>
    %748 = vector.broadcast %c0_i32_220 : i32 to vector<4x8xi32>
    %749 = arith.select %745, %747, %748 : vector<4x8xi1>, vector<4x8xi32>
    %750 = arith.addi %743, %749 : vector<4x8xi32>
    %c4_i32 = arith.constant 4 : i32
    %751 = vector.broadcast %c4_i32 : i32 to vector<4x8xi32>
    %752 = arith.cmpi eq, %721, %751 : vector<4x8xi32>
    %c0_i32_221 = arith.constant 0 : i32
    %753 = vector.shape_cast %696 : vector<4x1xi32> to vector<4x1xi32>
    %754 = vector.broadcast %753 : vector<4x1xi32> to vector<4x8xi32>
    %755 = vector.broadcast %c0_i32_221 : i32 to vector<4x8xi32>
    %756 = arith.select %752, %754, %755 : vector<4x8xi1>, vector<4x8xi32>
    %757 = arith.addi %750, %756 : vector<4x8xi32>
    %c5_i32_222 = arith.constant 5 : i32
    %758 = vector.broadcast %c5_i32_222 : i32 to vector<4x8xi32>
    %759 = arith.cmpi eq, %721, %758 : vector<4x8xi32>
    %c0_i32_223 = arith.constant 0 : i32
    %760 = vector.shape_cast %690 : vector<4x1xi32> to vector<4x1xi32>
    %761 = vector.broadcast %760 : vector<4x1xi32> to vector<4x8xi32>
    %762 = vector.broadcast %c0_i32_223 : i32 to vector<4x8xi32>
    %763 = arith.select %759, %761, %762 : vector<4x8xi1>, vector<4x8xi32>
    %764 = arith.addi %757, %763 : vector<4x8xi32>
    %c6_i32 = arith.constant 6 : i32
    %765 = vector.broadcast %c6_i32 : i32 to vector<4x8xi32>
    %766 = arith.cmpi eq, %721, %765 : vector<4x8xi32>
    %c0_i32_224 = arith.constant 0 : i32
    %767 = vector.shape_cast %684 : vector<4x1xi32> to vector<4x1xi32>
    %768 = vector.broadcast %767 : vector<4x1xi32> to vector<4x8xi32>
    %769 = vector.broadcast %c0_i32_224 : i32 to vector<4x8xi32>
    %770 = arith.select %766, %768, %769 : vector<4x8xi1>, vector<4x8xi32>
    %771 = arith.addi %764, %770 : vector<4x8xi32>
    %c7_i32 = arith.constant 7 : i32
    %772 = vector.broadcast %c7_i32 : i32 to vector<4x8xi32>
    %773 = arith.cmpi eq, %721, %772 : vector<4x8xi32>
    %c0_i32_225 = arith.constant 0 : i32
    %774 = vector.shape_cast %678 : vector<4x1xi32> to vector<4x1xi32>
    %775 = vector.broadcast %774 : vector<4x1xi32> to vector<4x8xi32>
    %776 = vector.broadcast %c0_i32_225 : i32 to vector<4x8xi32>
    %777 = arith.select %773, %775, %776 : vector<4x8xi1>, vector<4x8xi32>
    %778 = arith.addi %771, %777 : vector<4x8xi32>
    %779 = vector.shape_cast %672 : vector<4x1xf32> to vector<4x1x1xf32>
    %c0_226 = arith.constant 0 : index
    %c0_227 = arith.constant 0 : index
    %c0_228 = arith.constant 0 : index
    %780 = vector.load %arg9[%c0_226, %c0_227, %c0_228] : memref<4x1x1xf32, #tpu.memory_space<vmem>>, vector<4x1x1xf32>
    tpu.vector_store %arg9[%c0_226, %c0_227, %c0_228], %779 {strides = array<i32>} : memref<4x1x1xf32, #tpu.memory_space<vmem>>, vector<4x1x1xf32>,
    %781 = vector.shape_cast %778 : vector<4x8xi32> to vector<4x1x8xi32>
    %c0_229 = arith.constant 0 : index
    %c0_230 = arith.constant 0 : index
    %c0_231 = arith.constant 0 : index
    %782 = vector.load %arg10[%c0_229, %c0_230, %c0_231] : memref<4x1x8xi32, #tpu.memory_space<vmem>>, vector<4x1x8xi32>
    tpu.vector_store %arg10[%c0_229, %c0_230, %c0_231], %781 {strides = array<i32>} : memref<4x1x8xi32, #tpu.memory_space<vmem>>, vector<4x1x8xi32>,
    return
  }
  func.func @transform_0(%arg0: i32) -> (i32, i32, i32) {
    %c0_i32 = arith.constant 0 : i32
    %c0_i32_0 = arith.constant 0 : i32
    %c0_i32_1 = arith.constant 0 : i32
    return %arg0, %c0_i32, %c0_i32_0 : i32, i32, i32
  }
  func.func @transform_1(%arg0: i32) -> (i32, i32) {
    %c0_i32 = arith.constant 0 : i32
    %c0_i32_0 = arith.constant 0 : i32
    %c0_i32_1 = arith.constant 0 : i32
    return %c0_i32, %c0_i32_0 : i32, i32
  }
  func.func @transform_2(%arg0: i32) -> (i32, i32) {
    %c0_i32 = arith.constant 0 : i32
    %c0_i32_0 = arith.constant 0 : i32
    %c0_i32_1 = arith.constant 0 : i32
    return %c0_i32, %c0_i32_0 : i32, i32
  }
  func.func @transform_3(%arg0: i32) -> (i32, i32) {
    %c0_i32 = arith.constant 0 : i32
    %c0_i32_0 = arith.constant 0 : i32
    %c0_i32_1 = arith.constant 0 : i32
    return %c0_i32, %c0_i32_0 : i32, i32
  }
  func.func @transform_4(%arg0: i32) -> (i32, i32) {
    %c0_i32 = arith.constant 0 : i32
    %c0_i32_0 = arith.constant 0 : i32
    %c0_i32_1 = arith.constant 0 : i32
    return %c0_i32, %c0_i32_0 : i32, i32
  }
  func.func @transform_5(%arg0: i32) -> (i32, i32) {
    %c0_i32 = arith.constant 0 : i32
    %c0_i32_0 = arith.constant 0 : i32
    %c0_i32_1 = arith.constant 0 : i32
    return %c0_i32, %c0_i32_0 : i32, i32
  }
  func.func @transform_6(%arg0: i32) -> (i32, i32) {
    %c0_i32 = arith.constant 0 : i32
    %c0_i32_0 = arith.constant 0 : i32
    %c0_i32_1 = arith.constant 0 : i32
    return %c0_i32, %c0_i32_0 : i32, i32
  }
  func.func @transform_7(%arg0: i32) -> (i32, i32, i32) {
    %c0_i32 = arith.constant 0 : i32
    %c0_i32_0 = arith.constant 0 : i32
    %c0_i32_1 = arith.constant 0 : i32
    return %arg0, %c0_i32, %c0_i32_0 : i32, i32, i32
  }
  func.func @transform_8(%arg0: i32) -> (i32, i32, i32) {
    %c0_i32 = arith.constant 0 : i32
    %c0_i32_0 = arith.constant 0 : i32
    %c0_i32_1 = arith.constant 0 : i32
    return %arg0, %c0_i32, %c0_i32_0 : i32, i32, i32
  }
  func.func @transform_9(%arg0: i32) -> (i32, i32, i32) {
    %c0_i32 = arith.constant 0 : i32
    %c0_i32_0 = arith.constant 0 : i32
    %c0_i32_1 = arith.constant 0 : i32
    return %arg0, %c0_i32, %c0_i32_0 : i32, i32, i32
  }
}

</mosaic_0001>

<bundles_post_ra>
// kernel: tpu_custom_call.1
= control target key start
LH: loop header
LB: loop body
LE: loop exit
PB: predicated region body
PF: predicated region fallthrough
CT: control target
= control target key end

     0   :  { %15 = vsyncpa [#allocation5], 0  ;;  %s13870_s0 = inlined_call_operand.hbm [shape: f32[8,8,128], index: 0, kind: input, shape index: {}]   ;;  %s13871_s1 = inlined_call_operand.vmem [shape: bf16[16,64], index: 1, kind: input, shape index: {}]   ;;  %s13872_s2 = inlined_call_operand.vmem [shape: bf16[16,64], index: 2, kind: input, shape index: {}]   ;;  %s13873_s3 = inlined_call_operand.vmem [shape: bf16[16,5], index: 3, kind: input, shape index: {}]   ;;  %s13874_s4 = inlined_call_operand.vmem [shape: bf16[16,5], index: 4, kind: input, shape index: {}]   ;;  %s13875_s5 = inlined_call_operand.vmem [shape: f32[1,5], index: 5, kind: input, shape index: {}]   ;;  %s13876_s6 = inlined_call_operand.vmem [shape: f32[5,5], index: 6, kind: input, shape index: {}]   ;;  %s13877_s7 = inlined_call_operand.vmem [shape: f32[8,8,5], index: 7, kind: output, shape index: {0}]   ;;  %s13878_s8 = inlined_call_operand.vmem [shape: f32[8,1,1], index: 8, kind: output, shape index: {1}]   ;;  %s13879_s9 = inlined_call_operand.hbm [shape: s32[8,1,8], index: 9, kind: output, shape index: {2}]  }
   0x1   :  { %17 = vsyncpa [#allocation5 + $0x1], 0 }
   0x2   :  { %18 = vsyncpa [#allocation6], 0 }
   0x3   :  { %20 = vsyncpa [#allocation6 + $0x1], 0  ;;  %s9848_s30 = smov 0   ;;  %s9850_s10 = smov 0  }
   0x4   :  { %s9852_s11 = smov 0   ;;  %s9854_s12 = smov 0  }
   0x5 LB: > { %s9869_s13 = sadd.s32 4294967295, %s9781_s12   ;;  %s8848_s14 = sadd.s32 4294967294, %s9781_s12   ;;  %s9781_s12 = sphi %s9854_s12, %s14251_s12   ;;  %s9777_s11 = sphi %s9852_s11, %s14250_s11   ;;  %s9773_s10 = sphi %s9850_s10, %s14249_s10   ;;  %s9769_s30 = sphi %s9848_s30, %s14248_s30  }
   0x6   : > { %s9873_s15 = sadd.s32 1, %s9781_s12   ;;  %s33_s16 = sadd.s32 1, %s9777_s11 }
   0x7   : > { %s30_s17 = ssub.s32 %s9781_s12, %s9873_s15  ;;  %p40_p0 = scmp.ne.s32.totalorder %s9777_s11, %s9773_s10 }
   0x8   : > { %p31_p1 = scmp.eq.s32.totalorder %s30_s17, 0  ;;  %p41_p2 = scmp.eq.s32.totalorder %s9781_s12, 0 }
   0x9   : > { %p46_p3 = scmp.ne.s32.totalorder %s9773_s10, %s9769_s30  ;;  %p47_p4 = scmp.eq.s32.totalorder %s9869_s13, 0 }
   0xa   : > { %s9885_s18 = scalar_select %p31_p1, %s9777_s11, %s33_s16  }
   0xb   : > { %p9887_p5 = por %p41_p2, %p40_p0  ;;  %p9891_p6 = por %p47_p4, %p46_p3 }
   0xc   : > { %p248_p7 = scmp.eq.s32.totalorder %s9869_s13, 1  ;;  %p254_p8 = scmp.eq.s32.totalorder %s8848_s14, 1 }
   0xd   : > { %p9116_p10 = scmp.lt.s32.totalorder %s9781_s12, 2  ;;  %s292_s23 = sand.u32 1, %s9777_s11  }
   0xe   : > { %p9898_p11 = por %p248_p7, %p40_p0  ;;  %p9902_p12 = por %p254_p8, %p46_p3 }
   0xf   : > { %s8952_s24 = sshll.u32 %s9781_s12, 9  ;;  %s8851_s25 = sshll.u32 %s292_s23, 5 }
  0x10   : > { %s13995_s21 = scalar_select %p9898_p11, 1, 0 }
  0x11   : > { %s13996_s22 = scalar_select %p9902_p12, 1, 0 }
  0x12   : > { %s9911_s28 = scalar_lea.hbm %s13870_s0, %s8952_s24  ;;  %s296_s29 = scalar_lea.vmem [#allocation4], %s8851_s25 }
  0x13   : > { %s303_s14 = sshll.u32 %s296_s29, 4  ;;  %p9915_p13 = pnand %p9116_p10, %p9887_p5  ;;  %s9919_s14 = int_to_ptr.vmem [resolvable:$true] %s303_s14 }
  0x14   : > { %s9921_s17 = scalar_lea.sflag [#allocation5], %s292_s23  ;;  %s9685_s26 = scalar_lea.hbm %s9911_s28, 512 }
  0x15   : > { %p9686_p0 = scmp.ne.s32.totalorder %s9911_s28, %s9685_s26  ;;  %p9687_p1 = pneg %p9915_p13 }
  0x16   : > { %s9690_s25 = scalar_lea.hbm %s13870_s0, 1024  ;;  %p9691_p4 = scmp.lt.u32.totalorder %s9911_s28, %s13870_s0 }
  0x17   : > { %p9688_p2 = pnand %p9687_p1, %p9686_p0  ;;  %p9692_p5 = scmp.lt.u32.totalorder %s9690_s25, %s9685_s26 }
  0x18   : > { %p9694_p8 = scmp.lt.u32.totalorder %s9685_s26, %s9911_s28 }
  0x19   : > { %p9689_p3 = pneg %p9688_p2  ;;  %p9693_p7 = por %p9692_p5, %p9691_p4 }
  0x1b   : > { %p9695_p10 = por %p9694_p8, %p9693_p7 }
  0x1d   : > { %p9696_p9 = pnand %p9695_p10, %p9689_p3 }
  0x1f   : > { %9699 = shalt.err (!%p9696_p9)
}
  0x20   : > { %s9700_s23 = scalar_lea.vmem %s9919_s14, 512  ;;  %s9783_s24 = smov [#allocation4]  }
  0x21   : > { %p9701_p0 = scmp.ne.s32.totalorder %s9919_s14, %s9700_s23  ;;  %s9705_s19 = sshll.u32 %s9783_s24, 4  ;;  %s9706_s19 = int_to_ptr.vmem [resolvable:$false] %s9705_s19 }
  0x22   : > { %s9707_s27 = scalar_lea.vmem %s9706_s19, 1024  ;;  %p9708_p11 = scmp.lt.s32.totalorder %s9919_s14, %s9706_s19 }
  0x23   : > { %p9703_p2 = pnand %p9701_p0, %p9687_p1  ;;  %p9709_p4 = scmp.lt.s32.totalorder %s9707_s27, %s9700_s23 }
  0x25   : > { %p9704_p12 = pneg %p9703_p2  ;;  %p9710_p5 = por %p9709_p4, %p9708_p11 }
  0x27   : > { %p9711_p7 = pnand %p9710_p5, %p9704_p12 }
  0x29   : > { %9714 = shalt.err (!%p9711_p7)
}
  0x2a   : > { %s9784_s26 = smov 128   ;;  %s9785_s25 = smov 8  }
  0x2b   : > { %9111 = dma.hbm_to_vmem [thread:$0]  (!%p9915_p13), %s9911_s28, 512, %s9919_s14, %s9921_s17, %s9784_s26, %s9784_s26, %s9785_s25  }
  0x2c   : > { %p8854_p9 = scmp.ge.s32.totalorder %s9781_s12, 1  ;;  %p311_p1 = scmp.lt.s32.totalorder %s9781_s12, 3 }
  0x2e   : > { %p312_p3 = pnand %p8854_p9, %p311_p1 }
  0x30   : > { %315 = sbr.rel (%p312_p3) target bundleno = 12046 (0x2f0e), region = 48 }
  0x37   : > { %s9952_s29 = sand.u32 1, %s9773_s10  }
  0x38   : > { %s8855_s23 = sshll.u32 %s9952_s29, 5  ;;  %s318_s24 = scalar_lea.sflag [#allocation5], %s9952_s29 }
  0x39   : > { %s9956_s19 = scalar_lea.vmem [#allocation4], %s8855_s23 }
  0x3a   : > { %9760 = dma.done.wait (%p9891_p6), %s318_s24, 512  }
  0x3b   : > { %9762 = vsyncadd (%p9891_p6), %s318_s24, 4294966784  ;;  %v9786_v0 = vmov 0.0   ;;  %vm9787_vm0 = vmmov 0   ;;  %v9788_v1 = vmov 0   ;;  %v9971_v2 = vld [vmem:[%s13871_s1] sm:$0xff]   ;;  %s9789_s17 = smov 64  }
  0x3c   : > { %8992 = vmatprep.subr.bf16.mxu1 %v9786_v0  ;;  %8994 = vmatprep.mubr.msk.bf16.mxu1 %vm9787_vm0, %v9786_v0  ;;  %v9977_v3 = vld [vmem:[%s13872_s2] sm:$0xff]   ;;  %v388_v15 = vld [vmem:[%s9956_s19 + $0xf] sm:$0x1]  ;;  %v389_v20 = vld [vmem:[%s9956_s19 + $0x17] sm:$0x1]  ;;  %s9790_s27 = smov 96  }
  0x3d   : > { %9004 = vmatprep.subr.bf16.mxu0 %v9786_v0  ;;  %9006 = vmatprep.mubr.msk.bf16.mxu0 %vm9787_vm0, %v9786_v0  ;;  %v387_v17 = vld [vmem:[%s9956_s19 + $0x7] sm:$0x1]  ;;  %v390_v23 = vld [vmem:[%s9956_s19 + $0x1f] sm:$0x1]  ;;  %s9791_s26 = smov 16   ;;  %s9792_s25 = smov 32  }
  0x3e   : > { %9164 = vset.pattern.permute.xlu0 %v9788_v1  ;;  %9163 = vset.pattern.permute.xlu1 %v9788_v1  ;;  %vm716_vm1 = vcmask 1041409   ;;  %vm719_vm2 = vcmask 1042434   ;;  %vm722_vm3 = vcmask 1043459   ;;  %vm397_vm4 = vcmask 130048   ;;  %s9793_s23 = smov 80   ;;  %s8857_s16 = sshll.u32 %s9869_s13, 2 }
  0x3f   : > { %8993 = vmatpush3.bf16.msra.mxu1 %v9971_v2  ;;  %9005 = vmatpush3.bf16.msra.mxu0 %v9971_v2  ;;  %vm727_vm5 = vcmask 125952   ;;  %vm3696_vm7 = vcmask 36864   ;;  %p367_p6 = scmp.lt.s32.totalorder %s8857_s16, 7  ;;  %vm3642_vm8 = vcmask 32768   ;;  %vm4002_vm9 = vcmask 1044484   ;;  %s8953_s24 = sshll.u32 %s9869_s13, 6 }
  0x40   : > { %8998 = vmatprep.subr.bf16.mxu1 %v9786_v0  ;;  %9016 = vmatprep.subr.bf16.mxu0 %v9786_v0  ;;  %s8709_s13 = scalar_lea.sflag [#allocation6], %s9952_s29  ;;  %p14245_p12 = scmp.ne.s32.totalorder %s13995_s21, 0 }
  0x41   : > { %s14253_s16 = smov (!%p367_p6, %s8857_s16), 7 }
  0x42   : > { %8995 = vmatmul.mubr.bf16.vlgmr.msra.gmra.mrb[0].mxu1 %v9788_v1  ;;  %s8858_s14 = sshll.u32 %s14253_s16, 3  ;;  %s375_s20 = scalar_lea.vmem %s13878_s8, %s14253_s16 }
  0x43   : > { %8999 = vmatpush3.bf16.msra.mxu1 %v9977_v3  ;;  %9000 = vmatprep.mubr.msk.bf16.mxu1 %vm9787_vm0, %v9786_v0  ;;  %s8856_s16 = sshll.u32 %s9952_s29, 2 }
  0x44   : > { %9010 = vmatprep.subr.bf16.mxu1 %v9786_v0  ;;  %s364_s28 = scalar_lea.vmem [#allocation7], %s8856_s16 }
  0x4a   : > { %9001 = vmatmul.mubr.bf16.vlgmr.msra.gmra.mrb[4].mxu1 %v9788_v1 }
  0x4b   : > { %9011 = vmatpush3.bf16.msra.mxu1 %v9977_v3  ;;  %9012 = vmatprep.mubr.msk.bf16.mxu1 %vm9787_vm0, %v9786_v0 }
  0x4c   : > { %9022 = vmatprep.subr.bf16.mxu1 %v9786_v0 }
 0x115   : > { %v9990_v4 = vpop.f32.mrb[0].mxu1 }
 0x116   : > { %v8996_v5 = vpop.f32.mrb[1].mxu1  ;;  %v442_v1 = vrot.slane %v9990_v4, 1 }
 0x117   : > { %v438_v6 = vpop.f32.mrb[2].mxu1 }
 0x118   : > { %v8997_v7 = vpop.f32.mrb[3].mxu1  ;;  %v384_v6 = vld [vmem:[%s9956_s19 + $0x8] sm:$0x1] }
 0x11d   : > { %v589_v8 = vpop.f32.mrb[4].mxu1 }
 0x11e   : > { %599 = vrot.lane.b32.xlu1 %v589_v8, %s9789_s17  ;;  %v9002_v9 = vpop.f32.mrb[5].mxu1  ;;  %v596_v10 = vrot.slane %v589_v8, 1  ;;  %v598_v13 = vrot.slane %v589_v8, 3  ;;  %v597_v14 = vrot.slane %v589_v8, 2 }
 0x11f   : > { %v592_v11 = vpop.f32.mrb[6].mxu1  ;;  %v10021_v9 = vadd.f32 %v442_v1, %v384_v6 }
 0x120   : > { %601 = vrot.lane.b32.xlu0 %v596_v10, %s9789_s17  ;;  %v9003_v12 = vpop.f32.mrb[7].mxu1  ;;  %v383_v10 = vld [vmem:[%s9956_s19] sm:$0x1] }
 0x121   : > { %v10027_v12 = vadd.f32 %v9990_v4, %v383_v10 }
 0x122   : > { %605 = vrot.lane.b32.xlu1 %v598_v13, %s9789_s17 }
 0x124   : > { %603 = vrot.lane.b32.xlu0 %v597_v14, %s9789_s17 }
 0x190   : > { %v600_v16 = vpop.permute.xlu1 %599 }
 0x191   : > { %v611_v21 = vadd.f32 %v600_v16, %v387_v17 }
 0x192   : > { %v602_v18 = vpop.permute.xlu0 %601 }
 0x193   : > { %v612_v19 = vadd.f32 %v602_v18, %v388_v15  ;;  %v8866_v32 = vmul.f32 -1.442695, %v611_v21 }
 0x194   : > { %v606_v24 = vpop.permute.xlu1 %605 }
 0x195   : > { %9169 = vtanh.f32 %v612_v19  ;;  %v614_v26 = vadd.f32 %v606_v24, %v390_v23  ;;  %v8867_v31 = vmul.f32 -1.442695, %v612_v19 }
 0x196   : > { %v604_v22 = vpop.permute.xlu0 %603  ;;  %9171 = vtanh.f32 %v611_v21 }
 0x197   : > { %v613_v25 = vadd.f32 %v604_v22, %v389_v20  ;;  %v8869_v34 = vmul.f32 -1.442695, %v614_v26  ;;  %v443_v22 = vrot.slane %v9990_v4, 2 }
 0x199   : > { %9173 = vtanh.f32 %v613_v25  ;;  %v8868_v33 = vmul.f32 -1.442695, %v613_v25  ;;  %v385_v25 = vld [vmem:[%s9956_s19 + $0x10] sm:$0x1] }
 0x19a   : > { %9175 = vtanh.f32 %v614_v26 }
 0x19b   : > { %9177 = vpow2.f32 %v8867_v31  ;;  %v444_v31 = vrot.slane %v9990_v4, 3 }
 0x19c   : > { %9179 = vpow2.f32 %v8866_v32 }
 0x19d   : > { %9181 = vpow2.f32 %v8868_v33 }
 0x19e   : > { %9183 = vpow2.f32 %v8869_v34 }
 0x19f   : > { %v9170_v27 = vpop.eup %9169 }
 0x1a0   : > { %653 = vrot.lane.b32.xlu0 %v9170_v27, %s9790_s27  ;;  %v9172_v28 = vpop.eup %9171 }
 0x1a3   : > { %v9174_v29 = vpop.eup %9173 }
 0x1a4   : > { %651 = vrot.lane.b32.xlu0 %v9172_v28, %s9790_s27  ;;  %655 = vrot.lane.b32.xlu1 %v9174_v29, %s9790_s27  ;;  %v9176_v30 = vpop.eup %9175 }
 0x1a5   : > { %v9178_v35 = vpop.eup %9177 }
 0x1a6   : > { %v9180_v36 = vpop.eup %9179  ;;  %v628_v37 = vadd.f32 1.0, %v9178_v35  ;;  %v386_v35 = vld [vmem:[%s9956_s19 + $0x18] sm:$0x1] }
 0x1a7   : > { %v9182_v38 = vpop.eup %9181  ;;  %v627_v39 = vadd.f32 1.0, %v9180_v36  ;;  %v451_v36 = vadd.f32 %v443_v22, %v385_v25 }
 0x1a8   : > { %657 = vrot.lane.b32.xlu1 %v9176_v30, %s9790_s27  ;;  %9185 = vrcp.f32 %v628_v37  ;;  %v629_v40 = vadd.f32 1.0, %v9182_v38  ;;  %v9184_v41 = vpop.eup %9183 }
 0x1a9   : > { %9187 = vrcp.f32 %v627_v39  ;;  %v630_v42 = vadd.f32 1.0, %v9184_v41 }
 0x1aa   : > { %9189 = vrcp.f32 %v629_v40 }
 0x1ab   : > { %9191 = vrcp.f32 %v630_v42 }
 0x1b2   : > { %v9186_v43 = vpop.eup %9185 }
 0x1b3   : > { %v9188_v46 = vpop.eup %9187  ;;  %v644_v55 = vmul.f32 0.0, %v9186_v43 }
 0x1b4   : > { %v9190_v47 = vpop.eup %9189  ;;  %v643_v59 = vmul.f32 0.0, %v9188_v46 }
 0x1b5   : > { %v9192_v52 = vpop.eup %9191  ;;  %v645_v58 = vmul.f32 0.0, %v9190_v47 }
 0x1b6   : > { %v646_v5 = vmul.f32 0.0, %v9192_v52 }
 0x212   : > { %v654_v44 = vpop.permute.xlu0 %653 }
 0x213   : > { %v664_v45 = vmul.f32 %v9186_v43, %v654_v44  ;;  %v452_v44 = vadd.f32 %v444_v31, %v386_v35  ;;  %v748_v35 = vld [vmem:[%s9956_s19 + $0xe] sm:$0x1] }
 0x215   : > { %673 = vrot.lane.b32.xlu0 %v664_v45, %s9791_s26 }
 0x216   : > { %v656_v48 = vpop.permute.xlu1 %655  ;;  %v652_v49 = vpop.permute.xlu0 %651 }
 0x217   : > { %v665_v50 = vmul.f32 %v9190_v47, %v656_v48  ;;  %v663_v51 = vmul.f32 %v9188_v46, %v652_v49 }
 0x219   : > { %675 = vrot.lane.b32.xlu1 %v665_v50, %s9791_s26  ;;  %671 = vrot.lane.b32.xlu0 %v663_v51, %s9791_s26 }
 0x21a   : > { %v658_v53 = vpop.permute.xlu1 %657 }
 0x21b   : > { %v666_v54 = vmul.f32 %v9192_v52, %v658_v53 }
 0x21d   : > { %677 = vrot.lane.b32.xlu1 %v666_v54, %s9791_s26 }
 0x287   : > { %v674_v56 = vpop.permute.xlu0 %673 }
 0x288   : > { %v10008_v57 = vadd.f32 %v674_v56, %v644_v55  ;;  %v8862_v55 = vmul.f32 -1.442695, %v10021_v9  ;;  %v8863_v56 = vmul.f32 -1.442695, %v451_v36 }
 0x28a   : > { %9193 = vtanh.f32 %v10008_v57 }
 0x28b   : > { %v676_v60 = vpop.permute.xlu1 %675  ;;  %v672_v61 = vpop.permute.xlu0 %671 }
 0x28c   : > { %v10011_v62 = vadd.f32 %v676_v60, %v645_v58  ;;  %v10013_v63 = vadd.f32 %v672_v61, %v643_v59  ;;  %v8861_v58 = vmul.f32 -1.442695, %v10027_v12  ;;  %v8864_v59 = vmul.f32 -1.442695, %v452_v44 }
 0x28e   : > { %9195 = vtanh.f32 %v10011_v62 }
 0x28f   : > { %9197 = vtanh.f32 %v10013_v63  ;;  %v678_v7 = vpop.permute.xlu1 %677 }
 0x290   : > { %v10019_v8 = vadd.f32 %v678_v7, %v646_v5 }
 0x292   : > { %9199 = vtanh.f32 %v10019_v8 }
 0x293   : > { %9201 = vtanh.f32 %v10021_v9 }
 0x294   : > { %v9194_v11 = vpop.eup %9193  ;;  %9203 = vtanh.f32 %v10027_v12 }
 0x295   : > { %697 = vrot.lane.b32.xlu0 %v9194_v11, %s9792_s25  ;;  %9205 = vtanh.f32 %v451_v36 }
 0x296   : > { %9207 = vtanh.f32 %v452_v44 }
 0x297   : > { %9209 = vpow2.f32 %v8862_v55 }
 0x298   : > { %v9196_v13 = vpop.eup %9195  ;;  %9211 = vpow2.f32 %v8863_v56 }
 0x299   : > { %v9198_v14 = vpop.eup %9197  ;;  %699 = vrot.lane.b32.xlu1 %v9196_v13, %s9792_s25  ;;  %9213 = vpow2.f32 %v8861_v58 }
 0x29a   : > { %695 = vrot.lane.b32.xlu0 %v9198_v14, %s9792_s25  ;;  %9215 = vpow2.f32 %v8864_v59 }
 0x29c   : > { %v9200_v15 = vpop.eup %9199 }
 0x29d   : > { %701 = vrot.lane.b32.xlu1 %v9200_v15, %s9792_s25  ;;  %v9202_v16 = vpop.eup %9201 }
 0x29e   : > { %v9204_v17 = vpop.eup %9203 }
 0x2a1   : > { %491 = vrot.lane.b32.xlu1 %v9202_v16, %s9790_s27 }
 0x2a5   : > { %489 = vrot.lane.b32.xlu1 %v9204_v17, %s9790_s27 }
 0x307   : > { %v698_v18 = vpop.permute.xlu0 %697 }
 0x308   : > { %v708_v19 = vmul.f32 %v9186_v43, %v698_v18 }
 0x30a   : > { %v924_v20 = vpack.c.bf16 %v708_v19, %v708_v19  ;;  %v733_v26 = vrot.slane %v708_v19, 7 }
 0x30b   : > { %v700_v21 = vpop.permute.xlu1 %699 }
 0x30c   : > { %v709_v23 = vmul.f32 %v9190_v47, %v700_v21  ;;  %v696_v24 = vpop.permute.xlu0 %695  ;;  %v932_v28 = vunpack.c.l.b16 %v924_v20 }
 0x30d   : > { %v707_v27 = vmul.f32 %v9188_v46, %v696_v24 }
 0x30e   : > { %v735_v29 = vrot.slane %v709_v23, 6  ;;  %v925_v30 = vpack.c.bf16 %v709_v23, %v709_v23  ;;  %v935_v41 = vrot.slane %v932_v28, 7 }
 0x30f   : > { %v734_v32 = vsel %vm716_vm1, %v733_v26, %v707_v27  ;;  %v923_v33 = vpack.c.bf16 %v707_v27, %v707_v27  ;;  %v702_v34 = vpop.permute.xlu1 %701 }
 0x310   : > { %v933_v37 = vunpack.c.l.b16 %v925_v30  ;;  %v710_v38 = vmul.f32 %v9192_v52, %v702_v34  ;;  %v736_v39 = vsel %vm719_vm2, %v735_v29, %v734_v32  ;;  %v9206_v52 = vpop.eup %9205  ;;  %v747_v30 = vld [vmem:[%s9956_s19 + $0x6] sm:$0x1]  ;;  %v749_v32 = vld [vmem:[%s9956_s19 + $0x16] sm:$0x1] }
 0x311   : > { %v931_v40 = vunpack.c.l.b16 %v923_v33  ;;  %v9208_v53 = vpop.eup %9207 }
 0x312   : > { %v737_v42 = vrot.slane %v710_v38, 5  ;;  %v926_v43 = vpack.c.bf16 %v710_v38, %v710_v38  ;;  %v937_v45 = vrot.slane %v933_v37, 6  ;;  %v9210_v60 = vpop.eup %9209  ;;  %v750_v38 = vld [vmem:[%s9956_s19 + $0x1e] sm:$0x1] }
 0x313   : > { %v936_v4 = vsel %vm716_vm1, %v935_v41, %v931_v40  ;;  %v9212_v61 = vpop.eup %9211  ;;  %v466_v1 = vadd.f32 1.0, %v9210_v60  ;;  %v492_v14 = vpop.permute.xlu1 %491 }
 0x314   : > { %v934_v46 = vunpack.c.l.b16 %v926_v43  ;;  %v10044_v47 = vsel %vm722_vm3, %v737_v42, %v736_v39  ;;  %v938_v49 = vsel %vm719_vm2, %v937_v45, %v936_v4  ;;  %v9214_v5 = vpop.eup %9213  ;;  %v467_v6 = vadd.f32 1.0, %v9212_v61 }
 0x315   : > { %v9216_v7 = vpop.eup %9215  ;;  %v465_v10 = vadd.f32 1.0, %v9214_v5  ;;  %9217 = vrcp.f32 %v466_v1 }
 0x316   : > { %v939_v48 = vrot.slane %v934_v46, 5  ;;  %v468_v11 = vadd.f32 1.0, %v9216_v7  ;;  %9219 = vrcp.f32 %v467_v6 }
 0x317   : > { %9221 = vrcp.f32 %v465_v10  ;;  %v490_v23 = vpop.permute.xlu1 %489 }
 0x318   : > { %v940_v50 = vsel %vm722_vm3, %v939_v48, %v938_v49  ;;  %9223 = vrcp.f32 %v468_v11 }
 0x319   : > { %v941_v51 = vpack.c.b16 %v940_v50, %v940_v50 }
 0x31b   : > { %942 = vrot.lane.b32.xlu0 %v941_v51, %s9791_s26 }
 0x31f   : > { %493 = vrot.lane.b32.xlu0 %v9206_v52, %s9790_s27  ;;  %v10061_v20 = vpop.eup %9217 }
 0x320   : > { %v502_v21 = vmul.f32 %v10061_v20, %v492_v14  ;;  %v10065_v22 = vpop.eup %9219  ;;  %v482_v42 = vmul.f32 0.0, %v10061_v20 }
 0x321   : > { %v10069_v25 = vpop.eup %9221  ;;  %v483_v45 = vmul.f32 0.0, %v10065_v22 }
 0x322   : > { %v501_v27 = vmul.f32 %v10069_v25, %v490_v23  ;;  %v10073_v28 = vpop.eup %9223  ;;  %v481_v48 = vmul.f32 0.0, %v10069_v25 }
 0x323   : > { %495 = vrot.lane.b32.xlu0 %v9208_v53, %s9790_s27  ;;  %v484_v52 = vmul.f32 0.0, %v10073_v28 }
 0x38d   : > { %v943_v54 = vpop.permute.xlu0 %942 }
 0x38e   : > { %9013 = vmatmul.mubr.msk.bf16.vlgmr.msra.gmra.mrb[8].mxu1 %vm397_vm4, %v943_v54 }
 0x38f   : > { %9023 = vmatpush3.bf16.msra.mxu1 %v9977_v3  ;;  %9024 = vmatprep.mubr.msk.bf16.mxu1 %vm9787_vm0, %v9786_v0 }
 0x390   : > { %9034 = vmatprep.subr.bf16.mxu1 %v9786_v0 }
 0x391   : > { %v494_v18 = vpop.permute.xlu0 %493 }
 0x392   : > { %v503_v24 = vmul.f32 %v10065_v22, %v494_v18 }
 0x395   : > { %v496_v26 = vpop.permute.xlu0 %495 }
 0x396   : > { %v504_v29 = vmul.f32 %v10073_v28, %v496_v26 }
 0x461   : > { %v981_v9 = vpop.f32.mrb[8].mxu1 }
 0x462   : > { %991 = vrot.lane.b32.xlu1 %v981_v9, %s9789_s17  ;;  %v9014_v12 = vpop.f32.mrb[9].mxu1  ;;  %v989_v13 = vrot.slane %v981_v9, 2  ;;  %v988_v17 = vrot.slane %v981_v9, 1  ;;  %v990_v19 = vrot.slane %v981_v9, 3 }
 0x463   : > { %v984_v15 = vpop.f32.mrb[10].mxu1 }
 0x464   : > { %995 = vrot.lane.b32.xlu0 %v989_v13, %s9789_s17  ;;  %v9015_v16 = vpop.f32.mrb[11].mxu1 }
 0x466   : > { %993 = vrot.lane.b32.xlu1 %v988_v17, %s9789_s17 }
 0x468   : > { %997 = vrot.lane.b32.xlu0 %v990_v19, %s9789_s17 }
 0x46a   : > { %511 = vrot.lane.b32.xlu1 %v502_v21, %s9791_s26 }
 0x46c   : > { %513 = vrot.lane.b32.xlu0 %v503_v24, %s9791_s26 }
 0x46e   : > { %509 = vrot.lane.b32.xlu1 %v501_v27, %s9791_s26 }
 0x470   : > { %515 = vrot.lane.b32.xlu0 %v504_v29, %s9791_s26 }
 0x4d4   : > { %v992_v31 = vpop.permute.xlu1 %991 }
 0x4d5   : > { %v1003_v33 = vadd.f32 %v992_v31, %v747_v30 }
 0x4d6   : > { %v996_v34 = vpop.permute.xlu0 %995 }
 0x4d7   : > { %9225 = vtanh.f32 %v1003_v33  ;;  %v1005_v36 = vadd.f32 %v996_v34, %v749_v32  ;;  %v8876_v10 = vmul.f32 -1.442695, %v1003_v33 }
 0x4d8   : > { %v994_v37 = vpop.permute.xlu1 %993 }
 0x4d9   : > { %v1004_v39 = vadd.f32 %v994_v37, %v748_v35  ;;  %9227 = vtanh.f32 %v1005_v36  ;;  %v8878_v5 = vmul.f32 -1.442695, %v1005_v36 }
 0x4da   : > { %v998_v40 = vpop.permute.xlu0 %997 }
 0x4db   : > { %v1006_v41 = vadd.f32 %v998_v40, %v750_v38  ;;  %9229 = vtanh.f32 %v1004_v39  ;;  %v8877_v6 = vmul.f32 -1.442695, %v1004_v39 }
 0x4dc   : > { %v512_v43 = vpop.permute.xlu1 %511 }
 0x4dd   : > { %v10083_v44 = vadd.f32 %v512_v43, %v482_v42  ;;  %9231 = vtanh.f32 %v1006_v41  ;;  %v8879_v7 = vmul.f32 -1.442695, %v1006_v41 }
 0x4de   : > { %v514_v46 = vpop.permute.xlu0 %513 }
 0x4df   : > { %v10086_v4 = vadd.f32 %v514_v46, %v483_v45  ;;  %9233 = vtanh.f32 %v10083_v44 }
 0x4e0   : > { %v510_v49 = vpop.permute.xlu1 %509 }
 0x4e1   : > { %v9226_v50 = vpop.eup %9225  ;;  %9235 = vtanh.f32 %v10086_v4  ;;  %v10091_v51 = vadd.f32 %v510_v49, %v481_v48 }
 0x4e2   : > { %v516_v53 = vpop.permute.xlu0 %515  ;;  %1043 = vrot.lane.b32.xlu1 %v9226_v50, %s9790_s27 }
 0x4e3   : > { %9237 = vtanh.f32 %v10091_v51  ;;  %v10096_v54 = vadd.f32 %v516_v53, %v484_v52  ;;  %v9228_v55 = vpop.eup %9227 }
 0x4e4   : > { %1047 = vrot.lane.b32.xlu0 %v9228_v55, %s9790_s27 }
 0x4e5   : > { %9239 = vtanh.f32 %v10096_v54  ;;  %v9230_v56 = vpop.eup %9229 }
 0x4e6   : > { %1045 = vrot.lane.b32.xlu1 %v9230_v56, %s9790_s27  ;;  %9241 = vpow2.f32 %v8878_v5 }
 0x4e7   : > { %v9232_v58 = vpop.eup %9231  ;;  %9243 = vpow2.f32 %v8877_v6 }
 0x4e8   : > { %1049 = vrot.lane.b32.xlu0 %v9232_v58, %s9790_s27  ;;  %9245 = vpow2.f32 %v8879_v7 }
 0x4e9   : > { %v9234_v59 = vpop.eup %9233  ;;  %9247 = vpow2.f32 %v8876_v10 }
 0x4ea   : > { %535 = vrot.lane.b32.xlu1 %v9234_v59, %s9792_s25 }
 0x4eb   : > { %v9236_v60 = vpop.eup %9235 }
 0x4ec   : > { %537 = vrot.lane.b32.xlu0 %v9236_v60, %s9792_s25 }
 0x4ed   : > { %v9238_v61 = vpop.eup %9237 }
 0x4ee   : > { %533 = vrot.lane.b32.xlu1 %v9238_v61, %s9792_s25 }
 0x4ef   : > { %v9240_v1 = vpop.eup %9239 }
 0x4f0   : > { %539 = vrot.lane.b32.xlu0 %v9240_v1, %s9792_s25  ;;  %v9242_v11 = vpop.eup %9241 }
 0x4f1   : > { %v9244_v9 = vpop.eup %9243  ;;  %v1021_v12 = vadd.f32 1.0, %v9242_v11 }
 0x4f2   : > { %v9246_v13 = vpop.eup %9245  ;;  %v1020_v14 = vadd.f32 1.0, %v9244_v9 }
 0x4f3   : > { %v9248_v15 = vpop.eup %9247  ;;  %9249 = vrcp.f32 %v1021_v12  ;;  %v1022_v16 = vadd.f32 1.0, %v9246_v13 }
 0x4f4   : > { %v1019_v17 = vadd.f32 1.0, %v9248_v15  ;;  %9251 = vrcp.f32 %v1020_v14 }
 0x4f5   : > { %9253 = vrcp.f32 %v1022_v16 }
 0x4f6   : > { %9255 = vrcp.f32 %v1019_v17 }
 0x4fd   : > { %v10106_v19 = vpop.eup %9249 }
 0x4fe   : > { %v10109_v24 = vpop.eup %9251 }
 0x4ff   : > { %v10113_v29 = vpop.eup %9253  ;;  %v1036_v11 = vmul.f32 %v10109_v24, %v10008_v57 }
 0x500   : > { %v10117_v32 = vpop.eup %9255  ;;  %v1038_v13 = vmul.f32 %v10113_v29, %v10019_v8 }
 0x554   : > { %v1044_v18 = vpop.permute.xlu1 %1043 }
 0x555   : > { %v1055_v34 = vmul.f32 %v10117_v32, %v1044_v18 }
 0x556   : > { %v1048_v21 = vpop.permute.xlu0 %1047 }
 0x557   : > { %v1057_v23 = vmul.f32 %v10106_v19, %v1048_v21 }
 0x558   : > { %v1046_v26 = vpop.permute.xlu1 %1045 }
 0x559   : > { %v1056_v27 = vmul.f32 %v10109_v24, %v1046_v26  ;;  %1067 = vrot.lane.b32.xlu0 %v1057_v23, %s9791_s26 }
 0x55a   : > { %v1050_v30 = vpop.permute.xlu0 %1049 }
 0x55b   : > { %v1058_v31 = vmul.f32 %v10113_v29, %v1050_v30  ;;  %1065 = vrot.lane.b32.xlu1 %v1056_v27, %s9791_s26 }
 0x55c   : > { %v536_v33 = vpop.permute.xlu1 %535 }
 0x55d   : > { %v546_v35 = vmul.f32 %v10061_v20, %v536_v33  ;;  %1069 = vrot.lane.b32.xlu0 %v1058_v31, %s9791_s26 }
 0x55e   : > { %v538_v36 = vpop.permute.xlu0 %537 }
 0x55f   : > { %v752_v37 = vpack.c.bf16 %v546_v35, %v546_v35  ;;  %v547_v38 = vmul.f32 %v10065_v22, %v538_v36  ;;  %1063 = vrot.lane.b32.xlu1 %v1055_v34, %s9791_s26  ;;  %v715_v40 = vrot.slane %v546_v35, 7 }
 0x560   : > { %v534_v39 = vpop.permute.xlu1 %533 }
 0x561   : > { %v718_v41 = vrot.slane %v547_v38, 6  ;;  %v753_v42 = vpack.c.bf16 %v547_v38, %v547_v38  ;;  %v545_v43 = vmul.f32 %v10069_v25, %v534_v39  ;;  %v760_v45 = vunpack.c.l.b16 %v752_v37 }
 0x562   : > { %v540_v46 = vpop.permute.xlu0 %539 }
 0x563   : > { %v761_v48 = vunpack.c.l.b16 %v753_v42  ;;  %v717_v49 = vsel %vm716_vm1, %v715_v40, %v545_v43  ;;  %v751_v20 = vpack.c.bf16 %v545_v43, %v545_v43  ;;  %v548_v50 = vmul.f32 %v10073_v28, %v540_v46 }
 0x564   : > { %v720_v52 = vsel %vm719_vm2, %v718_v41, %v717_v49  ;;  %v763_v22 = vrot.slane %v760_v45, 7  ;;  %v1037_v28 = vmul.f32 %v10106_v19, %v10011_v62  ;;  %v1035_v62 = vmul.f32 %v10117_v32, %v10013_v63 }
 0x565   : > { %v759_v53 = vunpack.c.l.b16 %v751_v20  ;;  %v721_v55 = vrot.slane %v548_v50, 5  ;;  %v754_v56 = vpack.c.bf16 %v548_v50, %v548_v50  ;;  %v765_v58 = vrot.slane %v761_v48, 6 }
 0x567   : > { %v762_v59 = vunpack.c.l.b16 %v754_v56  ;;  %v764_v60 = vsel %vm716_vm1, %v763_v22, %v759_v53  ;;  %v10130_v25 = vsel %vm722_vm3, %v721_v55, %v720_v52  ;;  %v744_v22 = vld [vmem:[%s9956_s19 + $0x9] sm:$0x1] }
 0x568   : > { %v766_v1 = vsel %vm719_vm2, %v765_v58, %v764_v60 }
 0x569   : > { %v767_v61 = vrot.slane %v762_v59, 5  ;;  %v743_v59 = vld [vmem:[%s9956_s19 + $0x1] sm:$0x1] }
 0x56b   : > { %v768_v5 = vsel %vm722_vm3, %v767_v61, %v766_v1  ;;  %v745_v1 = vld [vmem:[%s9956_s19 + $0x11] sm:$0x1] }
 0x56c   : > { %v769_v6 = vpack.c.b16 %v768_v5, %v768_v5 }
 0x56e   : > { %770 = vrot.lane.b32.xlu1 %v769_v6, %s9793_s23 }
 0x5cb   : > { %v1068_v7 = vpop.permute.xlu0 %1067 }
 0x5cc   : > { %v10137_v10 = vadd.f32 %v1068_v7, %v1037_v28 }
 0x5cd   : > { %v1066_v9 = vpop.permute.xlu1 %1065 }
 0x5ce   : > { %9257 = vtanh.f32 %v10137_v10  ;;  %v10142_v12 = vadd.f32 %v1066_v9, %v1036_v11  ;;  %v746_v9 = vld [vmem:[%s9956_s19 + $0x19] sm:$0x1] }
 0x5cf   : > { %v1070_v14 = vpop.permute.xlu0 %1069 }
 0x5d0   : > { %9259 = vtanh.f32 %v10142_v12  ;;  %v10147_v15 = vadd.f32 %v1070_v14, %v1038_v13 }
 0x5d1   : > { %v1064_v16 = vpop.permute.xlu1 %1063 }
 0x5d2   : > { %9261 = vtanh.f32 %v10147_v15  ;;  %v10152_v57 = vadd.f32 %v1064_v16, %v1035_v62 }
 0x5d4   : > { %9263 = vtanh.f32 %v10152_v57 }
 0x5d8   : > { %v9258_v17 = vpop.eup %9257 }
 0x5d9   : > { %1091 = vrot.lane.b32.xlu1 %v9258_v17, %s9792_s25 }
 0x5da   : > { %v9260_v18 = vpop.eup %9259 }
 0x5db   : > { %1089 = vrot.lane.b32.xlu0 %v9260_v18, %s9792_s25 }
 0x5dc   : > { %v9262_v8 = vpop.eup %9261 }
 0x5dd   : > { %1093 = vrot.lane.b32.xlu1 %v9262_v8, %s9792_s25 }
 0x5de   : > { %v9264_v21 = vpop.eup %9263 }
 0x5df   : > { %1087 = vrot.lane.b32.xlu0 %v9264_v21, %s9792_s25 }
 0x5e0   : > { %v771_v63 = vpop.permute.xlu1 %770 }
 0x5e1   : > { %9007 = vmatmul.mubr.msk.bf16.vlgmr.msra.gmra.mrb[0].mxu0 %vm397_vm4, %v771_v63 }
 0x5e2   : > { %9017 = vmatpush3.bf16.msra.mxu0 %v9971_v2  ;;  %9018 = vmatprep.mubr.msk.bf16.mxu0 %vm9787_vm0, %v9786_v0 }
 0x5e3   : > { %9028 = vmatprep.subr.bf16.mxu0 %v9786_v0 }
 0x64b   : > { %v1092_v23 = vpop.permute.xlu1 %1091 }
 0x64c   : > { %v1101_v26 = vmul.f32 %v10106_v19, %v1092_v23 }
 0x64d   : > { %v1090_v27 = vpop.permute.xlu0 %1089 }
 0x64e   : > { %v1100_v30 = vmul.f32 %v10109_v24, %v1090_v27  ;;  %v1313_v33 = vpack.c.bf16 %v1101_v26, %v1101_v26  ;;  %v1123_v40 = vrot.slane %v1101_v26, 6 }
 0x64f   : > { %v1094_v31 = vpop.permute.xlu1 %1093 }
 0x650   : > { %v1312_v34 = vpack.c.bf16 %v1100_v30, %v1100_v30  ;;  %v1102_v35 = vmul.f32 %v10113_v29, %v1094_v31  ;;  %v1121_v38 = vrot.slane %v1100_v30, 7  ;;  %v1321_v41 = vunpack.c.l.b16 %v1313_v33 }
 0x651   : > { %v1088_v36 = vpop.permute.xlu0 %1087 }
 0x652   : > { %v1314_v37 = vpack.c.bf16 %v1102_v35, %v1102_v35  ;;  %v1320_v2 = vunpack.c.l.b16 %v1312_v34  ;;  %v1099_v39 = vmul.f32 %v10117_v32, %v1088_v36  ;;  %v1125_v42 = vrot.slane %v1102_v35, 5 }
 0x653   : > { %v1325_v49 = vrot.slane %v1321_v41, 6 }
 0x654   : > { %v1322_v43 = vunpack.c.l.b16 %v1314_v37  ;;  %v1122_v19 = vsel %vm716_vm1, %v1121_v38, %v1099_v39  ;;  %v1311_v45 = vpack.c.bf16 %v1099_v39, %v1099_v39  ;;  %v1323_v46 = vrot.slane %v1320_v2, 7 }
 0x655   : > { %v1124_v24 = vsel %vm719_vm2, %v1123_v40, %v1122_v19 }
 0x656   : > { %v1319_v48 = vunpack.c.l.b16 %v1311_v45  ;;  %v10171_v29 = vsel %vm722_vm3, %v1125_v42, %v1124_v24  ;;  %v1327_v20 = vrot.slane %v1322_v43, 5 }
 0x658   : > { %v1324_v32 = vsel %vm716_vm1, %v1323_v46, %v1319_v48 }
 0x659   : > { %v1326_v50 = vsel %vm719_vm2, %v1325_v49, %v1324_v32 }
 0x65a   : > { %v1328_v52 = vsel %vm722_vm3, %v1327_v20, %v1326_v50 }
 0x65b   : > { %v1329_v53 = vpack.c.b16 %v1328_v52, %v1328_v52 }
 0x65d   : > { %1330 = vrot.lane.b32.xlu0 %v1329_v53, %s9791_s26 }
 0x6b4   : > { %v809_v55 = vpop.f32.mrb[0].mxu0 }
 0x6b5   : > { %v816_v56 = vrot.slane %v809_v55, 1  ;;  %v9008_v58 = vpop.f32.mrb[1].mxu0  ;;  %v817_v60 = vrot.slane %v809_v55, 2  ;;  %v823_v28 = vadd.f32 %v809_v55, %v743_v59  ;;  %v818_v7 = vrot.slane %v809_v55, 3 }
 0x6b6   : > { %v812_v61 = vpop.f32.mrb[2].mxu0 }
 0x6b7   : > { %v824_v5 = vadd.f32 %v816_v56, %v744_v22  ;;  %v9009_v6 = vpop.f32.mrb[3].mxu0  ;;  %v825_v11 = vadd.f32 %v817_v60, %v745_v1  ;;  %v826_v13 = vadd.f32 %v818_v7, %v746_v9  ;;  %v8871_v21 = vmul.f32 -1.442695, %v823_v28 }
 0x6b9   : > { %9265 = vtanh.f32 %v824_v5  ;;  %v8872_v8 = vmul.f32 -1.442695, %v824_v5  ;;  %v8873_v63 = vmul.f32 -1.442695, %v825_v11  ;;  %v8874_v23 = vmul.f32 -1.442695, %v826_v13 }
 0x6ba   : > { %9267 = vtanh.f32 %v823_v28 }
 0x6bb   : > { %9269 = vtanh.f32 %v825_v11  ;;  %v1136_v11 = vld [vmem:[%s9956_s19 + $0xd] sm:$0x1] }
 0x6bc   : > { %9271 = vtanh.f32 %v826_v13 }
 0x6bd   : > { %9273 = vpow2.f32 %v8872_v8 }
 0x6be   : > { %9275 = vpow2.f32 %v8871_v21 }
 0x6bf   : > { %9277 = vpow2.f32 %v8873_v63 }
 0x6c0   : > { %9279 = vpow2.f32 %v8874_v23 }
 0x6c3   : > { %v9266_v14 = vpop.eup %9265 }
 0x6c4   : > { %865 = vrot.lane.b32.xlu1 %v9266_v14, %s9790_s27  ;;  %v9268_v62 = vpop.eup %9267 }
 0x6c5   : > { %v9270_v16 = vpop.eup %9269 }
 0x6c6   : > { %867 = vrot.lane.b32.xlu0 %v9270_v16, %s9790_s27  ;;  %v9272_v17 = vpop.eup %9271  ;;  %v1138_v16 = vld [vmem:[%s9956_s19 + $0x1d] sm:$0x1] }
 0x6c7   : > { %v9274_v26 = vpop.eup %9273 }
 0x6c8   : > { %863 = vrot.lane.b32.xlu1 %v9268_v62, %s9790_s27  ;;  %v9276_v27 = vpop.eup %9275  ;;  %v840_v30 = vadd.f32 1.0, %v9274_v26 }
 0x6c9   : > { %v9278_v31 = vpop.eup %9277  ;;  %v839_v33 = vadd.f32 1.0, %v9276_v27 }
 0x6ca   : > { %869 = vrot.lane.b32.xlu0 %v9272_v17, %s9790_s27  ;;  %v841_v34 = vadd.f32 1.0, %v9278_v31  ;;  %9281 = vrcp.f32 %v840_v30  ;;  %v1135_v17 = vld [vmem:[%s9956_s19 + $0x5] sm:$0x1] }
 0x6cb   : > { %9283 = vrcp.f32 %v839_v33 }
 0x6cc   : > { %9285 = vrcp.f32 %v841_v34 }
 0x6cf   : > { %v1331_v18 = vpop.permute.xlu0 %1330 }
 0x6d0   : > { %9025 = vmatmul.mubr.msk.bf16.vlgmr.msra.gmra.mrb[12].mxu1 %vm397_vm4, %v1331_v18 }
 0x6d1   : > { %9035 = vmatpush3.bf16.msra.mxu1 %v9977_v3  ;;  %9036 = vmatprep.mubr.msk.bf16.mxu1 %vm9787_vm0, %v9786_v0  ;;  %v9280_v3 = vpop.eup %9279 }
 0x6d2   : > { %9046 = vmatprep.subr.bf16.mxu1 %v9786_v0  ;;  %v842_v35 = vadd.f32 1.0, %v9280_v3 }
 0x6d4   : > { %9287 = vrcp.f32 %v842_v35  ;;  %v10190_v36 = vpop.eup %9281 }
 0x6d5   : > { %v10193_v2 = vpop.eup %9283  ;;  %v856_v53 = vmul.f32 %v10190_v36, %v10083_v44 }
 0x6d6   : > { %v10196_v39 = vpop.eup %9285  ;;  %v855_v58 = vmul.f32 %v10193_v2, %v10091_v51 }
 0x6d7   : > { %v857_v56 = vmul.f32 %v10196_v39, %v10086_v4 }
 0x6de   : > { %v10202_v19 = vpop.eup %9287 }
 0x6df   : > { %v858_v44 = vmul.f32 %v10202_v19, %v10096_v54  ;;  %v1137_v54 = vld [vmem:[%s9956_s19 + $0x15] sm:$0x1] }
 0x736   : > { %v866_v37 = vpop.permute.xlu1 %865 }
 0x737   : > { %v876_v38 = vmul.f32 %v10190_v36, %v866_v37 }
 0x738   : > { %v868_v40 = vpop.permute.xlu0 %867 }
 0x739   : > { %885 = vrot.lane.b32.xlu1 %v876_v38, %s9791_s26  ;;  %v877_v42 = vmul.f32 %v10196_v39, %v868_v40 }
 0x73a   : > { %v864_v41 = vpop.permute.xlu1 %863 }
 0x73b   : > { %v875_v43 = vmul.f32 %v10193_v2, %v864_v41  ;;  %887 = vrot.lane.b32.xlu0 %v877_v42, %s9791_s26 }
 0x73c   : > { %v870_v45 = vpop.permute.xlu0 %869 }
 0x73d   : > { %883 = vrot.lane.b32.xlu1 %v875_v43, %s9791_s26  ;;  %v878_v24 = vmul.f32 %v10202_v19, %v870_v45 }
 0x73f   : > { %889 = vrot.lane.b32.xlu0 %v878_v24, %s9791_s26 }
 0x7a3   : > { %v1369_v46 = vpop.f32.mrb[12].mxu1 }
 0x7a4   : > { %v9026_v48 = vpop.f32.mrb[13].mxu1  ;;  %v1377_v49 = vrot.slane %v1369_v46, 2  ;;  %v1376_v20 = vrot.slane %v1369_v46, 1  ;;  %v1378_v52 = vrot.slane %v1369_v46, 3 }
 0x7a5   : > { %v1372_v32 = vpop.f32.mrb[14].mxu1 }
 0x7a6   : > { %1383 = vrot.lane.b32.xlu0 %v1377_v49, %s9789_s17  ;;  %1381 = vrot.lane.b32.xlu1 %v1376_v20, %s9789_s17  ;;  %v9027_v50 = vpop.f32.mrb[15].mxu1 }
 0x7aa   : > { %1385 = vrot.lane.b32.xlu0 %v1378_v52, %s9789_s17  ;;  %1379 = vrot.lane.b32.xlu1 %v1369_v46, %s9789_s17 }
 0x7ab   : > { %v886_v22 = vpop.permute.xlu1 %885 }
 0x7ac   : > { %v10212_v55 = vadd.f32 %v886_v22, %v856_v53 }
 0x7ad   : > { %v888_v59 = vpop.permute.xlu0 %887 }
 0x7ae   : > { %9289 = vtanh.f32 %v10212_v55  ;;  %v10219_v61 = vadd.f32 %v888_v59, %v857_v56 }
 0x7af   : > { %v884_v60 = vpop.permute.xlu1 %883 }
 0x7b0   : > { %v10221_v1 = vadd.f32 %v884_v60, %v855_v58  ;;  %9291 = vtanh.f32 %v10219_v61 }
 0x7b1   : > { %v890_v5 = vpop.permute.xlu0 %889 }
 0x7b2   : > { %9293 = vtanh.f32 %v10221_v1  ;;  %v10227_v4 = vadd.f32 %v890_v5, %v858_v44 }
 0x7b4   : > { %9295 = vtanh.f32 %v10227_v4 }
 0x7b8   : > { %v9290_v51 = vpop.eup %9289 }
 0x7b9   : > { %909 = vrot.lane.b32.xlu1 %v9290_v51, %s9792_s25 }
 0x7ba   : > { %v9292_v6 = vpop.eup %9291 }
 0x7bb   : > { %911 = vrot.lane.b32.xlu0 %v9292_v6, %s9792_s25 }
 0x7bc   : > { %v9294_v28 = vpop.eup %9293 }
 0x7bd   : > { %907 = vrot.lane.b32.xlu1 %v9294_v28, %s9792_s25 }
 0x7be   : > { %v9296_v7 = vpop.eup %9295 }
 0x7bf   : > { %913 = vrot.lane.b32.xlu0 %v9296_v7, %s9792_s25 }
 0x818   : > { %v1384_v9 = vpop.permute.xlu0 %1383  ;;  %v1382_v13 = vpop.permute.xlu1 %1381 }
 0x819   : > { %v1393_v14 = vadd.f32 %v1384_v9, %v1137_v54  ;;  %v1392_v62 = vadd.f32 %v1382_v13, %v1136_v11 }
 0x81b   : > { %9297 = vtanh.f32 %v1393_v14  ;;  %v8887_v44 = vmul.f32 -1.442695, %v1392_v62 }
 0x81c   : > { %9299 = vtanh.f32 %v1392_v62  ;;  %v1386_v18 = vpop.permute.xlu0 %1385  ;;  %v1380_v8 = vpop.permute.xlu1 %1379 }
 0x81d   : > { %v1394_v21 = vadd.f32 %v1386_v18, %v1138_v16  ;;  %v1391_v63 = vadd.f32 %v1380_v8, %v1135_v17 }
 0x81f   : > { %9301 = vtanh.f32 %v1394_v21  ;;  %v8889_v5 = vmul.f32 -1.442695, %v1394_v21  ;;  %v8886_v51 = vmul.f32 -1.442695, %v1391_v63 }
 0x820   : > { %9303 = vtanh.f32 %v1391_v63 }
 0x825   : > { %v9298_v23 = vpop.eup %9297 }
 0x826   : > { %v9300_v26 = vpop.eup %9299  ;;  %1435 = vrot.lane.b32.xlu0 %v9298_v23, %s9790_s27 }
 0x827   : > { %1433 = vrot.lane.b32.xlu1 %v9300_v26, %s9790_s27 }
 0x829   : > { %v9302_v27 = vpop.eup %9301 }
 0x82a   : > { %v9304_v30 = vpop.eup %9303  ;;  %1437 = vrot.lane.b32.xlu0 %v9302_v27, %s9790_s27 }
 0x82b   : > { %1431 = vrot.lane.b32.xlu1 %v9304_v30, %s9790_s27  ;;  %v910_v31 = vpop.permute.xlu1 %909 }
 0x82c   : > { %v920_v33 = vmul.f32 %v10190_v36, %v910_v31 }
 0x82d   : > { %v912_v3 = vpop.permute.xlu0 %911 }
 0x82e   : > { %v1140_v34 = vpack.c.bf16 %v920_v33, %v920_v33  ;;  %v921_v35 = vmul.f32 %v10196_v39, %v912_v3  ;;  %v1107_v38 = vrot.slane %v920_v33, 7 }
 0x82f   : > { %v908_v37 = vpop.permute.xlu1 %907 }
 0x830   : > { %v1148_v40 = vunpack.c.l.b16 %v1140_v34  ;;  %v919_v41 = vmul.f32 %v10193_v2, %v908_v37  ;;  %v1109_v42 = vrot.slane %v921_v35, 6  ;;  %v1141_v43 = vpack.c.bf16 %v921_v35, %v921_v35  ;;  %v10266_v34 = vld [vmem:[%s13871_s1] sm:$0xff]  }
 0x831   : > { %v914_v45 = vpop.permute.xlu0 %913 }
 0x832   : > { %v1108_v24 = vsel %vm716_vm1, %v1107_v38, %v919_v41  ;;  %v1139_v46 = vpack.c.bf16 %v919_v41, %v919_v41  ;;  %v1149_v48 = vunpack.c.l.b16 %v1141_v43  ;;  %v922_v49 = vmul.f32 %v10202_v19, %v914_v45 }
 0x833   : > { %v1110_v36 = vsel %vm719_vm2, %v1109_v42, %v1108_v24  ;;  %v1151_v20 = vrot.slane %v1148_v40, 7  ;;  %v8888_v19 = vmul.f32 -1.442695, %v1393_v14 }
 0x834   : > { %v1147_v32 = vunpack.c.l.b16 %v1139_v46  ;;  %v1111_v50 = vrot.slane %v922_v49, 5  ;;  %v1142_v39 = vpack.c.bf16 %v922_v49, %v922_v49  ;;  %v1153_v52 = vrot.slane %v1149_v48, 6 }
 0x835   : > { %9305 = vpow2.f32 %v8888_v19 }
 0x836   : > { %v1152_v53 = vsel %vm716_vm1, %v1151_v20, %v1147_v32  ;;  %v1150_v22 = vunpack.c.l.b16 %v1142_v39  ;;  %v10250_v2 = vsel %vm722_vm3, %v1111_v50, %v1110_v36  ;;  %9307 = vpow2.f32 %v8887_v44  ;;  %v1131_v39 = vld [vmem:[%s9956_s19 + $0x2] sm:$0x1]  ;;  %v1133_v44 = vld [vmem:[%s9956_s19 + $0x12] sm:$0x1] }
 0x837   : > { %v1154_v56 = vsel %vm719_vm2, %v1153_v52, %v1152_v53  ;;  %9309 = vpow2.f32 %v8889_v5 }
 0x838   : > { %v1155_v58 = vrot.slane %v1150_v22, 5  ;;  %9311 = vpow2.f32 %v8886_v51 }
 0x83a   : > { %v1156_v59 = vsel %vm722_vm3, %v1155_v58, %v1154_v56 }
 0x83b   : > { %v1157_v60 = vpack.c.b16 %v1156_v59, %v1156_v59 }
 0x83d   : > { %1158 = vrot.lane.b32.xlu1 %v1157_v60, %s9793_s23 }
 0x83f   : > { %v9306_v6 = vpop.eup %9305 }
 0x840   : > { %v9308_v28 = vpop.eup %9307  ;;  %v1409_v7 = vadd.f32 1.0, %v9306_v6 }
 0x841   : > { %v9310_v54 = vpop.eup %9309  ;;  %v1408_v11 = vadd.f32 1.0, %v9308_v28 }
 0x842   : > { %v9312_v9 = vpop.eup %9311  ;;  %9313 = vrcp.f32 %v1409_v7  ;;  %v1410_v13 = vadd.f32 1.0, %v9310_v54 }
 0x843   : > { %9315 = vrcp.f32 %v1408_v11  ;;  %v1407_v16 = vadd.f32 1.0, %v9312_v9  ;;  %v1134_v11 = vld [vmem:[%s9956_s19 + $0x1a] sm:$0x1] }
 0x844   : > { %9317 = vrcp.f32 %v1410_v13 }
 0x845   : > { %9319 = vrcp.f32 %v1407_v16 }
 0x84c   : > { %v9314_v14 = vpop.eup %9313 }
 0x84d   : > { %v9316_v17 = vpop.eup %9315  ;;  %v1425_v3 = vmul.f32 %v9314_v14, %v10137_v10 }
 0x84e   : > { %v9318_v63 = vpop.eup %9317  ;;  %v1424_v35 = vmul.f32 %v9316_v17, %v10142_v12 }
 0x84f   : > { %v10257_v26 = vpop.eup %9319  ;;  %v1426_v42 = vmul.f32 %v9318_v63, %v10147_v15 }
 0x850   : > { %v1423_v43 = vmul.f32 %v10257_v26, %v10152_v57  ;;  %v1132_v57 = vld [vmem:[%s9956_s19 + $0xa] sm:$0x1] }
 0x898   : > { %v1436_v62 = vpop.permute.xlu0 %1435 }
 0x899   : > { %v1445_v18 = vmul.f32 %v9314_v14, %v1436_v62  ;;  %v1434_v8 = vpop.permute.xlu1 %1433 }
 0x89a   : > { %v1444_v21 = vmul.f32 %v9316_v17, %v1434_v8 }
 0x89b   : > { %1455 = vrot.lane.b32.xlu1 %v1445_v18, %s9791_s26 }
 0x89c   : > { %1453 = vrot.lane.b32.xlu0 %v1444_v21, %s9791_s26  ;;  %v1438_v23 = vpop.permute.xlu0 %1437 }
 0x89d   : > { %v1446_v27 = vmul.f32 %v9318_v63, %v1438_v23  ;;  %v1432_v30 = vpop.permute.xlu1 %1431 }
 0x89e   : > { %v1443_v31 = vmul.f32 %v10257_v26, %v1432_v30 }
 0x89f   : > { %1457 = vrot.lane.b32.xlu1 %v1446_v27, %s9791_s26 }
 0x8a0   : > { %1451 = vrot.lane.b32.xlu0 %v1443_v31, %s9791_s26 }
 0x8af   : > { %v1159_v33 = vpop.permute.xlu1 %1158 }
 0x8b0   : > { %9019 = vmatmul.mubr.msk.bf16.vlgmr.msra.gmra.mrb[4].mxu0 %vm397_vm4, %v1159_v33 }
 0x8b1   : > { %9029 = vmatpush3.bf16.msra.mxu0 %v10266_v34  ;;  %9030 = vmatprep.mubr.msk.bf16.mxu0 %vm9787_vm0, %v9786_v0 }
 0x8b2   : > { %9040 = vmatprep.subr.bf16.mxu0 %v9786_v0 }
 0x90d   : > { %v1456_v37 = vpop.permute.xlu1 %1455 }
 0x90e   : > { %v1454_v38 = vpop.permute.xlu0 %1453  ;;  %v10274_v40 = vadd.f32 %v1456_v37, %v1425_v3 }
 0x90f   : > { %v10276_v41 = vadd.f32 %v1454_v38, %v1424_v35 }
 0x910   : > { %9321 = vtanh.f32 %v10274_v40 }
 0x911   : > { %9323 = vtanh.f32 %v10276_v41  ;;  %v1458_v45 = vpop.permute.xlu1 %1457 }
 0x912   : > { %v1452_v10 = vpop.permute.xlu0 %1451  ;;  %v10283_v24 = vadd.f32 %v1458_v45, %v1426_v42 }
 0x913   : > { %v10285_v12 = vadd.f32 %v1452_v10, %v1423_v43 }
 0x914   : > { %9325 = vtanh.f32 %v10283_v24 }
 0x915   : > { %9327 = vtanh.f32 %v10285_v12 }
 0x91a   : > { %v9322_v46 = vpop.eup %9321 }
 0x91b   : > { %v9324_v48 = vpop.eup %9323  ;;  %1479 = vrot.lane.b32.xlu1 %v9322_v46, %s9792_s25 }
 0x91c   : > { %1477 = vrot.lane.b32.xlu0 %v9324_v48, %s9792_s25 }
 0x91e   : > { %v9326_v15 = vpop.eup %9325 }
 0x91f   : > { %v9328_v49 = vpop.eup %9327  ;;  %1481 = vrot.lane.b32.xlu1 %v9326_v15, %s9792_s25 }
 0x920   : > { %1475 = vrot.lane.b32.xlu0 %v9328_v49, %s9792_s25 }
 0x983   : > { %v1197_v36 = vpop.f32.mrb[4].mxu0 }
 0x984   : > { %v1204_v20 = vrot.slane %v1197_v36, 1  ;;  %v9020_v32 = vpop.f32.mrb[5].mxu0  ;;  %v1211_v22 = vadd.f32 %v1197_v36, %v1131_v39  ;;  %v1205_v60 = vrot.slane %v1197_v36, 2  ;;  %v1206_v28 = vrot.slane %v1197_v36, 3 }
 0x985   : > { %v1200_v50 = vpop.f32.mrb[6].mxu0 }
 0x986   : > { %v1212_v52 = vadd.f32 %v1204_v20, %v1132_v57  ;;  %v9021_v53 = vpop.f32.mrb[7].mxu0  ;;  %v1213_v9 = vadd.f32 %v1205_v60, %v1133_v44  ;;  %v1214_v30 = vadd.f32 %v1206_v28, %v1134_v11  ;;  %v8881_v49 = vmul.f32 -1.442695, %v1211_v22 }
 0x988   : > { %9329 = vtanh.f32 %v1212_v52  ;;  %v8882_v15 = vmul.f32 -1.442695, %v1212_v52  ;;  %v8883_v57 = vmul.f32 -1.442695, %v1213_v9  ;;  %v8884_v20 = vmul.f32 -1.442695, %v1214_v30 }
 0x989   : > { %9331 = vtanh.f32 %v1211_v22 }
 0x98a   : > { %9333 = vtanh.f32 %v1213_v9 }
 0x98b   : > { %9335 = vtanh.f32 %v1214_v30 }
 0x98c   : > { %9337 = vpow2.f32 %v8882_v15 }
 0x98d   : > { %v1480_v56 = vpop.permute.xlu1 %1479  ;;  %9339 = vpow2.f32 %v8881_v49 }
 0x98e   : > { %v1478_v58 = vpop.permute.xlu0 %1477  ;;  %v1489_v59 = vmul.f32 %v9314_v14, %v1480_v56  ;;  %9341 = vpow2.f32 %v8883_v57 }
 0x98f   : > { %v1488_v19 = vmul.f32 %v9316_v17, %v1478_v58  ;;  %9343 = vpow2.f32 %v8884_v20 }
 0x990   : > { %v1701_v5 = vpack.c.bf16 %v1489_v59, %v1489_v59  ;;  %v1511_v18 = vrot.slane %v1489_v59, 6 }
 0x991   : > { %v1700_v51 = vpack.c.bf16 %v1488_v19, %v1488_v19  ;;  %v1482_v6 = vpop.permute.xlu1 %1481  ;;  %v1509_v13 = vrot.slane %v1488_v19, 7 }
 0x992   : > { %v1476_v7 = vpop.permute.xlu0 %1475  ;;  %v1490_v54 = vmul.f32 %v9318_v63, %v1482_v6  ;;  %v1709_v8 = vunpack.c.l.b16 %v1701_v5  ;;  %v9330_v27 = vpop.eup %9329  ;;  %v10317_v6 = vld [vmem:[%s13872_s2] sm:$0xff]  }
 0x993   : > { %v1708_v16 = vunpack.c.l.b16 %v1700_v51  ;;  %v1487_v62 = vmul.f32 %v10257_v26, %v1476_v7  ;;  %1253 = vrot.lane.b32.xlu1 %v9330_v27, %s9790_s27  ;;  %v9332_v42 = vpop.eup %9331 }
 0x994   : > { %v1513_v21 = vrot.slane %v1490_v54, 5  ;;  %v1702_v14 = vpack.c.bf16 %v1490_v54, %v1490_v54  ;;  %v1713_v26 = vrot.slane %v1709_v8, 6  ;;  %v9334_v46 = vpop.eup %9333 }
 0x995   : > { %v1510_v17 = vsel %vm716_vm1, %v1509_v13, %v1487_v62  ;;  %v1699_v23 = vpack.c.bf16 %v1487_v62, %v1487_v62  ;;  %v1711_v63 = vrot.slane %v1708_v16, 7  ;;  %v9336_v48 = vpop.eup %9335 }
 0x996   : > { %v1710_v31 = vunpack.c.l.b16 %v1702_v14  ;;  %v1512_v33 = vsel %vm719_vm2, %v1511_v18, %v1510_v17  ;;  %v9338_v36 = vpop.eup %9337 }
 0x997   : > { %v1707_v3 = vunpack.c.l.b16 %v1699_v23  ;;  %v10302_v35 = vsel %vm722_vm3, %v1513_v21, %v1512_v33  ;;  %1251 = vrot.lane.b32.xlu1 %v9332_v42, %s9790_s27  ;;  %v1228_v32 = vadd.f32 1.0, %v9338_v36  ;;  %v9340_v50 = vpop.eup %9339 }
 0x998   : > { %v1715_v37 = vrot.slane %v1710_v31, 5  ;;  %v1227_v39 = vadd.f32 1.0, %v9340_v50  ;;  %v9342_v53 = vpop.eup %9341 }
 0x999   : > { %v1712_v38 = vsel %vm716_vm1, %v1711_v63, %v1707_v3  ;;  %9345 = vrcp.f32 %v1228_v32  ;;  %v1229_v56 = vadd.f32 1.0, %v9342_v53  ;;  %v9344_v58 = vpop.eup %9343 }
 0x99a   : > { %v1714_v43 = vsel %vm719_vm2, %v1713_v26, %v1712_v38  ;;  %9347 = vrcp.f32 %v1227_v39  ;;  %v1230_v19 = vadd.f32 1.0, %v9344_v58 }
 0x99b   : > { %v1716_v45 = vsel %vm722_vm3, %v1715_v37, %v1714_v43  ;;  %9349 = vrcp.f32 %v1229_v56 }
 0x99c   : > { %v1717_v10 = vpack.c.b16 %v1716_v45, %v1716_v45  ;;  %9351 = vrcp.f32 %v1230_v19 }
 0x99e   : > { %1718 = vrot.lane.b32.xlu0 %v1717_v10, %s9791_s26 }
 0x9a2   : > { %1255 = vrot.lane.b32.xlu0 %v9334_v46, %s9790_s27 }
 0x9a3   : > { %v9346_v59 = vpop.eup %9345 }
 0x9a4   : > { %v9348_v22 = vpop.eup %9347  ;;  %v1244_v16 = vmul.f32 %v9346_v59, %v10212_v55 }
 0x9a5   : > { %v9350_v28 = vpop.eup %9349  ;;  %v1243_v8 = vmul.f32 %v9348_v22, %v10221_v1 }
 0x9a6   : > { %1257 = vrot.lane.b32.xlu0 %v9336_v48, %s9790_s27  ;;  %v9352_v11 = vpop.eup %9351  ;;  %v1245_v17 = vmul.f32 %v9350_v28, %v10219_v61 }
 0x9a7   : > { %v1246_v55 = vmul.f32 %v9352_v11, %v10227_v4 }
 0xa05   : > { %v1254_v60 = vpop.permute.xlu1 %1253 }
 0xa06   : > { %v1264_v52 = vmul.f32 %v9346_v59, %v1254_v60 }
 0xa08   : > { %1273 = vrot.lane.b32.xlu1 %v1264_v52, %s9791_s26 }
 0xa09   : > { %v1252_v44 = vpop.permute.xlu1 %1251 }
 0xa0a   : > { %v1263_v5 = vmul.f32 %v9348_v22, %v1252_v44 }
 0xa0c   : > { %1271 = vrot.lane.b32.xlu1 %v1263_v5, %s9791_s26 }
 0xa10   : > { %v1719_v51 = vpop.permute.xlu0 %1718 }
 0xa11   : > { %9037 = vmatmul.mubr.msk.bf16.vlgmr.msra.gmra.mrb[16].mxu1 %vm397_vm4, %v1719_v51 }
 0xa12   : > { %9047 = vmatpush3.bf16.msra.mxu1 %v10317_v6  ;;  %9048 = vmatprep.mubr.msk.bf16.mxu1 %vm9787_vm0, %v9786_v0 }
 0xa13   : > { %9058 = vmatprep.subr.bf16.mxu1 %v9786_v0 }
 0xa14   : > { %v1256_v7 = vpop.permute.xlu0 %1255 }
 0xa15   : > { %v1265_v54 = vmul.f32 %v9350_v28, %v1256_v7 }
 0xa17   : > { %1275 = vrot.lane.b32.xlu0 %v1265_v54, %s9791_s26 }
 0xa18   : > { %v1258_v9 = vpop.permute.xlu0 %1257 }
 0xa19   : > { %v1266_v13 = vmul.f32 %v9352_v11, %v1258_v9 }
 0xa1b   : > { %1277 = vrot.lane.b32.xlu0 %v1266_v13, %s9791_s26 }
 0xa7a   : > { %v1274_v62 = vpop.permute.xlu1 %1273 }
 0xa7b   : > { %v10326_v18 = vadd.f32 %v1274_v62, %v1244_v16  ;;  %v1525_v16 = vld [vmem:[%s9956_s19 + $0x14] sm:$0x1]  ;;  %v1524_v62 = vld [vmem:[%s9956_s19 + $0xc] sm:$0x1] }
 0xa7d   : > { %9353 = vtanh.f32 %v10326_v18 }
 0xa7e   : > { %v1272_v21 = vpop.permute.xlu1 %1271 }
 0xa7f   : > { %v10330_v14 = vadd.f32 %v1272_v21, %v1243_v8 }
 0xa81   : > { %9355 = vtanh.f32 %v10330_v14 }
 0xa87   : > { %v9354_v30 = vpop.eup %9353 }
 0xa88   : > { %1297 = vrot.lane.b32.xlu1 %v9354_v30, %s9792_s25  ;;  %v1526_v30 = vld [vmem:[%s9956_s19 + $0x1c] sm:$0x1] }
 0xa89   : > { %v1276_v23 = vpop.permute.xlu0 %1275 }
 0xa8a   : > { %v10334_v27 = vadd.f32 %v1276_v23, %v1245_v17 }
 0xa8b   : > { %v9356_v1 = vpop.eup %9355 }
 0xa8c   : > { %9357 = vtanh.f32 %v10334_v27  ;;  %1295 = vrot.lane.b32.xlu1 %v9356_v1, %s9792_s25 }
 0xa8d   : > { %v1278_v31 = vpop.permute.xlu0 %1277 }
 0xa8e   : > { %v10339_v33 = vadd.f32 %v1278_v31, %v1246_v55  ;;  %v1523_v55 = vld [vmem:[%s9956_s19 + $0x4] sm:$0x1] }
 0xa90   : > { %9359 = vtanh.f32 %v10339_v33 }
 0xa96   : > { %v9358_v63 = vpop.eup %9357 }
 0xa97   : > { %1299 = vrot.lane.b32.xlu0 %v9358_v63, %s9792_s25 }
 0xa9a   : > { %v9360_v61 = vpop.eup %9359 }
 0xa9b   : > { %1301 = vrot.lane.b32.xlu0 %v9360_v61, %s9792_s25 }
 0xae4   : > { %v1757_v3 = vpop.f32.mrb[16].mxu1 }
 0xae5   : > { %v9038_v26 = vpop.f32.mrb[17].mxu1  ;;  %v1765_v37 = vrot.slane %v1757_v3, 2  ;;  %v1764_v38 = vrot.slane %v1757_v3, 1  ;;  %v1766_v43 = vrot.slane %v1757_v3, 3 }
 0xae6   : > { %v1760_v42 = vpop.f32.mrb[18].mxu1 }
 0xae7   : > { %1771 = vrot.lane.b32.xlu0 %v1765_v37, %s9789_s17  ;;  %1769 = vrot.lane.b32.xlu1 %v1764_v38, %s9789_s17  ;;  %v9039_v4 = vpop.f32.mrb[19].mxu1 }
 0xaeb   : > { %1773 = vrot.lane.b32.xlu0 %v1766_v43, %s9789_s17  ;;  %1767 = vrot.lane.b32.xlu1 %v1757_v3, %s9789_s17 }
 0xafa   : > { %v1298_v45 = vpop.permute.xlu1 %1297 }
 0xafb   : > { %v1308_v10 = vmul.f32 %v9346_v59, %v1298_v45 }
 0xafd   : > { %v1495_v48 = vrot.slane %v1308_v10, 7  ;;  %v1528_v36 = vpack.c.bf16 %v1308_v10, %v1308_v10 }
 0xafe   : > { %v1296_v46 = vpop.permute.xlu1 %1295 }
 0xaff   : > { %v1307_v15 = vmul.f32 %v9348_v22, %v1296_v46  ;;  %v1536_v56 = vunpack.c.l.b16 %v1528_v36 }
 0xb01   : > { %v1496_v49 = vsel %vm716_vm1, %v1495_v48, %v1307_v15  ;;  %v1527_v32 = vpack.c.bf16 %v1307_v15, %v1307_v15  ;;  %v1539_v5 = vrot.slane %v1536_v56, 7 }
 0xb03   : > { %v1535_v59 = vunpack.c.l.b16 %v1527_v32 }
 0xb05   : > { %v1540_v54 = vsel %vm716_vm1, %v1539_v5, %v1535_v59 }
 0xb09   : > { %v1300_v57 = vpop.permute.xlu0 %1299 }
 0xb0a   : > { %v1309_v20 = vmul.f32 %v9350_v28, %v1300_v57 }
 0xb0c   : > { %v1497_v50 = vrot.slane %v1309_v20, 6  ;;  %v1529_v39 = vpack.c.bf16 %v1309_v20, %v1309_v20 }
 0xb0d   : > { %v1302_v53 = vpop.permute.xlu0 %1301 }
 0xb0e   : > { %v1537_v58 = vunpack.c.l.b16 %v1529_v39  ;;  %v1310_v60 = vmul.f32 %v9352_v11, %v1302_v53  ;;  %v1498_v19 = vsel %vm719_vm2, %v1497_v50, %v1496_v49 }
 0xb10   : > { %v1499_v52 = vrot.slane %v1310_v60, 5  ;;  %v1530_v44 = vpack.c.bf16 %v1310_v60, %v1310_v60  ;;  %v1541_v22 = vrot.slane %v1537_v58, 6 }
 0xb12   : > { %v1538_v51 = vunpack.c.l.b16 %v1530_v44  ;;  %v10352_v28 = vsel %vm722_vm3, %v1499_v52, %v1498_v19  ;;  %v1542_v9 = vsel %vm719_vm2, %v1541_v22, %v1540_v54 }
 0xb14   : > { %v1543_v7 = vrot.slane %v1538_v51, 5 }
 0xb16   : > { %v1544_v11 = vsel %vm722_vm3, %v1543_v7, %v1542_v9 }
 0xb17   : > { %v1545_v13 = vpack.c.b16 %v1544_v11, %v1544_v11 }
 0xb19   : > { %1546 = vrot.lane.b32.xlu1 %v1545_v13, %s9793_s23 }
 0xb59   : > { %v1772_v8 = vpop.permute.xlu0 %1771  ;;  %v1770_v21 = vpop.permute.xlu1 %1769 }
 0xb5a   : > { %v1781_v17 = vadd.f32 %v1772_v8, %v1525_v16  ;;  %v1780_v23 = vadd.f32 %v1770_v21, %v1524_v62 }
 0xb5c   : > { %9361 = vtanh.f32 %v1781_v17  ;;  %v8898_v4 = vmul.f32 -1.442695, %v1781_v17  ;;  %v8897_v43 = vmul.f32 -1.442695, %v1780_v23 }
 0xb5d   : > { %9363 = vtanh.f32 %v1780_v23  ;;  %v1774_v31 = vpop.permute.xlu0 %1773  ;;  %v1768_v1 = vpop.permute.xlu1 %1767 }
 0xb5e   : > { %v1782_v63 = vadd.f32 %v1774_v31, %v1526_v30  ;;  %v1779_v61 = vadd.f32 %v1768_v1, %v1523_v55  ;;  %v1520_v30 = vld [vmem:[%s9956_s19 + $0xb] sm:$0x1] }
 0xb60   : > { %9365 = vtanh.f32 %v1782_v63  ;;  %v8899_v45 = vmul.f32 -1.442695, %v1782_v63  ;;  %v8896_v10 = vmul.f32 -1.442695, %v1779_v61 }
 0xb61   : > { %9367 = vtanh.f32 %v1779_v61  ;;  %v1519_v61 = vld [vmem:[%s9956_s19 + $0x3] sm:$0x1] }
 0xb62   : > { %9369 = vpow2.f32 %v8898_v4 }
 0xb63   : > { %9371 = vpow2.f32 %v8897_v43 }
 0xb64   : > { %9373 = vpow2.f32 %v8899_v45 }
 0xb65   : > { %9375 = vpow2.f32 %v8896_v10 }
 0xb66   : > { %v9362_v3 = vpop.eup %9361 }
 0xb67   : > { %v9364_v26 = vpop.eup %9363  ;;  %1823 = vrot.lane.b32.xlu1 %v9362_v3, %s9790_s27 }
 0xb68   : > { %1821 = vrot.lane.b32.xlu0 %v9364_v26, %s9790_s27 }
 0xb6a   : > { %v9366_v37 = vpop.eup %9365 }
 0xb6b   : > { %v9368_v38 = vpop.eup %9367  ;;  %1825 = vrot.lane.b32.xlu1 %v9366_v37, %s9790_s27 }
 0xb6c   : > { %1819 = vrot.lane.b32.xlu0 %v9368_v38, %s9790_s27  ;;  %v9370_v46 = vpop.eup %9369 }
 0xb6d   : > { %v9372_v48 = vpop.eup %9371  ;;  %v1797_v15 = vadd.f32 1.0, %v9370_v46 }
 0xb6e   : > { %v9374_v49 = vpop.eup %9373  ;;  %v1796_v57 = vadd.f32 1.0, %v9372_v48 }
 0xb6f   : > { %v9376_v36 = vpop.eup %9375  ;;  %9377 = vrcp.f32 %v1797_v15  ;;  %v1798_v20 = vadd.f32 1.0, %v9374_v49  ;;  %v1521_v15 = vld [vmem:[%s9956_s19 + $0x13] sm:$0x1] }
 0xb70   : > { %9379 = vrcp.f32 %v1796_v57  ;;  %v1795_v32 = vadd.f32 1.0, %v9376_v36 }
 0xb71   : > { %9381 = vrcp.f32 %v1798_v20 }
 0xb72   : > { %9383 = vrcp.f32 %v1795_v32 }
 0xb79   : > { %v9378_v50 = vpop.eup %9377 }
 0xb7a   : > { %v9380_v53 = vpop.eup %9379  ;;  %v1813_v51 = vmul.f32 %v9378_v50, %v10274_v40 }
 0xb7b   : > { %v10372_v19 = vpop.eup %9381  ;;  %v1812_v7 = vmul.f32 %v9380_v53, %v10276_v41 }
 0xb7c   : > { %v10375_v52 = vpop.eup %9383  ;;  %v1814_v16 = vmul.f32 %v10372_v19, %v10283_v24 }
 0xb7d   : > { %v1811_v62 = vmul.f32 %v10375_v52, %v10285_v12 }
 0xb8b   : > { %v1547_v42 = vpop.permute.xlu1 %1546 }
 0xb8c   : > { %9031 = vmatmul.mubr.msk.bf16.vlgmr.msra.gmra.mrb[8].mxu0 %vm397_vm4, %v1547_v42 }
 0xb8d   : > { %9041 = vmatpush3.bf16.msra.mxu0 %v10266_v34  ;;  %9042 = vmatprep.mubr.msk.bf16.mxu0 %vm9787_vm0, %v9786_v0 }
 0xb8e   : > { %9052 = vmatprep.subr.bf16.mxu0 %v9786_v0 }
 0xbd9   : > { %v1824_v39 = vpop.permute.xlu1 %1823 }
 0xbda   : > { %v1822_v56 = vpop.permute.xlu0 %1821  ;;  %v1833_v58 = vmul.f32 %v9378_v50, %v1824_v39 }
 0xbdb   : > { %v1832_v60 = vmul.f32 %v9380_v53, %v1822_v56  ;;  %v1522_v56 = vld [vmem:[%s9956_s19 + $0x1b] sm:$0x1] }
 0xbdc   : > { %1843 = vrot.lane.b32.xlu1 %v1833_v58, %s9791_s26 }
 0xbdd   : > { %1841 = vrot.lane.b32.xlu0 %v1832_v60, %s9791_s26  ;;  %v1826_v59 = vpop.permute.xlu1 %1825 }
 0xbde   : > { %v1820_v44 = vpop.permute.xlu0 %1819  ;;  %v1834_v22 = vmul.f32 %v10372_v19, %v1826_v59 }
 0xbdf   : > { %v1831_v5 = vmul.f32 %v10375_v52, %v1820_v44 }
 0xbe0   : > { %1845 = vrot.lane.b32.xlu1 %v1834_v22, %s9791_s26 }
 0xbe1   : > { %1839 = vrot.lane.b32.xlu0 %v1831_v5, %s9791_s26 }
 0xc4e   : > { %v1844_v54 = vpop.permute.xlu1 %1843 }
 0xc4f   : > { %v1842_v9 = vpop.permute.xlu0 %1841  ;;  %v10383_v11 = vadd.f32 %v1844_v54, %v1813_v51 }
 0xc50   : > { %v10385_v13 = vadd.f32 %v1842_v9, %v1812_v7 }
 0xc51   : > { %9385 = vtanh.f32 %v10383_v11 }
 0xc52   : > { %9387 = vtanh.f32 %v10385_v13  ;;  %v1846_v40 = vpop.permute.xlu1 %1845 }
 0xc53   : > { %v1840_v8 = vpop.permute.xlu0 %1839  ;;  %v10393_v41 = vadd.f32 %v1846_v40, %v1814_v16 }
 0xc54   : > { %v10395_v21 = vadd.f32 %v1840_v8, %v1811_v62 }
 0xc55   : > { %9389 = vtanh.f32 %v10393_v41 }
 0xc56   : > { %9391 = vtanh.f32 %v10395_v21 }
 0xc5b   : > { %v9386_v17 = vpop.eup %9385 }
 0xc5c   : > { %v9388_v23 = vpop.eup %9387  ;;  %1867 = vrot.lane.b32.xlu1 %v9386_v17, %s9792_s25 }
 0xc5d   : > { %1865 = vrot.lane.b32.xlu0 %v9388_v23, %s9792_s25 }
 0xc5f   : > { %v9390_v24 = vpop.eup %9389  ;;  %v1585_v12 = vpop.f32.mrb[8].mxu0 }
 0xc60   : > { %v9392_v55 = vpop.eup %9391  ;;  %v1592_v31 = vrot.slane %v1585_v12, 1  ;;  %v9032_v1 = vpop.f32.mrb[9].mxu0  ;;  %1869 = vrot.lane.b32.xlu1 %v9390_v24, %s9792_s25  ;;  %v1599_v37 = vadd.f32 %v1585_v12, %v1519_v61  ;;  %v1593_v10 = vrot.slane %v1585_v12, 2  ;;  %v1594_v20 = vrot.slane %v1585_v12, 3 }
 0xc61   : > { %1863 = vrot.lane.b32.xlu0 %v9392_v55, %s9792_s25  ;;  %v1588_v63 = vpop.f32.mrb[10].mxu0 }
 0xc62   : > { %v1600_v3 = vadd.f32 %v1592_v31, %v1520_v30  ;;  %v9033_v26 = vpop.f32.mrb[11].mxu0  ;;  %v8891_v43 = vmul.f32 -1.442695, %v1599_v37  ;;  %v1601_v58 = vadd.f32 %v1593_v10, %v1521_v15  ;;  %v1602_v16 = vadd.f32 %v1594_v20, %v1522_v56 }
 0xc64   : > { %9393 = vtanh.f32 %v1600_v3  ;;  %v8892_v4 = vmul.f32 -1.442695, %v1600_v3  ;;  %v8894_v10 = vmul.f32 -1.442695, %v1602_v16 }
 0xc65   : > { %9395 = vtanh.f32 %v1599_v37 }
 0xc66   : > { %9397 = vpow2.f32 %v8892_v4 }
 0xc67   : > { %9399 = vpow2.f32 %v8891_v43 }
 0xc68   : > { %9401 = vtanh.f32 %v1601_v58 }
 0xc6e   : > { %v9394_v38 = vpop.eup %9393 }
 0xc6f   : > { %1641 = vrot.lane.b32.xlu1 %v9394_v38, %s9790_s27  ;;  %v9396_v42 = vpop.eup %9395 }
 0xc70   : > { %v9398_v57 = vpop.eup %9397 }
 0xc71   : > { %v9400_v44 = vpop.eup %9399  ;;  %v1616_v22 = vadd.f32 1.0, %v9398_v57 }
 0xc72   : > { %v1615_v8 = vadd.f32 1.0, %v9400_v44  ;;  %v9402_v61 = vpop.eup %9401 }
 0xc73   : > { %1639 = vrot.lane.b32.xlu1 %v9396_v42, %s9790_s27  ;;  %9403 = vrcp.f32 %v1616_v22 }
 0xc74   : > { %9405 = vtanh.f32 %v1602_v16 }
 0xc75   : > { %9407 = vrcp.f32 %v1615_v8 }
 0xc7d   : > { %v9404_v3 = vpop.eup %9403 }
 0xc7e   : > { %v9406_v38 = vpop.eup %9405 }
 0xc7f   : > { %v9408_v42 = vpop.eup %9407 }
 0xc80   : > { %v1631_v44 = vmul.f32 %v9408_v42, %v10330_v14 }
 0xcce   : > { %v1868_v45 = vpop.permute.xlu1 %1867 }
 0xccf   : > { %v1866_v46 = vpop.permute.xlu0 %1865  ;;  %v1877_v48 = vmul.f32 %v9378_v50, %v1868_v45  ;;  %v8893_v45 = vmul.f32 -1.442695, %v1601_v58 }
 0xcd0   : > { %v1876_v49 = vmul.f32 %v9380_v53, %v1866_v46 }
 0xcd1   : > { %v2089_v36 = vpack.c.bf16 %v1877_v48, %v1877_v48  ;;  %v1899_v54 = vrot.slane %v1877_v48, 6  ;;  %9409 = vpow2.f32 %v8893_v45 }
 0xcd2   : > { %v2088_v32 = vpack.c.bf16 %v1876_v49, %v1876_v49  ;;  %v1870_v39 = vpop.permute.xlu1 %1869  ;;  %v1897_v5 = vrot.slane %v1876_v49, 7  ;;  %9411 = vpow2.f32 %v8894_v10 }
 0xcd3   : > { %v1864_v60 = vpop.permute.xlu0 %1863  ;;  %v1878_v59 = vmul.f32 %v10372_v19, %v1870_v39  ;;  %v2097_v50 = vunpack.c.l.b16 %v2089_v36  ;;  %v1632_v39 = vmul.f32 %v9404_v3, %v10326_v18 }
 0xcd4   : > { %v2096_v51 = vunpack.c.l.b16 %v2088_v32  ;;  %v1875_v7 = vmul.f32 %v10375_v52, %v1864_v60 }
 0xcd5   : > { %v1901_v9 = vrot.slane %v1878_v59, 5  ;;  %v2090_v53 = vpack.c.bf16 %v1878_v59, %v1878_v59  ;;  %v2101_v52 = vrot.slane %v2097_v50, 6 }
 0xcd6   : > { %v1898_v62 = vsel %vm716_vm1, %v1897_v5, %v1875_v7  ;;  %v2087_v40 = vpack.c.bf16 %v1875_v7, %v1875_v7  ;;  %v2099_v19 = vrot.slane %v2096_v51, 7 }
 0xcd7   : > { %v2098_v17 = vunpack.c.l.b16 %v2090_v53  ;;  %v1900_v23 = vsel %vm719_vm2, %v1899_v54, %v1898_v62 }
 0xcd8   : > { %v2095_v24 = vunpack.c.l.b16 %v2087_v40  ;;  %v10414_v30 = vsel %vm722_vm3, %v1901_v9, %v1900_v23 }
 0xcd9   : > { %v2103_v12 = vrot.slane %v2098_v17, 5 }
 0xcda   : > { %v2100_v55 = vsel %vm716_vm1, %v2099_v19, %v2095_v24 }
 0xcdb   : > { %v2102_v31 = vsel %vm719_vm2, %v2101_v52, %v2100_v55  ;;  %v9410_v46 = vpop.eup %9409 }
 0xcdc   : > { %v2104_v1 = vsel %vm722_vm3, %v2103_v12, %v2102_v31  ;;  %v1617_v48 = vadd.f32 1.0, %v9410_v46  ;;  %v9412_v15 = vpop.eup %9411 }
 0xcdd   : > { %v2105_v63 = vpack.c.b16 %v2104_v1, %v2104_v1  ;;  %v1618_v49 = vadd.f32 1.0, %v9412_v15 }
 0xcde   : > { %9413 = vrcp.f32 %v1617_v48 }
 0xcdf   : > { %2106 = vrot.lane.b32.xlu0 %v2105_v63, %s9791_s26  ;;  %9415 = vrcp.f32 %v1618_v49 }
 0xce1   : > { %v1642_v26 = vpop.permute.xlu1 %1641 }
 0xce2   : > { %v1652_v37 = vmul.f32 %v9404_v3, %v1642_v26 }
 0xce3   : > { %1643 = vrot.lane.b32.xlu0 %v9402_v61, %s9790_s27 }
 0xce4   : > { %1661 = vrot.lane.b32.xlu1 %v1652_v37, %s9791_s26 }
 0xce5   : > { %v1640_v4 = vpop.permute.xlu1 %1639 }
 0xce6   : > { %v1651_v43 = vmul.f32 %v9408_v42, %v1640_v4 }
 0xce7   : > { %1645 = vrot.lane.b32.xlu0 %v9406_v38, %s9790_s27 }
 0xce8   : > { %1659 = vrot.lane.b32.xlu1 %v1651_v43, %s9791_s26  ;;  %v9414_v36 = vpop.eup %9413 }
 0xce9   : > { %v9416_v60 = vpop.eup %9415  ;;  %v1633_v7 = vmul.f32 %v9414_v36, %v10334_v27 }
 0xcea   : > { %v1634_v14 = vmul.f32 %v9416_v60, %v10339_v33 }
 0xd51   : > { %v2107_v57 = vpop.permute.xlu0 %2106 }
 0xd52   : > { %9049 = vmatmul.mubr.msk.bf16.vlgmr.msra.gmra.mrb[20].mxu1 %vm397_vm4, %v2107_v57 }
 0xd53   : > { %9059 = vmatpush3.bf16.msra.mxu1 %v10317_v6  ;;  %9060 = vmatprep.mubr.msk.bf16.mxu1 %vm9787_vm0, %v9786_v0 }
 0xd54   : > { %9070 = vmatprep.subr.bf16.mxu1 %v9786_v0 }
 0xd55   : > { %v1644_v20 = vpop.permute.xlu0 %1643 }
 0xd56   : > { %v1653_v32 = vmul.f32 %v9414_v36, %v1644_v20  ;;  %v1662_v56 = vpop.permute.xlu1 %1661 }
 0xd57   : > { %v10430_v58 = vadd.f32 %v1662_v56, %v1632_v39 }
 0xd58   : > { %1663 = vrot.lane.b32.xlu0 %v1653_v32, %s9791_s26 }
 0xd59   : > { %v1646_v59 = vpop.permute.xlu0 %1645  ;;  %9417 = vtanh.f32 %v10430_v58 }
 0xd5a   : > { %v1654_v6 = vmul.f32 %v9416_v60, %v1646_v59  ;;  %v1660_v22 = vpop.permute.xlu1 %1659 }
 0xd5b   : > { %v10435_v5 = vadd.f32 %v1660_v22, %v1631_v44 }
 0xd5c   : > { %1665 = vrot.lane.b32.xlu0 %v1654_v6, %s9791_s26  ;;  %v1912_v6 = vld [vmem:[%s9956_s19 + $0xb] sm:$0x1] }
 0xd5d   : > { %9419 = vtanh.f32 %v10435_v5 }
 0xd63   : > { %v9418_v18 = vpop.eup %9417 }
 0xd64   : > { %1685 = vrot.lane.b32.xlu1 %v9418_v18, %s9792_s25  ;;  %v1911_v18 = vld [vmem:[%s9956_s19 + $0x3] sm:$0x1] }
 0xd67   : > { %v9420_v51 = vpop.eup %9419 }
 0xd68   : > { %1683 = vrot.lane.b32.xlu1 %v9420_v51, %s9792_s25 }
 0xdca   : > { %v1664_v54 = vpop.permute.xlu0 %1663 }
 0xdcb   : > { %v10442_v50 = vadd.f32 %v1664_v54, %v1633_v7 }
 0xdcd   : > { %9421 = vtanh.f32 %v10442_v50 }
 0xdce   : > { %v1666_v9 = vpop.permute.xlu0 %1665 }
 0xdcf   : > { %v10446_v53 = vadd.f32 %v1666_v9, %v1634_v14 }
 0xdd1   : > { %9423 = vtanh.f32 %v10446_v53 }
 0xdd6   : > { %v1686_v62 = vpop.permute.xlu1 %1685 }
 0xdd7   : > { %v9422_v16 = vpop.eup %9421  ;;  %v1696_v40 = vmul.f32 %v9404_v3, %v1686_v62 }
 0xdd8   : > { %1687 = vrot.lane.b32.xlu0 %v9422_v16, %s9792_s25  ;;  %v1913_v16 = vld [vmem:[%s9956_s19 + $0x13] sm:$0x1] }
 0xdd9   : > { %v1883_v27 = vrot.slane %v1696_v40, 7  ;;  %v1916_v1 = vpack.c.bf16 %v1696_v40, %v1696_v40 }
 0xdda   : > { %v1684_v17 = vpop.permute.xlu1 %1683 }
 0xddb   : > { %v9424_v8 = vpop.eup %9423  ;;  %v1695_v23 = vmul.f32 %v9408_v42, %v1684_v17  ;;  %v1924_v38 = vunpack.c.l.b16 %v1916_v1 }
 0xddc   : > { %1689 = vrot.lane.b32.xlu0 %v9424_v8, %s9792_s25  ;;  %v1914_v8 = vld [vmem:[%s9956_s19 + $0x1b] sm:$0x1] }
 0xddd   : > { %v1884_v19 = vsel %vm716_vm1, %v1883_v27, %v1695_v23  ;;  %v1915_v61 = vpack.c.bf16 %v1695_v23, %v1695_v23  ;;  %v1927_v15 = vrot.slane %v1924_v38, 7 }
 0xddf   : > { %v1923_v45 = vunpack.c.l.b16 %v1915_v61 }
 0xe25   : > { %v2145_v24 = vpop.f32.mrb[20].mxu1 }
 0xe26   : > { %v2152_v33 = vrot.slane %v2145_v24, 1  ;;  %v9050_v52 = vpop.f32.mrb[21].mxu1  ;;  %v2154_v59 = vrot.slane %v2145_v24, 3 }
 0xe27   : > { %v2148_v12 = vpop.f32.mrb[22].mxu1 }
 0xe28   : > { %2157 = vrot.lane.b32.xlu0 %v2152_v33, %s9789_s17  ;;  %v9051_v55 = vpop.f32.mrb[23].mxu1 }
 0xe2c   : > { %2155 = vrot.lane.b32.xlu0 %v2145_v24, %s9789_s17 }
 0xe4a   : > { %v1688_v31 = vpop.permute.xlu0 %1687 }
 0xe4b   : > { %v1697_v63 = vmul.f32 %v9414_v36, %v1688_v31  ;;  %v1928_v36 = vsel %vm716_vm1, %v1927_v15, %v1923_v45 }
 0xe4d   : > { %v1885_v3 = vrot.slane %v1697_v63, 6  ;;  %v1917_v26 = vpack.c.bf16 %v1697_v63, %v1697_v63 }
 0xe4e   : > { %v1690_v37 = vpop.permute.xlu0 %1689 }
 0xe4f   : > { %v1925_v42 = vunpack.c.l.b16 %v1917_v26  ;;  %v1698_v4 = vmul.f32 %v9416_v60, %v1690_v37  ;;  %v1886_v43 = vsel %vm719_vm2, %v1885_v3, %v1884_v19  ;;  %v2153_v60 = vrot.slane %v2145_v24, 2 }
 0xe51   : > { %v1887_v10 = vrot.slane %v1698_v4, 5  ;;  %v1918_v46 = vpack.c.bf16 %v1698_v4, %v1698_v4  ;;  %v1929_v48 = vrot.slane %v1925_v42, 6 }
 0xe53   : > { %v1926_v49 = vunpack.c.l.b16 %v1918_v46  ;;  %v10456_v57 = vsel %vm722_vm3, %v1887_v10, %v1886_v43  ;;  %v1930_v32 = vsel %vm719_vm2, %v1929_v48, %v1928_v36 }
 0xe55   : > { %v1931_v20 = vrot.slane %v1926_v49, 5 }
 0xe57   : > { %v1932_v39 = vsel %vm722_vm3, %v1931_v20, %v1930_v32 }
 0xe58   : > { %v1933_v56 = vpack.c.b16 %v1932_v39, %v1932_v39 }
 0xe5a   : > { %1934 = vrot.lane.b32.xlu1 %v1933_v56, %s9793_s23 }
 0xe5e   : > { %2159 = vrot.lane.b32.xlu1 %v2153_v60, %s9789_s17 }
 0xe62   : > { %2161 = vrot.lane.b32.xlu1 %v2154_v59, %s9789_s17 }
 0xe9a   : > { %v2158_v44 = vpop.permute.xlu0 %2157 }
 0xe9b   : > { %v2168_v22 = vadd.f32 %v2158_v44, %v1912_v6 }
 0xe9d   : > { %9425 = vtanh.f32 %v2168_v22  ;;  %v8907_v24 = vmul.f32 -1.442695, %v2168_v22  ;;  %v1908_v22 = vld [vmem:[%s9956_s19 + $0xc] sm:$0x1] }
 0xe9e   : > { %v2156_v51 = vpop.permute.xlu0 %2155 }
 0xe9f   : > { %v2167_v7 = vadd.f32 %v2156_v51, %v1911_v18 }
 0xea1   : > { %9427 = vtanh.f32 %v2167_v7 }
 0xea7   : > { %v9426_v54 = vpop.eup %9425 }
 0xea8   : > { %2209 = vrot.lane.b32.xlu0 %v9426_v54, %s9790_s27  ;;  %v1907_v54 = vld [vmem:[%s9956_s19 + $0x4] sm:$0x1] }
 0xeab   : > { %v9428_v14 = vpop.eup %9427 }
 0xeac   : > { %2207 = vrot.lane.b32.xlu0 %v9428_v14, %s9790_s27 }
 0xecc   : > { %v1935_v9 = vpop.permute.xlu1 %1934 }
 0xecd   : > { %9043 = vmatmul.mubr.msk.bf16.vlgmr.msra.gmra.mrb[12].mxu0 %vm397_vm4, %v1935_v9 }
 0xece   : > { %9053 = vmatpush3.bf16.msra.mxu0 %v10266_v34  ;;  %9054 = vmatprep.mubr.msk.bf16.mxu0 %vm9787_vm0, %v9786_v0  ;;  %v8906_v34 = vmul.f32 -1.442695, %v2167_v7 }
 0xecf   : > { %9064 = vmatprep.subr.bf16.mxu0 %v9786_v0 }
 0xed0   : > { %v2160_v62 = vpop.permute.xlu1 %2159 }
 0xed1   : > { %v2169_v40 = vadd.f32 %v2160_v62, %v1913_v16 }
 0xed3   : > { %9429 = vtanh.f32 %v2169_v40  ;;  %v8908_v37 = vmul.f32 -1.442695, %v2169_v40 }
 0xed4   : > { %v2162_v17 = vpop.permute.xlu1 %2161 }
 0xed5   : > { %v2170_v27 = vadd.f32 %v2162_v17, %v1914_v8 }
 0xed7   : > { %9431 = vtanh.f32 %v2170_v27  ;;  %v8909_v38 = vmul.f32 -1.442695, %v2170_v27 }
 0xed8   : > { %9433 = vpow2.f32 %v8907_v24 }
 0xed9   : > { %9435 = vpow2.f32 %v8906_v34 }
 0xedd   : > { %v9430_v23 = vpop.eup %9429 }
 0xede   : > { %2211 = vrot.lane.b32.xlu1 %v9430_v23, %s9790_s27 }
 0xee1   : > { %v9432_v19 = vpop.eup %9431 }
 0xee2   : > { %2213 = vrot.lane.b32.xlu1 %v9432_v19, %s9790_s27  ;;  %v9434_v33 = vpop.eup %9433  ;;  %v1909_v19 = vld [vmem:[%s9956_s19 + $0x14] sm:$0x1] }
 0xee3   : > { %v2184_v52 = vadd.f32 1.0, %v9434_v33  ;;  %v9436_v12 = vpop.eup %9435 }
 0xee4   : > { %v2183_v55 = vadd.f32 1.0, %v9436_v12  ;;  %v1910_v12 = vld [vmem:[%s9956_s19 + $0x1c] sm:$0x1] }
 0xee5   : > { %9437 = vrcp.f32 %v2184_v52 }
 0xee6   : > { %9439 = vrcp.f32 %v2183_v55 }
 0xee7   : > { %9441 = vpow2.f32 %v8908_v37 }
 0xee8   : > { %9443 = vpow2.f32 %v8909_v38 }
 0xeef   : > { %v10477_v31 = vpop.eup %9437 }
 0xef0   : > { %v10481_v61 = vpop.eup %9439  ;;  %v2200_v20 = vmul.f32 %v10477_v31, %v10385_v13 }
 0xef1   : > { %v9442_v42 = vpop.eup %9441  ;;  %v2199_v56 = vmul.f32 %v10481_v61, %v10395_v21 }
 0xef2   : > { %v2185_v4 = vadd.f32 1.0, %v9442_v42  ;;  %v9444_v43 = vpop.eup %9443 }
 0xef3   : > { %v2186_v45 = vadd.f32 1.0, %v9444_v43 }
 0xef4   : > { %9445 = vrcp.f32 %v2185_v4 }
 0xef5   : > { %9447 = vrcp.f32 %v2186_v45 }
 0xefe   : > { %v10485_v10 = vpop.eup %9445 }
 0xeff   : > { %v10489_v15 = vpop.eup %9447  ;;  %v2201_v40 = vmul.f32 %v10485_v10, %v10383_v11 }
 0xf00   : > { %v2202_v23 = vmul.f32 %v10489_v15, %v10393_v41 }
 0xf1a   : > { %v2210_v1 = vpop.permute.xlu0 %2209 }
 0xf1b   : > { %v2220_v63 = vmul.f32 %v10477_v31, %v2210_v1 }
 0xf1d   : > { %2229 = vrot.lane.b32.xlu0 %v2220_v63, %s9791_s26 }
 0xf1e   : > { %v2208_v3 = vpop.permute.xlu0 %2207 }
 0xf1f   : > { %v2219_v26 = vmul.f32 %v10481_v61, %v2208_v3 }
 0xf21   : > { %2227 = vrot.lane.b32.xlu0 %v2219_v26, %s9791_s26 }
 0xf50   : > { %v2212_v46 = vpop.permute.xlu1 %2211 }
 0xf51   : > { %v2221_v48 = vmul.f32 %v10485_v10, %v2212_v46 }
 0xf53   : > { %2231 = vrot.lane.b32.xlu1 %v2221_v48, %s9791_s26 }
 0xf54   : > { %v2214_v49 = vpop.permute.xlu1 %2213 }
 0xf55   : > { %v2222_v36 = vmul.f32 %v10489_v15, %v2214_v49 }
 0xf57   : > { %2233 = vrot.lane.b32.xlu1 %v2222_v36, %s9791_s26 }
 0xf8f   : > { %v2230_v32 = vpop.permute.xlu0 %2229 }
 0xf90   : > { %v10495_v39 = vadd.f32 %v2230_v32, %v2200_v20 }
 0xf92   : > { %9449 = vtanh.f32 %v10495_v39 }
 0xf93   : > { %v2228_v60 = vpop.permute.xlu0 %2227 }
 0xf94   : > { %v10500_v59 = vadd.f32 %v2228_v60, %v2199_v56 }
 0xf96   : > { %9451 = vtanh.f32 %v10500_v59 }
 0xf9c   : > { %v9450_v6 = vpop.eup %9449 }
 0xf9d   : > { %2253 = vrot.lane.b32.xlu0 %v9450_v6, %s9792_s25 }
 0xfa0   : > { %v9452_v44 = vpop.eup %9451  ;;  %v1973_v13 = vpop.f32.mrb[12].mxu0 }
 0xfa1   : > { %v1980_v18 = vrot.slane %v1973_v13, 1  ;;  %v9044_v51 = vpop.f32.mrb[13].mxu0  ;;  %2251 = vrot.lane.b32.xlu0 %v9452_v44, %s9792_s25  ;;  %v1987_v9 = vadd.f32 %v1973_v13, %v1907_v54  ;;  %v1981_v27 = vrot.slane %v1973_v13, 2  ;;  %v1982_v33 = vrot.slane %v1973_v13, 3 }
 0xfa2   : > { %v1976_v7 = vpop.f32.mrb[14].mxu0 }
 0xfa3   : > { %v1988_v14 = vadd.f32 %v1980_v18, %v1908_v22  ;;  %v9045_v21 = vpop.f32.mrb[15].mxu0  ;;  %v1989_v52 = vadd.f32 %v1981_v27, %v1909_v19  ;;  %v1990_v55 = vadd.f32 %v1982_v33, %v1910_v12  ;;  %v8901_v26 = vmul.f32 -1.442695, %v1987_v9 }
 0xfa5   : > { %9453 = vtanh.f32 %v1988_v14  ;;  %v8902_v3 = vmul.f32 -1.442695, %v1988_v14  ;;  %v8904_v44 = vmul.f32 -1.442695, %v1990_v55 }
 0xfa6   : > { %9455 = vtanh.f32 %v1987_v9 }
 0xfaf   : > { %v9454_v16 = vpop.eup %9453 }
 0xfb0   : > { %2029 = vrot.lane.b32.xlu0 %v9454_v16, %s9790_s27  ;;  %v9456_v62 = vpop.eup %9455 }
 0xfb4   : > { %2027 = vrot.lane.b32.xlu0 %v9456_v62, %s9790_s27 }
 0xfc5   : > { %v2232_v8 = vpop.permute.xlu1 %2231 }
 0xfc6   : > { %v10511_v17 = vadd.f32 %v2232_v8, %v2201_v40 }
 0xfc8   : > { %9457 = vtanh.f32 %v10511_v17 }
 0xfc9   : > { %v2234_v24 = vpop.permute.xlu1 %2233 }
 0xfca   : > { %v10517_v34 = vadd.f32 %v2234_v24, %v2202_v23 }
 0xfcc   : > { %9459 = vtanh.f32 %v10517_v34 }
 0xfcd   : > { %9461 = vtanh.f32 %v1989_v52 }
 0xfce   : > { %9463 = vtanh.f32 %v1990_v55 }
 0xfcf   : > { %9465 = vpow2.f32 %v8902_v3 }
 0xfd0   : > { %9467 = vpow2.f32 %v8901_v26 }
 0xfd2   : > { %v9458_v11 = vpop.eup %9457 }
 0xfd3   : > { %2255 = vrot.lane.b32.xlu1 %v9458_v11, %s9792_s25 }
 0xfd6   : > { %v9460_v1 = vpop.eup %9459 }
 0xfd7   : > { %2257 = vrot.lane.b32.xlu1 %v9460_v1, %s9792_s25  ;;  %v9462_v63 = vpop.eup %9461 }
 0xfd8   : > { %v9464_v41 = vpop.eup %9463 }
 0xfd9   : > { %v9466_v42 = vpop.eup %9465 }
 0xfda   : > { %v2004_v46 = vadd.f32 1.0, %v9466_v42  ;;  %v9468_v48 = vpop.eup %9467 }
 0xfdb   : > { %2031 = vrot.lane.b32.xlu1 %v9462_v63, %s9790_s27  ;;  %v2003_v36 = vadd.f32 1.0, %v9468_v48 }
 0xfdc   : > { %9469 = vrcp.f32 %v2004_v46 }
 0xfdd   : > { %9471 = vrcp.f32 %v2003_v36 }
 0xfdf   : > { %2033 = vrot.lane.b32.xlu1 %v9464_v41, %s9790_s27 }
 0xfe6   : > { %v10528_v20 = vpop.eup %9469 }
0x100f   : > { %v2254_v37 = vpop.permute.xlu0 %2253 }
0x1010   : > { %v2264_v38 = vmul.f32 %v10477_v31, %v2254_v37  ;;  %v10532_v31 = vpop.eup %9471 }
0x1011   : > { %v2019_v48 = vmul.f32 %v10532_v31, %v10435_v5 }
0x1012   : > { %v2285_v43 = vrot.slane %v2264_v38, 7  ;;  %v2476_v18 = vpack.c.bf16 %v2264_v38, %v2264_v38 }
0x1013   : > { %v2252_v4 = vpop.permute.xlu0 %2251 }
0x1014   : > { %v2263_v45 = vmul.f32 %v10481_v61, %v2252_v4  ;;  %v8903_v61 = vmul.f32 -1.442695, %v1989_v52  ;;  %v2484_v62 = vunpack.c.l.b16 %v2476_v18 }
0x1016   : > { %v2286_v49 = vsel %vm716_vm1, %v2285_v43, %v2263_v45  ;;  %9473 = vpow2.f32 %v8903_v61  ;;  %v2475_v14 = vpack.c.bf16 %v2263_v45, %v2263_v45  ;;  %v2487_v12 = vrot.slane %v2484_v62, 7 }
0x1017   : > { %9475 = vpow2.f32 %v8904_v44  ;;  %v2020_v43 = vmul.f32 %v10528_v20, %v10430_v58 }
0x1018   : > { %v2483_v19 = vunpack.c.l.b16 %v2475_v14 }
0x101a   : > { %v2488_v11 = vsel %vm716_vm1, %v2487_v12, %v2483_v19 }
0x1020   : > { %v9474_v22 = vpop.eup %9473 }
0x1021   : > { %v9476_v7 = vpop.eup %9475  ;;  %v2005_v54 = vadd.f32 1.0, %v9474_v22 }
0x1022   : > { %v2030_v32 = vpop.permute.xlu0 %2029  ;;  %v2006_v23 = vadd.f32 1.0, %v9476_v7 }
0x1023   : > { %v2040_v56 = vmul.f32 %v10528_v20, %v2030_v32  ;;  %9477 = vrcp.f32 %v2005_v54 }
0x1024   : > { %9479 = vrcp.f32 %v2006_v23 }
0x1025   : > { %2049 = vrot.lane.b32.xlu1 %v2040_v56, %s9791_s26 }
0x1026   : > { %v2028_v60 = vpop.permute.xlu0 %2027 }
0x1027   : > { %v2039_v6 = vmul.f32 %v10532_v31, %v2028_v60  ;;  %v10564_v60 = vld [vmem:[%s13872_s2] sm:$0xff]  }
0x1029   : > { %2047 = vrot.lane.b32.xlu1 %v2039_v6, %s9791_s26 }
0x102d   : > { %v9478_v26 = vpop.eup %9477 }
0x102e   : > { %v9480_v42 = vpop.eup %9479  ;;  %v2021_v5 = vmul.f32 %v9478_v26, %v10442_v50 }
0x102f   : > { %v2022_v44 = vmul.f32 %v9480_v42, %v10446_v53 }
0x1045   : > { %v2256_v13 = vpop.permute.xlu1 %2255 }
0x1046   : > { %v2265_v51 = vmul.f32 %v10485_v10, %v2256_v13 }
0x1048   : > { %v2287_v21 = vrot.slane %v2265_v51, 6  ;;  %v2477_v9 = vpack.c.bf16 %v2265_v51, %v2265_v51 }
0x1049   : > { %v2258_v16 = vpop.permute.xlu1 %2257 }
0x104a   : > { %v2485_v40 = vunpack.c.l.b16 %v2477_v9  ;;  %v2266_v8 = vmul.f32 %v10489_v15, %v2258_v16  ;;  %v2288_v27 = vsel %vm719_vm2, %v2287_v21, %v2286_v49 }
0x104c   : > { %v2289_v24 = vrot.slane %v2266_v8, 5  ;;  %v2478_v33 = vpack.c.bf16 %v2266_v8, %v2266_v8  ;;  %v2489_v52 = vrot.slane %v2485_v40, 6 }
0x104d   : > { %v2032_v15 = vpop.permute.xlu1 %2031 }
0x104e   : > { %v2486_v10 = vunpack.c.l.b16 %v2478_v33  ;;  %v10540_v55 = vsel %vm722_vm3, %v2289_v24, %v2288_v27  ;;  %v2490_v63 = vsel %vm719_vm2, %v2489_v52, %v2488_v11  ;;  %v2041_v37 = vmul.f32 %v9478_v26, %v2032_v15 }
0x1050   : > { %v2491_v1 = vrot.slane %v2486_v10, 5 }
0x1051   : > { %v2034_v38 = vpop.permute.xlu1 %2033 }
0x1052   : > { %v2492_v41 = vsel %vm722_vm3, %v2491_v1, %v2490_v63  ;;  %v2042_v4 = vmul.f32 %v9480_v42, %v2034_v38 }
0x1053   : > { %v2493_v3 = vpack.c.b16 %v2492_v41, %v2492_v41 }
0x1055   : > { %2494 = vrot.lane.b32.xlu0 %v2493_v3, %s9791_s26 }
0x1059   : > { %2051 = vrot.lane.b32.xlu0 %v2041_v37, %s9791_s26 }
0x105d   : > { %2053 = vrot.lane.b32.xlu0 %v2042_v4, %s9791_s26 }
0x1097   : > { %v2050_v45 = vpop.permute.xlu1 %2049 }
0x1098   : > { %v10550_v46 = vadd.f32 %v2050_v45, %v2020_v43 }
0x109a   : > { %9481 = vtanh.f32 %v10550_v46 }
0x109b   : > { %v2048_v49 = vpop.permute.xlu1 %2047 }
0x109c   : > { %v10555_v36 = vadd.f32 %v2048_v49, %v2019_v48 }
0x109e   : > { %9483 = vtanh.f32 %v10555_v36 }
0x10a4   : > { %v9482_v32 = vpop.eup %9481 }
0x10a5   : > { %2073 = vrot.lane.b32.xlu1 %v9482_v32, %s9792_s25 }
0x10a8   : > { %v9484_v56 = vpop.eup %9483 }
0x10a9   : > { %2071 = vrot.lane.b32.xlu1 %v9484_v56, %s9792_s25  ;;  %v10599_v56 = vld [vmem:[%s13871_s1] sm:$0xff]  }
0x10c7   : > { %v2495_v58 = vpop.permute.xlu0 %2494 }
0x10c8   : > { %9061 = vmatmul.mubr.msk.bf16.vlgmr.msra.gmra.mrb[24].mxu1 %vm397_vm4, %v2495_v58  ;;  %v2301_v58 = vld [vmem:[%s9956_s19 + $0x12] sm:$0x1] }
0x10c9   : > { %9071 = vmatpush3.bf16.msra.mxu1 %v10564_v60  ;;  %9072 = vmatprep.mubr.msk.bf16.mxu1 %vm9787_vm0, %v9786_v0 }
0x10ca   : > { %9082 = vmatprep.subr.bf16.mxu1 %v9786_v0 }
0x10cb   : > { %v2052_v6 = vpop.permute.xlu0 %2051 }
0x10cc   : > { %v10571_v61 = vadd.f32 %v2052_v6, %v2021_v5  ;;  %v2300_v5 = vld [vmem:[%s9956_s19 + $0xa] sm:$0x1] }
0x10ce   : > { %9485 = vtanh.f32 %v10571_v61 }
0x10cf   : > { %v2054_v22 = vpop.permute.xlu0 %2053 }
0x10d0   : > { %v10575_v13 = vadd.f32 %v2054_v22, %v2022_v44 }
0x10d2   : > { %9487 = vtanh.f32 %v10575_v13 }
0x10d8   : > { %v9486_v18 = vpop.eup %9485 }
0x10d9   : > { %2075 = vrot.lane.b32.xlu0 %v9486_v18, %s9792_s25 }
0x10dc   : > { %v9488_v51 = vpop.eup %9487 }
0x10dd   : > { %2077 = vrot.lane.b32.xlu0 %v9488_v51, %s9792_s25  ;;  %v2302_v51 = vld [vmem:[%s9956_s19 + $0x1a] sm:$0x1] }
0x1117   : > { %v2074_v50 = vpop.permute.xlu1 %2073 }
0x1118   : > { %v2084_v7 = vmul.f32 %v10528_v20, %v2074_v50  ;;  %v2299_v50 = vld [vmem:[%s9956_s19 + $0x2] sm:$0x1] }
0x111a   : > { %v2271_v14 = vrot.slane %v2084_v7, 7  ;;  %v2304_v16 = vpack.c.bf16 %v2084_v7, %v2084_v7 }
0x111b   : > { %v2072_v54 = vpop.permute.xlu1 %2071 }
0x111c   : > { %v2083_v21 = vmul.f32 %v10532_v31, %v2072_v54  ;;  %v2312_v19 = vunpack.c.l.b16 %v2304_v16 }
0x111e   : > { %v2272_v53 = vsel %vm716_vm1, %v2271_v14, %v2083_v21  ;;  %v2303_v40 = vpack.c.bf16 %v2083_v21, %v2083_v21  ;;  %v2315_v1 = vrot.slane %v2312_v19, 7 }
0x1120   : > { %v2311_v12 = vunpack.c.l.b16 %v2303_v40 }
0x1122   : > { %v2316_v15 = vsel %vm716_vm1, %v2315_v1, %v2311_v12 }
0x114b   : > { %v2076_v9 = vpop.permute.xlu0 %2075 }
0x114c   : > { %v2085_v62 = vmul.f32 %v9478_v26, %v2076_v9 }
0x114e   : > { %v2273_v8 = vrot.slane %v2085_v62, 6  ;;  %v2305_v27 = vpack.c.bf16 %v2085_v62, %v2085_v62 }
0x114f   : > { %v2078_v23 = vpop.permute.xlu0 %2077 }
0x1150   : > { %v2313_v24 = vunpack.c.l.b16 %v2305_v27  ;;  %v2086_v33 = vmul.f32 %v9480_v42, %v2078_v23  ;;  %v2274_v52 = vsel %vm719_vm2, %v2273_v8, %v2272_v53 }
0x1152   : > { %v2275_v20 = vrot.slane %v2086_v33, 5  ;;  %v2306_v10 = vpack.c.bf16 %v2086_v33, %v2086_v33  ;;  %v2317_v11 = vrot.slane %v2313_v24, 6 }
0x1154   : > { %v2314_v31 = vunpack.c.l.b16 %v2306_v10  ;;  %v10585_v63 = vsel %vm722_vm3, %v2275_v20, %v2274_v52  ;;  %v2318_v3 = vsel %vm719_vm2, %v2317_v11, %v2316_v15 }
0x1156   : > { %v2319_v41 = vrot.slane %v2314_v31, 5 }
0x1158   : > { %v2320_v26 = vsel %vm722_vm3, %v2319_v41, %v2318_v3 }
0x1159   : > { %v2321_v37 = vpack.c.b16 %v2320_v26, %v2320_v26 }
0x115b   : > { %2322 = vrot.lane.b32.xlu1 %v2321_v37, %s9793_s23 }
0x119b   : > { %v2533_v38 = vpop.f32.mrb[24].mxu1 }
0x119c   : > { %v2540_v42 = vrot.slane %v2533_v38, 1  ;;  %v2541_v4 = vrot.slane %v2533_v38, 2  ;;  %v9062_v43 = vpop.f32.mrb[25].mxu1  ;;  %v2542_v49 = vrot.slane %v2533_v38, 3 }
0x119d   : > { %v2536_v45 = vpop.f32.mrb[26].mxu1 }
0x119e   : > { %2547 = vrot.lane.b32.xlu1 %v2541_v4, %s9789_s17  ;;  %2545 = vrot.lane.b32.xlu0 %v2540_v42, %s9789_s17  ;;  %v9063_v48 = vpop.f32.mrb[27].mxu1 }
0x119f   : > { %v2296_v48 = vld [vmem:[%s9956_s19 + $0xd] sm:$0x1] }
0x11a2   : > { %2549 = vrot.lane.b32.xlu1 %v2542_v49, %s9789_s17  ;;  %2543 = vrot.lane.b32.xlu0 %v2533_v38, %s9789_s17 }
0x11cd   : > { %v2323_v32 = vpop.permute.xlu1 %2322 }
0x11ce   : > { %9055 = vmatmul.mubr.msk.bf16.vlgmr.msra.gmra.mrb[16].mxu0 %vm397_vm4, %v2323_v32 }
0x11cf   : > { %9065 = vmatpush3.bf16.msra.mxu0 %v10599_v56  ;;  %9066 = vmatprep.mubr.msk.bf16.mxu0 %vm9787_vm0, %v9786_v0 }
0x11d0   : > { %9076 = vmatprep.subr.bf16.mxu0 %v9786_v0 }
0x1210   : > { %v2548_v6 = vpop.permute.xlu1 %2547  ;;  %v2546_v44 = vpop.permute.xlu0 %2545 }
0x1211   : > { %v2557_v22 = vadd.f32 %v2548_v6, %v2301_v58  ;;  %v2556_v18 = vadd.f32 %v2546_v44, %v2300_v5  ;;  %v2295_v5 = vld [vmem:[%s9956_s19 + $0x5] sm:$0x1] }
0x1213   : > { %9489 = vtanh.f32 %v2557_v22  ;;  %v8918_v40 = vmul.f32 -1.442695, %v2557_v22  ;;  %v8917_v8 = vmul.f32 -1.442695, %v2556_v18  ;;  %v2297_v22 = vld [vmem:[%s9956_s19 + $0x15] sm:$0x1] }
0x1214   : > { %9491 = vtanh.f32 %v2556_v18  ;;  %v2550_v7 = vpop.permute.xlu1 %2549  ;;  %v2544_v54 = vpop.permute.xlu0 %2543 }
0x1215   : > { %v2558_v14 = vadd.f32 %v2550_v7, %v2302_v51  ;;  %v2555_v21 = vadd.f32 %v2544_v54, %v2299_v50 }
0x1217   : > { %9493 = vtanh.f32 %v2558_v14  ;;  %v8919_v27 = vmul.f32 -1.442695, %v2558_v14  ;;  %v8916_v23 = vmul.f32 -1.442695, %v2555_v21  ;;  %v2298_v14 = vld [vmem:[%s9956_s19 + $0x1d] sm:$0x1] }
0x1218   : > { %9495 = vtanh.f32 %v2555_v21 }
0x1219   : > { %9497 = vpow2.f32 %v8918_v40 }
0x121a   : > { %9499 = vpow2.f32 %v8917_v8 }
0x121b   : > { %9501 = vpow2.f32 %v8919_v27 }
0x121c   : > { %9503 = vpow2.f32 %v8916_v23 }
0x121d   : > { %v9490_v53 = vpop.eup %9489 }
0x121e   : > { %v9492_v9 = vpop.eup %9491  ;;  %2599 = vrot.lane.b32.xlu1 %v9490_v53, %s9790_s27 }
0x121f   : > { %2597 = vrot.lane.b32.xlu0 %v9492_v9, %s9790_s27 }
0x1221   : > { %v9494_v16 = vpop.eup %9493 }
0x1222   : > { %v9496_v62 = vpop.eup %9495  ;;  %2601 = vrot.lane.b32.xlu1 %v9494_v16, %s9790_s27 }
0x1223   : > { %2595 = vrot.lane.b32.xlu0 %v9496_v62, %s9790_s27  ;;  %v9498_v19 = vpop.eup %9497 }
0x1224   : > { %v9500_v24 = vpop.eup %9499  ;;  %v2573_v33 = vadd.f32 1.0, %v9498_v19 }
0x1225   : > { %v9502_v52 = vpop.eup %9501  ;;  %v2572_v12 = vadd.f32 1.0, %v9500_v24 }
0x1226   : > { %v9504_v20 = vpop.eup %9503  ;;  %9505 = vrcp.f32 %v2573_v33  ;;  %v2574_v10 = vadd.f32 1.0, %v9502_v52 }
0x1227   : > { %9507 = vrcp.f32 %v2572_v12  ;;  %v2571_v11 = vadd.f32 1.0, %v9504_v20 }
0x1228   : > { %9509 = vrcp.f32 %v2574_v10 }
0x1229   : > { %9511 = vrcp.f32 %v2571_v11 }
0x1230   : > { %v10613_v1 = vpop.eup %9505 }
0x1231   : > { %v10615_v15 = vpop.eup %9507  ;;  %v2589_v8 = vmul.f32 %v10613_v1, %v10511_v17 }
0x1232   : > { %v10620_v37 = vpop.eup %9509  ;;  %v2588_v23 = vmul.f32 %v10615_v15, %v10495_v39 }
0x1233   : > { %v10623_v42 = vpop.eup %9511  ;;  %v2590_v20 = vmul.f32 %v10620_v37, %v10517_v34 }
0x1234   : > { %v2587_v10 = vmul.f32 %v10623_v42, %v10500_v59 }
0x1290   : > { %v2600_v31 = vpop.permute.xlu1 %2599 }
0x1291   : > { %v2609_v41 = vmul.f32 %v10613_v1, %v2600_v31  ;;  %v2598_v3 = vpop.permute.xlu0 %2597 }
0x1292   : > { %v2608_v26 = vmul.f32 %v10615_v15, %v2598_v3 }
0x1293   : > { %2619 = vrot.lane.b32.xlu1 %v2609_v41, %s9791_s26 }
0x1294   : > { %2617 = vrot.lane.b32.xlu0 %v2608_v26, %s9791_s26  ;;  %v2602_v38 = vpop.permute.xlu1 %2601 }
0x1295   : > { %v2610_v4 = vmul.f32 %v10620_v37, %v2602_v38  ;;  %v2596_v43 = vpop.permute.xlu0 %2595 }
0x1296   : > { %v2607_v45 = vmul.f32 %v10623_v42, %v2596_v43 }
0x1297   : > { %2621 = vrot.lane.b32.xlu1 %v2610_v4, %s9791_s26 }
0x1298   : > { %2615 = vrot.lane.b32.xlu0 %v2607_v45, %s9791_s26 }
0x12a1   : > { %v2361_v49 = vpop.f32.mrb[16].mxu0 }
0x12a2   : > { %v2368_v32 = vrot.slane %v2361_v49, 1  ;;  %v9056_v58 = vpop.f32.mrb[17].mxu0  ;;  %v2369_v6 = vrot.slane %v2361_v49, 2  ;;  %v2375_v50 = vadd.f32 %v2361_v49, %v2295_v5  ;;  %v2370_v7 = vrot.slane %v2361_v49, 3 }
0x12a3   : > { %v2364_v44 = vpop.f32.mrb[18].mxu0 }
0x12a4   : > { %v2376_v18 = vadd.f32 %v2368_v32, %v2296_v48  ;;  %v9057_v51 = vpop.f32.mrb[19].mxu0  ;;  %v2377_v54 = vadd.f32 %v2369_v6, %v2297_v22  ;;  %v2378_v21 = vadd.f32 %v2370_v7, %v2298_v14  ;;  %v8911_v19 = vmul.f32 -1.442695, %v2375_v50 }
0x12a6   : > { %9513 = vtanh.f32 %v2376_v18  ;;  %v8912_v40 = vmul.f32 -1.442695, %v2376_v18  ;;  %v8913_v52 = vmul.f32 -1.442695, %v2377_v54  ;;  %v8914_v41 = vmul.f32 -1.442695, %v2378_v21 }
0x12a7   : > { %9515 = vtanh.f32 %v2375_v50 }
0x12a8   : > { %9517 = vtanh.f32 %v2377_v54 }
0x12a9   : > { %9519 = vtanh.f32 %v2378_v21 }
0x12aa   : > { %9521 = vpow2.f32 %v8912_v40 }
0x12b0   : > { %v9514_v53 = vpop.eup %9513 }
0x12b1   : > { %2417 = vrot.lane.b32.xlu0 %v9514_v53, %s9790_s27  ;;  %v9516_v9 = vpop.eup %9515 }
0x12b2   : > { %v9518_v16 = vpop.eup %9517 }
0x12b3   : > { %2419 = vrot.lane.b32.xlu1 %v9518_v16, %s9790_s27  ;;  %v9520_v62 = vpop.eup %9519 }
0x12b4   : > { %v9522_v3 = vpop.eup %9521 }
0x12b5   : > { %2415 = vrot.lane.b32.xlu0 %v9516_v9, %s9790_s27  ;;  %v2392_v43 = vadd.f32 1.0, %v9522_v3 }
0x12b7   : > { %2421 = vrot.lane.b32.xlu1 %v9520_v62, %s9790_s27 }
0x1305   : > { %v2620_v27 = vpop.permute.xlu1 %2619 }
0x1306   : > { %v10641_v24 = vadd.f32 %v2620_v27, %v2589_v8  ;;  %v2618_v33 = vpop.permute.xlu0 %2617 }
0x1307   : > { %v10643_v12 = vadd.f32 %v2618_v33, %v2588_v23 }
0x1308   : > { %9523 = vtanh.f32 %v10641_v24 }
0x1309   : > { %9525 = vtanh.f32 %v10643_v12  ;;  %v2622_v17 = vpop.permute.xlu1 %2621 }
0x130a   : > { %9527 = vpow2.f32 %v8911_v19  ;;  %v10651_v39 = vadd.f32 %v2622_v17, %v2590_v20  ;;  %v2616_v11 = vpop.permute.xlu0 %2615 }
0x130b   : > { %9529 = vpow2.f32 %v8913_v52  ;;  %v10653_v31 = vadd.f32 %v2616_v11, %v2587_v10 }
0x130c   : > { %9531 = vtanh.f32 %v10651_v39 }
0x130d   : > { %9533 = vtanh.f32 %v10653_v31 }
0x130e   : > { %9535 = vpow2.f32 %v8914_v41 }
0x130f   : > { %9537 = vrcp.f32 %v2392_v43 }
0x1312   : > { %v9524_v34 = vpop.eup %9523 }
0x1313   : > { %v9526_v26 = vpop.eup %9525  ;;  %2643 = vrot.lane.b32.xlu1 %v9524_v34, %s9792_s25 }
0x1314   : > { %v9528_v38 = vpop.eup %9527  ;;  %2641 = vrot.lane.b32.xlu0 %v9526_v26, %s9792_s25 }
0x1315   : > { %v9530_v59 = vpop.eup %9529  ;;  %v2391_v48 = vadd.f32 1.0, %v9528_v38 }
0x1316   : > { %v9532_v4 = vpop.eup %9531  ;;  %v2393_v49 = vadd.f32 1.0, %v9530_v59 }
0x1317   : > { %v9534_v45 = vpop.eup %9533  ;;  %2645 = vrot.lane.b32.xlu1 %v9532_v4, %s9792_s25  ;;  %9539 = vrcp.f32 %v2391_v48 }
0x1318   : > { %2639 = vrot.lane.b32.xlu0 %v9534_v45, %s9792_s25  ;;  %v9536_v32 = vpop.eup %9535  ;;  %9541 = vrcp.f32 %v2393_v49 }
0x1319   : > { %v2394_v58 = vadd.f32 1.0, %v9536_v32  ;;  %v10661_v5 = vpop.eup %9537 }
0x131a   : > { %v2408_v32 = vmul.f32 %v10661_v5, %v10550_v46 }
0x131b   : > { %9543 = vrcp.f32 %v2394_v58 }
0x1321   : > { %v10664_v22 = vpop.eup %9539 }
0x1322   : > { %v10667_v18 = vpop.eup %9541 }
0x1323   : > { %v2418_v6 = vpop.permute.xlu0 %2417 }
0x1324   : > { %v2428_v44 = vmul.f32 %v10661_v5, %v2418_v6 }
0x1325   : > { %v2420_v51 = vpop.permute.xlu1 %2419  ;;  %v10673_v14 = vpop.eup %9543 }
0x1326   : > { %2437 = vrot.lane.b32.xlu0 %v2428_v44, %s9791_s26  ;;  %v2429_v7 = vmul.f32 %v10667_v18, %v2420_v51  ;;  %v2409_v44 = vmul.f32 %v10667_v18, %v10571_v61  ;;  %v2407_v51 = vmul.f32 %v10664_v22, %v10555_v36  ;;  %v2410_v46 = vmul.f32 %v10673_v14, %v10575_v13 }
0x1327   : > { %v2416_v50 = vpop.permute.xlu0 %2415 }
0x1328   : > { %v2427_v54 = vmul.f32 %v10664_v22, %v2416_v50  ;;  %2439 = vrot.lane.b32.xlu1 %v2429_v7, %s9791_s26 }
0x1329   : > { %v2422_v21 = vpop.permute.xlu1 %2421 }
0x132a   : > { %2435 = vrot.lane.b32.xlu0 %v2427_v54, %s9791_s26  ;;  %v2430_v53 = vmul.f32 %v10673_v14, %v2422_v21 }
0x132c   : > { %2441 = vrot.lane.b32.xlu1 %v2430_v53, %s9791_s26 }
0x1385   : > { %v2644_v9 = vpop.permute.xlu1 %2643 }
0x1386   : > { %v2653_v16 = vmul.f32 %v10613_v1, %v2644_v9  ;;  %v2642_v62 = vpop.permute.xlu0 %2641 }
0x1387   : > { %v2652_v40 = vmul.f32 %v10615_v15, %v2642_v62 }
0x1388   : > { %v2865_v8 = vpack.c.bf16 %v2653_v16, %v2653_v16  ;;  %v2675_v10 = vrot.slane %v2653_v16, 6 }
0x1389   : > { %v2864_v27 = vpack.c.bf16 %v2652_v40, %v2652_v40  ;;  %v2646_v23 = vpop.permute.xlu1 %2645  ;;  %v2673_v52 = vrot.slane %v2652_v40, 7 }
0x138a   : > { %v2654_v19 = vmul.f32 %v10620_v37, %v2646_v23  ;;  %v2640_v33 = vpop.permute.xlu0 %2639  ;;  %v2873_v11 = vunpack.c.l.b16 %v2865_v8 }
0x138b   : > { %v2872_v20 = vunpack.c.l.b16 %v2864_v27  ;;  %v2651_v17 = vmul.f32 %v10623_v42, %v2640_v33 }
0x138c   : > { %v2677_v41 = vrot.slane %v2654_v19, 5  ;;  %v2866_v3 = vpack.c.bf16 %v2654_v19, %v2654_v19  ;;  %v2877_v37 = vrot.slane %v2873_v11, 6 }
0x138d   : > { %v2674_v34 = vsel %vm716_vm1, %v2673_v52, %v2651_v17  ;;  %v2863_v1 = vpack.c.bf16 %v2651_v17, %v2651_v17  ;;  %v2875_v38 = vrot.slane %v2872_v20, 7 }
0x138e   : > { %v2874_v26 = vunpack.c.l.b16 %v2866_v3  ;;  %v2676_v15 = vsel %vm719_vm2, %v2675_v10, %v2674_v34 }
0x138f   : > { %v2871_v59 = vunpack.c.l.b16 %v2863_v1  ;;  %v10684_v4 = vsel %vm722_vm3, %v2677_v41, %v2676_v15 }
0x1390   : > { %v2879_v43 = vrot.slane %v2874_v26, 5 }
0x1391   : > { %v2876_v45 = vsel %vm716_vm1, %v2875_v38, %v2871_v59 }
0x1392   : > { %v2878_v42 = vsel %vm719_vm2, %v2877_v37, %v2876_v45 }
0x1393   : > { %v2880_v48 = vsel %vm722_vm3, %v2879_v43, %v2878_v42 }
0x1394   : > { %v2881_v49 = vpack.c.b16 %v2880_v48, %v2880_v48 }
0x1396   : > { %2882 = vrot.lane.b32.xlu0 %v2881_v49, %s9791_s26 }
0x1398   : > { %v2438_v58 = vpop.permute.xlu0 %2437 }
0x1399   : > { %v10692_v6 = vadd.f32 %v2438_v58, %v2408_v32 }
0x139a   : > { %v2440_v50 = vpop.permute.xlu1 %2439 }
0x139b   : > { %9545 = vtanh.f32 %v10692_v6  ;;  %v10699_v54 = vadd.f32 %v2440_v50, %v2409_v44 }
0x139c   : > { %v2436_v7 = vpop.permute.xlu0 %2435 }
0x139d   : > { %v10701_v21 = vadd.f32 %v2436_v7, %v2407_v51  ;;  %9547 = vtanh.f32 %v10699_v54 }
0x139e   : > { %v2442_v53 = vpop.permute.xlu1 %2441 }
0x139f   : > { %9549 = vtanh.f32 %v10701_v21  ;;  %v10707_v61 = vadd.f32 %v2442_v53, %v2410_v46  ;;  %v2688_v53 = vld [vmem:[%s9956_s19 + $0x9] sm:$0x1] }
0x13a1   : > { %9551 = vtanh.f32 %v10707_v61 }
0x13a5   : > { %v9546_v9 = vpop.eup %9545 }
0x13a6   : > { %2461 = vrot.lane.b32.xlu1 %v9546_v9, %s9792_s25 }
0x13a7   : > { %v9548_v36 = vpop.eup %9547 }
0x13a8   : > { %2463 = vrot.lane.b32.xlu0 %v9548_v36, %s9792_s25 }
0x13a9   : > { %v9550_v16 = vpop.eup %9549 }
0x13aa   : > { %2459 = vrot.lane.b32.xlu1 %v9550_v16, %s9792_s25 }
0x13ab   : > { %v9552_v62 = vpop.eup %9551 }
0x13ac   : > { %2465 = vrot.lane.b32.xlu0 %v9552_v62, %s9792_s25  ;;  %v2690_v62 = vld [vmem:[%s9956_s19 + $0x19] sm:$0x1] }
0x1408   : > { %v2883_v13 = vpop.permute.xlu0 %2882 }
0x1409   : > { %9073 = vmatmul.mubr.msk.bf16.vlgmr.msra.gmra.mrb[28].mxu1 %vm397_vm4, %v2883_v13  ;;  %v2687_v13 = vld [vmem:[%s9956_s19 + $0x1] sm:$0x1] }
0x140a   : > { %9083 = vmatpush3.bf16.msra.mxu1 %v10564_v60  ;;  %9084 = vmatprep.mubr.msk.bf16.mxu1 %vm9787_vm0, %v9786_v0 }
0x1418   : > { %v2462_v40 = vpop.permute.xlu1 %2461 }
0x1419   : > { %v2472_v8 = vmul.f32 %v10661_v5, %v2462_v40 }
0x141a   : > { %v2464_v23 = vpop.permute.xlu0 %2463 }
0x141b   : > { %v2692_v27 = vpack.c.bf16 %v2472_v8, %v2472_v8  ;;  %v2473_v19 = vmul.f32 %v10667_v18, %v2464_v23  ;;  %v2659_v52 = vrot.slane %v2472_v8, 7 }
0x141c   : > { %v2460_v33 = vpop.permute.xlu1 %2459 }
0x141d   : > { %v2700_v20 = vunpack.c.l.b16 %v2692_v27  ;;  %v2471_v17 = vmul.f32 %v10664_v22, %v2460_v33  ;;  %v2661_v10 = vrot.slane %v2473_v19, 6  ;;  %v2693_v11 = vpack.c.bf16 %v2473_v19, %v2473_v19 }
0x141e   : > { %v2466_v3 = vpop.permute.xlu0 %2465 }
0x141f   : > { %v2660_v41 = vsel %vm716_vm1, %v2659_v52, %v2471_v17  ;;  %v2691_v60 = vpack.c.bf16 %v2471_v17, %v2471_v17  ;;  %v2701_v34 = vunpack.c.l.b16 %v2693_v11  ;;  %v2474_v1 = vmul.f32 %v10673_v14, %v2466_v3 }
0x1420   : > { %v2662_v5 = vsel %vm719_vm2, %v2661_v10, %v2660_v41  ;;  %v2703_v26 = vrot.slane %v2700_v20, 7 }
0x1421   : > { %v2699_v15 = vunpack.c.l.b16 %v2691_v60  ;;  %v2663_v38 = vrot.slane %v2474_v1, 5  ;;  %v2694_v18 = vpack.c.bf16 %v2474_v1, %v2474_v1  ;;  %v2705_v59 = vrot.slane %v2701_v34, 6 }
0x1423   : > { %v2704_v37 = vsel %vm716_vm1, %v2703_v26, %v2699_v15  ;;  %v2702_v43 = vunpack.c.l.b16 %v2694_v18  ;;  %v10726_v22 = vsel %vm722_vm3, %v2663_v38, %v2662_v5 }
0x1424   : > { %v2706_v45 = vsel %vm719_vm2, %v2705_v59, %v2704_v37 }
0x1425   : > { %v2707_v42 = vrot.slane %v2702_v43, 5 }
0x1427   : > { %v2708_v48 = vsel %vm722_vm3, %v2707_v42, %v2706_v45  ;;  %v2685_v42 = vld [vmem:[%s9956_s19 + $0x16] sm:$0x1] }
0x1428   : > { %v2709_v49 = vpack.c.b16 %v2708_v48, %v2708_v48 }
0x142a   : > { %2710 = vrot.lane.b32.xlu1 %v2709_v49, %s9793_s23  ;;  %v2684_v49 = vld [vmem:[%s9956_s19 + $0xe] sm:$0x1] }
0x149c   : > { %v2711_v14 = vpop.permute.xlu1 %2710 }
0x149d   : > { %9067 = vmatmul.mubr.msk.bf16.vlgmr.msra.gmra.mrb[20].mxu0 %vm397_vm4, %v2711_v14 }
0x149e   : > { %9077 = vmatpush3.bf16.msra.mxu0 %v10599_v56  ;;  %9078 = vmatprep.mubr.msk.bf16.mxu0 %vm9787_vm0, %v9786_v0  ;;  %v2689_v56 = vld [vmem:[%s9956_s19 + $0x11] sm:$0x1] }
0x14dc   : > { %v2921_v32 = vpop.f32.mrb[28].mxu1 }
0x14dd   : > { %v2928_v58 = vrot.slane %v2921_v32, 1  ;;  %v2929_v44 = vrot.slane %v2921_v32, 2  ;;  %v9074_v51 = vpop.f32.mrb[29].mxu1  ;;  %v2930_v46 = vrot.slane %v2921_v32, 3 }
0x14de   : > { %v2924_v50 = vpop.f32.mrb[30].mxu1  ;;  %v2683_v51 = vld [vmem:[%s9956_s19 + $0x6] sm:$0x1] }
0x14df   : > { %2935 = vrot.lane.b32.xlu1 %v2929_v44, %s9789_s17  ;;  %2933 = vrot.lane.b32.xlu0 %v2928_v58, %s9789_s17  ;;  %v9075_v7 = vpop.f32.mrb[31].mxu1  ;;  %v2686_v58 = vld [vmem:[%s9956_s19 + $0x1e] sm:$0x1] }
0x14e3   : > { %2937 = vrot.lane.b32.xlu1 %v2930_v46, %s9789_s17  ;;  %2931 = vrot.lane.b32.xlu0 %v2921_v32, %s9789_s17 }
0x1551   : > { %v2936_v0 = vpop.permute.xlu1 %2935  ;;  %v2934_v9 = vpop.permute.xlu0 %2933 }
0x1552   : > { %v2945_v36 = vadd.f32 %v2936_v0, %v2689_v56  ;;  %v2944_v16 = vadd.f32 %v2934_v9, %v2688_v53 }
0x1554   : > { %9553 = vtanh.f32 %v2945_v36  ;;  %v8928_v60 = vmul.f32 -1.442695, %v2945_v36  ;;  %v8927_v3 = vmul.f32 -1.442695, %v2944_v16 }
0x1555   : > { %9555 = vtanh.f32 %v2944_v16  ;;  %v2938_v40 = vpop.permute.xlu1 %2937  ;;  %v2932_v8 = vpop.permute.xlu0 %2931 }
0x1556   : > { %v2946_v27 = vadd.f32 %v2938_v40, %v2690_v62  ;;  %v2943_v23 = vadd.f32 %v2932_v8, %v2687_v13 }
0x1558   : > { %9557 = vtanh.f32 %v2946_v27  ;;  %v8929_v34 = vmul.f32 -1.442695, %v2946_v27  ;;  %v8926_v1 = vmul.f32 -1.442695, %v2943_v23 }
0x1559   : > { %9559 = vtanh.f32 %v2943_v23 }
0x155a   : > { %9561 = vpow2.f32 %v8928_v60 }
0x155b   : > { %9563 = vpow2.f32 %v8927_v3 }
0x155c   : > { %9565 = vpow2.f32 %v8929_v34 }
0x155d   : > { %9567 = vpow2.f32 %v8926_v1 }
0x155e   : > { %v9554_v19 = vpop.eup %9553 }
0x155f   : > { %v9556_v33 = vpop.eup %9555  ;;  %2987 = vrot.lane.b32.xlu1 %v9554_v19, %s9790_s27 }
0x1560   : > { %2985 = vrot.lane.b32.xlu0 %v9556_v33, %s9790_s27 }
0x1562   : > { %v9558_v52 = vpop.eup %9557 }
0x1563   : > { %v9560_v20 = vpop.eup %9559  ;;  %2989 = vrot.lane.b32.xlu1 %v9558_v52, %s9790_s27 }
0x1564   : > { %2983 = vrot.lane.b32.xlu0 %v9560_v20, %s9790_s27  ;;  %v9562_v5 = vpop.eup %9561 }
0x1565   : > { %v9564_v26 = vpop.eup %9563  ;;  %v2961_v15 = vadd.f32 1.0, %v9562_v5 }
0x1566   : > { %v9566_v38 = vpop.eup %9565  ;;  %v2960_v18 = vadd.f32 1.0, %v9564_v26 }
0x1567   : > { %v9568_v59 = vpop.eup %9567  ;;  %9569 = vrcp.f32 %v2961_v15  ;;  %v2962_v37 = vadd.f32 1.0, %v9566_v38 }
0x1568   : > { %9571 = vrcp.f32 %v2960_v18  ;;  %v2959_v43 = vadd.f32 1.0, %v9568_v59 }
0x1569   : > { %9573 = vrcp.f32 %v2962_v37 }
0x156a   : > { %9575 = vrcp.f32 %v2959_v43 }
0x1570   : > { %v2749_v17 = vpop.f32.mrb[20].mxu0 }
0x1571   : > { %v9068_v10 = vpop.f32.mrb[21].mxu0  ;;  %v2757_v45 = vrot.slane %v2749_v17, 2  ;;  %v2756_v48 = vrot.slane %v2749_v17, 1  ;;  %v2758_v14 = vrot.slane %v2749_v17, 3  ;;  %v10751_v50 = vpop.eup %9569  ;;  %v2763_v53 = vadd.f32 %v2749_v17, %v2683_v51 }
0x1572   : > { %v2752_v11 = vpop.f32.mrb[22].mxu0  ;;  %v10753_v56 = vpop.eup %9571 }
0x1573   : > { %v9069_v41 = vpop.f32.mrb[23].mxu0  ;;  %v2765_v32 = vadd.f32 %v2757_v45, %v2685_v42  ;;  %v2764_v44 = vadd.f32 %v2756_v48, %v2684_v49  ;;  %v2766_v7 = vadd.f32 %v2758_v14, %v2686_v58  ;;  %v10758_v16 = vpop.eup %9573  ;;  %v8921_v11 = vmul.f32 -1.442695, %v2763_v53 }
0x1574   : > { %v10761_v13 = vpop.eup %9575  ;;  %v2976_v18 = vmul.f32 %v10753_v56, %v10643_v12  ;;  %v2977_v42 = vmul.f32 %v10751_v50, %v10641_v24 }
0x1575   : > { %9577 = vtanh.f32 %v2765_v32  ;;  %v8922_v20 = vmul.f32 -1.442695, %v2764_v44  ;;  %v8924_v17 = vmul.f32 -1.442695, %v2766_v7  ;;  %v8923_v10 = vmul.f32 -1.442695, %v2765_v32 }
0x1576   : > { %9579 = vtanh.f32 %v2764_v44  ;;  %v2975_v48 = vmul.f32 %v10761_v13, %v10653_v31  ;;  %v2978_v44 = vmul.f32 %v10758_v16, %v10651_v39 }
0x1577   : > { %9581 = vtanh.f32 %v2766_v7 }
0x1578   : > { %9583 = vtanh.f32 %v2763_v53 }
0x1579   : > { %9585 = vpow2.f32 %v8922_v20 }
0x157a   : > { %9587 = vpow2.f32 %v8924_v17 }
0x157b   : > { %9589 = vpow2.f32 %v8923_v10 }
0x157c   : > { %9591 = vpow2.f32 %v8921_v11 }
0x157f   : > { %v9578_v23 = vpop.eup %9577 }
0x1580   : > { %v9580_v19 = vpop.eup %9579 }
0x1581   : > { %v9582_v33 = vpop.eup %9581 }
0x1582   : > { %v9584_v52 = vpop.eup %9583 }
0x1583   : > { %v9586_v41 = vpop.eup %9585 }
0x1584   : > { %v9588_v60 = vpop.eup %9587  ;;  %v2780_v3 = vadd.f32 1.0, %v9586_v41 }
0x1585   : > { %v9590_v34 = vpop.eup %9589  ;;  %v2782_v1 = vadd.f32 1.0, %v9588_v60 }
0x1586   : > { %v2781_v5 = vadd.f32 1.0, %v9590_v34  ;;  %9593 = vrcp.f32 %v2780_v3  ;;  %v9592_v26 = vpop.eup %9591 }
0x1587   : > { %9595 = vrcp.f32 %v2782_v1  ;;  %v2779_v59 = vadd.f32 1.0, %v9592_v26 }
0x1588   : > { %9597 = vrcp.f32 %v2781_v5 }
0x1589   : > { %9599 = vrcp.f32 %v2779_v59 }
0x1590   : > { %v10782_v32 = vpop.eup %9593 }
0x1591   : > { %v10789_v24 = vpop.eup %9595 }
0x1592   : > { %v2798_v10 = vmul.f32 %v10789_v24, %v10707_v61 }
0x15d1   : > { %v2988_v46 = vpop.permute.xlu1 %2987 }
0x15d2   : > { %v2997_v0 = vmul.f32 %v10751_v50, %v2988_v46  ;;  %v2986_v9 = vpop.permute.xlu0 %2985  ;;  %v10795_v46 = vpop.eup %9597 }
0x15d3   : > { %v2996_v36 = vmul.f32 %v10753_v56, %v2986_v9  ;;  %v10803_v9 = vpop.eup %9599  ;;  %v2797_v20 = vmul.f32 %v10795_v46, %v10699_v54 }
0x15d4   : > { %3007 = vrot.lane.b32.xlu1 %v2997_v0, %s9791_s26 }
0x15d5   : > { %3005 = vrot.lane.b32.xlu0 %v2996_v36, %s9791_s26  ;;  %v2990_v62 = vpop.permute.xlu1 %2989 }
0x15d6   : > { %v2998_v40 = vmul.f32 %v10758_v16, %v2990_v62  ;;  %v2984_v8 = vpop.permute.xlu0 %2983 }
0x15d7   : > { %v2995_v27 = vmul.f32 %v10761_v13, %v2984_v8 }
0x15d8   : > { %3009 = vrot.lane.b32.xlu1 %v2998_v40, %s9791_s26 }
0x15d9   : > { %3003 = vrot.lane.b32.xlu0 %v2995_v27, %s9791_s26 }
0x15dc   : > { %2807 = vrot.lane.b32.xlu1 %v9578_v23, %s9790_s27  ;;  %v2796_v23 = vmul.f32 %v10782_v32, %v10692_v6 }
0x15dd   : > { %2805 = vrot.lane.b32.xlu0 %v9580_v19, %s9790_s27 }
0x15e0   : > { %2809 = vrot.lane.b32.xlu1 %v9582_v33, %s9790_s27 }
0x15e1   : > { %2803 = vrot.lane.b32.xlu0 %v9584_v52, %s9790_s27 }
0x1646   : > { %v3008_v15 = vpop.permute.xlu1 %3007 }
0x1647   : > { %v3006_v38 = vpop.permute.xlu0 %3005  ;;  %v10779_v49 = vadd.f32 %v3008_v15, %v2977_v42 }
0x1648   : > { %v10773_v37 = vadd.f32 %v3006_v38, %v2976_v18  ;;  %v2795_v18 = vmul.f32 %v10803_v9, %v10701_v21 }
0x164a   : > { %v3010_v43 = vpop.permute.xlu1 %3009  ;;  %9601 = vtanh.f32 %v10773_v37 }
0x164b   : > { %v3004_v45 = vpop.permute.xlu0 %3003  ;;  %9603 = vtanh.f32 %v10779_v49  ;;  %v10792_v31 = vadd.f32 %v3010_v43, %v2978_v44 }
0x164c   : > { %v10784_v12 = vadd.f32 %v3004_v45, %v2975_v48 }
0x164e   : > { %v2808_v14 = vpop.permute.xlu1 %2807  ;;  %9605 = vtanh.f32 %v10784_v12 }
0x164f   : > { %v2806_v58 = vpop.permute.xlu0 %2805  ;;  %v2817_v0 = vmul.f32 %v10795_v46, %v2808_v14  ;;  %9607 = vtanh.f32 %v10792_v31 }
0x1650   : > { %v2816_v51 = vmul.f32 %v10782_v32, %v2806_v58 }
0x1652   : > { %2825 = vrot.lane.b32.xlu0 %v2816_v51, %s9791_s26  ;;  %v2810_v7 = vpop.permute.xlu1 %2809 }
0x1653   : > { %v2818_v53 = vmul.f32 %v10789_v24, %v2810_v7  ;;  %v2804_v39 = vpop.permute.xlu0 %2803 }
0x1654   : > { %v9602_v36 = vpop.eup %9601  ;;  %v2815_v62 = vmul.f32 %v10803_v9, %v2804_v39 }
0x1655   : > { %2829 = vrot.lane.b32.xlu1 %v2818_v53, %s9791_s26  ;;  %v9604_v40 = vpop.eup %9603 }
0x1656   : > { %2827 = vrot.lane.b32.xlu0 %v2817_v0, %s9791_s26 }
0x1658   : > { %v9606_v8 = vpop.eup %9605 }
0x1659   : > { %3029 = vrot.lane.b32.xlu1 %v9602_v36, %s9792_s25  ;;  %v9608_v27 = vpop.eup %9607 }
0x165a   : > { %2823 = vrot.lane.b32.xlu0 %v2815_v62, %s9791_s26 }
0x165d   : > { %3031 = vrot.lane.b32.xlu1 %v9604_v40, %s9792_s25 }
0x165e   : > { %3027 = vrot.lane.b32.xlu0 %v9606_v8, %s9792_s25 }
0x1661   : > { %3033 = vrot.lane.b32.xlu1 %v9608_v27, %s9792_s25 }
0x16c4   : > { %v2826_v19 = vpop.permute.xlu0 %2825 }
0x16c5   : > { %v10813_v33 = vadd.f32 %v2826_v19, %v2796_v23 }
0x16c7   : > { %9609 = vtanh.f32 %v10813_v33  ;;  %v2830_v52 = vpop.permute.xlu1 %2829 }
0x16c8   : > { %v2828_v17 = vpop.permute.xlu0 %2827  ;;  %v10822_v41 = vadd.f32 %v2830_v52, %v2798_v10 }
0x16c9   : > { %v10820_v11 = vadd.f32 %v2828_v17, %v2797_v20 }
0x16cb   : > { %9611 = vtanh.f32 %v10820_v11  ;;  %v3030_v6 = vpop.permute.xlu1 %3029 }
0x16cc   : > { %v3040_v60 = vmul.f32 %v10753_v56, %v3030_v6  ;;  %v2824_v3 = vpop.permute.xlu0 %2823  ;;  %9613 = vtanh.f32 %v10822_v41 }
0x16cd   : > { %v10833_v48 = vadd.f32 %v2824_v3, %v2795_v18 }
0x16ce   : > { %v3252_v34 = vpack.c.bf16 %v3040_v60, %v3040_v60  ;;  %v3061_v15 = vrot.slane %v3040_v60, 7 }
0x16cf   : > { %v3032_v1 = vpop.permute.xlu1 %3031  ;;  %9615 = vtanh.f32 %v10833_v48 }
0x16d0   : > { %v3041_v54 = vmul.f32 %v10751_v50, %v3032_v1  ;;  %v3028_v5 = vpop.permute.xlu0 %3027  ;;  %v3260_v38 = vunpack.c.l.b16 %v3252_v34 }
0x16d1   : > { %v9610_v26 = vpop.eup %9609  ;;  %v3039_v61 = vmul.f32 %v10761_v13, %v3028_v5 }
0x16d2   : > { %v3063_v59 = vrot.slane %v3041_v54, 6  ;;  %v3253_v43 = vpack.c.bf16 %v3041_v54, %v3041_v54  ;;  %2849 = vrot.lane.b32.xlu0 %v9610_v26, %s9792_s25  ;;  %v3263_v51 = vrot.slane %v3260_v38, 7 }
0x16d3   : > { %v3062_v56 = vsel %vm716_vm1, %v3061_v15, %v3039_v61  ;;  %v3251_v45 = vpack.c.bf16 %v3039_v61, %v3039_v61  ;;  %v3034_v42 = vpop.permute.xlu1 %3033 }
0x16d4   : > { %v3261_v50 = vunpack.c.l.b16 %v3253_v43  ;;  %v3042_v14 = vmul.f32 %v10758_v16, %v3034_v42  ;;  %v3064_v58 = vsel %vm719_vm2, %v3063_v59, %v3062_v56 }
0x16d5   : > { %v9612_v13 = vpop.eup %9611  ;;  %v3259_v44 = vunpack.c.l.b16 %v3251_v45 }
0x16d6   : > { %v3065_v7 = vrot.slane %v3042_v14, 5  ;;  %v3254_v21 = vpack.c.bf16 %v3042_v14, %v3042_v14  ;;  %2851 = vrot.lane.b32.xlu0 %v9612_v13, %s9792_s25  ;;  %v3265_v53 = vrot.slane %v3261_v50, 6  ;;  %v9614_v62 = vpop.eup %9613 }
0x16d7   : > { %v3264_v0 = vsel %vm716_vm1, %v3263_v51, %v3259_v44 }
0x16d8   : > { %v3262_v39 = vunpack.c.l.b16 %v3254_v21  ;;  %v10841_v36 = vsel %vm722_vm3, %v3065_v7, %v3064_v58  ;;  %v3266_v40 = vsel %vm719_vm2, %v3265_v53, %v3264_v0 }
0x16d9   : > { %v9616_v23 = vpop.eup %9615 }
0x16da   : > { %v3267_v16 = vrot.slane %v3262_v39, 5  ;;  %2853 = vrot.lane.b32.xlu0 %v9614_v62, %s9792_s25 }
0x16dc   : > { %v3268_v8 = vsel %vm722_vm3, %v3267_v16, %v3266_v40  ;;  %v3077_v16 = vld [vmem:[%s9956_s19 + $0x10] sm:$0x1]  ;;  %v3076_v40 = vld [vmem:[%s9956_s19 + $0x8] sm:$0x1] }
0x16dd   : > { %v3269_v27 = vpack.c.b16 %v3268_v8, %v3268_v8 }
0x16df   : > { %3270 = vrot.lane.b32.xlu1 %v3269_v27, %s9791_s26 }
0x16e3   : > { %2847 = vrot.lane.b32.xlu1 %v9616_v23, %s9792_s25 }
0x1744   : > { %v2850_v19 = vpop.permute.xlu0 %2849 }
0x1745   : > { %v2860_v17 = vmul.f32 %v10782_v32, %v2850_v19 }
0x1747   : > { %v3080_v3 = vpack.c.bf16 %v2860_v17, %v2860_v17  ;;  %v3047_v5 = vrot.slane %v2860_v17, 7 }
0x1748   : > { %v2852_v52 = vpop.permute.xlu0 %2851 }
0x1749   : > { %v2861_v10 = vmul.f32 %v10795_v46, %v2852_v52  ;;  %v3088_v26 = vunpack.c.l.b16 %v3080_v3  ;;  %v3078_v52 = vld [vmem:[%s9956_s19 + $0x18] sm:$0x1] }
0x174b   : > { %v3081_v34 = vpack.c.bf16 %v2861_v10, %v2861_v10  ;;  %v3049_v61 = vrot.slane %v2861_v10, 6  ;;  %v3091_v43 = vrot.slane %v3088_v26, 7 }
0x174c   : > { %v2854_v20 = vpop.permute.xlu0 %2853 }
0x174d   : > { %v2862_v6 = vmul.f32 %v10789_v24, %v2854_v20  ;;  %v3089_v38 = vunpack.c.l.b16 %v3081_v34  ;;  %v3075_v20 = vld [vmem:[%s9956_s19] sm:$0x1] }
0x174f   : > { %v3082_v1 = vpack.c.bf16 %v2862_v6, %v2862_v6  ;;  %v3051_v18 = vrot.slane %v2862_v6, 5  ;;  %v3093_v42 = vrot.slane %v3089_v38, 6 }
0x1751   : > { %v3271_v60 = vpop.permute.xlu1 %3270  ;;  %v3090_v59 = vunpack.c.l.b16 %v3082_v1 }
0x1752   : > { %9085 = vmatmul.mubr.msk.bf16.vlgmr.msra.gmra.mrb[32].mxu1 %vm397_vm4, %v3271_v60 }
0x1753   : > { %v3095_v50 = vrot.slane %v3090_v59, 5 }
0x1755   : > { %v2848_v54 = vpop.permute.xlu1 %2847 }
0x1756   : > { %v2859_v15 = vmul.f32 %v10803_v9, %v2848_v54 }
0x1758   : > { %v3048_v32 = vsel %vm716_vm1, %v3047_v5, %v2859_v15  ;;  %v3079_v46 = vpack.c.bf16 %v2859_v15, %v2859_v15 }
0x1759   : > { %v3050_v24 = vsel %vm719_vm2, %v3049_v61, %v3048_v32  ;;  %v3073_v32 = vld [vmem:[%s9956_s19 + $0x17] sm:$0x1] }
0x175a   : > { %v3087_v56 = vunpack.c.l.b16 %v3079_v46  ;;  %v10856_v45 = vsel %vm722_vm3, %v3051_v18, %v3050_v24  ;;  %v3072_v18 = vld [vmem:[%s9956_s19 + $0xf] sm:$0x1]  ;;  %v3071_v24 = vld [vmem:[%s9956_s19 + $0x7] sm:$0x1] }
0x175c   : > { %v3092_v14 = vsel %vm716_vm1, %v3091_v43, %v3087_v56 }
0x175d   : > { %v3094_v9 = vsel %vm719_vm2, %v3093_v42, %v3092_v14  ;;  %v3074_v42 = vld [vmem:[%s9956_s19 + $0x1f] sm:$0x1] }
0x175e   : > { %v3096_v58 = vsel %vm722_vm3, %v3095_v50, %v3094_v9 }
0x175f   : > { %v3097_v13 = vpack.c.b16 %v3096_v58, %v3096_v58 }
0x1761   : > { %3098 = vrot.lane.b32.xlu1 %v3097_v13, %s9793_s23 }
0x17d3   : > { %v3099_v44 = vpop.permute.xlu1 %3098 }
0x17d4   : > { %9079 = vmatmul.mubr.msk.bf16.vlgmr.msra.gmra.mrb[24].mxu0 %vm397_vm4, %v3099_v44 }
0x1825   : > { %v3309_v51 = vpop.f32.mrb[32].mxu1 }
0x1826   : > { %v3316_v7 = vrot.slane %v3309_v51, 1  ;;  %v3317_v21 = vrot.slane %v3309_v51, 2  ;;  %v9086_v53 = vpop.f32.mrb[33].mxu1  ;;  %v3318_v62 = vrot.slane %v3309_v51, 3 }
0x1827   : > { %v3312_v0 = vpop.f32.mrb[34].mxu1 }
0x1828   : > { %3323 = vrot.lane.b32.xlu1 %v3317_v21, %s9789_s17  ;;  %3321 = vrot.lane.b32.xlu0 %v3316_v7, %s9789_s17  ;;  %v9087_v39 = vpop.f32.mrb[35].mxu1 }
0x182c   : > { %3325 = vrot.lane.b32.xlu1 %v3318_v62, %s9789_s17  ;;  %3319 = vrot.lane.b32.xlu0 %v3309_v51, %s9789_s17 }
0x189a   : > { %v3324_v8 = vpop.permute.xlu1 %3323  ;;  %v3322_v27 = vpop.permute.xlu0 %3321 }
0x189b   : > { %v3333_v23 = vadd.f32 %v3324_v8, %v3077_v16  ;;  %v3332_v19 = vadd.f32 %v3322_v27, %v3076_v40 }
0x189d   : > { %9617 = vtanh.f32 %v3333_v23  ;;  %v8938_v51 = vmul.f32 -1.442695, %v3333_v23  ;;  %v8937_v7 = vmul.f32 -1.442695, %v3332_v19 }
0x189e   : > { %9619 = vtanh.f32 %v3332_v19  ;;  %v3326_v17 = vpop.permute.xlu1 %3325  ;;  %v3320_v10 = vpop.permute.xlu0 %3319 }
0x189f   : > { %v3334_v6 = vadd.f32 %v3326_v17, %v3078_v52  ;;  %v3331_v60 = vadd.f32 %v3320_v10, %v3075_v20 }
0x18a1   : > { %9621 = vtanh.f32 %v3334_v6  ;;  %v8939_v21 = vmul.f32 -1.442695, %v3334_v6  ;;  %v8936_v53 = vmul.f32 -1.442695, %v3331_v60 }
0x18a2   : > { %9623 = vtanh.f32 %v3331_v60 }
0x18a7   : > { %v9618_v3 = vpop.eup %9617  ;;  %v3137_v34 = vpop.f32.mrb[24].mxu0 }
0x18a8   : > { %v9620_v1 = vpop.eup %9619  ;;  %v9080_v54 = vpop.f32.mrb[25].mxu0  ;;  %3375 = vrot.lane.b32.xlu1 %v9618_v3, %s9790_s27  ;;  %v3144_v38 = vrot.slane %v3137_v34, 1  ;;  %v3145_v59 = vrot.slane %v3137_v34, 2  ;;  %v3146_v43 = vrot.slane %v3137_v34, 3  ;;  %v3151_v50 = vadd.f32 %v3137_v34, %v3071_v24 }
0x18a9   : > { %3373 = vrot.lane.b32.xlu0 %v9620_v1, %s9790_s27  ;;  %v3140_v5 = vpop.f32.mrb[26].mxu0 }
0x18aa   : > { %v9081_v26 = vpop.f32.mrb[27].mxu0  ;;  %v3152_v46 = vadd.f32 %v3144_v38, %v3072_v18  ;;  %v3153_v56 = vadd.f32 %v3145_v59, %v3073_v32  ;;  %v3154_v14 = vadd.f32 %v3146_v43, %v3074_v42  ;;  %v8931_v23 = vmul.f32 -1.442695, %v3151_v50 }
0x18ab   : > { %v9622_v15 = vpop.eup %9621 }
0x18ac   : > { %v9624_v61 = vpop.eup %9623  ;;  %3377 = vrot.lane.b32.xlu1 %v9622_v15, %s9790_s27  ;;  %9625 = vtanh.f32 %v3152_v46  ;;  %v8932_v20 = vmul.f32 -1.442695, %v3152_v46  ;;  %v8933_v17 = vmul.f32 -1.442695, %v3153_v56  ;;  %v8934_v19 = vmul.f32 -1.442695, %v3154_v14 }
0x18ad   : > { %3371 = vrot.lane.b32.xlu0 %v9624_v61, %s9790_s27  ;;  %9627 = vtanh.f32 %v3153_v56 }
0x18ae   : > { %9629 = vtanh.f32 %v3151_v50 }
0x18af   : > { %9631 = vtanh.f32 %v3154_v14 }
0x18b0   : > { %9633 = vpow2.f32 %v8938_v51 }
0x18b1   : > { %9635 = vpow2.f32 %v8937_v7 }
0x18b2   : > { %9637 = vpow2.f32 %v8939_v21 }
0x18b3   : > { %9639 = vpow2.f32 %v8936_v53 }
0x18b6   : > { %v9626_v9 = vpop.eup %9625 }
0x18b7   : > { %v9628_v58 = vpop.eup %9627  ;;  %3193 = vrot.lane.b32.xlu0 %v9626_v9, %s9790_s27 }
0x18b8   : > { %3195 = vrot.lane.b32.xlu1 %v9628_v58, %s9790_s27  ;;  %v9630_v13 = vpop.eup %9629 }
0x18b9   : > { %v9632_v44 = vpop.eup %9631 }
0x18ba   : > { %v9634_v0 = vpop.eup %9633 }
0x18bb   : > { %3191 = vrot.lane.b32.xlu0 %v9630_v13, %s9790_s27  ;;  %v9636_v39 = vpop.eup %9635  ;;  %v3349_v62 = vadd.f32 1.0, %v9634_v0 }
0x18bc   : > { %3197 = vrot.lane.b32.xlu1 %v9632_v44, %s9790_s27  ;;  %v9638_v16 = vpop.eup %9637  ;;  %v3348_v40 = vadd.f32 1.0, %v9636_v39  ;;  %s11093_s27 = scalar_lea.vmem %s13877_s7, %s8858_s14  ;;  %s8730_s14 = sshll.u32 %s364_s28, 4  ;;  %s13824_s14 = int_to_ptr.vmem [resolvable:$true] %s8730_s14 }
0x18bd   : > { %v9640_v8 = vpop.eup %9639  ;;  %9641 = vrcp.f32 %v3349_v62  ;;  %v3350_v27 = vadd.f32 1.0, %v9638_v16 }
0x18be   : > { %9643 = vrcp.f32 %v3348_v40  ;;  %v3347_v52 = vadd.f32 1.0, %v9640_v8 }
0x18bf   : > { %9645 = vrcp.f32 %v3350_v27 }
0x18c0   : > { %9647 = vrcp.f32 %v3347_v52 }
0x18c1   : > { %9649 = vpow2.f32 %v8932_v20 }
0x18c2   : > { %9651 = vpow2.f32 %v8933_v17 }
0x18c3   : > { %9653 = vpow2.f32 %v8931_v23 }
0x18c4   : > { %9655 = vpow2.f32 %v8934_v19 }
0x18c7   : > { %v10883_v10 = vpop.eup %9641 }
0x18c8   : > { %v10885_v60 = vpop.eup %9643  ;;  %v3365_v62 = vmul.f32 %v10883_v10, %v10779_v49 }
0x18c9   : > { %v10890_v54 = vpop.eup %9645  ;;  %v3364_v40 = vmul.f32 %v10885_v60, %v10773_v37 }
0x18ca   : > { %v10893_v26 = vpop.eup %9647  ;;  %v3366_v20 = vmul.f32 %v10890_v54, %v10792_v31 }
0x18cb   : > { %v9650_v38 = vpop.eup %9649  ;;  %v3363_v23 = vmul.f32 %v10893_v26, %v10784_v12 }
0x18cc   : > { %v9652_v59 = vpop.eup %9651  ;;  %v3168_v32 = vadd.f32 1.0, %v9650_v38 }
0x18cd   : > { %v9654_v46 = vpop.eup %9653  ;;  %v3169_v24 = vadd.f32 1.0, %v9652_v59 }
0x18ce   : > { %v9656_v43 = vpop.eup %9655  ;;  %v3167_v56 = vadd.f32 1.0, %v9654_v46  ;;  %9657 = vrcp.f32 %v3168_v32 }
0x18cf   : > { %v3170_v42 = vadd.f32 1.0, %v9656_v43  ;;  %9659 = vrcp.f32 %v3169_v24 }
0x18d0   : > { %9661 = vrcp.f32 %v3167_v56 }
0x18d1   : > { %9663 = vrcp.f32 %v3170_v42 }
0x18d8   : > { %v10899_v50 = vpop.eup %9657 }
0x18d9   : > { %v10901_v9 = vpop.eup %9659  ;;  %v3184_v12 = vmul.f32 %v10899_v50, %v10813_v33 }
0x18da   : > { %v10906_v51 = vpop.eup %9661  ;;  %v3185_v31 = vmul.f32 %v10901_v9, %v10820_v11 }
0x18db   : > { %v10909_v21 = vpop.eup %9663 }
0x18dc   : > { %v3186_v59 = vmul.f32 %v10909_v21, %v10822_v41 }
0x191a   : > { %v3376_v6 = vpop.permute.xlu1 %3375 }
0x191b   : > { %v3385_v3 = vmul.f32 %v10883_v10, %v3376_v6  ;;  %v3374_v34 = vpop.permute.xlu0 %3373 }
0x191c   : > { %v3384_v1 = vmul.f32 %v10885_v60, %v3374_v34 }
0x191d   : > { %3395 = vrot.lane.b32.xlu1 %v3385_v3, %s9791_s26 }
0x191e   : > { %3393 = vrot.lane.b32.xlu0 %v3384_v1, %s9791_s26  ;;  %v3378_v5 = vpop.permute.xlu1 %3377 }
0x191f   : > { %v3386_v15 = vmul.f32 %v10890_v54, %v3378_v5  ;;  %v3372_v61 = vpop.permute.xlu0 %3371 }
0x1920   : > { %v3383_v18 = vmul.f32 %v10893_v26, %v3372_v61 }
0x1921   : > { %3397 = vrot.lane.b32.xlu1 %v3386_v15, %s9791_s26 }
0x1922   : > { %3391 = vrot.lane.b32.xlu0 %v3383_v18, %s9791_s26  ;;  %v3183_v18 = vmul.f32 %v10906_v51, %v10833_v48 }
0x1929   : > { %v3194_v14 = vpop.permute.xlu0 %3193 }
0x192a   : > { %v3196_v58 = vpop.permute.xlu1 %3195  ;;  %v3204_v13 = vmul.f32 %v10899_v50, %v3194_v14 }
0x192b   : > { %v3205_v44 = vmul.f32 %v10901_v9, %v3196_v58 }
0x192c   : > { %3213 = vrot.lane.b32.xlu0 %v3204_v13, %s9791_s26 }
0x192d   : > { %3215 = vrot.lane.b32.xlu1 %v3205_v44, %s9791_s26  ;;  %v3192_v7 = vpop.permute.xlu0 %3191 }
0x192e   : > { %v3198_v53 = vpop.permute.xlu1 %3197  ;;  %v3203_v0 = vmul.f32 %v10906_v51, %v3192_v7 }
0x192f   : > { %v3206_v39 = vmul.f32 %v10909_v21, %v3198_v53 }
0x1930   : > { %3211 = vrot.lane.b32.xlu0 %v3203_v0, %s9791_s26 }
0x1931   : > { %3217 = vrot.lane.b32.xlu1 %v3206_v39, %s9791_s26 }
0x198f   : > { %v3396_v16 = vpop.permute.xlu1 %3395 }
0x1990   : > { %v3405_v8 = vadd.f32 %v3396_v16, %v3365_v62  ;;  %v3394_v27 = vpop.permute.xlu0 %3393 }
0x1991   : > { %v3404_v52 = vadd.f32 %v3394_v27, %v3364_v40  ;;  %v3609_v40 = vlaneseq }
0x1992   : > { %9665 = vtanh.f32 %v3405_v8 }
0x1993   : > { %9667 = vtanh.f32 %v3404_v52  ;;  %v3398_v17 = vpop.permute.xlu1 %3397 }
0x1994   : > { %v3406_v19 = vadd.f32 %v3398_v17, %v3366_v20  ;;  %v3392_v6 = vpop.permute.xlu0 %3391 }
0x1995   : > { %v3403_v3 = vadd.f32 %v3392_v6, %v3363_v23  ;;  %v9795_v23 = vmov -10000.0  }
0x1996   : > { %9669 = vtanh.f32 %v3406_v19 }
0x1997   : > { %9671 = vtanh.f32 %v3403_v3 }
0x199c   : > { %v9666_v49 = vpop.eup %9665 }
0x199d   : > { %v9668_v34 = vpop.eup %9667  ;;  %3419 = vrot.lane.b32.xlu1 %v9666_v49, %s9792_s25 }
0x199e   : > { %3417 = vrot.lane.b32.xlu0 %v9668_v34, %s9792_s25  ;;  %v3214_v5 = vpop.permute.xlu0 %3213 }
0x199f   : > { %v3216_v15 = vpop.permute.xlu1 %3215  ;;  %v3224_v61 = vadd.f32 %v3214_v5, %v3184_v12 }
0x19a0   : > { %v9670_v37 = vpop.eup %9669  ;;  %v3225_v38 = vadd.f32 %v3216_v15, %v3185_v31  ;;  %v11016_v31 = vld [vmem:[%s13876_s6] sm:$0x1f] }
0x19a1   : > { %v9672_v1 = vpop.eup %9671  ;;  %3421 = vrot.lane.b32.xlu1 %v9670_v37, %s9792_s25  ;;  %9673 = vtanh.f32 %v3224_v61 }
0x19a2   : > { %3415 = vrot.lane.b32.xlu0 %v9672_v1, %s9792_s25  ;;  %9675 = vtanh.f32 %v3225_v38  ;;  %v3212_v32 = vpop.permute.xlu0 %3211 }
0x19a3   : > { %v3218_v46 = vpop.permute.xlu1 %3217  ;;  %v3223_v24 = vadd.f32 %v3212_v32, %v3183_v18 }
0x19a4   : > { %v3226_v43 = vadd.f32 %v3218_v46, %v3186_v59 }
0x19a5   : > { %9677 = vtanh.f32 %v3223_v24 }
0x19a6   : > { %9679 = vtanh.f32 %v3226_v43 }
0x19ab   : > { %v9674_v33 = vpop.eup %9673 }
0x19ac   : > { %v9676_v11 = vpop.eup %9675  ;;  %3237 = vrot.lane.b32.xlu0 %v9674_v33, %s9792_s25 }
0x19ad   : > { %3239 = vrot.lane.b32.xlu1 %v9676_v11, %s9792_s25 }
0x19af   : > { %v9678_v56 = vpop.eup %9677 }
0x19b0   : > { %v9680_v42 = vpop.eup %9679  ;;  %3235 = vrot.lane.b32.xlu0 %v9678_v56, %s9792_s25 }
0x19b1   : > { %3241 = vrot.lane.b32.xlu1 %v9680_v42, %s9792_s25  ;;  %s9715_s25 = scalar_lea.vmem %s13824_s14, 64 }
0x19b2   : > { %p9716_p11 = scmp.ne.s32.totalorder %s13824_s14, %s9715_s25 }
0x19b4   : > { %2291 = vrot.lane.b32.xlu0 %v10540_v55, %s9791_s26  ;;  %p9717_p13 = pnand %p9716_p11, %p14245_p12 }
0x19b5   : > { %2679 = vrot.lane.b32.xlu1 %v10684_v4, %s9791_s26 }
0x19b6   : > { %p9718_p8 = pneg %p9717_p13 }
0x19b8   : > { %3067 = vrot.lane.b32.xlu0 %v10841_v36, %s9791_s26 }
0x19b9   : > { %1127 = vrot.lane.b32.xlu1 %v10171_v29, %s9791_s26 }
0x19bc   : > { %739 = vrot.lane.b32.xlu0 %v10044_v47, %s9791_s26 }
0x19bd   : > { %1903 = vrot.lane.b32.xlu1 %v10414_v30, %s9791_s26 }
0x19c0   : > { %1515 = vrot.lane.b32.xlu0 %v10302_v35, %s9791_s26  ;;  %v9167_v35 = vld [vmem:[%s13874_s4] sm:$0xff]  }
0x19c1   : > { %9088 = vmatprep.subr.bf16.mxu0 %v9167_v35 }
0x19c2   : > { %9089 = vmatpush3.bf16.msra.mxu0 %v9167_v35 }
0x19c4   : > { %724 = vrot.lane.b32.xlu0 %v10130_v25, %s9793_s23 }
0x19c8   : > { %1501 = vrot.lane.b32.xlu0 %v10352_v28, %s9793_s23 }
0x19cc   : > { %2277 = vrot.lane.b32.xlu0 %v10585_v63, %s9793_s23 }
0x19d0   : > { %3053 = vrot.lane.b32.xlu0 %v10856_v45, %s9793_s23 }
0x1a0f   : > { %v3420_v29 = vpop.permute.xlu1 %3419 }
0x1a10   : > { %v3418_v47 = vpop.permute.xlu0 %3417  ;;  %v3429_v30 = vmul.f32 %v10883_v10, %v3420_v29  ;;  %v10974_v10 = vld [vmem:[%s13873_s3] sm:$0xff]  }
0x1a11   : > { %v3428_v55 = vmul.f32 %v10885_v60, %v3418_v47  ;;  %9094 = vmatprep.subr.bf16.mxu0 %v10974_v10 }
0x1a12   : > { %v3451_v48 = vrot.slane %v3429_v30, 6 }
0x1a13   : > { %v3422_v25 = vpop.permute.xlu1 %3421  ;;  %v3449_v63 = vrot.slane %v3428_v55, 7 }
0x1a14   : > { %v3430_v28 = vmul.f32 %v10890_v54, %v3422_v25  ;;  %v3416_v4 = vpop.permute.xlu0 %3415 }
0x1a15   : > { %v3427_v41 = vmul.f32 %v10893_v26, %v3416_v4 }
0x1a16   : > { %v3453_v36 = vrot.slane %v3430_v28, 5 }
0x1a17   : > { %v3450_v45 = vsel %vm716_vm1, %v3449_v63, %v3427_v41 }
0x1a18   : > { %v3452_v60 = vsel %vm719_vm2, %v3451_v48, %v3450_v45 }
0x1a19   : > { %v3454_v14 = vsel %vm722_vm3, %v3453_v36, %v3452_v60 }
0x1a1a   : > { %3455 = vrot.lane.b32.xlu1 %v3454_v14, %s9791_s26 }
0x1a1e   : > { %1113 = vrot.lane.b32.xlu1 %v10250_v2, %s9793_s23  ;;  %v3238_v54 = vpop.permute.xlu0 %3237 }
0x1a1f   : > { %v3240_v26 = vpop.permute.xlu1 %3239  ;;  %v3248_v58 = vmul.f32 %v10899_v50, %v3238_v54 }
0x1a20   : > { %v3249_v13 = vmul.f32 %v10901_v9, %v3240_v26  ;;  %v10993_v9 = vand.u32 127, %v3609_v40 }
0x1a21   : > { %v3435_v7 = vrot.slane %v3248_v58, 7 }
0x1a22   : > { %1889 = vrot.lane.b32.xlu1 %v10456_v57, %s9793_s23  ;;  %v3236_v44 = vpop.permute.xlu0 %3235  ;;  %v3437_v39 = vrot.slane %v3249_v13, 6  ;;  %13998 = vst [vmem:[#allocation10_spill] sm:$0xff] %v10993_v9  ;;  %vm3611_vm6 = vcmp.eq.s32.totalorder %v10993_v9, 3 }
0x1a23   : > { %v3242_v53 = vpop.permute.xlu1 %3241  ;;  %v3247_v0 = vmul.f32 %v10906_v51, %v3236_v44  ;;  %v9794_v51 = vmov 1966171168   ;;  %v3612_v19 = vsel %vm3611_vm6, 0.0, %v9795_v23 }
0x1a24   : > { %v3250_v2 = vmul.f32 %v10909_v21, %v3242_v53  ;;  %v3615_v27 = vunpack.c.l.s4 %v9794_v51  ;;  %v10995_v21 = vshrl.u32 %v3609_v40, 7 }
0x1a25   : > { %v3436_v57 = vsel %vm716_vm1, %v3435_v7, %v3247_v0 }
0x1a26   : > { %2665 = vrot.lane.b32.xlu1 %v10726_v22, %s9793_s23  ;;  %v3439_v62 = vrot.slane %v3250_v2, 5  ;;  %v2292_v16 = vpop.permute.xlu0 %2291  ;;  %v3438_v22 = vsel %vm719_vm2, %v3437_v39, %v3436_v57  ;;  %v3616_v20 = vunpack.c.0.s8 %v3615_v27  ;;  %v11008_v34 = vsub.s32 0, %v10995_v21  ;;  %v8946_v57 = vld [vmem:[%s13875_s5] ss:$0 sm:$0xff] }
0x1a27   : > { %v2680_v8 = vpop.permute.xlu1 %2679  ;;  %2294 = vst.msk [vmem:[#allocation3 + $0xc] sm:$0xf] %vm727_vm5, %v2292_v16  ;;  %v11047_v39 = vsub.s32 1, %v10995_v21  ;;  %v11063_v16 = vsub.s32 4, %v10995_v21 }
0x1a28   : > { %2682 = vst.msk [vmem:[#allocation3 + $0x8] sm:$0xf] %vm727_vm5, %v2680_v8  ;;  %v3440_v50 = vsel %vm722_vm3, %v3439_v62, %v3438_v22  ;;  %v11004_v6 = vsub.s32 %v3616_v20, %v10995_v21  ;;  %v11060_v62 = vsub.s32 2, %v10995_v21 }
0x1a29   : > { %v3789_v2 = vrot.slane %v11016_v31, %v11047_v39 }
0x1a2a   : > { %3441 = vrot.lane.b32.xlu1 %v3440_v50, %s9793_s23  ;;  %v3068_v52 = vpop.permute.xlu0 %3067  ;;  %13999 = vst [vmem:[#allocation11_spill] sm:$0xff] %v11004_v6  ;;  %v3654_v49 = vrot.slane %v3612_v19, %v11004_v6  ;;  %v3796_v27 = vrot.slane %v11016_v31, %v11060_v62  ;;  %s9796_s23 = smov [#allocation7]  }
0x1a2b   : > { %v1128_v17 = vpop.permute.xlu1 %1127  ;;  %3070 = vst.msk [vmem:[#allocation3 + $0x4] sm:$0xf] %vm727_vm5, %v3068_v52  ;;  %v11074_v52 = vrot.slane %v11016_v31, %v11063_v16 }
0x1a2c   : > { %1130 = vst.msk [vmem:[#allocation3 + $0x18] sm:$0xf] %vm727_vm5, %v1128_v17  ;;  %v3662_v1 = vrot.slane %v3654_v49, %v11004_v6  ;;  %v3655_v12 = vcombine.high %v3654_v49, %v3654_v49 }
0x1a2e   : > { %v740_v3 = vpop.permute.xlu0 %739  ;;  %v3675_v15 = vrot.slane %v3662_v1, %v11008_v34  ;;  %v3670_v61 = vcombine.high %v3662_v1, %v3662_v1  ;;  %v3669_v38 = vrot.slane %v3655_v12, %v11004_v6 }
0x1a2f   : > { %v1904_v37 = vpop.permute.xlu1 %1903  ;;  %742 = vst.msk [vmem:[#allocation3 + $0x1c] sm:$0xf] %vm727_vm5, %v740_v3  ;;  %v3468_v36 = vld [vmem:[#allocation3 + $0x8] sm:$0xff] }
0x1a30   : > { %1906 = vst.msk [vmem:[#allocation3 + $0x10] sm:$0xf] %vm727_vm5, %v1904_v37  ;;  %v3692_v18 = vadd.f32 %v3675_v15, %v11016_v31  ;;  %v3683_v59 = vrot.slane %v3670_v61, %v11008_v34  ;;  %v3671_v32 = vcombine.high %v3669_v38, %v3669_v38  ;;  %v3679_v35 = vrot.slane %v3669_v38, %v11008_v34 }
0x1a32   : > { %v1516_v5 = vpop.permute.xlu0 %1515  ;;  %v3697_v24 = vsel %vm3696_vm7, %v3692_v18, -inf  ;;  %v3694_v43 = vadd.f32 %v3683_v59, %v11016_v31  ;;  %v3687_v33 = vrot.slane %v3671_v32, %v11008_v34  ;;  %v3693_v30 = vadd.f32 %v3679_v35, %v11016_v31 }
0x1a33   : > { %1518 = vst.msk [vmem:[#allocation3 + $0x14] sm:$0xf] %vm727_vm5, %v1516_v5  ;;  %3698 = vmax.xlane.f32.xlu0 %v3697_v24 }
0x1a34   : > { %v3703_v11 = vsel %vm3696_vm7, %v3694_v43, -inf  ;;  %v3695_v56 = vadd.f32 %v3687_v33, %v11016_v31  ;;  %v3700_v25 = vsel %vm3696_vm7, %v3693_v30, -inf }
0x1a36   : > { %v725_v46 = vpop.permute.xlu0 %724  ;;  %v3706_v29 = vsel %vm3696_vm7, %v3695_v56, -inf  ;;  %v3470_v60 = vld [vmem:[#allocation3 + $0x18] sm:$0xff] }
0x1a37   : > { %728 = vst.msk [vmem:[#allocation2] sm:$0xf] %vm727_vm5, %v725_v46  ;;  %3704 = vmax.xlane.f32.xlu0 %v3703_v11 }
0x1a3a   : > { %v1502_v42 = vpop.permute.xlu0 %1501  ;;  %v3469_v63 = vld [vmem:[#allocation3 + $0x10] sm:$0xff] }
0x1a3b   : > { %1504 = vst.msk [vmem:[#allocation2 + $0x8] sm:$0xf] %vm727_vm5, %v1502_v42  ;;  %3707 = vmax.xlane.f32.xlu0 %v3706_v29  ;;  %v3472_v14 = vpack.c.bf16 %v3470_v60, %v3469_v63 }
0x1a3e   : > { %v2278_v47 = vpop.permute.xlu0 %2277 }
0x1a3f   : > { %2280 = vst.msk [vmem:[#allocation2 + $0x10] sm:$0xf] %vm727_vm5, %v2278_v47 }
0x1a42   : > { %v3054_v55 = vpop.permute.xlu0 %3053 }
0x1a43   : > { %3056 = vst.msk [vmem:[#allocation2 + $0x18] sm:$0xf] %vm727_vm5, %v3054_v55 }
0x1a4e   : > { %3701 = vmax.xlane.f32.xlu1 %v3700_v25 }
0x1a5f   : > { %3791 = vbcast.lane.b32.xlu1 %v3789_v2, 256 }
0x1a8c   : > { %v3456_v28 = vpop.permute.xlu1 %3455 }
0x1a8d   : > { %3458 = vst.msk [vmem:[#allocation3] sm:$0xf] %vm727_vm5, %v3456_v28 }
0x1a90   : > { %v1114_v4 = vpop.permute.xlu1 %1113 }
0x1a91   : > { %1116 = vst.msk [vmem:[#allocation2 + $0x4] sm:$0xf] %vm727_vm5, %v1114_v4 }
0x1a94   : > { %v1890_v41 = vpop.permute.xlu1 %1889  ;;  %v3467_v48 = vld [vmem:[#allocation3] sm:$0xff] }
0x1a95   : > { %1892 = vst.msk [vmem:[#allocation2 + $0xc] sm:$0xf] %vm727_vm5, %v1890_v41  ;;  %v3471_v45 = vpack.c.bf16 %v3468_v36, %v3467_v48 }
0x1a97   : > { %9090 = vmatprep.mubr.msk.bf16.mxu0 %vm397_vm4, %v3471_v45 }
0x1a98   : > { %v2666_v54 = vpop.permute.xlu1 %2665  ;;  %9091 = vmatmul.mubr.msk.bf16.vlgmr.msra.gmra.mrb[28].mxu0 %vm397_vm4, %v3472_v14  ;;  %v3459_v26 = vld [vmem:[#allocation2] sm:$0xff] }
0x1a99   : > { %2668 = vst.msk [vmem:[#allocation2 + $0x14] sm:$0xf] %vm727_vm5, %v2666_v54  ;;  %9095 = vmatpush3.bf16.msra.mxu0 %v10974_v10  ;;  %v3782_v10 = vrot.slane %v11016_v31, %v11008_v34 }
0x1a9b   : > { %3784 = vbcast.lane.b32.xlu0 %v3782_v10, 256  ;;  %v11161_v10 = vsub.s32 3, %v10995_v21 }
0x1a9c   : > { %v3460_v58 = vld [vmem:[#allocation2 + $0x8] sm:$0xff]  ;;  %v3442_v44 = vpop.permute.xlu1 %3441 }
0x1a9d   : > { %v3463_v13 = vpack.c.bf16 %v3460_v58, %v3459_v26  ;;  %3444 = vst.msk [vmem:[#allocation2 + $0x1c] sm:$0xf] %vm727_vm5, %v3442_v44 }
0x1a9f   : > { %9096 = vmatprep.mubr.msk.bf16.mxu0 %vm397_vm4, %v3463_v13 }
0x1aa0   : > { %v3461_v7 = vld [vmem:[#allocation2 + $0x10] sm:$0xff] }
0x1aa4   : > { %v3462_v53 = vld [vmem:[#allocation2 + $0x18] sm:$0xff] }
0x1aa5   : > { %v3464_v0 = vpack.c.bf16 %v3462_v53, %v3461_v7 }
0x1aa7   : > { %9097 = vmatmul.mubr.msk.bf16.vlgmr.msra.gmra.mrb[28].mxu0 %vm397_vm4, %v3464_v0 }
0x1b7a   : > { %v9098_v22 = vpop.f32.mrb[28].mxu0 }
0x1b7b   : > { %v11065_v40 = vadd.f32 %v9098_v22, %v8946_v57  ;;  %v3582_v8 = vpop.f32.mrb[29].mxu0 }
0x1b7c   : > { %v11068_v50 = vadd.f32 %v8946_v57, %v3582_v8  ;;  %v9099_v51 = vpop.f32.mrb[30].mxu0 }
0x1b7d   : > { %v5720_v20 = vrot.slane %v11065_v40, %v11004_v6  ;;  %v6354_v17 = vcombine.high %v11065_v40, %v11065_v40  ;;  %v11080_v23 = vadd.f32 %v9099_v51, %v8946_v57  ;;  %v3585_v19 = vpop.f32.mrb[31].mxu0 }
0x1b7e   : > { %v3620_v3 = vrot.slane %v11068_v50, %v11004_v6  ;;  %v3745_v49 = vcombine.high %v11068_v50, %v11068_v50  ;;  %v11086_v37 = vadd.f32 %v8946_v57, %v3585_v19  ;;  %v3719_v1 = vrot.slane %v11068_v50, %v11047_v39 }
0x1b7f   : > { %v5721_v12 = vcombine.high %v5720_v20, %v5720_v20  ;;  %v5728_v5 = vrot.slane %v5720_v20, %v11004_v6  ;;  %v6361_v15 = vrot.slane %v6354_v17, %v11004_v6  ;;  %v7002_v61 = vrot.slane %v11080_v23, %v11004_v6 }
0x1b80   : > { %v3621_v38 = vcombine.high %v3620_v3, %v3620_v3  ;;  %v3628_v18 = vrot.slane %v3620_v3, %v11004_v6  ;;  %v3752_v59 = vrot.slane %v3745_v49, %v11004_v6  ;;  %v7636_v32 = vcombine.high %v11080_v23, %v11080_v23  ;;  %3721 = vbcast.lane.b32.xlu0 %v3719_v1, 256 }
0x1b81   : > { %v5735_v46 = vrot.slane %v5721_v12, %v11004_v6  ;;  %v5736_v24 = vcombine.high %v5728_v5, %v5728_v5  ;;  %v6362_v43 = vcombine.high %v6361_v15, %v6361_v15  ;;  %v6369_v33 = vrot.slane %v6361_v15, %v11004_v6  ;;  %5742 = vst.msk [vmem:[%s11093_s27 + $0x4] sm:$0x1] %vm3642_vm8, %v5728_v5 }
0x1b82   : > { %v3635_v11 = vrot.slane %v3621_v38, %v11004_v6  ;;  %v3636_v56 = vcombine.high %v3628_v18, %v3628_v18  ;;  %v3753_v42 = vcombine.high %v3752_v59, %v3752_v59  ;;  %v3760_v29 = vrot.slane %v3752_v59, %v11004_v6  ;;  %3643 = vst.msk [vmem:[%s11093_s27] sm:$0x1] %vm3642_vm8, %v3628_v18 }
0x1b83   : > { %v5737_v47 = vcombine.high %v5735_v46, %v5735_v46  ;;  %v6376_v55 = vrot.slane %v6362_v43, %v11004_v6  ;;  %v6377_v35 = vcombine.high %v6369_v33, %v6369_v33  ;;  %v7003_v30 = vcombine.high %v7002_v61, %v7002_v61  ;;  %5743 = vst.msk [vmem:[%s11093_s27 + $0xc] sm:$0x1] %vm3642_vm8, %v5735_v46 }
0x1b84   : > { %6383 = vst.msk [vmem:[%s11093_s27 + $0x5] sm:$0x1] %vm3642_vm8, %v6369_v33  ;;  %v3637_v25 = vcombine.high %v3635_v11, %v3635_v11  ;;  %v3767_v28 = vrot.slane %v3753_v42, %v11004_v6  ;;  %v3768_v4 = vcombine.high %v3760_v29, %v3760_v29  ;;  %v7010_v63 = vrot.slane %v7002_v61, %v11004_v6  ;;  %v3699_v42 = vpop.xlane.xlu0 %3698 }
0x1b85   : > { %3798 = vbcast.lane.b32.xlu0 %v3796_v27, 256  ;;  %3644 = vst.msk [vmem:[%s11093_s27 + $0x8] sm:$0x1] %vm3642_vm8, %v3635_v11  ;;  %3774 = vst.msk [vmem:[%s11093_s27 + $0x1] sm:$0x1] %vm3642_vm8, %v3760_v29  ;;  %v6378_v41 = vcombine.high %v6376_v55, %v6376_v55  ;;  %v7017_v48 = vrot.slane %v7003_v30, %v11004_v6  ;;  %v7643_v36 = vrot.slane %v7636_v32, %v11004_v6 }
0x1b86   : > { %5744 = vst.msk [vmem:[%s11093_s27 + $0x14] sm:$0x1] %vm3642_vm8, %v5736_v24  ;;  %v4438_v45 = vrot.slane %v11086_v37, %v11004_v6  ;;  %3645 = vst.msk [vmem:[%s11093_s27 + $0x10] sm:$0x1] %vm3642_vm8, %v3636_v56  ;;  %v3769_v60 = vcombine.high %v3767_v28, %v3767_v28  ;;  %v7018_v14 = vcombine.high %v7010_v63, %v7010_v63  ;;  %v11175_v3 = vsub.s32 5, %v10995_v21 }
0x1b87   : > { %5745 = vst.msk [vmem:[%s11093_s27 + $0x1c] sm:$0x1] %vm3642_vm8, %v5737_v47  ;;  %6384 = vst.msk [vmem:[%s11093_s27 + $0xd] sm:$0x1] %vm3642_vm8, %v6376_v55  ;;  %v5072_v54 = vcombine.high %v11086_v37, %v11086_v37  ;;  %v3712_v26 = vrot.slane %v11068_v50, %v11008_v34  ;;  %v7019_v58 = vcombine.high %v7017_v48, %v7017_v48  ;;  %v11183_v12 = vsub.s32 6, %v10995_v21  ;;  %v3702_v47 = vpop.xlane.xlu1 %3701 }
0x1b88   : > { %3646 = vst.msk [vmem:[%s11093_s27 + $0x18] sm:$0x1] %vm3642_vm8, %v3637_v25  ;;  %3775 = vst.msk [vmem:[%s11093_s27 + $0x9] sm:$0x1] %vm3642_vm8, %v3767_v28  ;;  %v7644_v13 = vcombine.high %v7643_v36, %v7643_v36  ;;  %v7651_v44 = vrot.slane %v7643_v36, %v11004_v6  ;;  %v4439_v7 = vcombine.high %v4438_v45, %v4438_v45  ;;  %v11186_v5 = vsub.s32 7, %v10995_v21 }
0x1b89   : > { %6385 = vst.msk [vmem:[%s11093_s27 + $0x15] sm:$0x1] %vm3642_vm8, %v6377_v35  ;;  %7024 = vst.msk [vmem:[%s11093_s27 + $0x6] sm:$0x1] %vm3642_vm8, %v7010_v63  ;;  %v4446_v53 = vrot.slane %v4438_v45, %v11004_v6  ;;  %v5079_v0 = vrot.slane %v5072_v54, %v11004_v6  ;;  %3714 = vbcast.lane.b32.xlu1 %v3712_v26, 256  ;;  %3812 = vbcast.lane.b32.xlu0 %v11074_v52, 256 }
0x1b8a   : > { %3776 = vst.msk [vmem:[%s11093_s27 + $0x11] sm:$0x1] %vm3642_vm8, %v3768_v4  ;;  %6386 = vst.msk [vmem:[%s11093_s27 + $0x1d] sm:$0x1] %vm3642_vm8, %v6378_v41  ;;  %v7658_v2 = vrot.slane %v7644_v13, %v11004_v6  ;;  %v7659_v57 = vcombine.high %v7651_v44, %v7651_v44  ;;  %v4453_v22 = vrot.slane %v4439_v7, %v11004_v6 }
0x1b8b   : > { %7025 = vst.msk [vmem:[%s11093_s27 + $0xe] sm:$0x1] %vm3642_vm8, %v7017_v48  ;;  %3777 = vst.msk [vmem:[%s11093_s27 + $0x19] sm:$0x1] %vm3642_vm8, %v3769_v60  ;;  %v4454_v8 = vcombine.high %v4446_v53, %v4446_v53  ;;  %v5080_v51 = vcombine.high %v5079_v0, %v5079_v0  ;;  %v5087_v27 = vrot.slane %v5079_v0, %v11004_v6  ;;  %v11228_v35 = vpop.permute.xlu1 %3791 }
0x1b8c   : > { %7026 = vst.msk [vmem:[%s11093_s27 + $0x16] sm:$0x1] %vm3642_vm8, %v7018_v14  ;;  %7027 = vst.msk [vmem:[%s11093_s27 + $0x1e] sm:$0x1] %vm3642_vm8, %v7019_v58  ;;  %v3726_v20 = vrot.slane %v11068_v50, %v11060_v62  ;;  %v7660_v17 = vcombine.high %v7658_v2, %v7658_v2  ;;  %v4455_v19 = vcombine.high %v4453_v22, %v4453_v22 }
0x1b8d   : > { %7665 = vst.msk [vmem:[%s11093_s27 + $0x7] sm:$0x1] %vm3642_vm8, %v7651_v44  ;;  %4460 = vst.msk [vmem:[%s11093_s27 + $0x2] sm:$0x1] %vm3642_vm8, %v4446_v53  ;;  %v5094_v49 = vrot.slane %v5080_v51, %v11004_v6  ;;  %v5095_v1 = vcombine.high %v5087_v27, %v5087_v27  ;;  %v3733_v38 = vrot.slane %v11068_v50, %v11161_v10 }
0x1b8e   : > { %4461 = vst.msk [vmem:[%s11093_s27 + $0xa] sm:$0x1] %vm3642_vm8, %v4453_v22  ;;  %7666 = vst.msk [vmem:[%s11093_s27 + $0xf] sm:$0x1] %vm3642_vm8, %v7658_v2  ;;  %3728 = vbcast.lane.b32.xlu1 %v3726_v20, 256  ;;  %v3803_v46 = vrot.slane %v11016_v31, %v11161_v10  ;;  %v3705_v31 = vpop.xlane.xlu0 %3704 }
0x1b8f   : > { %4462 = vst.msk [vmem:[%s11093_s27 + $0x12] sm:$0x1] %vm3642_vm8, %v4454_v8  ;;  %5101 = vst.msk [vmem:[%s11093_s27 + $0x3] sm:$0x1] %vm3642_vm8, %v5087_v27  ;;  %v5096_v61 = vcombine.high %v5094_v49, %v5094_v49 }
0x1b90   : > { %7667 = vst.msk [vmem:[%s11093_s27 + $0x17] sm:$0x1] %vm3642_vm8, %v7659_v57  ;;  %4463 = vst.msk [vmem:[%s11093_s27 + $0x1a] sm:$0x1] %vm3642_vm8, %v4455_v19 }
0x1b91   : > { %7668 = vst.msk [vmem:[%s11093_s27 + $0x1f] sm:$0x1] %vm3642_vm8, %v7660_v17  ;;  %5102 = vst.msk [vmem:[%s11093_s27 + $0xb] sm:$0x1] %vm3642_vm8, %v5094_v49 }
0x1b92   : > { %5103 = vst.msk [vmem:[%s11093_s27 + $0x13] sm:$0x1] %vm3642_vm8, %v5095_v1  ;;  %3735 = vbcast.lane.b32.xlu1 %v3733_v38, 256  ;;  %5104 = vst.msk [vmem:[%s11093_s27 + $0x1b] sm:$0x1] %vm3642_vm8, %v5096_v61  ;;  %v3708_v29 = vpop.xlane.xlu0 %3707  ;;  %v4405_v1 = vrot.slane %v11068_v50, %v11175_v3  ;;  %s13822_s27 = scalar_lea.hbm %s13879_s9, %s8953_s24 }
0x1b96   : > { %3805 = vbcast.lane.b32.xlu1 %v3803_v46, 256  ;;  %v11226_v55 = vpop.permute.xlu0 %3784  ;;  %v4398_v46 = vrot.slane %v11068_v50, %v11063_v16 }
0x1bf2   : > { %v3722_v30 = vpop.permute.xlu0 %3721 }
0x1bf3   : > { %v3742_v4 = vadd.f32 %v3722_v30, %v3702_v47 }
0x1bf5   : > { %v11241_v60 = vadd.f32 %v11226_v55, %v3742_v4  ;;  %v11249_v26 = vadd.f32 %v11228_v35, %v3742_v4 }
0x1bf7   : > { %v11236_v36 = vpop.permute.xlu0 %3798 }
0x1bf8   : > { %v11259_v44 = vadd.f32 %v11236_v36, %v3742_v4 }
0x1bfb   : > { %v3715_v25 = vpop.permute.xlu1 %3714  ;;  %v11280_v8 = vpop.permute.xlu0 %3812 }
0x1bfc   : > { %v3741_v28 = vadd.f32 %v3715_v25, %v3699_v42  ;;  %v11288_v27 = vadd.f32 %v11280_v8, %v3742_v4  ;;  %v4412_v42 = vrot.slane %v11068_v50, %v11183_v12 }
0x1bfe   : > { %v11231_v63 = vadd.f32 %v11228_v35, %v3741_v28  ;;  %v11234_v41 = vadd.f32 %v11226_v55, %v3741_v28  ;;  %v11244_v14 = vadd.f32 %v11236_v36, %v3741_v28  ;;  %v11296_v17 = vadd.f32 %v11280_v8, %v3741_v28 }
0x1c00   : > { %v3729_v48 = vpop.permute.xlu1 %3728  ;;  %3863 = vperm.xlu0 %9164, %v11231_v63   ;;  %3860 = vperm.xlu1 %9163, %v11234_v41  }
0x1c01   : > { %v3743_v45 = vadd.f32 %v3729_v48, %v3705_v31 }
0x1c03   : > { %v11252_v58 = vadd.f32 %v11226_v55, %v3743_v45  ;;  %v11267_v0 = vadd.f32 %v11228_v35, %v3743_v45  ;;  %v11270_v2 = vadd.f32 %v11236_v36, %v3743_v45  ;;  %v11311_v61 = vadd.f32 %v11280_v8, %v3743_v45 }
0x1c04   : > { %v3736_v54 = vpop.permute.xlu1 %3735  ;;  %3875 = vperm.xlu1 %9163, %v11241_v60   ;;  %3866 = vperm.xlu0 %9164, %v11244_v14  }
0x1c05   : > { %v3744_v53 = vadd.f32 %v3736_v54, %v3708_v29 }
0x1c07   : > { %v11278_v22 = vadd.f32 %v11228_v35, %v3744_v53  ;;  %v11285_v51 = vadd.f32 %v11226_v55, %v3744_v53  ;;  %v11293_v20 = vadd.f32 %v11236_v36, %v3744_v53  ;;  %v11315_v38 = vadd.f32 %v11280_v8, %v3744_v53 }
0x1c08   : > { %v11254_v13 = vpop.permute.xlu1 %3805  ;;  %3878 = vperm.xlu1 %9163, %v11249_v26   ;;  %3890 = vperm.xlu0 %9164, %v11252_v58  }
0x1c09   : > { %v11262_v7 = vadd.f32 %v11254_v13, %v3741_v28  ;;  %v11275_v57 = vadd.f32 %v11254_v13, %v3742_v4  ;;  %14000 = vst [vmem:[#allocation12_spill] sm:$0xff] %v11293_v20  ;;  %v11301_v19 = vadd.f32 %v11254_v13, %v3744_v53  ;;  %v11304_v49 = vadd.f32 %v11254_v13, %v3743_v45 }
0x1c0a   : > { %14002 = vst [vmem:[#allocation14_spill] sm:$0xff] %v11315_v38  ;;  %v11324_v53 = vsub.s32 %v10993_v9, %v10995_v21 }
0x1c0b   : > { %14001 = vst [vmem:[#allocation13_spill] sm:$0xff] %v11301_v19 }
0x1c0c   : > { %3881 = vperm.xlu1 %9163, %v11259_v44   ;;  %3869 = vperm.xlu0 %9164, %v11262_v7  }
0x1c10   : > { %3893 = vperm.xlu1 %9163, %v11267_v0   ;;  %3896 = vperm.xlu0 %9164, %v11270_v2  }
0x1c14   : > { %3884 = vperm.xlu1 %9163, %v11275_v57   ;;  %3908 = vperm.xlu0 %9164, %v11278_v22  }
0x1c18   : > { %3905 = vperm.xlu1 %9163, %v11285_v51   ;;  %3887 = vperm.xlu0 %9164, %v11288_v27  }
0x1c1c   : > { %3911 = vperm.xlu0 %9164, %v11293_v20   ;;  %3872 = vperm.xlu1 %9163, %v11296_v17  }
0x1c20   : > { %3914 = vperm.xlu0 %9164, %v11301_v19   ;;  %3899 = vperm.xlu1 %9163, %v11304_v49  }
0x1c24   : > { %4407 = vbcast.lane.b32.xlu0 %v4405_v1, 256  ;;  %3902 = vperm.xlu1 %9163, %v11311_v61  }
0x1c28   : > { %3917 = vperm.xlu1 %9163, %v11315_v38  }
0x1c2c   : > { %4400 = vbcast.lane.b32.xlu1 %v4398_v46, 256 }
0x1c30   : > { %4414 = vbcast.lane.b32.xlu1 %v4412_v42, 256 }
0x1c7f   : > { %v3861_v31 = vpop.permute.xlu1 %3860  ;;  %v3864_v29 = vpop.permute.xlu0 %3863 }
0x1c80   : > { %v3922_v43 = vrot.slane %v3861_v31, %v11324_v53  ;;  %v3926_v24 = vrot.slane %v3864_v29, %v11324_v53 }
0x1c82   : > { %v3999_v31 = vsel %vm716_vm1, %v3926_v24, %v3922_v43 }
0x1c83   : > { %v3876_v47 = vpop.permute.xlu1 %3875  ;;  %v3867_v30 = vpop.permute.xlu0 %3866 }
0x1c84   : > { %v3942_v11 = vrot.slane %v3876_v47, %v11324_v53  ;;  %v3930_v21 = vrot.slane %v3867_v30, %v11324_v53 }
0x1c87   : > { %v3879_v25 = vpop.permute.xlu1 %3878  ;;  %v3891_v28 = vpop.permute.xlu0 %3890 }
0x1c88   : > { %v3946_v1 = vrot.slane %v3879_v25, %v11324_v53 }
0x1c8a   : > { %v4004_v32 = vsel %vm716_vm1, %v3946_v1, %v3942_v11  ;;  %v4000_v1 = vsel %vm719_vm2, %v3930_v21, %v3999_v31 }
0x1c8b   : > { %v3882_v4 = vpop.permute.xlu1 %3881  ;;  %v3870_v48 = vpop.permute.xlu0 %3869 }
0x1c8c   : > { %v3950_v42 = vrot.slane %v3882_v4, %v11324_v53  ;;  %v3934_v4 = vrot.slane %v3870_v48, %v11324_v53 }
0x1c8e   : > { %v4005_v25 = vsel %vm719_vm2, %v3950_v42, %v4004_v32 }
0x1c8f   : > { %v3894_v45 = vpop.permute.xlu1 %3893  ;;  %v3897_v54 = vpop.permute.xlu0 %3896 }
0x1c90   : > { %v3966_v32 = vrot.slane %v3894_v45, %v11324_v53  ;;  %v3970_v43 = vrot.slane %v3897_v54, %v11324_v53 }
0x1c93   : > { %v3885_v46 = vpop.permute.xlu1 %3884  ;;  %v3909_v56 = vpop.permute.xlu0 %3908 }
0x1c94   : > { %v3954_v33 = vrot.slane %v3885_v46, %v11324_v53 }
0x1c96   : > { %v4006_v47 = vsel %vm722_vm3, %v3954_v33, %v4005_v25  ;;  %v3962_v33 = vrot.slane %v3891_v28, %v11324_v53 }
0x1c97   : > { %v3906_v59 = vpop.permute.xlu1 %3905  ;;  %v3888_v18 = vpop.permute.xlu0 %3887 }
0x1c98   : > { %v3958_v15 = vrot.slane %v3888_v18, %v11324_v53  ;;  %v4001_v18 = vsel %vm722_vm3, %v3934_v4, %v4000_v1  ;;  %v4008_v42 = vsel %vm716_vm1, %v3966_v32, %v3962_v33  ;;  %v4419_v33 = vrot.slane %v11068_v50, %v11186_v5 }
0x1c99   : > { %v4009_v4 = vsel %vm719_vm2, %v3970_v43, %v4008_v42 }
0x1c9a   : > { %v4007_v46 = vsel %vm4002_vm9, %v3958_v15, %v4006_v47  ;;  %v3982_v47 = vrot.slane %v3906_v59, %v11324_v53 }
0x1c9b   : > { %v3873_v29 = vpop.permute.xlu1 %3872  ;;  %v4023_v11 = vsel %vm3696_vm7, %v4007_v46, -inf  ;;  %v3912_v30 = vpop.permute.xlu0 %3911  ;;  %v3986_v46 = vrot.slane %v3909_v56, %v11324_v53 }
0x1c9c   : > { %v3938_v6 = vrot.slane %v3873_v29, %v11324_v53  ;;  %4024 = vmax.xlane.f32.xlu1 %v4023_v11 }
0x1c9d   : > { %v4012_v11 = vsel %vm716_vm1, %v3986_v46, %v3982_v47 }
0x1c9e   : > { %v4003_v48 = vsel %vm4002_vm9, %v3938_v6, %v4001_v18  ;;  %v3990_v6 = vrot.slane %v3912_v30, %v11324_v53 }
0x1c9f   : > { %v3900_v15 = vpop.permute.xlu1 %3899  ;;  %v4020_v24 = vsel %vm3696_vm7, %v4003_v48, -inf  ;;  %v3915_v25 = vpop.permute.xlu0 %3914 }
0x1ca0   : > { %4021 = vmax.xlane.f32.xlu0 %v4020_v24  ;;  %v3974_v21 = vrot.slane %v3900_v15, %v11324_v53  ;;  %v3994_v31 = vrot.slane %v3915_v25, %v11324_v53  ;;  %v4013_v32 = vsel %vm719_vm2, %v3990_v6, %v4012_v11 }
0x1ca2   : > { %v4010_v54 = vsel %vm722_vm3, %v3974_v21, %v4009_v4  ;;  %v4014_v30 = vsel %vm722_vm3, %v3994_v31, %v4013_v32 }
0x1ca3   : > { %v3903_v45 = vpop.permute.xlu1 %3902  ;;  %v4408_v24 = vpop.permute.xlu0 %4407 }
0x1ca4   : > { %v3978_v28 = vrot.slane %v3903_v45, %v11324_v53 }
0x1ca6   : > { %v4011_v29 = vsel %vm4002_vm9, %v3978_v28, %v4010_v54 }
0x1ca7   : > { %v3918_v1 = vpop.permute.xlu1 %3917  ;;  %v4026_v59 = vsel %vm3696_vm7, %v4011_v29, -inf }
0x1ca8   : > { %v3998_v18 = vrot.slane %v3918_v1, %v11324_v53  ;;  %4027 = vmax.xlane.f32.xlu0 %v4026_v59 }
0x1caa   : > { %v4015_v56 = vsel %vm4002_vm9, %v3998_v18, %v4014_v30 }
0x1cab   : > { %v4029_v48 = vsel %vm3696_vm7, %v4015_v56, -inf  ;;  %v4401_v15 = vpop.permute.xlu1 %4400 }
0x1cac   : > { %4030 = vmax.xlane.f32.xlu0 %v4029_v48 }
0x1cad   : > { %4421 = vbcast.lane.b32.xlu1 %v4419_v33, 256 }
0x1caf   : > { %v4415_v43 = vpop.permute.xlu1 %4414 }
0x1d29   : > { %v11368_v42 = vpop.xlane.xlu1 %4024 }
0x1d2a   : > { %v4428_v47 = vadd.f32 %v4408_v24, %v11368_v42 }
0x1d2c   : > { %v11383_v50 = vadd.f32 %v4428_v47, %v11228_v35  ;;  %v11386_v6 = vadd.f32 %v4428_v47, %v11226_v55  ;;  %v11394_v31 = vadd.f32 %v4428_v47, %v11236_v36  ;;  %v11413_v18 = vadd.f32 %v4428_v47, %v11254_v13 }
0x1d2d   : > { %v11370_v21 = vpop.xlane.xlu0 %4021  ;;  %v4422_v59 = vpop.permute.xlu1 %4421  ;;  %v11437_v24 = vadd.f32 %v4428_v47, %v11280_v8 }
0x1d2e   : > { %v4427_v25 = vadd.f32 %v4401_v15, %v11370_v21  ;;  %14005 = vst [vmem:[#allocation17_spill] sm:$0xff] %v11383_v50  ;;  %14006 = vst [vmem:[#allocation18_spill] sm:$0xff] %v11386_v6 }
0x1d2f   : > { %14007 = vst [vmem:[#allocation19_spill] sm:$0xff] %v11394_v31  ;;  %14011 = vst [vmem:[#allocation23_spill] sm:$0xff] %v11413_v18 }
0x1d30   : > { %v11375_v45 = vadd.f32 %v4427_v25, %v11228_v35  ;;  %v11378_v4 = vadd.f32 %v4427_v25, %v11226_v55  ;;  %v11397_v54 = vadd.f32 %v4427_v25, %v11236_v36  ;;  %v11416_v30 = vadd.f32 %v4427_v25, %v11254_v13  ;;  %14017 = vst [vmem:[#allocation29_spill] sm:$0xff] %v11437_v24 }
0x1d31   : > { %v11432_v15 = vadd.f32 %v4427_v25, %v11280_v8 }
0x1d32   : > { %14003 = vst [vmem:[#allocation15_spill] sm:$0xff] %v11375_v45  ;;  %14004 = vst [vmem:[#allocation16_spill] sm:$0xff] %v11378_v4  ;;  %4508 = vperm.xlu1 %9163, %v11375_v45   ;;  %4505 = vperm.xlu0 %9164, %v11378_v4  }
0x1d33   : > { %14008 = vst [vmem:[#allocation20_spill] sm:$0xff] %v11397_v54  ;;  %14012 = vst [vmem:[#allocation24_spill] sm:$0xff] %v11416_v30 }
0x1d34   : > { %14016 = vst [vmem:[#allocation28_spill] sm:$0xff] %v11432_v15 }
0x1d35   : > { %v11388_v28 = vpop.xlane.xlu0 %4027 }
0x1d36   : > { %4523 = vperm.xlu1 %9163, %v11383_v50   ;;  %4520 = vperm.xlu0 %9164, %v11386_v6   ;;  %v4429_v46 = vadd.f32 %v4415_v43, %v11388_v28 }
0x1d38   : > { %v11402_v29 = vadd.f32 %v4429_v46, %v11228_v35  ;;  %v11405_v11 = vadd.f32 %v4429_v46, %v11226_v55  ;;  %v11421_v56 = vadd.f32 %v4429_v46, %v11236_v36  ;;  %v11440_v43 = vadd.f32 %v4429_v46, %v11254_v13 }
0x1d39   : > { %v11407_v1 = vpop.xlane.xlu0 %4030  ;;  %v11448_v25 = vadd.f32 %v4429_v46, %v11280_v8  ;;  %v5039_v46 = vrot.slane %v11086_v37, %v11008_v34 }
0x1d3a   : > { %4526 = vperm.xlu1 %9163, %v11394_v31   ;;  %4511 = vperm.xlu0 %9164, %v11397_v54   ;;  %14009 = vst [vmem:[#allocation21_spill] sm:$0xff] %v11402_v29  ;;  %14010 = vst [vmem:[#allocation22_spill] sm:$0xff] %v11405_v11  ;;  %v4430_v32 = vadd.f32 %v4422_v59, %v11407_v1 }
0x1d3b   : > { %14013 = vst [vmem:[#allocation25_spill] sm:$0xff] %v11421_v56  ;;  %14018 = vst [vmem:[#allocation30_spill] sm:$0xff] %v11440_v43 }
0x1d3c   : > { %v11424_v48 = vadd.f32 %v4430_v32, %v11226_v55  ;;  %v11429_v33 = vadd.f32 %v4430_v32, %v11228_v35  ;;  %v11445_v59 = vadd.f32 %v4430_v32, %v11236_v36  ;;  %14020 = vst [vmem:[#allocation32_spill] sm:$0xff] %v11448_v25  ;;  %v11453_v47 = vadd.f32 %v4430_v32, %v11254_v13 }
0x1d3e   : > { %4538 = vperm.xlu1 %9163, %v11402_v29   ;;  %4535 = vperm.xlu0 %9164, %v11405_v11   ;;  %14014 = vst [vmem:[#allocation26_spill] sm:$0xff] %v11424_v48  ;;  %14015 = vst [vmem:[#allocation27_spill] sm:$0xff] %v11429_v33 }
0x1d3f   : > { %14019 = vst [vmem:[#allocation31_spill] sm:$0xff] %v11445_v59  ;;  %14021 = vst [vmem:[#allocation33_spill] sm:$0xff] %v11453_v47 }
0x1d42   : > { %4529 = vperm.xlu1 %9163, %v11413_v18   ;;  %4514 = vperm.xlu0 %9164, %v11416_v30  }
0x1d46   : > { %4541 = vperm.xlu0 %9164, %v11421_v56   ;;  %4550 = vperm.xlu1 %9163, %v11424_v48  }
0x1d4a   : > { %4553 = vperm.xlu0 %9164, %v11429_v33   ;;  %4517 = vperm.xlu1 %9163, %v11432_v15   ;;  %v11456_v33 = vadd.f32 %v4430_v32, %v11280_v8 }
0x1d4c   : > { %14022 = vst [vmem:[#allocation34_spill] sm:$0xff] %v11456_v33 }
0x1d4e   : > { %4532 = vperm.xlu0 %9164, %v11437_v24   ;;  %4544 = vperm.xlu1 %9163, %v11440_v43   ;;  %v5046_v24 = vrot.slane %v11086_v37, %v11047_v39 }
0x1d52   : > { %4556 = vperm.xlu0 %9164, %v11445_v59   ;;  %4547 = vperm.xlu1 %9163, %v11448_v25   ;;  %v5053_v59 = vrot.slane %v11086_v37, %v11060_v62 }
0x1d56   : > { %4559 = vperm.xlu0 %9164, %v11453_v47   ;;  %4562 = vperm.xlu1 %9163, %v11456_v33  }
0x1d5a   : > { %5048 = vbcast.lane.b32.xlu0 %v5046_v24, 256  ;;  %5041 = vbcast.lane.b32.xlu1 %v5039_v46, 256 }
0x1d5e   : > { %5055 = vbcast.lane.b32.xlu1 %v5053_v59, 256 }
0x1db1   : > { %v4509_v56 = vpop.permute.xlu1 %4508  ;;  %v4506_v30 = vpop.permute.xlu0 %4505 }
0x1db2   : > { %v4571_v15 = vrot.slane %v4509_v56, %v11324_v53  ;;  %v4567_v48 = vrot.slane %v4506_v30, %v11324_v53 }
0x1db4   : > { %v4644_v29 = vsel %vm716_vm1, %v4571_v15, %v4567_v48 }
0x1db5   : > { %v4524_v32 = vpop.permute.xlu1 %4523  ;;  %v4521_v11 = vpop.permute.xlu0 %4520 }
0x1db6   : > { %v4591_v31 = vrot.slane %v4524_v32, %v11324_v53  ;;  %v4587_v50 = vrot.slane %v4521_v11, %v11324_v53 }
0x1db8   : > { %v4648_v48 = vsel %vm716_vm1, %v4591_v31, %v4587_v50 }
0x1db9   : > { %v4527_v54 = vpop.permute.xlu1 %4526  ;;  %v4512_v47 = vpop.permute.xlu0 %4511 }
0x1dba   : > { %v4575_v18 = vrot.slane %v4512_v47, %v11324_v53  ;;  %v4595_v38 = vrot.slane %v4527_v54, %v11324_v53 }
0x1dbc   : > { %v4645_v56 = vsel %vm719_vm2, %v4575_v18, %v4644_v29  ;;  %v4649_v29 = vsel %vm719_vm2, %v4595_v38, %v4648_v48 }
0x1dbd   : > { %v4539_v45 = vpop.permute.xlu1 %4538  ;;  %v4536_v33 = vpop.permute.xlu0 %4535 }
0x1dbe   : > { %v4611_v15 = vrot.slane %v4539_v45, %v11324_v53  ;;  %v4607_v11 = vrot.slane %v4536_v33, %v11324_v53 }
0x1dc0   : > { %v4652_v45 = vsel %vm716_vm1, %v4611_v15, %v4607_v11 }
0x1dc1   : > { %v4530_v25 = vpop.permute.xlu1 %4529  ;;  %v4515_v43 = vpop.permute.xlu0 %4514 }
0x1dc2   : > { %v4579_v59 = vrot.slane %v4515_v43, %v11324_v53  ;;  %v4599_v19 = vrot.slane %v4530_v25, %v11324_v53 }
0x1dc4   : > { %v4646_v47 = vsel %vm722_vm3, %v4579_v59, %v4645_v56  ;;  %v4650_v59 = vsel %vm722_vm3, %v4599_v19, %v4649_v29 }
0x1dc5   : > { %v4551_v24 = vpop.permute.xlu1 %4550  ;;  %v4542_v46 = vpop.permute.xlu0 %4541 }
0x1dc6   : > { %v4627_v19 = vrot.slane %v4551_v24, %v11324_v53 }
0x1dc9   : > { %v4518_v6 = vpop.permute.xlu1 %4517  ;;  %v4554_v4 = vpop.permute.xlu0 %4553 }
0x1dca   : > { %v4583_v30 = vrot.slane %v4518_v6, %v11324_v53  ;;  %v4615_v6 = vrot.slane %v4542_v46, %v11324_v53  ;;  %v4631_v38 = vrot.slane %v4554_v4, %v11324_v53 }
0x1dcc   : > { %v4647_v43 = vsel %vm4002_vm9, %v4583_v30, %v4646_v47  ;;  %v4653_v30 = vsel %vm719_vm2, %v4615_v6, %v4652_v45 }
0x1dcd   : > { %v4545_v32 = vpop.permute.xlu1 %4544  ;;  %v4533_v20 = vpop.permute.xlu0 %4532  ;;  %v4664_v54 = vsel %vm3696_vm7, %v4647_v43, -inf }
0x1dce   : > { %v4603_v18 = vrot.slane %v4533_v20, %v11324_v53  ;;  %4665 = vmax.xlane.f32.xlu0 %v4664_v54  ;;  %v4619_v25 = vrot.slane %v4545_v32, %v11324_v53  ;;  %v4656_v32 = vsel %vm716_vm1, %v4631_v38, %v4627_v19 }
0x1dd0   : > { %v4651_v50 = vsel %vm4002_vm9, %v4603_v18, %v4650_v59  ;;  %v4654_v47 = vsel %vm722_vm3, %v4619_v25, %v4653_v30  ;;  %v5060_v25 = vrot.slane %v11086_v37, %v11161_v10 }
0x1dd1   : > { %v4548_v31 = vpop.permute.xlu1 %4547  ;;  %v4557_v33 = vpop.permute.xlu0 %4556  ;;  %v4667_v56 = vsel %vm3696_vm7, %v4651_v50, -inf }
0x1dd2   : > { %v4623_v46 = vrot.slane %v4548_v31, %v11324_v53  ;;  %4668 = vmax.xlane.f32.xlu1 %v4667_v56  ;;  %v4635_v20 = vrot.slane %v4557_v33, %v11324_v53 }
0x1dd4   : > { %v4655_v43 = vsel %vm4002_vm9, %v4623_v46, %v4654_v47  ;;  %v4657_v29 = vsel %vm719_vm2, %v4635_v20, %v4656_v32 }
0x1dd5   : > { %v4563_v48 = vpop.permute.xlu1 %4562  ;;  %v4560_v15 = vpop.permute.xlu0 %4559  ;;  %v4670_v11 = vsel %vm3696_vm7, %v4655_v43, -inf }
0x1dd6   : > { %v4643_v54 = vrot.slane %v4563_v48, %v11324_v53  ;;  %v4639_v4 = vrot.slane %v4560_v15, %v11324_v53  ;;  %4671 = vmax.xlane.f32.xlu0 %v4670_v11 }
0x1dd8   : > { %v4658_v6 = vsel %vm722_vm3, %v4639_v4, %v4657_v29 }
0x1dd9   : > { %v4659_v18 = vsel %vm4002_vm9, %v4643_v54, %v4658_v6  ;;  %v5042_v59 = vpop.permute.xlu1 %5041  ;;  %v5049_v50 = vpop.permute.xlu0 %5048 }
0x1dda   : > { %v4673_v24 = vsel %vm3696_vm7, %v4659_v18, -inf }
0x1ddb   : > { %4674 = vmax.xlane.f32.xlu0 %v4673_v24 }
0x1ddd   : > { %v5056_v45 = vpop.permute.xlu1 %5055 }
0x1de3   : > { %5062 = vbcast.lane.b32.xlu1 %v5060_v25, 256 }
0x1e5b   : > { %v11508_v31 = vpop.xlane.xlu0 %4665 }
0x1e5c   : > { %14023 = vst [vmem:[#allocation35_spill] sm:$0xff] %v11508_v31  ;;  %v5068_v33 = vadd.f32 %v5042_v59, %v11508_v31  ;;  %v14048_v31 = vrot.slane %v11086_v37, %v11183_v12 }
0x1e5e   : > { %v11512_v56 = vadd.f32 %v5068_v33, %v11228_v35  ;;  %v11515_v30 = vadd.f32 %v5068_v33, %v11226_v55  ;;  %v11537_v15 = vadd.f32 %v5068_v33, %v11236_v36  ;;  %v11556_v18 = vadd.f32 %v5068_v33, %v11254_v13 }
0x1e5f   : > { %v11517_v38 = vpop.xlane.xlu1 %4668 }
0x1e60   : > { %14024 = vst [vmem:[#allocation36_spill] sm:$0xff] %v11512_v56  ;;  %14025 = vst [vmem:[#allocation37_spill] sm:$0xff] %v11515_v30  ;;  %v5069_v46 = vadd.f32 %v5049_v50, %v11517_v38  ;;  %5149 = vperm.xlu1 %9163, %v11512_v56   ;;  %5146 = vperm.xlu0 %9164, %v11515_v30   ;;  %v11572_v50 = vadd.f32 %v5068_v33, %v11280_v8 }
0x1e61   : > { %14026 = vst [vmem:[#allocation38_spill] sm:$0xff] %v11517_v38  ;;  %14031 = vst [vmem:[#allocation43_spill] sm:$0xff] %v11537_v15  ;;  %v5680_v38 = vrot.slane %v11086_v37, %v11063_v16 }
0x1e62   : > { %v11523_v20 = vadd.f32 %v5069_v46, %v11228_v35  ;;  %v11526_v47 = vadd.f32 %v5069_v46, %v11226_v55  ;;  %v11534_v48 = vadd.f32 %v5069_v46, %v11236_v36  ;;  %v11553_v6 = vadd.f32 %v5069_v46, %v11254_v13  ;;  %14036 = vst [vmem:[#allocation48_spill] sm:$0xff] %v11556_v18 }
0x1e63   : > { %v11528_v19 = vpop.xlane.xlu0 %4671  ;;  %v5063_v4 = vpop.permute.xlu1 %5062  ;;  %14040 = vst [vmem:[#allocation52_spill] sm:$0xff] %v11572_v50 }
0x1e64   : > { %14027 = vst [vmem:[#allocation39_spill] sm:$0xff] %v11523_v20  ;;  %14028 = vst [vmem:[#allocation40_spill] sm:$0xff] %v11526_v47  ;;  %5164 = vperm.xlu1 %9163, %v11523_v20   ;;  %5161 = vperm.xlu0 %9164, %v11526_v47   ;;  %v5070_v43 = vadd.f32 %v5056_v45, %v11528_v19  ;;  %v11577_v45 = vadd.f32 %v5069_v46, %v11280_v8 }
0x1e65   : > { %14029 = vst [vmem:[#allocation41_spill] sm:$0xff] %v11528_v19  ;;  %14030 = vst [vmem:[#allocation42_spill] sm:$0xff] %v11534_v48 }
0x1e66   : > { %v11542_v11 = vadd.f32 %v5070_v43, %v11228_v35  ;;  %v11545_v32 = vadd.f32 %v5070_v43, %v11226_v55  ;;  %14035 = vst [vmem:[#allocation47_spill] sm:$0xff] %v11553_v6  ;;  %v11561_v24 = vadd.f32 %v5070_v43, %v11236_v36  ;;  %14041 = vst [vmem:[#allocation53_spill] sm:$0xff] %v11577_v45 }
0x1e67   : > { %v11588_v33 = vadd.f32 %v5070_v43, %v11280_v8 }
0x1e68   : > { %5167 = vperm.xlu1 %9163, %v11534_v48   ;;  %5152 = vperm.xlu0 %9164, %v11537_v15   ;;  %14032 = vst [vmem:[#allocation44_spill] sm:$0xff] %v11542_v11  ;;  %14033 = vst [vmem:[#allocation45_spill] sm:$0xff] %v11545_v32  ;;  %v11547_v54 = vpop.xlane.xlu0 %4674 }
0x1e69   : > { %14034 = vst [vmem:[#allocation46_spill] sm:$0xff] %v11547_v54  ;;  %v5071_v29 = vadd.f32 %v5063_v4, %v11547_v54  ;;  %14037 = vst [vmem:[#allocation49_spill] sm:$0xff] %v11561_v24  ;;  %v11580_v4 = vadd.f32 %v5070_v43, %v11254_v13  ;;  %v14047_v43 = vrot.slane %v11086_v37, %v11175_v3 }
0x1e6a   : > { %14044 = vst [vmem:[#allocation56_spill] sm:$0xff] %v11588_v33 }
0x1e6b   : > { %v11564_v25 = vadd.f32 %v5071_v29, %v11226_v55  ;;  %v11569_v59 = vadd.f32 %v5071_v29, %v11228_v35  ;;  %14042 = vst [vmem:[#allocation54_spill] sm:$0xff] %v11580_v4  ;;  %v11585_v54 = vadd.f32 %v5071_v29, %v11236_v36  ;;  %v11593_v46 = vadd.f32 %v5071_v29, %v11254_v13 }
0x1e6c   : > { %5179 = vperm.xlu1 %9163, %v11542_v11   ;;  %5176 = vperm.xlu0 %9164, %v11545_v32   ;;  %v11596_v19 = vadd.f32 %v5071_v29, %v11280_v8 }
0x1e6d   : > { %14038 = vst [vmem:[#allocation50_spill] sm:$0xff] %v11564_v25  ;;  %14039 = vst [vmem:[#allocation51_spill] sm:$0xff] %v11569_v59 }
0x1e6e   : > { %14043 = vst [vmem:[#allocation55_spill] sm:$0xff] %v11585_v54  ;;  %14045 = vst [vmem:[#allocation57_spill] sm:$0xff] %v11593_v46 }
0x1e6f   : > { %14046 = vst [vmem:[#allocation58_spill] sm:$0xff] %v11596_v19 }
0x1e70   : > { %5170 = vperm.xlu1 %9163, %v11553_v6   ;;  %5155 = vperm.xlu0 %9164, %v11556_v18  }
0x1e74   : > { %5182 = vperm.xlu0 %9164, %v11561_v24   ;;  %5191 = vperm.xlu1 %9163, %v11564_v25  }
0x1e78   : > { %5194 = vperm.xlu0 %9164, %v11569_v59   ;;  %5158 = vperm.xlu1 %9163, %v11572_v50  }
0x1e7c   : > { %5173 = vperm.xlu0 %9164, %v11577_v45   ;;  %5185 = vperm.xlu1 %9163, %v11580_v4  }
0x1e80   : > { %5197 = vperm.xlu0 %9164, %v11585_v54   ;;  %5188 = vperm.xlu1 %9163, %v11588_v33  }
0x1e84   : > { %5200 = vperm.xlu0 %9164, %v11593_v46   ;;  %5203 = vperm.xlu1 %9163, %v11596_v19  }
0x1e88   : > { %5689 = vbcast.lane.b32.xlu0 %v14047_v43, 256  ;;  %5682 = vbcast.lane.b32.xlu1 %v5680_v38, 256 }
0x1e8c   : > { %5696 = vbcast.lane.b32.xlu1 %v14048_v31, 256 }
0x1edf   : > { %v5150_v33 = vpop.permute.xlu1 %5149  ;;  %v5147_v54 = vpop.permute.xlu0 %5146 }
0x1ee0   : > { %v5212_v15 = vrot.slane %v5150_v33, %v11324_v53  ;;  %v5208_v56 = vrot.slane %v5147_v54, %v11324_v53 }
0x1ee2   : > { %v5285_v50 = vsel %vm716_vm1, %v5212_v15, %v5208_v56 }
0x1ee3   : > { %v5165_v29 = vpop.permute.xlu1 %5164  ;;  %v5162_v45 = vpop.permute.xlu0 %5161 }
0x1ee4   : > { %v5232_v25 = vrot.slane %v5165_v29, %v11324_v53  ;;  %v5228_v6 = vrot.slane %v5162_v45, %v11324_v53 }
0x1ee6   : > { %v5289_v56 = vsel %vm716_vm1, %v5232_v25, %v5228_v6  ;;  %v14049_v6 = vrot.slane %v11086_v37, %v11186_v5 }
0x1ee7   : > { %v5168_v59 = vpop.permute.xlu1 %5167  ;;  %v5153_v46 = vpop.permute.xlu0 %5152 }
0x1ee8   : > { %v5216_v4 = vrot.slane %v5153_v46, %v11324_v53  ;;  %v5236_v20 = vrot.slane %v5168_v59, %v11324_v53 }
0x1eea   : > { %v5286_v33 = vsel %vm719_vm2, %v5216_v4, %v5285_v50  ;;  %v5290_v45 = vsel %vm719_vm2, %v5236_v20, %v5289_v56  ;;  %v6328_v50 = vrot.slane %v11065_v40, %v11047_v39  ;;  %v6321_v20 = vrot.slane %v11065_v40, %v11008_v34 }
0x1eeb   : > { %v5180_v24 = vpop.permute.xlu1 %5179  ;;  %v5177_v19 = vpop.permute.xlu0 %5176 }
0x1eef   : > { %v5171_v18 = vpop.permute.xlu1 %5170  ;;  %v5156_v32 = vpop.permute.xlu0 %5155 }
0x1ef0   : > { %v5220_v31 = vrot.slane %v5156_v32, %v11324_v53  ;;  %v5240_v47 = vrot.slane %v5171_v18, %v11324_v53 }
0x1ef2   : > { %v5287_v46 = vsel %vm722_vm3, %v5220_v31, %v5286_v33  ;;  %v5291_v59 = vsel %vm722_vm3, %v5240_v47, %v5290_v45  ;;  %v5248_v31 = vrot.slane %v5177_v19, %v11324_v53 }
0x1ef3   : > { %v5192_v43 = vpop.permute.xlu1 %5191  ;;  %v5183_v38 = vpop.permute.xlu0 %5182 }
0x1ef4   : > { %v5256_v33 = vrot.slane %v5183_v38, %v11324_v53 }
0x1ef7   : > { %v5159_v11 = vpop.permute.xlu1 %5158  ;;  %v5195_v48 = vpop.permute.xlu0 %5194 }
0x1ef8   : > { %v5224_v54 = vrot.slane %v5159_v11, %v11324_v53 }
0x1efa   : > { %v5288_v32 = vsel %vm4002_vm9, %v5224_v54, %v5287_v46  ;;  %v5272_v46 = vrot.slane %v5195_v48, %v11324_v53 }
0x1efb   : > { %v5174_v15 = vpop.permute.xlu0 %5173  ;;  %v5305_v29 = vsel %vm3696_vm7, %v5288_v32, -inf  ;;  %v5186_v25 = vpop.permute.xlu1 %5185 }
0x1efc   : > { %v5244_v30 = vrot.slane %v5174_v15, %v11324_v53  ;;  %5306 = vmax.xlane.f32.xlu0 %v5305_v29  ;;  %v5260_v37 = vrot.slane %v5186_v25, %v11324_v53  ;;  %v5268_v29 = vrot.slane %v5192_v43, %v11324_v53 }
0x1efe   : > { %v5292_v11 = vsel %vm4002_vm9, %v5244_v30, %v5291_v59  ;;  %v5252_v30 = vrot.slane %v5180_v24, %v11324_v53  ;;  %v5297_v38 = vsel %vm716_vm1, %v5272_v46, %v5268_v29 }
0x1eff   : > { %v5308_v18 = vsel %vm3696_vm7, %v5292_v11, -inf  ;;  %v5198_v4 = vpop.permute.xlu0 %5197  ;;  %v5189_v47 = vpop.permute.xlu1 %5188 }
0x1f00   : > { %5309 = vmax.xlane.f32.xlu1 %v5308_v18  ;;  %v5264_v32 = vrot.slane %v5189_v47, %v11324_v53  ;;  %v5276_v56 = vrot.slane %v5198_v4, %v11324_v53  ;;  %v5293_v15 = vsel %vm716_vm1, %v5252_v30, %v5248_v31 }
0x1f01   : > { %v5294_v19 = vsel %vm719_vm2, %v5256_v33, %v5293_v15 }
0x1f02   : > { %v5295_v59 = vsel %vm722_vm3, %v5260_v37, %v5294_v19  ;;  %v5298_v48 = vsel %vm719_vm2, %v5276_v56, %v5297_v38 }
0x1f03   : > { %v5201_v54 = vpop.permute.xlu0 %5200  ;;  %v5204_v45 = vpop.permute.xlu1 %5203  ;;  %v5296_v18 = vsel %vm4002_vm9, %v5264_v32, %v5295_v59 }
0x1f04   : > { %v5280_v24 = vrot.slane %v5201_v54, %v11324_v53  ;;  %v5284_v11 = vrot.slane %v5204_v45, %v11324_v53 }
0x1f07   : > { %v5683_v25 = vpop.permute.xlu1 %5682  ;;  %v5690_v4 = vpop.permute.xlu0 %5689 }
0x1f0b   : > { %v5697_v47 = vpop.permute.xlu1 %5696 }
0x1f11   : > { %5703 = vbcast.lane.b32.xlu1 %v14049_v6, 256  ;;  %v5311_v6 = vsel %vm3696_vm7, %v5296_v18, -inf }
0x1f12   : > { %6330 = vbcast.lane.b32.xlu0 %v6328_v50, 256  ;;  %v5299_v50 = vsel %vm722_vm3, %v5280_v24, %v5298_v48 }
0x1f13   : > { %v5300_v43 = vsel %vm4002_vm9, %v5284_v11, %v5299_v50 }
0x1f15   : > { %6323 = vbcast.lane.b32.xlu1 %v6321_v20, 256  ;;  %v5314_v20 = vsel %vm3696_vm7, %v5300_v43, -inf }
0x1f31   : > { %5312 = vmax.xlane.f32.xlu0 %v5311_v6 }
0x1f35   : > { %5315 = vmax.xlane.f32.xlu0 %v5314_v20 }
0x1f89   : > { %v11655_v30 = vpop.xlane.xlu0 %5306 }
0x1f8a   : > { %14050 = vst [vmem:[#allocation59_spill] sm:$0xff] %v11655_v30  ;;  %v5709_v31 = vadd.f32 %v5683_v25, %v11655_v30  ;;  %v7610_v30 = vrot.slane %v11080_v23, %v11047_v39 }
0x1f8c   : > { %v11659_v33 = vadd.f32 %v5709_v31, %v11228_v35  ;;  %v11662_v54 = vadd.f32 %v5709_v31, %v11226_v55  ;;  %v11681_v29 = vadd.f32 %v5709_v31, %v11236_v36  ;;  %v11705_v6 = vadd.f32 %v5709_v31, %v11254_v13 }
0x1f8d   : > { %v11664_v46 = vpop.xlane.xlu1 %5309  ;;  %v11685_v45 = vpop.permute.xlu0 %6330 }
0x1f8e   : > { %14051 = vst [vmem:[#allocation60_spill] sm:$0xff] %v11659_v33  ;;  %14052 = vst [vmem:[#allocation61_spill] sm:$0xff] %v11662_v54  ;;  %v5710_v37 = vadd.f32 %v5690_v4, %v11664_v46  ;;  %5790 = vperm.xlu1 %9163, %v11659_v33   ;;  %5787 = vperm.xlu0 %9164, %v11662_v54   ;;  %v11721_v4 = vadd.f32 %v5709_v31, %v11280_v8 }
0x1f8f   : > { %14053 = vst [vmem:[#allocation62_spill] sm:$0xff] %v11664_v46  ;;  %14057 = vst [vmem:[#allocation66_spill] sm:$0xff] %v11681_v29  ;;  %v6335_v46 = vrot.slane %v11065_v40, %v11060_v62  ;;  %v4043_v33 = vrot.slane %v11370_v21, %v11047_v39 }
0x1f90   : > { %v11670_v32 = vadd.f32 %v5710_v37, %v11228_v35  ;;  %v11673_v56 = vadd.f32 %v5710_v37, %v11226_v55  ;;  %v11678_v15 = vadd.f32 %v5710_v37, %v11236_v36  ;;  %v11702_v50 = vadd.f32 %v5710_v37, %v11254_v13  ;;  %14063 = vst [vmem:[#allocation72_spill] sm:$0xff] %v11705_v6 }
0x1f91   : > { %v5704_v11 = vpop.permute.xlu1 %5703  ;;  %14067 = vst [vmem:[#allocation76_spill] sm:$0xff] %v11721_v4  ;;  %vm4137_vm10 = vcmp.eq.f32.partialorder %v11231_v63, %v4043_v33 }
0x1f92   : > { %14054 = vst [vmem:[#allocation63_spill] sm:$0xff] %v11670_v32  ;;  %14055 = vst [vmem:[#allocation64_spill] sm:$0xff] %v11673_v56  ;;  %5805 = vperm.xlu1 %9163, %v11670_v32   ;;  %5802 = vperm.xlu0 %9164, %v11673_v56   ;;  %v4047_v32 = vrot.slane %v11370_v21, %v11060_v62 }
0x1f93   : > { %14056 = vst [vmem:[#allocation65_spill] sm:$0xff] %v11678_v15  ;;  %14062 = vst [vmem:[#allocation71_spill] sm:$0xff] %v11702_v50 }
0x1f94   : > { %vm4138_vm12 = vcmp.eq.f32.partialorder %v11244_v14, %v4047_v32 }
0x1f96   : > { %5808 = vperm.xlu1 %9163, %v11678_v15   ;;  %5793 = vperm.xlu0 %9164, %v11681_v29  }
0x1fbe   : > { %v11687_v24 = vpop.xlane.xlu0 %5312 }
0x1fbf   : > { %14058 = vst [vmem:[#allocation67_spill] sm:$0xff] %v11687_v24  ;;  %v5711_v19 = vadd.f32 %v5697_v47, %v11687_v24  ;;  %v11726_v47 = vadd.f32 %v5710_v37, %v11280_v8 }
0x1fc1   : > { %v11691_v38 = vadd.f32 %v5711_v19, %v11228_v35  ;;  %v11694_v59 = vadd.f32 %v5711_v19, %v11226_v55  ;;  %v11710_v43 = vadd.f32 %v5711_v19, %v11236_v36  ;;  %14068 = vst [vmem:[#allocation77_spill] sm:$0xff] %v11726_v47  ;;  %v11737_v31 = vadd.f32 %v5711_v19, %v11280_v8 }
0x1fc2   : > { %v11696_v48 = vpop.xlane.xlu0 %5315 }
0x1fc3   : > { %14059 = vst [vmem:[#allocation68_spill] sm:$0xff] %v11691_v38  ;;  %14060 = vst [vmem:[#allocation69_spill] sm:$0xff] %v11694_v59  ;;  %5820 = vperm.xlu1 %9163, %v11691_v38   ;;  %5817 = vperm.xlu0 %9164, %v11694_v59   ;;  %v5712_v18 = vadd.f32 %v5704_v11, %v11696_v48  ;;  %v11729_v11 = vadd.f32 %v5711_v19, %v11254_v13 }
0x1fc4   : > { %14061 = vst [vmem:[#allocation70_spill] sm:$0xff] %v11696_v48  ;;  %14064 = vst [vmem:[#allocation73_spill] sm:$0xff] %v11710_v43  ;;  %v14074_v19 = vrot.slane %v11065_v40, %v11175_v3 }
0x1fc5   : > { %v11713_v20 = vadd.f32 %v5712_v18, %v11226_v55  ;;  %v11718_v25 = vadd.f32 %v5712_v18, %v11228_v35  ;;  %14069 = vst [vmem:[#allocation78_spill] sm:$0xff] %v11729_v11  ;;  %v11734_v48 = vadd.f32 %v5712_v18, %v11236_v36  ;;  %14071 = vst [vmem:[#allocation80_spill] sm:$0xff] %v11737_v31 }
0x1fc6   : > { %v11742_v37 = vadd.f32 %v5712_v18, %v11254_v13  ;;  %v11745_v24 = vadd.f32 %v5712_v18, %v11280_v8  ;;  %v6962_v18 = vrot.slane %v11065_v40, %v11063_v16 }
0x1fc7   : > { %5811 = vperm.xlu1 %9163, %v11702_v50   ;;  %5796 = vperm.xlu0 %9164, %v11705_v6   ;;  %14065 = vst [vmem:[#allocation74_spill] sm:$0xff] %v11713_v20  ;;  %14066 = vst [vmem:[#allocation75_spill] sm:$0xff] %v11718_v25  ;;  %v4039_v50 = vrot.slane %v11370_v21, %v11008_v34 }
0x1fc8   : > { %14070 = vst [vmem:[#allocation79_spill] sm:$0xff] %v11734_v48  ;;  %14072 = vst [vmem:[#allocation81_spill] sm:$0xff] %v11742_v37 }
0x1fc9   : > { %14073 = vst [vmem:[#allocation82_spill] sm:$0xff] %v11745_v24  ;;  %vm4136_vm11 = vcmp.eq.f32.partialorder %v11234_v41, %v4039_v50 }
0x1fcb   : > { %5823 = vperm.xlu0 %9164, %v11710_v43   ;;  %5832 = vperm.xlu1 %9163, %v11713_v20  }
0x1fcf   : > { %5835 = vperm.xlu0 %9164, %v11718_v25   ;;  %5799 = vperm.xlu1 %9163, %v11721_v4  }
0x1fd3   : > { %5814 = vperm.xlu0 %9164, %v11726_v47   ;;  %5826 = vperm.xlu1 %9163, %v11729_v11  }
0x1fd7   : > { %5838 = vperm.xlu0 %9164, %v11734_v48   ;;  %5829 = vperm.xlu1 %9163, %v11737_v31   ;;  %v6342_v31 = vrot.slane %v11065_v40, %v11161_v10 }
0x1fdb   : > { %5841 = vperm.xlu0 %9164, %v11742_v37   ;;  %5844 = vperm.xlu1 %9163, %v11745_v24   ;;  %v14075_v24 = vrot.slane %v11080_v23, %v11175_v3  ;;  %v7624_v3 = vrot.slane %v11080_v23, %v11161_v10 }
0x1fdf   : > { %6971 = vbcast.lane.b32.xlu0 %v14074_v19, 256  ;;  %6337 = vbcast.lane.b32.xlu1 %v6335_v46, 256  ;;  %v14076_v19 = vrot.slane %v11065_v40, %v11183_v12  ;;  %v14077_v46 = vrot.slane %v11065_v40, %v11186_v5  ;;  %v14078_v40 = vrot.slane %v11080_v23, %v11183_v12 }
0x1fe3   : > { %7612 = vbcast.lane.b32.xlu0 %v7610_v30, 256  ;;  %6344 = vbcast.lane.b32.xlu1 %v6342_v31, 256  ;;  %v7603_v30 = vrot.slane %v11080_v23, %v11008_v34  ;;  %v7617_v31 = vrot.slane %v11080_v23, %v11060_v62 }
0x1fe7   : > { %8253 = vbcast.lane.b32.xlu0 %v14075_v24, 256  ;;  %6964 = vbcast.lane.b32.xlu1 %v6962_v18, 256  ;;  %v8244_v24 = vrot.slane %v11080_v23, %v11063_v16  ;;  %v11785_v18 = vpop.permute.xlu1 %6323 }
0x1feb   : > { %6978 = vbcast.lane.b32.xlu1 %v14076_v19, 256  ;;  %8283 = vbcast.lane.b32.xlu0 %v11074_v52, 256  ;;  %v14079_v52 = vrot.slane %v11080_v23, %v11186_v5 }
0x1fef   : > { %6985 = vbcast.lane.b32.xlu1 %v14077_v46, 256 }
0x1ff3   : > { %7605 = vbcast.lane.b32.xlu1 %v7603_v30, 256 }
0x1ff7   : > { %7619 = vbcast.lane.b32.xlu1 %v7617_v31, 256 }
0x1ffb   : > { %7626 = vbcast.lane.b32.xlu1 %v7624_v3, 256 }
0x1fff   : > { %8246 = vbcast.lane.b32.xlu1 %v8244_v24, 256 }
0x2003   : > { %8260 = vbcast.lane.b32.xlu1 %v14078_v40, 256 }
0x2007   : > { %8267 = vbcast.lane.b32.xlu1 %v14079_v52, 256 }
0x200b   : > { %4157 = vbcast.lane.b32.xlu1 %v10993_v9, 256 }
0x200d   : > { %v5791_v19 = vpop.permute.xlu1 %5790  ;;  %v5788_v20 = vpop.permute.xlu0 %5787 }
0x200e   : > { %v5853_v41 = vrot.slane %v5791_v19, %v11324_v53  ;;  %v5849_v33 = vrot.slane %v5788_v20, %v11324_v53 }
0x2011   : > { %v5806_v46 = vpop.permute.xlu1 %5805  ;;  %v5803_v59 = vpop.permute.xlu0 %5802 }
0x2012   : > { %v5873_v50 = vrot.slane %v5806_v46, %v11324_v53 }
0x2015   : > { %v5809_v30 = vpop.permute.xlu1 %5808  ;;  %v5794_v38 = vpop.permute.xlu0 %5793 }
0x2042   : > { %v11787_v31 = vpop.permute.xlu1 %5820 }
0x2046   : > { %v5812_v3 = vpop.permute.xlu1 %5811 }
0x2047   : > { %v5881_v32 = vrot.slane %v5812_v3, %v11324_v53 }
0x204a   : > { %v11789_v37 = vpop.permute.xlu1 %5832 }
0x204e   : > { %v5800_v24 = vpop.permute.xlu1 %5799 }
0x2052   : > { %v11791_v48 = vpop.permute.xlu1 %5826 }
0x2056   : > { %v11793_v12 = vpop.permute.xlu1 %5829 }
0x205a   : > { %v11795_v40 = vpop.permute.xlu1 %5844 }
0x205e   : > { %v11797_v23 = vpop.permute.xlu1 %6337 }
0x2062   : > { %v11799_v5 = vpop.permute.xlu1 %6344 }
0x2066   : > { %v11801_v52 = vpop.permute.xlu1 %6964 }
0x206a   : > { %v11803_v9 = vpop.permute.xlu1 %6978 }
0x206e   : > { %v11805_v11 = vpop.permute.xlu1 %6985 }
0x206f   : > { %14080 = vst [vmem:[#allocation83_spill] sm:$0xff] %v11805_v11  ;;  %v5926_v11 = vsel %vm716_vm1, %v5853_v41, %v5849_v33 }
0x2072   : > { %v11807_v47 = vpop.permute.xlu1 %7605 }
0x2073   : > { %14081 = vst [vmem:[#allocation84_spill] sm:$0xff] %v11807_v47  ;;  %v5877_v47 = vrot.slane %v5809_v30, %v11324_v53 }
0x2076   : > { %v11809_v4 = vpop.permute.xlu1 %7619 }
0x2077   : > { %14082 = vst [vmem:[#allocation85_spill] sm:$0xff] %v11809_v4  ;;  %v5869_v4 = vrot.slane %v5803_v59, %v11324_v53 }
0x2079   : > { %v5930_v20 = vsel %vm716_vm1, %v5873_v50, %v5869_v4  ;;  %v4051_v4 = vrot.slane %v11370_v21, %v11161_v10  ;;  %v4063_v50 = vrot.slane %v11368_v42, %v11047_v39 }
0x207a   : > { %v11811_v25 = vpop.permute.xlu1 %7626  ;;  %v5931_v59 = vsel %vm719_vm2, %v5877_v47, %v5930_v20  ;;  %v4055_v47 = vrot.slane %v11370_v21, %v11063_v16 }
0x207b   : > { %14083 = vst [vmem:[#allocation86_spill] sm:$0xff] %v11811_v25  ;;  %vm4139_vm13 = vcmp.eq.f32.partialorder %v11262_v7, %v4051_v4  ;;  %vm4142_vm0 = vcmp.eq.f32.partialorder %v11249_v26, %v4063_v50  ;;  %v5905_v26 = vrot.slane %v11793_v12, %v11324_v53  ;;  %v5925_v12 = vrot.slane %v11795_v40, %v11324_v53 }
0x207c   : > { %vm4140_vm14 = vcmp.eq.f32.partialorder %v11296_v17, %v4055_v47  ;;  %v5893_v17 = vrot.slane %v11787_v31, %v11324_v53  ;;  %v5909_v31 = vrot.slane %v11789_v37, %v11324_v53 }
0x207e   : > { %v11813_v43 = vpop.permute.xlu1 %8246 }
0x207f   : > { %14084 = vst [vmem:[#allocation87_spill] sm:$0xff] %v11813_v43 }
0x2082   : > { %v11815_v6 = vpop.permute.xlu1 %8260 }
0x2083   : > { %14085 = vst [vmem:[#allocation88_spill] sm:$0xff] %v11815_v6 }
0x2086   : > { %v11817_v29 = vpop.permute.xlu1 %8267 }
0x2087   : > { %14086 = vst [vmem:[#allocation89_spill] sm:$0xff] %v11817_v29  ;;  %v5818_v29 = vpop.permute.xlu0 %5817 }
0x208a   : > { %v11823_v15 = vpop.permute.xlu1 %4157 }
0x208b   : > { %v4160_v56 = vsel %vm4137_vm10, %v11823_v15, 5  ;;  %v4159_v54 = vsel %vm4136_vm11, %v11823_v15, 5  ;;  %v4161_v6 = vsel %vm4138_vm12, %v11823_v15, 5  ;;  %v5797_v43 = vpop.permute.xlu0 %5796  ;;  %v4162_v33 = vsel %vm4139_vm13, %v11823_v15, 5 }
0x208c   : > { %4183 = vperm.xlu1 %9163, %v4160_v56   ;;  %4180 = vperm.xlu0 %9164, %v4159_v54   ;;  %v5857_v56 = vrot.slane %v5794_v38, %v11324_v53  ;;  %v5861_v14 = vrot.slane %v5797_v43, %v11324_v53  ;;  %v5932_v43 = vsel %vm722_vm3, %v5881_v32, %v5931_v59  ;;  %v4165_v21 = vsel %vm4142_vm0, %v11823_v15, 5 }
0x208e   : > { %v5927_v46 = vsel %vm719_vm2, %v5857_v56, %v5926_v11  ;;  %v4059_v11 = vrot.slane %v11368_v42, %v11008_v34  ;;  %v4163_v56 = vsel %vm4140_vm14, %v11823_v15, 5 }
0x208f   : > { %v5824_v25 = vpop.permute.xlu0 %5823  ;;  %v5928_v38 = vsel %vm722_vm3, %v5861_v14, %v5927_v46 }
0x2090   : > { %4186 = vperm.xlu0 %9164, %v4161_v6   ;;  %v5865_v6 = vrot.slane %v5800_v24, %v11324_v53  ;;  %vm4141_vm15 = vcmp.eq.f32.partialorder %v11241_v60, %v4059_v11  ;;  %v5889_v60 = vrot.slane %v5818_v29, %v11324_v53  ;;  %v5897_v14 = vrot.slane %v5824_v25, %v11324_v53 }
0x2091   : > { %v4164_v7 = vsel %vm4141_vm15, %v11823_v15, 5 }
0x2092   : > { %v5929_v30 = vsel %vm4002_vm9, %v5865_v6, %v5928_v38  ;;  %v5934_v46 = vsel %vm716_vm1, %v5893_v17, %v5889_v60 }
0x2093   : > { %v5836_v63 = vpop.permute.xlu0 %5835  ;;  %v5946_v24 = vsel %vm3696_vm7, %v5929_v30, -inf  ;;  %v5935_v25 = vsel %vm719_vm2, %v5897_v14, %v5934_v46 }
0x2094   : > { %v5913_v6 = vrot.slane %v5836_v63, %v11324_v53 }
0x2096   : > { %v5938_v59 = vsel %vm716_vm1, %v5913_v6, %v5909_v31 }
0x2097   : > { %v5815_v54 = vpop.permute.xlu0 %5814 }
0x2098   : > { %v5885_v19 = vrot.slane %v5815_v54, %v11324_v53 }
0x209a   : > { %v5933_v3 = vsel %vm4002_vm9, %v5885_v19, %v5932_v43  ;;  %v5901_v19 = vrot.slane %v11791_v48, %v11324_v53 }
0x209b   : > { %v5949_v41 = vsel %vm3696_vm7, %v5933_v3, -inf  ;;  %v5839_v54 = vpop.permute.xlu0 %5838 }
0x209c   : > { %v5917_v20 = vrot.slane %v5839_v54, %v11324_v53  ;;  %v5936_v63 = vsel %vm722_vm3, %v5901_v19, %v5935_v25 }
0x209d   : > { %v5937_v38 = vsel %vm4002_vm9, %v5905_v26, %v5936_v63 }
0x209e   : > { %v5939_v48 = vsel %vm719_vm2, %v5917_v20, %v5938_v59  ;;  %v5952_v43 = vsel %vm3696_vm7, %v5937_v38, -inf }
0x209f   : > { %v5842_v32 = vpop.permute.xlu0 %5841 }
0x20a0   : > { %v5921_v29 = vrot.slane %v5842_v32, %v11324_v53 }
0x20a2   : > { %v5940_v30 = vsel %vm722_vm3, %v5921_v29, %v5939_v48 }
0x20a3   : > { %v5941_v37 = vsel %vm4002_vm9, %v5925_v12, %v5940_v30 }
0x20a4   : > { %v5955_v3 = vsel %vm3696_vm7, %v5941_v37, -inf }
0x20af   : > { %5947 = vmax.xlane.f32.xlu0 %v5946_v24  ;;  %v11894_v24 = vpop.permute.xlu0 %6971 }
0x20b0   : > { %5950 = vmax.xlane.f32.xlu1 %v5949_v41 }
0x20b3   : > { %v11896_v41 = vpop.permute.xlu0 %7612 }
0x20b7   : > { %v11898_v4 = vpop.permute.xlu0 %8253 }
0x20b8   : > { %14087 = vst [vmem:[#allocation90_spill] sm:$0xff] %v11898_v4 }
0x20bb   : > { %v11900_v47 = vpop.permute.xlu0 %8283 }
0x20bc   : > { %14088 = vst [vmem:[#allocation91_spill] sm:$0xff] %v11900_v47 }
0x20c1   : > { %4189 = vperm.xlu1 %9163, %v4162_v33  }
0x20c5   : > { %4192 = vperm.xlu0 %9164, %v4163_v56   ;;  %4195 = vperm.xlu1 %9163, %v4164_v7  }
0x20c9   : > { %4198 = vperm.xlu0 %9164, %v4165_v21  }
0x20e8   : > { %5953 = vmax.xlane.f32.xlu0 %v5952_v43 }
0x20ec   : > { %5956 = vmax.xlane.f32.xlu0 %v5955_v3 }
0x210b   : > { %v11902_v40 = vpop.permute.xlu0 %4180  ;;  %v11906_v33 = vpop.permute.xlu1 %4183 }
0x210f   : > { %v11904_v11 = vpop.permute.xlu0 %4186 }
0x213c   : > { %v11908_v50 = vpop.xlane.xlu0 %5947 }
0x213d   : > { %14089 = vst [vmem:[#allocation92_spill] sm:$0xff] %v11908_v50  ;;  %v6350_v56 = vadd.f32 %v11785_v18, %v11908_v50  ;;  %v11912_v7 = vpop.xlane.xlu1 %5950 }
0x213e   : > { %14090 = vst [vmem:[#allocation93_spill] sm:$0xff] %v11912_v7  ;;  %v6351_v21 = vadd.f32 %v11685_v45, %v11912_v7 }
0x213f   : > { %v11917_v54 = vadd.f32 %v6350_v56, %v11228_v35  ;;  %v11920_v17 = vadd.f32 %v6350_v56, %v11226_v55  ;;  %v11936_v14 = vadd.f32 %v6350_v56, %v11236_v36  ;;  %v11980_v48 = vadd.f32 %v6350_v56, %v11280_v8 }
0x2140   : > { %v11925_v60 = vadd.f32 %v6351_v21, %v11228_v35  ;;  %v11928_v18 = vadd.f32 %v6351_v21, %v11226_v55  ;;  %v11933_v45 = vadd.f32 %v6351_v21, %v11236_v36  ;;  %v11961_v25 = vadd.f32 %v6351_v21, %v11254_v13 }
0x2141   : > { %6431 = vperm.xlu1 %9163, %v11917_v54   ;;  %6428 = vperm.xlu0 %9164, %v11920_v17   ;;  %v11985_v12 = vadd.f32 %v6351_v21, %v11280_v8  ;;  %v4067_v21 = vrot.slane %v11368_v42, %v11060_v62 }
0x2143   : > { %vm4143_vm5 = vcmp.eq.f32.partialorder %v11259_v44, %v4067_v21  ;;  %v4083_v44 = vrot.slane %v11388_v28, %v11047_v39 }
0x2144   : > { %v11940_v32 = vpop.permute.xlu0 %4192 }
0x2145   : > { %6446 = vperm.xlu1 %9163, %v11925_v60   ;;  %6443 = vperm.xlu0 %9164, %v11928_v18   ;;  %vm4147_vm12 = vcmp.eq.f32.partialorder %v11267_v0, %v4083_v44  ;;  %v14099_v44 = vld [vmem:[#allocation13_spill] sm:$0xff] }
0x2148   : > { %v11942_v6 = vpop.permute.xlu0 %4198 }
0x2149   : > { %6449 = vperm.xlu1 %9163, %v11933_v45   ;;  %6434 = vperm.xlu0 %9164, %v11936_v14  }
0x2175   : > { %v11944_v19 = vpop.xlane.xlu0 %5953 }
0x2176   : > { %14091 = vst [vmem:[#allocation94_spill] sm:$0xff] %v11944_v19  ;;  %v6352_v26 = vadd.f32 %v11797_v23, %v11944_v19  ;;  %v11964_v23 = vadd.f32 %v6350_v56, %v11254_v13  ;;  %v4071_v56 = vrot.slane %v11368_v42, %v11161_v10  ;;  %v4166_v19 = vsel %vm4143_vm5, %v11823_v15, 5 }
0x2178   : > { %v11949_v20 = vadd.f32 %v6352_v26, %v11228_v35  ;;  %v11952_v46 = vadd.f32 %v6352_v26, %v11226_v55  ;;  %v11969_v59 = vadd.f32 %v6352_v26, %v11236_v36  ;;  %v11988_v38 = vadd.f32 %v6352_v26, %v11254_v13 }
0x2179   : > { %v11954_v31 = vpop.xlane.xlu0 %5956  ;;  %v11996_v43 = vadd.f32 %v6352_v26, %v11280_v8  ;;  %vm4144_vm4 = vcmp.eq.f32.partialorder %v11275_v57, %v4071_v56  ;;  %v4079_v26 = vrot.slane %v11388_v28, %v11008_v34  ;;  %v4087_v57 = vrot.slane %v11388_v28, %v11060_v62 }
0x217a   : > { %14092 = vst [vmem:[#allocation95_spill] sm:$0xff] %v11954_v31  ;;  %6461 = vperm.xlu1 %9163, %v11949_v20   ;;  %6458 = vperm.xlu0 %9164, %v11952_v46   ;;  %v6353_v29 = vadd.f32 %v11799_v5, %v11954_v31  ;;  %14093 = vst [vmem:[#allocation96_spill] sm:$0xff] %v11988_v38  ;;  %v4167_v31 = vsel %vm4144_vm4, %v11823_v15, 5 }
0x217b   : > { %14095 = vst [vmem:[#allocation98_spill] sm:$0xff] %v11996_v43  ;;  %vm4146_vm8 = vcmp.eq.f32.partialorder %v11252_v58, %v4079_v26  ;;  %vm4148_vm11 = vcmp.eq.f32.partialorder %v11270_v2, %v4087_v57  ;;  %v4095_v58 = vrot.slane %v11388_v28, %v11063_v16  ;;  %v4099_v2 = vrot.slane %v11407_v1, %v11008_v34 }
0x217c   : > { %v11972_v63 = vadd.f32 %v6353_v29, %v11226_v55  ;;  %v11977_v5 = vadd.f32 %v6353_v29, %v11228_v35  ;;  %v11993_v30 = vadd.f32 %v6353_v29, %v11236_v36  ;;  %v12001_v37 = vadd.f32 %v6353_v29, %v11254_v13 }
0x217d   : > { %v12004_v3 = vadd.f32 %v6353_v29, %v11280_v8  ;;  %v4075_v29 = vrot.slane %v11368_v42, %v11063_v16  ;;  %v4169_v56 = vsel %vm4146_vm8, %v11823_v15, 5  ;;  %vm4150_vm13 = vcmp.eq.f32.partialorder %v11311_v61, %v4095_v58 }
0x217e   : > { %6452 = vperm.xlu1 %9163, %v11961_v25   ;;  %6437 = vperm.xlu0 %9164, %v11964_v23   ;;  %14094 = vst [vmem:[#allocation97_spill] sm:$0xff] %v11993_v30  ;;  %14096 = vst [vmem:[#allocation99_spill] sm:$0xff] %v12001_v37  ;;  %v4173_v0 = vsel %vm4150_vm13, %v11823_v15, 5  ;;  %vm4151_vm15 = vcmp.eq.f32.partialorder %v11285_v51, %v4099_v2  ;;  %v4111_v57 = vrot.slane %v11407_v1, %v11161_v10 }
0x217f   : > { %14097 = vst [vmem:[#allocation100_spill] sm:$0xff] %v12004_v3  ;;  %vm4145_vm10 = vcmp.eq.f32.partialorder %v11288_v27, %v4075_v29  ;;  %v4091_v27 = vrot.slane %v11388_v28, %v11161_v10  ;;  %v4103_v28 = vrot.slane %v11407_v1, %v11047_v39  ;;  %v4174_v26 = vsel %vm4151_vm15, %v11823_v15, 5  ;;  %v14098_v29 = vld [vmem:[#allocation12_spill] sm:$0xff] }
0x2180   : > { %v4168_v42 = vsel %vm4145_vm10, %v11823_v15, 5  ;;  %vm4154_vm5 = vcmp.eq.f32.partialorder %v14099_v44, %v4111_v57  ;;  %v4250_v2 = vrot.slane %v11904_v11, %v11324_v53 }
0x2181   : > { %vm4149_vm14 = vcmp.eq.f32.partialorder %v11304_v49, %v4091_v27  ;;  %vm4152_vm0 = vcmp.eq.f32.partialorder %v11278_v22, %v4103_v28  ;;  %v4107_v49 = vrot.slane %v11407_v1, %v11060_v62  ;;  %v4177_v22 = vsel %vm4154_vm5, %v11823_v15, 5  ;;  %v4190_v27 = vpop.permute.xlu1 %4189 }
0x2182   : > { %6464 = vperm.xlu0 %9164, %v11969_v59   ;;  %6473 = vperm.xlu1 %9163, %v11972_v63   ;;  %v4172_v21 = vsel %vm4149_vm14, %v11823_v15, 5  ;;  %v4175_v61 = vsel %vm4152_vm0, %v11823_v15, 5 }
0x2183   : > { %vm4153_vm4 = vcmp.eq.f32.partialorder %v14098_v29, %v4107_v49 }
0x2184   : > { %v4176_v51 = vsel %vm4153_vm4, %v11823_v15, 5 }
0x2185   : > { %v4196_v29 = vpop.permute.xlu1 %4195 }
0x2186   : > { %6476 = vperm.xlu0 %9164, %v11977_v5   ;;  %6440 = vperm.xlu1 %9163, %v11980_v48  }
0x218a   : > { %6455 = vperm.xlu0 %9164, %v11985_v12   ;;  %6467 = vperm.xlu1 %9163, %v11988_v38  }
0x218e   : > { %6479 = vperm.xlu0 %9164, %v11993_v30   ;;  %6470 = vperm.xlu1 %9163, %v11996_v43   ;;  %v4262_v43 = vrot.slane %v4196_v29, %v11324_v53 }
0x2192   : > { %6482 = vperm.xlu0 %9164, %v12001_v37   ;;  %6485 = vperm.xlu1 %9163, %v12004_v3  }
0x2196   : > { %4204 = vperm.xlu0 %9164, %v4167_v31   ;;  %4201 = vperm.xlu1 %9163, %v4166_v19   ;;  %v4171_v19 = vsel %vm4148_vm11, %v11823_v15, 5  ;;  %v4170_v31 = vsel %vm4147_vm12, %v11823_v15, 5 }
0x219a   : > { %4210 = vperm.xlu0 %9164, %v4169_v56   ;;  %4207 = vperm.xlu1 %9163, %v4168_v42   ;;  %v4115_v56 = vrot.slane %v11407_v1, %v11063_v16  ;;  %v14100_v42 = vld [vmem:[#allocation14_spill] sm:$0xff]  ;;  %v4254_v1 = vrot.slane %v4190_v27, %v11324_v53 }
0x219c   : > { %vm4155_vm8 = vcmp.eq.f32.partialorder %v14100_v42, %v4115_v56 }
0x219d   : > { %v4178_v58 = vsel %vm4155_vm8, %v11823_v15, 5 }
0x219e   : > { %4216 = vperm.xlu0 %9164, %v4171_v19   ;;  %4213 = vperm.xlu1 %9163, %v4170_v31   ;;  %v4246_v19 = vrot.slane %v11906_v33, %v11324_v53  ;;  %v4242_v31 = vrot.slane %v11902_v40, %v11324_v53 }
0x21a2   : > { %4222 = vperm.xlu0 %9164, %v4173_v0   ;;  %4219 = vperm.xlu1 %9163, %v4172_v21   ;;  %v4258_v0 = vrot.slane %v11940_v32, %v11324_v53  ;;  %v4319_v21 = vsel %vm716_vm1, %v4246_v19, %v4242_v31 }
0x21a3   : > { %v4320_v28 = vsel %vm719_vm2, %v4250_v2, %v4319_v21 }
0x21a6   : > { %4225 = vperm.xlu1 %9163, %v4174_v26   ;;  %v4321_v26 = vsel %vm722_vm3, %v4254_v1, %v4320_v28 }
0x21a7   : > { %v4322_v49 = vsel %vm4002_vm9, %v4258_v0, %v4321_v26 }
0x21a8   : > { %v4335_v33 = vsel %vm3696_vm7, %v4322_v49, 2147483647 }
0x21aa   : > { %4228 = vperm.xlu1 %9163, %v4175_v61   ;;  %v4337_v61 = vshra.s32 %v4335_v33, 16 }
0x21ac   : > { %v12074_v40 = vcvt.s32.f32 %v4337_v61 }
0x21ae   : > { %4231 = vperm.xlu1 %9163, %v4176_v51  }
0x21b2   : > { %4234 = vperm.xlu1 %9163, %v4177_v22  }
0x21b6   : > { %4237 = vperm.xlu1 %9163, %v4178_v58  }
0x21c0   : > { %v12077_v11 = vpop.permute.xlu0 %6428  ;;  %v12079_v57 = vpop.permute.xlu1 %6431 }
0x21c1   : > { %v6490_v29 = vrot.slane %v12077_v11, %v11324_v53 }
0x21c4   : > { %v6444_v32 = vpop.permute.xlu0 %6443  ;;  %v6447_v51 = vpop.permute.xlu1 %6446 }
0x21c5   : > { %v6514_v31 = vrot.slane %v6447_v51, %v11324_v53  ;;  %v6510_v2 = vrot.slane %v6444_v32, %v11324_v53 }
0x21c7   : > { %v6571_v28 = vsel %vm716_vm1, %v6514_v31, %v6510_v2 }
0x21c8   : > { %v12081_v44 = vpop.permute.xlu0 %6434  ;;  %v6450_v22 = vpop.permute.xlu1 %6449 }
0x21c9   : > { %v6518_v0 = vrot.slane %v6450_v22, %v11324_v53 }
0x21cb   : > { %v6572_v49 = vsel %vm719_vm2, %v6518_v0, %v6571_v28 }
0x21da   : > { %4340 = vmin.xlane.f32.xlu1 %v12074_v40 }
0x21f9   : > { %v12083_v56 = vpop.permute.xlu0 %6458  ;;  %v12087_v58 = vpop.permute.xlu1 %6461 }
0x21fd   : > { %v12085_v42 = vpop.permute.xlu0 %6437  ;;  %v6453_v19 = vpop.permute.xlu1 %6452 }
0x21fe   : > { %v6522_v21 = vrot.slane %v6453_v19, %v11324_v53 }
0x2200   : > { %v6573_v7 = vsel %vm722_vm3, %v6522_v21, %v6572_v49  ;;  %v4266_v49 = vrot.slane %v11942_v6, %v11324_v53 }
0x2201   : > { %v12089_v27 = vpop.permute.xlu0 %6464  ;;  %v6474_v32 = vpop.permute.xlu1 %6473 }
0x2205   : > { %v12093_v1 = vpop.permute.xlu0 %6476  ;;  %v6441_v3 = vpop.permute.xlu1 %6440 }
0x2209   : > { %v6456_v26 = vpop.permute.xlu0 %6455  ;;  %v6468_v4 = vpop.permute.xlu1 %6467 }
0x220a   : > { %v6526_v61 = vrot.slane %v6456_v26, %v11324_v53 }
0x220c   : > { %v6574_v50 = vsel %vm4002_vm9, %v6526_v61, %v6573_v7 }
0x220d   : > { %v6590_v51 = vsel %vm3696_vm7, %v6574_v50, -inf  ;;  %v6471_v22 = vpop.permute.xlu1 %6470  ;;  %v6480_v21 = vpop.permute.xlu0 %6479 }
0x220e   : > { %6591 = vmax.xlane.f32.xlu1 %v6590_v51 }
0x2211   : > { %v12103_v47 = vpop.permute.xlu1 %6485  ;;  %v6483_v7 = vpop.permute.xlu0 %6482 }
0x2215   : > { %v4202_v19 = vpop.permute.xlu1 %4201  ;;  %v4205_v51 = vpop.permute.xlu0 %4204 }
0x2216   : > { %v4270_v61 = vrot.slane %v4202_v19, %v11324_v53  ;;  %v4336_v19 = vand.u32 65535, %v4335_v33 }
0x2219   : > { %v4208_v31 = vpop.permute.xlu1 %4207 }
0x221d   : > { %v12105_v2 = vpop.permute.xlu1 %4213 }
0x221e   : > { %14101 = vst [vmem:[#allocation12_spill] sm:$0xff] %v12105_v2  ;;  %v4323_v2 = vsel %vm716_vm1, %v4266_v49, %v4262_v43  ;;  %v6494_v43 = vrot.slane %v12079_v57, %v11324_v53  ;;  %v6506_v57 = vrot.slane %v6441_v3, %v11324_v53  ;;  %v6542_v3 = vrot.slane %v6468_v4, %v11324_v53 }
0x2220   : > { %v6567_v11 = vsel %vm716_vm1, %v6494_v43, %v6490_v29  ;;  %v6562_v43 = vrot.slane %v6483_v7, %v11324_v53 }
0x2221   : > { %v12107_v0 = vpop.permute.xlu1 %4219 }
0x2222   : > { %14102 = vst [vmem:[#allocation13_spill] sm:$0xff] %v12107_v0  ;;  %v4274_v0 = vrot.slane %v4205_v51, %v11324_v53  ;;  %v6546_v51 = vrot.slane %v6471_v22, %v11324_v53 }
0x2225   : > { %v12109_v28 = vpop.permute.xlu1 %4225 }
0x2226   : > { %14103 = vst [vmem:[#allocation14_spill] sm:$0xff] %v12109_v28  ;;  %v4324_v28 = vsel %vm719_vm2, %v4270_v61, %v4323_v2  ;;  %v4338_v2 = vcvt.s32.f32 %v4336_v19 }
0x2229   : > { %v12111_v26 = vpop.permute.xlu1 %4228 }
0x222a   : > { %14104 = vst [vmem:[#allocation101_spill] sm:$0xff] %v12111_v26  ;;  %v4278_v26 = vrot.slane %v4208_v31, %v11324_v53  ;;  %v6498_v31 = vrot.slane %v12081_v44, %v11324_v53  ;;  %v6530_v44 = vrot.slane %v12083_v56, %v11324_v53 }
0x222d   : > { %v12113_v50 = vpop.permute.xlu1 %4231 }
0x222e   : > { %14105 = vst [vmem:[#allocation102_spill] sm:$0xff] %v12113_v50  ;;  %v4325_v50 = vsel %vm722_vm3, %v4274_v0, %v4324_v28  ;;  %v6534_v28 = vrot.slane %v12087_v58, %v11324_v53  ;;  %v6558_v58 = vrot.slane %v6480_v21, %v11324_v53 }
0x222f   : > { %v4326_v38 = vsel %vm4002_vm9, %v4278_v26, %v4325_v50  ;;  %v6568_v26 = vsel %vm719_vm2, %v6498_v31, %v6567_v11 }
0x2230   : > { %v12130_v30 = vsel %vm3696_vm7, %v4326_v38, 2147483647  ;;  %v6502_v38 = vrot.slane %v12085_v42, %v11324_v53  ;;  %v6554_v42 = vrot.slane %v12093_v1, %v11324_v53  ;;  %v6575_v19 = vsel %vm716_vm1, %v6534_v28, %v6530_v44 }
0x2231   : > { %v12121_v37 = vpop.permute.xlu1 %4234  ;;  %14108 = vst [vmem:[#allocation105_spill] sm:$0xff] %v12130_v30  ;;  %v4352_v33 = vshra.s32 %v12130_v30, 16 }
0x2232   : > { %14106 = vst [vmem:[#allocation103_spill] sm:$0xff] %v12121_v37  ;;  %v6569_v61 = vsel %vm722_vm3, %v6502_v38, %v6568_v26 }
0x2233   : > { %v12154_v50 = vcvt.s32.f32 %v4352_v33  ;;  %v6570_v56 = vsel %vm4002_vm9, %v6506_v57, %v6569_v61 }
0x2234   : > { %v6587_v29 = vsel %vm3696_vm7, %v6570_v56, -inf }
0x2235   : > { %v12127_v6 = vpop.permute.xlu1 %4237  ;;  %14110 = vst [vmem:[#allocation107_spill] sm:$0xff] %v12154_v50 }
0x2236   : > { %14107 = vst [vmem:[#allocation104_spill] sm:$0xff] %v12127_v6  ;;  %v14123_v6 = vld [vmem:[#allocation85_spill] sm:$0xff] }
0x2267   : > { %v12136_v49 = vpop.xlane.xlu1 %4340 }
0x2268   : > { %14109 = vst [vmem:[#allocation106_spill] sm:$0xff] %v12136_v49  ;;  %vm4342_vm10 = vcmp.eq.f32.partialorder %v12074_v40, %v12136_v49  ;;  %v6538_v40 = vrot.slane %v12089_v27, %v11324_v53  ;;  %v6550_v27 = vrot.slane %v6474_v32, %v11324_v53 }
0x2269   : > { %v4343_v0 = vsel %vm4342_vm10, %v4338_v2, inf  ;;  %v6566_v2 = vrot.slane %v12103_v47, %v11324_v53 }
0x226a   : > { %4344 = vmin.xlane.f32.xlu0 %v4343_v0  ;;  %v6576_v1 = vsel %vm719_vm2, %v6538_v40, %v6575_v19  ;;  %v6579_v4 = vsel %vm716_vm1, %v6554_v42, %v6550_v27  ;;  %v12179_v0 = vpop.permute.xlu0 %4210 }
0x226b   : > { %v6577_v22 = vsel %vm722_vm3, %v6542_v3, %v6576_v1  ;;  %v6580_v21 = vsel %vm719_vm2, %v6558_v58, %v6579_v4  ;;  %14111 = vst [vmem:[#allocation108_spill] sm:$0xff] %v12179_v0 }
0x226c   : > { %v6578_v31 = vsel %vm4002_vm9, %v6546_v51, %v6577_v22  ;;  %v6581_v32 = vsel %vm722_vm3, %v6562_v43, %v6580_v21 }
0x226d   : > { %v6593_v7 = vsel %vm3696_vm7, %v6578_v31, -inf  ;;  %v6582_v33 = vsel %vm4002_vm9, %v6566_v2, %v6581_v32 }
0x226e   : > { %4355 = vmin.xlane.f32.xlu0 %v12154_v50  ;;  %v6596_v38 = vsel %vm3696_vm7, %v6582_v33, -inf  ;;  %v12181_v57 = vpop.permute.xlu0 %4216 }
0x226f   : > { %14112 = vst [vmem:[#allocation109_spill] sm:$0xff] %v12181_v57 }
0x2272   : > { %6588 = vmax.xlane.f32.xlu0 %v6587_v29  ;;  %v12183_v11 = vpop.permute.xlu0 %4222 }
0x2273   : > { %14113 = vst [vmem:[#allocation110_spill] sm:$0xff] %v12183_v11 }
0x2276   : > { %6594 = vmax.xlane.f32.xlu0 %v6593_v7 }
0x227a   : > { %6597 = vmax.xlane.f32.xlu0 %v6596_v38 }
0x229b   : > { %v12189_v44 = vpop.xlane.xlu1 %6591 }
0x229c   : > { %v6992_v42 = vadd.f32 %v11894_v24, %v12189_v44 }
0x229e   : > { %v12206_v51 = vadd.f32 %v6992_v42, %v11228_v35  ;;  %v12209_v58 = vadd.f32 %v6992_v42, %v11226_v55  ;;  %v12218_v56 = vadd.f32 %v6992_v42, %v11236_v36  ;;  %v12238_v29 = vadd.f32 %v6992_v42, %v11254_v13 }
0x229f   : > { %v12262_v7 = vadd.f32 %v6992_v42, %v11280_v8 }
0x22f7   : > { %v12185_v47 = vpop.xlane.xlu0 %4344 }
0x22f8   : > { %14114 = vst [vmem:[#allocation111_spill] sm:$0xff] %v12185_v47 }
0x22fb   : > { %v12187_v28 = vpop.xlane.xlu0 %4355 }
0x22fc   : > { %14115 = vst [vmem:[#allocation112_spill] sm:$0xff] %v12187_v28 }
0x22ff   : > { %v12191_v26 = vpop.xlane.xlu0 %6588 }
0x2300   : > { %v6991_v40 = vadd.f32 %v11801_v52, %v12191_v26  ;;  %v6610_v42 = vrot.slane %v12191_v26, %v11047_v39  ;;  %v6614_v50 = vrot.slane %v12191_v26, %v11060_v62 }
0x2302   : > { %v12198_v3 = vadd.f32 %v6991_v40, %v11228_v35  ;;  %v12201_v61 = vadd.f32 %v6991_v40, %v11226_v55  ;;  %v12221_v19 = vadd.f32 %v6991_v40, %v11236_v36  ;;  %v12241_v22 = vadd.f32 %v6991_v40, %v11254_v13 }
0x2303   : > { %v12211_v52 = vpop.xlane.xlu0 %6594  ;;  %v12257_v32 = vadd.f32 %v6991_v40, %v11280_v8  ;;  %vm6704_vm11 = vcmp.eq.f32.partialorder %v11917_v54, %v6610_v42  ;;  %vm6705_vm13 = vcmp.eq.f32.partialorder %v11936_v14, %v6614_v50  ;;  %v6618_v14 = vrot.slane %v12191_v26, %v11161_v10 }
0x2304   : > { %7072 = vperm.xlu1 %9163, %v12198_v3   ;;  %7069 = vperm.xlu0 %9164, %v12201_v61   ;;  %v6993_v24 = vadd.f32 %v11803_v9, %v12211_v52  ;;  %v14116_v9 = vld [vmem:[#allocation83_spill] sm:$0xff]  ;;  %v6724_v28 = vsel %vm6704_vm11, %v11823_v15, 5  ;;  %v6646_v54 = vrot.slane %v12211_v52, %v11008_v34  ;;  %v6654_v50 = vrot.slane %v12211_v52, %v11060_v62 }
0x2305   : > { %vm6706_vm5 = vcmp.eq.f32.partialorder %v11964_v23, %v6618_v14 }
0x2306   : > { %v12226_v27 = vadd.f32 %v6993_v24, %v11228_v35  ;;  %v12229_v43 = vadd.f32 %v6993_v24, %v11226_v55  ;;  %v12246_v21 = vadd.f32 %v6993_v24, %v11236_v36  ;;  %v12265_v33 = vadd.f32 %v6993_v24, %v11254_v13 }
0x2307   : > { %v12231_v1 = vpop.xlane.xlu0 %6597  ;;  %v12273_v40 = vadd.f32 %v6993_v24, %v11280_v8  ;;  %v6626_v24 = vrot.slane %v12189_v44, %v11008_v34  ;;  %vm6713_vm15 = vcmp.eq.f32.partialorder %v11952_v46, %v6646_v54  ;;  %v6650_v46 = vrot.slane %v12211_v52, %v11047_v39 }
0x2308   : > { %7087 = vperm.xlu1 %9163, %v12206_v51   ;;  %7084 = vperm.xlu0 %9164, %v12209_v58   ;;  %v6994_v4 = vadd.f32 %v14116_v9, %v12231_v1  ;;  %v6606_v9 = vrot.slane %v12191_v26, %v11008_v34  ;;  %vm6715_vm8 = vcmp.eq.f32.partialorder %v11969_v59, %v6654_v50 }
0x2309   : > { %vm6708_vm14 = vcmp.eq.f32.partialorder %v11928_v18, %v6626_v24  ;;  %v6733_v18 = vsel %vm6713_vm15, %v11823_v15, 5  ;;  %v6638_v24 = vrot.slane %v12189_v44, %v11161_v10  ;;  %vm6714_vm10 = vcmp.eq.f32.partialorder %v11949_v20, %v6650_v46 }
0x230a   : > { %v12249_v2 = vadd.f32 %v6994_v4, %v11226_v55  ;;  %v12254_v31 = vadd.f32 %v6994_v4, %v11228_v35  ;;  %v12270_v38 = vadd.f32 %v6994_v4, %v11236_v36  ;;  %v12282_v47 = vadd.f32 %v6994_v4, %v11254_v13 }
0x230b   : > { %v12285_v49 = vadd.f32 %v6994_v4, %v11280_v8  ;;  %vm6703_vm12 = vcmp.eq.f32.partialorder %v11920_v17, %v6606_v9  ;;  %v6630_v4 = vrot.slane %v12189_v44, %v11047_v39  ;;  %v6725_v17 = vsel %vm6705_vm13, %v11823_v15, 5 }
0x230c   : > { %7090 = vperm.xlu1 %9163, %v12218_v56   ;;  %7075 = vperm.xlu0 %9164, %v12221_v19   ;;  %v6723_v30 = vsel %vm6703_vm12, %v11823_v15, 5  ;;  %v6728_v42 = vsel %vm6708_vm14, %v11823_v15, 5  ;;  %v6634_v9 = vrot.slane %v12189_v44, %v11060_v62  ;;  %v6735_v23 = vsel %vm6715_vm8, %v11823_v15, 5 }
0x230d   : > { %vm6709_vm0 = vcmp.eq.f32.partialorder %v11925_v60, %v6630_v4  ;;  %v6726_v60 = vsel %vm6706_vm5, %v11823_v15, 5  ;;  %v6734_v4 = vsel %vm6714_vm10, %v11823_v15, 5  ;;  %v6642_v54 = vrot.slane %v12189_v44, %v11063_v16 }
0x230e   : > { %vm6710_vm4 = vcmp.eq.f32.partialorder %v11933_v45, %v6634_v9  ;;  %v6670_v45 = vrot.slane %v12231_v1, %v11047_v39  ;;  %vm6711_vm11 = vcmp.eq.f32.partialorder %v11961_v25, %v6638_v24  ;;  %v6666_v59 = vrot.slane %v12231_v1, %v11008_v34 }
0x230f   : > { %v6731_v20 = vsel %vm6711_vm11, %v11823_v15, 5  ;;  %vm6712_vm13 = vcmp.eq.f32.partialorder %v11985_v12, %v6642_v54  ;;  %v6622_v44 = vrot.slane %v12191_v26, %v11063_v16 }
0x2310   : > { %7102 = vperm.xlu1 %9163, %v12226_v27   ;;  %7099 = vperm.xlu0 %9164, %v12229_v43   ;;  %vm6719_vm12 = vcmp.eq.f32.partialorder %v11977_v5, %v6670_v45  ;;  %vm6718_vm14 = vcmp.eq.f32.partialorder %v11972_v63, %v6666_v59  ;;  %v6732_v25 = vsel %vm6712_vm13, %v11823_v15, 5 }
0x2311   : > { %v6738_v5 = vsel %vm6718_vm14, %v11823_v15, 5  ;;  %vm6707_vm15 = vcmp.eq.f32.partialorder %v11980_v48, %v6622_v44 }
0x2314   : > { %7093 = vperm.xlu1 %9163, %v12238_v29   ;;  %7078 = vperm.xlu0 %9164, %v12241_v22  }
0x2318   : > { %7105 = vperm.xlu0 %9164, %v12246_v21   ;;  %7114 = vperm.xlu1 %9163, %v12249_v2  }
0x231c   : > { %7117 = vperm.xlu0 %9164, %v12254_v31   ;;  %7081 = vperm.xlu1 %9163, %v12257_v32  }
0x2320   : > { %7096 = vperm.xlu0 %9164, %v12262_v7   ;;  %7108 = vperm.xlu1 %9163, %v12265_v33  }
0x2324   : > { %7120 = vperm.xlu0 %9164, %v12270_v38   ;;  %7111 = vperm.xlu1 %9163, %v12273_v40  }
0x2328   : > { %7123 = vperm.xlu0 %9164, %v12282_v47   ;;  %7126 = vperm.xlu1 %9163, %v12285_v49  }
0x232c   : > { %6747 = vperm.xlu0 %9164, %v6724_v28   ;;  %6744 = vperm.xlu1 %9163, %v6723_v30   ;;  %v6729_v30 = vsel %vm6709_vm0, %v11823_v15, 5  ;;  %v6730_v28 = vsel %vm6710_vm4, %v11823_v15, 5 }
0x2330   : > { %6750 = vperm.xlu0 %9164, %v6725_v17   ;;  %6759 = vperm.xlu1 %9163, %v6728_v42   ;;  %v6739_v17 = vsel %vm6719_vm12, %v11823_v15, 5  ;;  %v6727_v42 = vsel %vm6707_vm15, %v11823_v15, 5 }
0x2334   : > { %6774 = vperm.xlu0 %9164, %v6733_v18   ;;  %6762 = vperm.xlu1 %9163, %v6729_v30  }
0x2338   : > { %6753 = vperm.xlu0 %9164, %v6726_v60   ;;  %6765 = vperm.xlu1 %9163, %v6730_v28  }
0x233c   : > { %6780 = vperm.xlu0 %9164, %v6735_v23   ;;  %6777 = vperm.xlu1 %9163, %v6734_v4  }
0x2340   : > { %6768 = vperm.xlu1 %9163, %v6731_v20   ;;  %6792 = vperm.xlu0 %9164, %v6739_v17  }
0x2344   : > { %6771 = vperm.xlu0 %9164, %v6732_v25   ;;  %6789 = vperm.xlu1 %9163, %v6738_v5  }
0x2348   : > { %6756 = vperm.xlu1 %9163, %v6727_v42  }
0x2383   : > { %v7073_v9 = vpop.permute.xlu1 %7072  ;;  %v7070_v14 = vpop.permute.xlu0 %7069 }
0x2384   : > { %v7135_v28 = vrot.slane %v7073_v9, %v11324_v53  ;;  %v7131_v24 = vrot.slane %v7070_v14, %v11324_v53 }
0x2386   : > { %v7208_v54 = vsel %vm716_vm1, %v7135_v28, %v7131_v24 }
0x2387   : > { %v7088_v18 = vpop.permute.xlu1 %7087  ;;  %v7085_v12 = vpop.permute.xlu0 %7084 }
0x2388   : > { %v7155_v59 = vrot.slane %v7088_v18, %v11324_v53  ;;  %v7151_v20 = vrot.slane %v7085_v12, %v11324_v53 }
0x238b   : > { %v7091_v30 = vpop.permute.xlu1 %7090  ;;  %v7076_v63 = vpop.permute.xlu0 %7075 }
0x238c   : > { %v7139_v48 = vrot.slane %v7076_v63, %v11324_v53  ;;  %v7159_v25 = vrot.slane %v7091_v30, %v11324_v53 }
0x238e   : > { %v7209_v5 = vsel %vm719_vm2, %v7139_v48, %v7208_v54 }
0x238f   : > { %v7103_v50 = vpop.permute.xlu1 %7102  ;;  %v7100_v46 = vpop.permute.xlu0 %7099 }
0x2390   : > { %v7175_v18 = vrot.slane %v7103_v50, %v11324_v53  ;;  %v7171_v12 = vrot.slane %v7100_v46, %v11324_v53 }
0x2392   : > { %v7216_v50 = vsel %vm716_vm1, %v7175_v18, %v7171_v12 }
0x2393   : > { %v7094_v26 = vpop.permute.xlu1 %7093  ;;  %v7079_v60 = vpop.permute.xlu0 %7078 }
0x2394   : > { %v7143_v4 = vrot.slane %v7079_v60, %v11324_v53  ;;  %v7163_v9 = vrot.slane %v7094_v26, %v11324_v53  ;;  %v7212_v60 = vsel %vm716_vm1, %v7155_v59, %v7151_v20 }
0x2395   : > { %v7213_v48 = vsel %vm719_vm2, %v7159_v25, %v7212_v60 }
0x2396   : > { %v7210_v14 = vsel %vm722_vm3, %v7143_v4, %v7209_v5 }
0x2397   : > { %v7115_v45 = vpop.permute.xlu1 %7114  ;;  %v7106_v23 = vpop.permute.xlu0 %7105 }
0x2398   : > { %v7179_v54 = vrot.slane %v7106_v23, %v11324_v53 }
0x239b   : > { %v7082_v17 = vpop.permute.xlu1 %7081  ;;  %v7118_v44 = vpop.permute.xlu0 %7117 }
0x239c   : > { %v7147_v42 = vrot.slane %v7082_v17, %v11324_v53  ;;  %v7214_v17 = vsel %vm722_vm3, %v7163_v9, %v7213_v48  ;;  %v7195_v25 = vrot.slane %v7118_v44, %v11324_v53  ;;  %v7191_v9 = vrot.slane %v7115_v45, %v11324_v53 }
0x239e   : > { %v7211_v63 = vsel %vm4002_vm9, %v7147_v42, %v7210_v14  ;;  %v7217_v42 = vsel %vm719_vm2, %v7179_v54, %v7216_v50 }
0x239f   : > { %v7109_v28 = vpop.permute.xlu1 %7108  ;;  %v7097_v24 = vpop.permute.xlu0 %7096  ;;  %v7228_v30 = vsel %vm3696_vm7, %v7211_v63, -inf }
0x23a0   : > { %v7167_v26 = vrot.slane %v7097_v24, %v11324_v53  ;;  %7229 = vmax.xlane.f32.xlu0 %v7228_v30  ;;  %v7183_v4 = vrot.slane %v7109_v28, %v11324_v53  ;;  %v7220_v24 = vsel %vm716_vm1, %v7195_v25, %v7191_v9 }
0x23a2   : > { %v7215_v59 = vsel %vm4002_vm9, %v7167_v26, %v7214_v17  ;;  %v7218_v63 = vsel %vm722_vm3, %v7183_v4, %v7217_v42 }
0x23a3   : > { %v7112_v46 = vpop.permute.xlu1 %7111  ;;  %v7121_v20 = vpop.permute.xlu0 %7120  ;;  %v7231_v5 = vsel %vm3696_vm7, %v7215_v59, -inf }
0x23a4   : > { %v7187_v23 = vrot.slane %v7112_v46, %v11324_v53  ;;  %7232 = vmax.xlane.f32.xlu1 %v7231_v5  ;;  %v7199_v14 = vrot.slane %v7121_v20, %v11324_v53 }
0x23a6   : > { %v7219_v60 = vsel %vm4002_vm9, %v7187_v23, %v7218_v63  ;;  %v7221_v48 = vsel %vm719_vm2, %v7199_v14, %v7220_v24 }
0x23a7   : > { %v7127_v18 = vpop.permute.xlu1 %7126  ;;  %v7124_v12 = vpop.permute.xlu0 %7123  ;;  %v7234_v28 = vsel %vm3696_vm7, %v7219_v60, -inf }
0x23a8   : > { %v7207_v30 = vrot.slane %v7127_v18, %v11324_v53  ;;  %v7203_v44 = vrot.slane %v7124_v12, %v11324_v53  ;;  %7235 = vmax.xlane.f32.xlu0 %v7234_v28  ;;  %v14119_v28 = vld [vmem:[#allocation84_spill] sm:$0xff] }
0x23aa   : > { %v7222_v54 = vsel %vm722_vm3, %v7203_v44, %v7221_v48 }
0x23ab   : > { %v7223_v26 = vsel %vm4002_vm9, %v7207_v30, %v7222_v54  ;;  %v12385_v4 = vpop.permute.xlu1 %6744  ;;  %v12387_v17 = vpop.permute.xlu0 %6747 }
0x23ac   : > { %v7237_v45 = vsel %vm3696_vm7, %v7223_v26, -inf }
0x23ad   : > { %7238 = vmax.xlane.f32.xlu0 %v7237_v45 }
0x23af   : > { %v12389_v59 = vpop.permute.xlu1 %6759  ;;  %v12391_v50 = vpop.permute.xlu0 %6750 }
0x23b3   : > { %v12393_v46 = vpop.permute.xlu1 %6762  ;;  %v12395_v20 = vpop.permute.xlu0 %6774 }
0x23b7   : > { %v12397_v5 = vpop.permute.xlu1 %6765  ;;  %v12399_v42 = vpop.permute.xlu0 %6753 }
0x23bb   : > { %v12401_v25 = vpop.permute.xlu1 %6777  ;;  %v12403_v23 = vpop.permute.xlu0 %6780 }
0x23bf   : > { %v12405_v14 = vpop.permute.xlu1 %6768  ;;  %v12407_v63 = vpop.permute.xlu0 %6792 }
0x23c0   : > { %14117 = vst [vmem:[#allocation83_spill] sm:$0xff] %v12407_v63 }
0x23c3   : > { %v12409_v9 = vpop.permute.xlu1 %6789  ;;  %v12411_v60 = vpop.permute.xlu0 %6771 }
0x23c4   : > { %14118 = vst [vmem:[#allocation113_spill] sm:$0xff] %v12409_v9 }
0x23c7   : > { %v12413_v18 = vpop.permute.xlu1 %6756 }
0x242d   : > { %v12415_v12 = vpop.xlane.xlu0 %7229 }
0x242e   : > { %v7632_v24 = vadd.f32 %v14119_v28, %v12415_v12 }
0x2430   : > { %v12420_v30 = vadd.f32 %v7632_v24, %v11228_v35  ;;  %v12423_v44 = vadd.f32 %v7632_v24, %v11226_v55  ;;  %v12447_v11 = vadd.f32 %v7632_v24, %v11236_v36 }
0x2431   : > { %v12425_v48 = vpop.xlane.xlu1 %7232 }
0x2432   : > { %14120 = vst [vmem:[#allocation84_spill] sm:$0xff] %v12423_v44  ;;  %v7633_v54 = vadd.f32 %v11896_v41, %v12425_v48  ;;  %7713 = vperm.xlu1 %9163, %v12420_v30   ;;  %7710 = vperm.xlu0 %9164, %v12423_v44   ;;  %14124 = vst [vmem:[#allocation85_spill] sm:$0xff] %v12447_v11 }
0x2434   : > { %v12432_v26 = vadd.f32 %v7633_v54, %v11228_v35  ;;  %v12435_v45 = vadd.f32 %v7633_v54, %v11226_v55  ;;  %v12444_v41 = vadd.f32 %v7633_v54, %v11236_v36  ;;  %v12464_v44 = vadd.f32 %v7633_v54, %v11254_v13 }
0x2435   : > { %v12437_v28 = vpop.xlane.xlu0 %7235 }
0x2436   : > { %14121 = vst [vmem:[#allocation114_spill] sm:$0xff] %v12432_v26  ;;  %14122 = vst [vmem:[#allocation115_spill] sm:$0xff] %v12435_v45  ;;  %7728 = vperm.xlu1 %9163, %v12432_v26   ;;  %7725 = vperm.xlu0 %9164, %v12435_v45   ;;  %v7634_v37 = vadd.f32 %v14123_v6, %v12437_v28  ;;  %v14126_v6 = vld [vmem:[#allocation86_spill] sm:$0xff] }
0x2438   : > { %v12452_v57 = vadd.f32 %v7634_v37, %v11228_v35  ;;  %v12455_v0 = vadd.f32 %v7634_v37, %v11226_v55  ;;  %v12472_v63 = vadd.f32 %v7634_v37, %v11236_v36 }
0x243a   : > { %7731 = vperm.xlu1 %9163, %v12444_v41   ;;  %7716 = vperm.xlu0 %9164, %v12447_v11   ;;  %14125 = vst [vmem:[#allocation116_spill] sm:$0xff] %v12455_v0  ;;  %v12457_v26 = vpop.xlane.xlu0 %7238  ;;  %v12467_v11 = vadd.f32 %v7632_v24, %v11254_v13 }
0x243b   : > { %v7635_v45 = vadd.f32 %v14126_v6, %v12457_v26 }
0x243c   : > { %14127 = vst [vmem:[#allocation86_spill] sm:$0xff] %v12467_v11 }
0x243d   : > { %v12475_v9 = vadd.f32 %v7635_v45, %v11226_v55  ;;  %v12480_v6 = vadd.f32 %v7635_v45, %v11228_v35  ;;  %v12491_v55 = vadd.f32 %v7634_v37, %v11254_v13  ;;  %v12496_v35 = vadd.f32 %v7635_v45, %v11236_v36 }
0x243e   : > { %7743 = vperm.xlu1 %9163, %v12452_v57   ;;  %7740 = vperm.xlu0 %9164, %v12455_v0   ;;  %v12483_v0 = vadd.f32 %v7632_v24, %v11280_v8  ;;  %v12499_v24 = vadd.f32 %v7634_v37, %v11280_v8  ;;  %v6830_v36 = vrot.slane %v12393_v46, %v11324_v53 }
0x243f   : > { %14128 = vst [vmem:[#allocation117_spill] sm:$0xff] %v12480_v6  ;;  %14130 = vst [vmem:[#allocation119_spill] sm:$0xff] %v12496_v35  ;;  %v6834_v37 = vrot.slane %v12397_v5, %v11324_v53  ;;  %v6810_v46 = vrot.slane %v12387_v17, %v11324_v53  ;;  %v6814_v5 = vrot.slane %v12391_v50, %v11324_v53 }
0x2442   : > { %7734 = vperm.xlu1 %9163, %v12464_v44   ;;  %7719 = vperm.xlu0 %9164, %v12467_v11   ;;  %v12488_v11 = vadd.f32 %v7633_v54, %v11280_v8  ;;  %v12504_v54 = vadd.f32 %v7635_v45, %v11254_v13  ;;  %v6838_v13 = vrot.slane %v12405_v14, %v11324_v53 }
0x2443   : > { %v6818_v14 = vrot.slane %v12399_v42, %v11324_v53 }
0x2444   : > { %14129 = vst [vmem:[#allocation118_spill] sm:$0xff] %v12488_v11  ;;  %14131 = vst [vmem:[#allocation120_spill] sm:$0xff] %v12504_v54 }
0x2446   : > { %7746 = vperm.xlu0 %9164, %v12472_v63   ;;  %7755 = vperm.xlu1 %9163, %v12475_v9  }
0x244a   : > { %7758 = vperm.xlu0 %9164, %v12480_v6   ;;  %7722 = vperm.xlu1 %9163, %v12483_v0   ;;  %v12507_v6 = vadd.f32 %v7635_v45, %v11280_v8  ;;  %v6842_v8 = vrot.slane %v12411_v60, %v11324_v53 }
0x244e   : > { %7737 = vperm.xlu0 %9164, %v12488_v11   ;;  %7749 = vperm.xlu1 %9163, %v12491_v55  }
0x2452   : > { %7761 = vperm.xlu0 %9164, %v12496_v35   ;;  %7752 = vperm.xlu1 %9163, %v12499_v24   ;;  %v6826_v35 = vrot.slane %v12389_v59, %v11324_v53 }
0x2454   : > { %v6887_v45 = vsel %vm716_vm1, %v6830_v36, %v6826_v35  ;;  %v6822_v35 = vrot.slane %v12413_v18, %v11324_v53 }
0x2455   : > { %v6888_v11 = vsel %vm719_vm2, %v6834_v37, %v6887_v45  ;;  %v6658_v45 = vrot.slane %v12211_v52, %v11161_v10 }
0x2456   : > { %7764 = vperm.xlu0 %9164, %v12504_v54   ;;  %7767 = vperm.xlu1 %9163, %v12507_v6   ;;  %v6806_v54 = vrot.slane %v12385_v4, %v11324_v53  ;;  %v6889_v59 = vsel %vm722_vm3, %v6838_v13, %v6888_v11 }
0x2457   : > { %v6890_v60 = vsel %vm4002_vm9, %v6842_v8, %v6889_v59  ;;  %v6674_v8 = vrot.slane %v12231_v1, %v11060_v62  ;;  %v6678_v59 = vrot.slane %v12231_v1, %v11161_v10 }
0x2458   : > { %v6883_v4 = vsel %vm716_vm1, %v6810_v46, %v6806_v54  ;;  %v12538_v17 = vsel %vm3696_vm7, %v6890_v60, 2147483647  ;;  %v14132_v46 = vld [vmem:[#allocation97_spill] sm:$0xff] }
0x2459   : > { %v6884_v36 = vsel %vm719_vm2, %v6814_v5, %v6883_v4  ;;  %v6916_v11 = vshra.s32 %v12538_v17, 16  ;;  %vm6720_vm0 = vcmp.eq.f32.partialorder %v14132_v46, %v6674_v8  ;;  %v14133_v5 = vld [vmem:[#allocation96_spill] sm:$0xff]  ;;  %v7247_v4 = vrot.slane %v12415_v12, %v11008_v34 }
0x245a   : > { %v6885_v37 = vsel %vm722_vm3, %v6818_v14, %v6884_v36  ;;  %vm6716_vm4 = vcmp.eq.f32.partialorder %v14133_v5, %v6658_v45  ;;  %v6662_v14 = vrot.slane %v12211_v52, %v11063_v16  ;;  %v6740_v60 = vsel %vm6720_vm0, %v11823_v15, 5  ;;  %v14134_v36 = vld [vmem:[#allocation99_spill] sm:$0xff] }
0x245b   : > { %v6886_v50 = vsel %vm4002_vm9, %v6822_v35, %v6885_v37  ;;  %v12546_v13 = vcvt.s32.f32 %v6916_v11  ;;  %v6736_v35 = vsel %vm6716_vm4, %v11823_v15, 5  ;;  %vm6721_vm5 = vcmp.eq.f32.partialorder %v14134_v36, %v6678_v59  ;;  %v14135_v37 = vld [vmem:[#allocation98_spill] sm:$0xff] }
0x245c   : > { %v12544_v42 = vsel %vm3696_vm7, %v6886_v50, 2147483647  ;;  %vm6717_vm8 = vcmp.eq.f32.partialorder %v14135_v37, %v6662_v14  ;;  %v7251_v50 = vrot.slane %v12415_v12, %v11047_v39  ;;  %v6741_v11 = vsel %vm6721_vm5, %v11823_v15, 5 }
0x245d   : > { %v6901_v18 = vshra.s32 %v12544_v42, 16  ;;  %v6737_v52 = vsel %vm6717_vm8, %v11823_v15, 5  ;;  %vm7344_vm10 = vcmp.eq.f32.partialorder %v12201_v61, %v7247_v4  ;;  %v7267_v8 = vrot.slane %v12425_v48, %v11008_v34 }
0x245e   : > { %vm7345_vm11 = vcmp.eq.f32.partialorder %v12198_v3, %v7251_v50  ;;  %v7364_v45 = vsel %vm7344_vm10, %v11823_v15, 5  ;;  %v7255_v5 = vrot.slane %v12415_v12, %v11060_v62  ;;  %v7275_v3 = vrot.slane %v12425_v48, %v11060_v62 }
0x245f   : > { %v12550_v54 = vcvt.s32.f32 %v6901_v18  ;;  %v7271_v18 = vrot.slane %v12425_v48, %v11047_v39  ;;  %v7365_v46 = vsel %vm7345_vm11, %v11823_v15, 5  ;;  %vm7349_vm13 = vcmp.eq.f32.partialorder %v12209_v58, %v7267_v8 }
0x2460   : > { %v7369_v59 = vsel %vm7349_vm13, %v11823_v15, 5  ;;  %vm7346_vm14 = vcmp.eq.f32.partialorder %v12221_v19, %v7255_v5  ;;  %vm7351_vm15 = vcmp.eq.f32.partialorder %v12218_v56, %v7275_v3  ;;  %v7291_v14 = vrot.slane %v12437_v28, %v11047_v39 }
0x2461   : > { %vm7350_vm12 = vcmp.eq.f32.partialorder %v12206_v51, %v7271_v18  ;;  %v7287_v51 = vrot.slane %v12437_v28, %v11008_v34  ;;  %v7371_v58 = vsel %vm7351_vm15, %v11823_v15, 5  ;;  %v7259_v56 = vrot.slane %v12415_v12, %v11161_v10 }
0x2462   : > { %v7370_v61 = vsel %vm7350_vm12, %v11823_v15, 5  ;;  %vm7355_vm0 = vcmp.eq.f32.partialorder %v12226_v27, %v7291_v14  ;;  %v7295_v36 = vrot.slane %v12437_v28, %v11060_v62  ;;  %v7307_v27 = vrot.slane %v12457_v26, %v11008_v34 }
0x2463   : > { %vm7354_vm4 = vcmp.eq.f32.partialorder %v12229_v43, %v7287_v51  ;;  %v7375_v19 = vsel %vm7355_vm0, %v11823_v15, 5  ;;  %vm7347_vm8 = vcmp.eq.f32.partialorder %v12241_v22, %v7259_v56  ;;  %v7263_v50 = vrot.slane %v12415_v12, %v11063_v16 }
0x2464   : > { %v7374_v4 = vsel %vm7354_vm4, %v11823_v15, 5  ;;  %v7367_v37 = vsel %vm7347_vm8, %v11823_v15, 5  ;;  %vm7356_vm10 = vcmp.eq.f32.partialorder %v12246_v21, %v7295_v36  ;;  %vm7359_vm11 = vcmp.eq.f32.partialorder %v12249_v2, %v7307_v27 }
0x2465   : > { %v7376_v22 = vsel %vm7356_vm10, %v11823_v15, 5  ;;  %vm7348_vm13 = vcmp.eq.f32.partialorder %v12257_v32, %v7263_v50  ;;  %v7299_v21 = vrot.slane %v12437_v28, %v11161_v10  ;;  %v7319_v8 = vrot.slane %v12457_v26, %v11161_v10 }
0x2466   : > { %v7368_v12 = vsel %vm7348_vm13, %v11823_v15, 5 }
0x2467   : > { %vm7357_vm15 = vcmp.eq.f32.partialorder %v12265_v33, %v7299_v21 }
0x2468   : > { %v7377_v18 = vsel %vm7357_vm15, %v11823_v15, 5 }
0x2475   : > { %6919 = vmin.xlane.f32.xlu0 %v12546_v13 }
0x247a   : > { %6904 = vmin.xlane.f32.xlu1 %v12550_v54 }
0x248b   : > { %6795 = vperm.xlu0 %9164, %v6740_v60   ;;  %6783 = vperm.xlu1 %9163, %v6736_v35   ;;  %v7366_v60 = vsel %vm7346_vm14, %v11823_v15, 5  ;;  %v7279_v35 = vrot.slane %v12425_v48, %v11161_v10 }
0x248d   : > { %vm7352_vm5 = vcmp.eq.f32.partialorder %v12238_v29, %v7279_v35  ;;  %v7311_v29 = vrot.slane %v12457_v26, %v11047_v39 }
0x248e   : > { %v7372_v43 = vsel %vm7352_vm5, %v11823_v15, 5  ;;  %vm7362_vm5 = vcmp.eq.f32.partialorder %v12282_v47, %v7319_v8 }
0x248f   : > { %6798 = vperm.xlu0 %9164, %v6741_v11   ;;  %6786 = vperm.xlu1 %9163, %v6737_v52   ;;  %v7379_v11 = vsel %vm7359_vm11, %v11823_v15, 5  ;;  %v7283_v52 = vrot.slane %v12425_v48, %v11063_v16  ;;  %vm7360_vm12 = vcmp.eq.f32.partialorder %v12254_v31, %v7311_v29  ;;  %v7315_v48 = vrot.slane %v12457_v26, %v11060_v62 }
0x2490   : > { %v7380_v2 = vsel %vm7360_vm12, %v11823_v15, 5  ;;  %v7303_v31 = vrot.slane %v12437_v28, %v11063_v16 }
0x2491   : > { %vm7353_vm14 = vcmp.eq.f32.partialorder %v12262_v7, %v7283_v52  ;;  %vm7361_vm0 = vcmp.eq.f32.partialorder %v12270_v38, %v7315_v48  ;;  %v7323_v7 = vrot.slane %v12457_v26, %v11063_v16  ;;  %v7382_v38 = vsel %vm7362_vm5, %v11823_v15, 5 }
0x2492   : > { %v7373_v32 = vsel %vm7353_vm14, %v11823_v15, 5  ;;  %vm7358_vm4 = vcmp.eq.f32.partialorder %v12273_v40, %v7303_v31  ;;  %v7381_v28 = vsel %vm7361_vm0, %v11823_v15, 5 }
0x2493   : > { %7385 = vperm.xlu0 %9164, %v7364_v45   ;;  %7388 = vperm.xlu1 %9163, %v7365_v46   ;;  %v7378_v46 = vsel %vm7358_vm4, %v11823_v15, 5  ;;  %vm7363_vm8 = vcmp.eq.f32.partialorder %v12285_v49, %v7323_v7 }
0x2494   : > { %v7383_v40 = vsel %vm7363_vm8, %v11823_v15, 5 }
0x2497   : > { %7403 = vperm.xlu0 %9164, %v7370_v61   ;;  %7400 = vperm.xlu1 %9163, %v7369_v59  }
0x249b   : > { %7406 = vperm.xlu0 %9164, %v7371_v58   ;;  %7391 = vperm.xlu1 %9163, %v7366_v60  }
0x249f   : > { %7418 = vperm.xlu0 %9164, %v7375_v19   ;;  %7415 = vperm.xlu1 %9163, %v7374_v4  }
0x24a3   : > { %7409 = vperm.xlu0 %9164, %v7372_v43   ;;  %7394 = vperm.xlu1 %9163, %v7367_v37  }
0x24a7   : > { %7421 = vperm.xlu1 %9163, %v7376_v22   ;;  %7430 = vperm.xlu0 %9164, %v7379_v11  }
0x24ab   : > { %7433 = vperm.xlu1 %9163, %v7380_v2   ;;  %7397 = vperm.xlu0 %9164, %v7368_v12  }
0x24af   : > { %7412 = vperm.xlu1 %9163, %v7373_v32   ;;  %7424 = vperm.xlu0 %9164, %v7377_v18  }
0x24b1   : > { %v7714_v33 = vpop.permute.xlu1 %7713  ;;  %v7711_v45 = vpop.permute.xlu0 %7710 }
0x24b2   : > { %v7776_v49 = vrot.slane %v7714_v33, %v11324_v53  ;;  %v7772_v19 = vrot.slane %v7711_v45, %v11324_v53 }
0x24b3   : > { %7436 = vperm.xlu1 %9163, %v7381_v28   ;;  %7427 = vperm.xlu0 %9164, %v7378_v46  }
0x24b4   : > { %v7849_v37 = vsel %vm716_vm1, %v7776_v49, %v7772_v19 }
0x24b5   : > { %v7729_v5 = vpop.permute.xlu1 %7728  ;;  %v7726_v3 = vpop.permute.xlu0 %7725 }
0x24b6   : > { %v7796_v29 = vrot.slane %v7729_v5, %v11324_v53  ;;  %v7792_v22 = vrot.slane %v7726_v3, %v11324_v53 }
0x24b7   : > { %7439 = vperm.xlu1 %9163, %v7382_v38   ;;  %7442 = vperm.xlu0 %9164, %v7383_v40  }
0x24b8   : > { %v7853_v28 = vsel %vm716_vm1, %v7796_v29, %v7792_v22 }
0x24b9   : > { %v7732_v26 = vpop.permute.xlu1 %7731  ;;  %v7717_v61 = vpop.permute.xlu0 %7716 }
0x24ba   : > { %v7780_v4 = vrot.slane %v7717_v61, %v11324_v53  ;;  %v7800_v21 = vrot.slane %v7732_v26, %v11324_v53 }
0x24bc   : > { %v7850_v2 = vsel %vm719_vm2, %v7780_v4, %v7849_v37  ;;  %v7854_v38 = vsel %vm719_vm2, %v7800_v21, %v7853_v28 }
0x24bd   : > { %v7744_v59 = vpop.permute.xlu1 %7743  ;;  %v7741_v14 = vpop.permute.xlu0 %7740 }
0x24be   : > { %v7816_v11 = vrot.slane %v7744_v59, %v11324_v53  ;;  %v7812_v52 = vrot.slane %v7741_v14, %v11324_v53 }
0x24c0   : > { %v7857_v46 = vsel %vm716_vm1, %v7816_v11, %v7812_v52 }
0x24c1   : > { %v7735_v51 = vpop.permute.xlu1 %7734  ;;  %v7720_v58 = vpop.permute.xlu0 %7719 }
0x24c2   : > { %v7784_v36 = vrot.slane %v7720_v58, %v11324_v53  ;;  %v7804_v48 = vrot.slane %v7735_v51, %v11324_v53 }
0x24c4   : > { %v7851_v8 = vsel %vm722_vm3, %v7784_v36, %v7850_v2  ;;  %v7855_v58 = vsel %vm722_vm3, %v7804_v48, %v7854_v38 }
0x24c5   : > { %v7756_v60 = vpop.permute.xlu1 %7755  ;;  %v7747_v35 = vpop.permute.xlu0 %7746 }
0x24c6   : > { %v7820_v12 = vrot.slane %v7747_v35, %v11324_v53  ;;  %v7832_v40 = vrot.slane %v7756_v60, %v11324_v53 }
0x24c8   : > { %v7858_v26 = vsel %vm719_vm2, %v7820_v12, %v7857_v46 }
0x24c9   : > { %v7723_v56 = vpop.permute.xlu1 %7722  ;;  %v7759_v47 = vpop.permute.xlu0 %7758 }
0x24ca   : > { %v7788_v50 = vrot.slane %v7723_v56, %v11324_v53  ;;  %v7836_v7 = vrot.slane %v7759_v47, %v11324_v53 }
0x24cc   : > { %v7852_v45 = vsel %vm4002_vm9, %v7788_v50, %v7851_v8  ;;  %v7861_v35 = vsel %vm716_vm1, %v7836_v7, %v7832_v40 }
0x24cd   : > { %v7750_v27 = vpop.permute.xlu1 %7749  ;;  %v7738_v43 = vpop.permute.xlu0 %7737  ;;  %v7869_v14 = vsel %vm3696_vm7, %v7852_v45, -inf }
0x24ce   : > { %v7824_v31 = vrot.slane %v7750_v27, %v11324_v53  ;;  %v7808_v5 = vrot.slane %v7738_v43, %v11324_v53 }
0x24d0   : > { %v7859_v51 = vsel %vm722_vm3, %v7824_v31, %v7858_v26  ;;  %v7856_v19 = vsel %vm4002_vm9, %v7808_v5, %v7855_v58 }
0x24d1   : > { %v7753_v32 = vpop.permute.xlu1 %7752  ;;  %v7762_v18 = vpop.permute.xlu0 %7761  ;;  %v7872_v27 = vsel %vm3696_vm7, %v7856_v19, -inf }
0x24d2   : > { %v7828_v33 = vrot.slane %v7753_v32, %v11324_v53  ;;  %v7840_v3 = vrot.slane %v7762_v18, %v11324_v53 }
0x24d4   : > { %v7860_v49 = vsel %vm4002_vm9, %v7828_v33, %v7859_v51  ;;  %v7862_v60 = vsel %vm719_vm2, %v7840_v3, %v7861_v35 }
0x24d5   : > { %v7768_v61 = vpop.permute.xlu1 %7767  ;;  %v7765_v59 = vpop.permute.xlu0 %7764  ;;  %v7875_v36 = vsel %vm3696_vm7, %v7860_v49, -inf }
0x24d6   : > { %v7848_v56 = vrot.slane %v7768_v61, %v11324_v53  ;;  %v7844_v47 = vrot.slane %v7765_v59, %v11324_v53  ;;  %7870 = vmax.xlane.f32.xlu0 %v7869_v14 }
0x24d8   : > { %v7863_v4 = vsel %vm722_vm3, %v7844_v47, %v7862_v60 }
0x24d9   : > { %v7864_v43 = vsel %vm4002_vm9, %v7848_v56, %v7863_v4 }
0x24da   : > { %7876 = vmax.xlane.f32.xlu0 %v7875_v36  ;;  %v7878_v37 = vsel %vm3696_vm7, %v7864_v43, -inf }
0x24db   : > { %7873 = vmax.xlane.f32.xlu1 %v7872_v27 }
0x24de   : > { %7879 = vmax.xlane.f32.xlu0 %v7878_v37 }
0x2502   : > { %v12689_v50 = vpop.xlane.xlu0 %6919 }
0x2507   : > { %v12691_v29 = vpop.xlane.xlu1 %6904 }
0x250a   : > { %v12693_v22 = vpop.permute.xlu0 %6795 }
0x250b   : > { %v12695_v11 = vpop.permute.xlu1 %6783 }
0x250e   : > { %v12697_v52 = vpop.permute.xlu0 %6798 }
0x250f   : > { %v12699_v21 = vpop.permute.xlu1 %6786 }
0x2512   : > { %v7386_v2 = vpop.permute.xlu0 %7385 }
0x2513   : > { %v7389_v12 = vpop.permute.xlu1 %7388  ;;  %v7447_v28 = vrot.slane %v7386_v2, %v11324_v53 }
0x2514   : > { %v7451_v46 = vrot.slane %v7389_v12, %v11324_v53 }
0x2516   : > { %v7404_v48 = vpop.permute.xlu0 %7403  ;;  %v7524_v26 = vsel %vm716_vm1, %v7451_v46, %v7447_v28 }
0x2517   : > { %v7401_v31 = vpop.permute.xlu1 %7400  ;;  %v7471_v59 = vrot.slane %v7404_v48, %v11324_v53 }
0x2518   : > { %v7467_v14 = vrot.slane %v7401_v31, %v11324_v53 }
0x251a   : > { %v7407_v32 = vpop.permute.xlu0 %7406  ;;  %v7528_v43 = vsel %vm716_vm1, %v7471_v59, %v7467_v14 }
0x251b   : > { %v7392_v18 = vpop.permute.xlu1 %7391  ;;  %v7475_v56 = vrot.slane %v7407_v32, %v11324_v53 }
0x251c   : > { %v7455_v3 = vrot.slane %v7392_v18, %v11324_v53 }
0x251d   : > { %v7529_v48 = vsel %vm719_vm2, %v7475_v56, %v7528_v43 }
0x251e   : > { %v7419_v8 = vpop.permute.xlu0 %7418  ;;  %v7525_v51 = vsel %vm719_vm2, %v7455_v3, %v7524_v26 }
0x251f   : > { %v7416_v7 = vpop.permute.xlu1 %7415  ;;  %v7491_v19 = vrot.slane %v7419_v8, %v11324_v53 }
0x2520   : > { %v7487_v4 = vrot.slane %v7416_v7, %v11324_v53 }
0x2522   : > { %v7410_v33 = vpop.permute.xlu0 %7409  ;;  %v7532_v7 = vsel %vm716_vm1, %v7491_v19, %v7487_v4 }
0x2523   : > { %v7395_v45 = vpop.permute.xlu1 %7394  ;;  %v7479_v49 = vrot.slane %v7410_v33, %v11324_v53 }
0x2524   : > { %v7459_v40 = vrot.slane %v7395_v45, %v11324_v53 }
0x2525   : > { %v7530_v18 = vsel %vm722_vm3, %v7479_v49, %v7529_v48 }
0x2526   : > { %v7431_v5 = vpop.permute.xlu0 %7430  ;;  %v7526_v47 = vsel %vm722_vm3, %v7459_v40, %v7525_v51 }
0x2527   : > { %v7422_v38 = vpop.permute.xlu1 %7421  ;;  %v7507_v51 = vrot.slane %v7431_v5, %v11324_v53 }
0x2528   : > { %v7495_v37 = vrot.slane %v7422_v38, %v11324_v53 }
0x252a   : > { %v7398_v61 = vpop.permute.xlu0 %7397  ;;  %v7533_v28 = vsel %vm719_vm2, %v7495_v37, %v7532_v7  ;;  %v14137_v7 = vld [vmem:[#allocation91_spill] sm:$0xff] }
0x252b   : > { %v7463_v58 = vrot.slane %v7398_v61, %v11324_v53  ;;  %v7434_v35 = vpop.permute.xlu1 %7433 }
0x252c   : > { %v7511_v40 = vrot.slane %v7434_v35, %v11324_v53 }
0x252d   : > { %v7527_v60 = vsel %vm4002_vm9, %v7463_v58, %v7526_v47 }
0x252e   : > { %v7425_v36 = vpop.permute.xlu0 %7424  ;;  %v12717_v27 = vsel %vm3696_vm7, %v7527_v60, 2147483647  ;;  %v7536_v35 = vsel %vm716_vm1, %v7511_v40, %v7507_v51  ;;  %v14139_v40 = vld [vmem:[#allocation90_spill] sm:$0xff]  ;;  %v14140_v51 = vld [vmem:[#allocation89_spill] sm:$0xff] }
0x252f   : > { %v7413_v2 = vpop.permute.xlu1 %7412  ;;  %v7542_v12 = vshra.s32 %v12717_v27, 16  ;;  %v7499_v31 = vrot.slane %v7425_v36, %v11324_v53 }
0x2530   : > { %v7483_v32 = vrot.slane %v7413_v2, %v11324_v53 }
0x2531   : > { %v12726_v8 = vcvt.s32.f32 %v7542_v12  ;;  %v7534_v26 = vsel %vm722_vm3, %v7499_v31, %v7533_v28 }
0x2532   : > { %v7531_v33 = vsel %vm4002_vm9, %v7483_v32, %v7530_v18  ;;  %v7428_v45 = vpop.permute.xlu0 %7427  ;;  %v14136_v32 = vld [vmem:[#allocation87_spill] sm:$0xff] }
0x2533   : > { %v7503_v46 = vrot.slane %v7428_v45, %v11324_v53  ;;  %v7437_v3 = vpop.permute.xlu1 %7436  ;;  %7545 = vmin.xlane.f32.xlu1 %v12726_v8  ;;  %v12734_v38 = vsel %vm3696_vm7, %v7531_v33, 2147483647 }
0x2534   : > { %v7557_v61 = vshra.s32 %v12734_v38, 16  ;;  %v7515_v14 = vrot.slane %v7437_v3, %v11324_v53 }
0x2535   : > { %v7535_v59 = vsel %vm4002_vm9, %v7503_v46, %v7534_v26  ;;  %v14138_v46 = vld [vmem:[#allocation88_spill] sm:$0xff] }
0x2536   : > { %v7443_v58 = vpop.permute.xlu0 %7442  ;;  %v12742_v56 = vcvt.s32.f32 %v7557_v61  ;;  %v12745_v47 = vsel %vm3696_vm7, %v7535_v59, 2147483647  ;;  %v7537_v4 = vsel %vm719_vm2, %v7515_v14, %v7536_v35  ;;  %v6846_v35 = vrot.slane %v12395_v20, %v11324_v53 }
0x2537   : > { %v7440_v49 = vpop.permute.xlu1 %7439  ;;  %v7572_v60 = vshra.s32 %v12745_v47, 16  ;;  %v7523_v36 = vrot.slane %v7443_v58, %v11324_v53 }
0x2538   : > { %v7519_v19 = vrot.slane %v7440_v49, %v11324_v53  ;;  %7560 = vmin.xlane.f32.xlu0 %v12742_v56 }
0x2539   : > { %v12753_v5 = vcvt.s32.f32 %v7572_v60  ;;  %v6850_v60 = vrot.slane %v12401_v25, %v11324_v53 }
0x253a   : > { %v7538_v43 = vsel %vm722_vm3, %v7519_v19, %v7537_v4  ;;  %v6854_v19 = vrot.slane %v12403_v23, %v11324_v53 }
0x253b   : > { %7575 = vmin.xlane.f32.xlu1 %v12753_v5  ;;  %v7539_v37 = vsel %vm4002_vm9, %v7523_v36, %v7538_v43  ;;  %v6891_v4 = vsel %vm716_vm1, %v6850_v60, %v6846_v35  ;;  %v6858_v36 = vrot.slane %v12695_v11, %v11324_v53  ;;  %v6862_v43 = vrot.slane %v12699_v21, %v11324_v53  ;;  %v14142_v21 = vld [vmem:[#allocation92_spill] sm:$0xff]  ;;  %v14146_v35 = vld [vmem:[#allocation63_spill] sm:$0xff] }
0x253c   : > { %v12759_v2 = vsel %vm3696_vm7, %v7539_v37, 2147483647  ;;  %v6892_v37 = vsel %vm719_vm2, %v6854_v19, %v6891_v4  ;;  %v6682_v11 = vrot.slane %v12231_v1, %v11063_v16 }
0x253d   : > { %v7587_v12 = vshra.s32 %v12759_v2, 16 }
0x253f   : > { %v12762_v48 = vcvt.s32.f32 %v7587_v12  ;;  %v6893_v12 = vsel %vm722_vm3, %v6858_v36, %v6892_v37  ;;  %v14147_v36 = vld [vmem:[#allocation65_spill] sm:$0xff] }
0x2540   : > { %v6894_v25 = vsel %vm4002_vm9, %v6862_v43, %v6893_v12  ;;  %v14148_v43 = vld [vmem:[#allocation94_spill] sm:$0xff] }
0x2541   : > { %7590 = vmin.xlane.f32.xlu0 %v12762_v48  ;;  %v6009_v37 = vrot.slane %v14148_v43, %v11047_v39 }
0x2563   : > { %v12765_v31 = vpop.xlane.xlu0 %7870 }
0x2564   : > { %v8273_v18 = vadd.f32 %v14136_v32, %v12765_v31  ;;  %v12812_v32 = vsel %vm3696_vm7, %v6894_v25, 2147483647  ;;  %v14149_v25 = vld [vmem:[#allocation68_spill] sm:$0xff] }
0x2565   : > { %v6931_v20 = vshra.s32 %v12812_v32, 16  ;;  %vm6073_vm15 = vcmp.eq.f32.partialorder %v14149_v25, %v6009_v37 }
0x2566   : > { %v12770_v33 = vadd.f32 %v14137_v7, %v8273_v18  ;;  %v14141_v18 = vld [vmem:[#allocation100_spill] sm:$0xff] }
0x2567   : > { %v12772_v45 = vpop.xlane.xlu0 %7876  ;;  %v12815_v23 = vcvt.s32.f32 %v6931_v20  ;;  %vm6722_vm10 = vcmp.eq.f32.partialorder %v14141_v18, %v6682_v11  ;;  %v6093_v11 = vsel %vm6073_vm15, %v11823_v15, 5  ;;  %v14150_v18 = vld [vmem:[#allocation71_spill] sm:$0xff] }
0x2568   : > { %v12774_v28 = vpop.xlane.xlu1 %7873  ;;  %8295 = vperm.xlu0 %9164, %v12770_v33   ;;  %v8275_v3 = vadd.f32 %v14138_v46, %v12772_v45  ;;  %v6742_v46 = vsel %vm6722_vm10, %v11823_v15, 5 }
0x2569   : > { %v8274_v26 = vadd.f32 %v14139_v40, %v12774_v28  ;;  %v14144_v40 = vld [vmem:[#allocation93_spill] sm:$0xff] }
0x256a   : > { %v12782_v61 = vadd.f32 %v14137_v7, %v8275_v3  ;;  %v14143_v3 = vld [vmem:[#allocation61_spill] sm:$0xff]  ;;  %v5989_v1 = vrot.slane %v14144_v40, %v11047_v39  ;;  %v5993_v19 = vrot.slane %v14144_v40, %v11060_v62  ;;  %v5997_v20 = vrot.slane %v14144_v40, %v11161_v10 }
0x256b   : > { %v12784_v59 = vpop.xlane.xlu0 %7879  ;;  %v12787_v14 = vadd.f32 %v14137_v7, %v8274_v26  ;;  %v5985_v26 = vrot.slane %v14144_v40, %v11008_v34 }
0x256c   : > { %8301 = vperm.xlu0 %9164, %v12782_v61   ;;  %v8276_v58 = vadd.f32 %v14140_v51, %v12784_v59  ;;  %vm6068_vm13 = vcmp.eq.f32.partialorder %v14146_v35, %v5989_v1  ;;  %vm6069_vm14 = vcmp.eq.f32.partialorder %v14147_v36, %v5993_v19  ;;  %vm6070_vm0 = vcmp.eq.f32.partialorder %v14150_v18, %v5997_v20 }
0x256d   : > { %8298 = vperm.xlu1 %9163, %v12787_v14   ;;  %v6088_v4 = vsel %vm6068_vm13, %v11823_v15, 5  ;;  %v6089_v12 = vsel %vm6069_vm14, %v11823_v15, 5  ;;  %v7920_v1 = vrot.slane %v12774_v28, %v11161_v10  ;;  %v7904_v35 = vrot.slane %v12765_v31, %v11063_v16 }
0x256e   : > { %v12794_v49 = vadd.f32 %v14137_v7, %v8276_v58  ;;  %v5965_v7 = vrot.slane %v14142_v21, %v11008_v34  ;;  %v14145_v58 = vld [vmem:[#allocation64_spill] sm:$0xff]  ;;  %v7940_v19 = vrot.slane %v12772_v45, %v11161_v10  ;;  %v7964_v36 = vrot.slane %v12784_v59, %v11063_v16 }
0x256f   : > { %vm6067_vm12 = vcmp.eq.f32.partialorder %v14145_v58, %v5985_v26  ;;  %vm7993_vm10 = vcmp.eq.f32.partialorder %v12464_v44, %v7920_v1 }
0x2570   : > { %vm6062_vm11 = vcmp.eq.f32.partialorder %v14143_v3, %v5965_v7  ;;  %v6087_v60 = vsel %vm6067_vm12, %v11823_v15, 5  ;;  %v7892_v7 = vrot.slane %v12765_v31, %v11047_v39  ;;  %v7916_v3 = vrot.slane %v12774_v28, %v11060_v62 }
0x2571   : > { %8304 = vperm.xlu1 %9163, %v12794_v49   ;;  %v6082_v51 = vsel %vm6062_vm11, %v11823_v15, 5  ;;  %vm7989_vm12 = vcmp.eq.f32.partialorder %v12483_v0, %v7904_v35  ;;  %vm7998_vm13 = vcmp.eq.f32.partialorder %v12491_v55, %v7940_v19  ;;  %vm8004_vm15 = vcmp.eq.f32.partialorder %v12507_v6, %v7964_v36  ;;  %v14154_v36 = vld [vmem:[#allocation66_spill] sm:$0xff] }
0x2572   : > { %vm7986_vm4 = vcmp.eq.f32.partialorder %v12420_v30, %v7892_v7  ;;  %vm7992_vm5 = vcmp.eq.f32.partialorder %v12444_v41, %v7916_v3  ;;  %v8013_v41 = vsel %vm7993_vm10, %v11823_v15, 5  ;;  %v8009_v44 = vsel %vm7989_vm12, %v11823_v15, 5  ;;  %v14151_v7 = vld [vmem:[#allocation113_spill] sm:$0xff] }
0x2573   : > { %v8006_v26 = vsel %vm7986_vm4, %v11823_v15, 5  ;;  %v8012_v58 = vsel %vm7992_vm5, %v11823_v15, 5  ;;  %v8024_v37 = vsel %vm8004_vm15, %v11823_v15, 5 }
0x2595   : > { %6934 = vmin.xlane.f32.xlu1 %v12815_v23 }
0x25a6   : > { %6801 = vperm.xlu1 %9163, %v6742_v46   ;;  %v6090_v46 = vsel %vm6070_vm0, %v11823_v15, 5 }
0x25aa   : > { %6103 = vperm.xlu1 %9163, %v6082_v51   ;;  %v7932_v51 = vrot.slane %v12772_v45, %v11047_v39 }
0x25ac   : > { %vm7996_vm8 = vcmp.eq.f32.partialorder %v12452_v57, %v7932_v51  ;;  %v6878_v51 = vrot.slane %v12697_v52, %v11324_v53  ;;  %v5969_v52 = vrot.slane %v14142_v21, %v11047_v39 }
0x25ad   : > { %v8016_v30 = vsel %vm7996_vm8, %v11823_v15, 5 }
0x25ae   : > { %6118 = vperm.xlu1 %9163, %v6087_v60   ;;  %v7948_v60 = vrot.slane %v12784_v59, %v11008_v34 }
0x25b0   : > { %vm8000_vm11 = vcmp.eq.f32.partialorder %v12475_v9, %v7948_v60  ;;  %v8018_v9 = vsel %vm7998_vm13, %v11823_v15, 5 }
0x25b1   : > { %v8020_v57 = vsel %vm8000_vm11, %v11823_v15, 5 }
0x25b2   : > { %6121 = vperm.xlu1 %9163, %v6088_v4   ;;  %v7944_v4 = vrot.slane %v12772_v45, %v11063_v16 }
0x25b4   : > { %vm7999_vm14 = vcmp.eq.f32.partialorder %v12499_v24, %v7944_v4  ;;  %v5973_v4 = vrot.slane %v14142_v21, %v11060_v62 }
0x25b5   : > { %v8019_v0 = vsel %vm7999_vm14, %v11823_v15, 5 }
0x25b6   : > { %6124 = vperm.xlu1 %9163, %v6089_v12   ;;  %v7556_v12 = vand.u32 65535, %v12734_v38  ;;  %v6874_v38 = vrot.slane %v12693_v22, %v11324_v53  ;;  %vm6064_vm5 = vcmp.eq.f32.partialorder %v14154_v36, %v5973_v4  ;;  %v14161_v4 = vld [vmem:[#allocation85_spill] sm:$0xff] }
0x25b8   : > { %v7558_v25 = vcvt.s32.f32 %v7556_v12  ;;  %v14155_v12 = vld [vmem:[#allocation69_spill] sm:$0xff] }
0x25ba   : > { %6136 = vperm.xlu1 %9163, %v6093_v11  }
0x25be   : > { %6127 = vperm.xlu1 %9163, %v6090_v46   ;;  %v6866_v46 = vrot.slane %v14151_v7, %v11324_v53  ;;  %v14156_v7 = vld [vmem:[#allocation72_spill] sm:$0xff] }
0x25c0   : > { %v12887_v20 = vpop.xlane.xlu1 %7545 }
0x25c2   : > { %8029 = vperm.xlu1 %9163, %v8006_v26  }
0x25c5   : > { %v12882_v55 = vpop.xlane.xlu0 %7560 }
0x25c6   : > { %8047 = vperm.xlu1 %9163, %v8012_v58   ;;  %vm7562_vm0 = vcmp.eq.f32.partialorder %v12742_v56, %v12882_v55  ;;  %v14152_v56 = vld [vmem:[#allocation83_spill] sm:$0xff] }
0x25c7   : > { %v7563_v24 = vsel %vm7562_vm0, %v7558_v25, inf  ;;  %v6870_v26 = vrot.slane %v14152_v56, %v11324_v53  ;;  %v5977_v25 = vrot.slane %v14142_v21, %v11161_v10  ;;  %v14157_v56 = vld [vmem:[#allocation73_spill] sm:$0xff] }
0x25c8   : > { %v12889_v11 = vpop.xlane.xlu1 %7575 }
0x25c9   : > { %v6895_v58 = vsel %vm716_vm1, %v6870_v26, %v6866_v46  ;;  %vm6065_vm10 = vcmp.eq.f32.partialorder %v14156_v7, %v5977_v25  ;;  %v6013_v46 = vrot.slane %v14148_v43, %v11060_v62  ;;  %v7888_v26 = vrot.slane %v12765_v31, %v11008_v34  ;;  %v14163_v25 = vld [vmem:[#allocation86_spill] sm:$0xff] }
0x25ca   : > { %8059 = vperm.xlu1 %9163, %v8016_v30   ;;  %v6896_v30 = vsel %vm719_vm2, %v6874_v38, %v6895_v58  ;;  %v6085_v38 = vsel %vm6065_vm10, %v11823_v15, 5  ;;  %v14158_v58 = vld [vmem:[#allocation84_spill] sm:$0xff] }
0x25cb   : > { %vm6074_vm11 = vcmp.eq.f32.partialorder %v14157_v56, %v6013_v46  ;;  %vm7985_vm12 = vcmp.eq.f32.partialorder %v14158_v58, %v7888_v26  ;;  %v7952_v46 = vrot.slane %v12784_v59, %v11047_v39  ;;  %v7924_v56 = vrot.slane %v12774_v28, %v11063_v16  ;;  %v14166_v58 = vld [vmem:[#allocation119_spill] sm:$0xff] }
0x25ce   : > { %8050 = vperm.xlu1 %9163, %v8013_v41   ;;  %v6897_v41 = vsel %vm722_vm3, %v6878_v51, %v6896_v30  ;;  %v6094_v51 = vsel %vm6074_vm11, %v11823_v15, 5  ;;  %v8005_v30 = vsel %vm7985_vm12, %v11823_v15, 5 }
0x25d2   : > { %8071 = vperm.xlu1 %9163, %v8020_v57  }
0x25d6   : > { %8038 = vperm.xlu1 %9163, %v8009_v44   ;;  %v14153_v44 = vld [vmem:[#allocation60_spill] sm:$0xff] }
0x25d7   : > { %vm6063_vm4 = vcmp.eq.f32.partialorder %v14153_v44, %v5969_v52  ;;  %v7896_v52 = vrot.slane %v12765_v31, %v11060_v62 }
0x25d9   : > { %vm7987_vm15 = vcmp.eq.f32.partialorder %v14161_v4, %v7896_v52 }
0x25da   : > { %8065 = vperm.xlu1 %9163, %v8018_v9   ;;  %v6083_v9 = vsel %vm6063_vm4, %v11823_v15, 5  ;;  %v8007_v36 = vsel %vm7987_vm15, %v11823_v15, 5 }
0x25de   : > { %8068 = vperm.xlu1 %9163, %v8019_v0   ;;  %v6005_v0 = vrot.slane %v14148_v43, %v11008_v34 }
0x25e0   : > { %vm6072_vm8 = vcmp.eq.f32.partialorder %v14155_v12, %v6005_v0  ;;  %v14162_v0 = vld [vmem:[#allocation116_spill] sm:$0xff] }
0x25e2   : > { %8083 = vperm.xlu1 %9163, %v8024_v37   ;;  %v6084_v37 = vsel %vm6064_vm5, %v11823_v15, 5 }
0x25ec   : > { %v12891_v18 = vpop.permute.xlu1 %8298 }
0x25ed   : > { %v8313_v4 = vrot.slane %v12891_v18, %v11324_v53 }
0x25f0   : > { %v12893_v6 = vpop.permute.xlu1 %8304 }
0x2606   : > { %7564 = vmin.xlane.f32.xlu1 %v7563_v24  ;;  %v6092_v24 = vsel %vm6072_vm8, %v11823_v15, 5 }
0x2622   : > { %v12897_v3 = vpop.xlane.xlu1 %6934 }
0x2626   : > { %v6802_v1 = vpop.permute.xlu1 %6801 }
0x2627   : > { %v6882_v60 = vrot.slane %v6802_v1, %v11324_v53  ;;  %v7908_v1 = vrot.slane %v12774_v28, %v11008_v34 }
0x2629   : > { %v6898_v35 = vsel %vm4002_vm9, %v6882_v60, %v6897_v41  ;;  %v14159_v60 = vld [vmem:[#allocation115_spill] sm:$0xff]  ;;  %v7912_v41 = vrot.slane %v12774_v28, %v11047_v39  ;;  %v14167_v28 = vld [vmem:[#allocation120_spill] sm:$0xff] }
0x262a   : > { %v12911_v57 = vsel %vm3696_vm7, %v6898_v35, 2147483647  ;;  %vm7990_vm13 = vcmp.eq.f32.partialorder %v14159_v60, %v7908_v1  ;;  %v7960_v1 = vrot.slane %v12784_v59, %v11161_v10 }
0x262b   : > { %v6946_v22 = vshra.s32 %v12911_v57, 16  ;;  %v8010_v35 = vsel %vm7990_vm13, %v11823_v15, 5  ;;  %vm7547_vm13 = vcmp.eq.f32.partialorder %v12726_v8, %v12887_v20 }
0x262c   : > { %vm8003_vm12 = vcmp.eq.f32.partialorder %v14167_v28, %v7960_v1 }
0x262d   : > { %v12914_v19 = vcvt.s32.f32 %v6946_v22  ;;  %v14160_v22 = vld [vmem:[#allocation114_spill] sm:$0xff]  ;;  %v8023_v60 = vsel %vm8003_vm12, %v11823_v15, 5 }
0x262e   : > { %vm7991_vm14 = vcmp.eq.f32.partialorder %v14160_v22, %v7912_v41  ;;  %v12981_v41 = vpop.xlane.xlu0 %7590 }
0x262f   : > { %6949 = vmin.xlane.f32.xlu0 %v12914_v19  ;;  %v8011_v44 = vsel %vm7991_vm14, %v11823_v15, 5  ;;  %14168 = vst [vmem:[#allocation97_spill] sm:$0xff] %v12981_v41  ;;  %vm7577_vm14 = vcmp.eq.f32.partialorder %v12753_v5, %v12889_v11  ;;  %vm7592_vm15 = vcmp.eq.f32.partialorder %v12762_v48, %v12981_v41 }
0x2632   : > { %v8296_v22 = vpop.permute.xlu0 %8295 }
0x2645   : > { %6106 = vperm.xlu0 %9164, %v6083_v9   ;;  %v7928_v9 = vrot.slane %v12772_v45, %v11008_v34 }
0x2647   : > { %vm7995_vm0 = vcmp.eq.f32.partialorder %v14162_v0, %v7928_v9  ;;  %v8302_v0 = vpop.permute.xlu0 %8301 }
0x2648   : > { %v8015_v12 = vsel %vm7995_vm0, %v11823_v15, 5  ;;  %v8317_v5 = vrot.slane %v8302_v0, %v11324_v53  ;;  %vm8326_vm0 = vcmask 35840  }
0x2649   : > { %6109 = vperm.xlu0 %9164, %v6084_v37   ;;  %v7900_v37 = vrot.slane %v12765_v31, %v11161_v10  ;;  %v14164_v31 = vld [vmem:[#allocation117_spill] sm:$0xff] }
0x264a   : > { %vm8001_vm8 = vcmp.eq.f32.partialorder %v14164_v31, %v7952_v46 }
0x264b   : > { %vm7988_vm4 = vcmp.eq.f32.partialorder %v14163_v25, %v7900_v37  ;;  %v8021_v26 = vsel %vm8001_vm8, %v11823_v15, 5  ;;  %v12993_v37 = vpop.permute.xlu1 %6103 }
0x264c   : > { %v8008_v7 = vsel %vm7988_vm4, %v11823_v15, 5  ;;  %vm8665_vm4 = vcmask 0  }
0x264d   : > { %6133 = vperm.xlu0 %9164, %v6092_v24   ;;  %v7936_v24 = vrot.slane %v12772_v45, %v11060_v62  ;;  %v14165_v45 = vld [vmem:[#allocation118_spill] sm:$0xff] }
0x264e   : > { %vm7994_vm10 = vcmp.eq.f32.partialorder %v14165_v45, %v7924_v56 }
0x264f   : > { %vm7997_vm5 = vcmp.eq.f32.partialorder %v12472_v63, %v7936_v24  ;;  %v8014_v63 = vsel %vm7994_vm10, %v11823_v15, 5  ;;  %v13002_v24 = vpop.permute.xlu1 %6118 }
0x2651   : > { %6112 = vperm.xlu0 %9164, %v6085_v38   ;;  %v8017_v38 = vsel %vm7997_vm5, %v11823_v15, 5 }
0x2655   : > { %6139 = vperm.xlu0 %9164, %v6094_v51   ;;  %v7956_v51 = vrot.slane %v12784_v59, %v11060_v62 }
0x2657   : > { %vm8002_vm11 = vcmp.eq.f32.partialorder %v14166_v58, %v7956_v51 }
0x2659   : > { %8026 = vperm.xlu0 %9164, %v8005_v30   ;;  %v8022_v30 = vsel %vm8002_vm11, %v11823_v15, 5 }
0x265d   : > { %8041 = vperm.xlu0 %9164, %v8010_v35   ;;  %v7541_v35 = vand.u32 65535, %v12717_v27  ;;  %v8309_v27 = vrot.slane %v8296_v22, %v11324_v53 }
0x265f   : > { %v7543_v52 = vcvt.s32.f32 %v7541_v35 }
0x2661   : > { %8044 = vperm.xlu0 %9164, %v8011_v44   ;;  %v7571_v44 = vand.u32 65535, %v12745_v47  ;;  %v7548_v59 = vsel %vm7547_vm13, %v7543_v52, inf  ;;  %v8321_v47 = vrot.slane %v12893_v6, %v11324_v53  ;;  %v13006_v6 = vpop.permute.xlu1 %6121 }
0x2663   : > { %v7573_v9 = vcvt.s32.f32 %v7571_v44 }
0x2665   : > { %8032 = vperm.xlu0 %9164, %v8007_v36   ;;  %v7586_v36 = vand.u32 65535, %v12759_v2  ;;  %v7578_v8 = vsel %vm7577_vm14, %v7573_v9, inf }
0x2667   : > { %v7588_v18 = vcvt.s32.f32 %v7586_v36 }
0x2669   : > { %8056 = vperm.xlu0 %9164, %v8015_v12   ;;  %v8322_v12 = vsel %vm716_vm1, %v8313_v4, %v8309_v27  ;;  %v7593_v25 = vsel %vm7592_vm15, %v7588_v18, inf }
0x266a   : > { %v8323_v2 = vsel %vm719_vm2, %v8317_v5, %v8322_v12 }
0x266d   : > { %8035 = vperm.xlu0 %9164, %v8008_v7   ;;  %v8324_v7 = vsel %vm722_vm3, %v8321_v47, %v8323_v2 }
0x266e   : > { %v8327_v46 = vsel %vm8326_vm0, %v8324_v7, -inf }
0x2671   : > { %8062 = vperm.xlu0 %9164, %v8017_v38   ;;  %v13008_v38 = vpop.permute.xlu1 %6124 }
0x2675   : > { %8074 = vperm.xlu0 %9164, %v8021_v26   ;;  %v13010_v48 = vpop.permute.xlu1 %6136 }
0x2679   : > { %8053 = vperm.xlu0 %9164, %v8014_v63   ;;  %v13012_v31 = vpop.permute.xlu1 %6127 }
0x267d   : > { %8077 = vperm.xlu0 %9164, %v8022_v30   ;;  %v8030_v45 = vpop.permute.xlu1 %8029 }
0x2681   : > { %8080 = vperm.xlu0 %9164, %v8023_v60   ;;  %v8048_v63 = vpop.permute.xlu1 %8047 }
0x2685   : > { %v8060_v30 = vpop.permute.xlu1 %8059 }
0x2689   : > { %v8051_v60 = vpop.permute.xlu1 %8050 }
0x268d   : > { %v8072_v52 = vpop.permute.xlu1 %8071 }
0x26a0   : > { %7549 = vmin.xlane.f32.xlu0 %v7548_v59  ;;  %v8039_v59 = vpop.permute.xlu1 %8038 }
0x26a1   : > { %v8104_v18 = vrot.slane %v8039_v59, %v11324_v53 }
0x26a4   : > { %7579 = vmin.xlane.f32.xlu0 %v7578_v8  ;;  %v8066_v27 = vpop.permute.xlu1 %8065  ;;  %v8092_v8 = vrot.slane %v8030_v45, %v11324_v53 }
0x26a5   : > { %v8140_v59 = vrot.slane %v8066_v27, %v11324_v53 }
0x26a8   : > { %7594 = vmin.xlane.f32.xlu0 %v7593_v25 }
0x26ac   : > { %8328 = vmax.xlane.f32.xlu0 %v8327_v46  ;;  %v8132_v46 = vrot.slane %v8060_v30, %v11324_v53 }
0x26bc   : > { %v13014_v56 = vpop.xlane.xlu0 %6949 }
0x26c4   : > { %v13016_v26 = vpop.permute.xlu0 %6106 }
0x26c8   : > { %v13018_v51 = vpop.permute.xlu0 %6109 }
0x26cc   : > { %v13020_v58 = vpop.permute.xlu0 %6133 }
0x26d0   : > { %v13022_v1 = vpop.permute.xlu0 %6112 }
0x26d4   : > { %v13024_v28 = vpop.permute.xlu0 %6139 }
0x26d8   : > { %v8027_v35 = vpop.permute.xlu0 %8026 }
0x26d9   : > { %v8088_v36 = vrot.slane %v8027_v35, %v11324_v53  ;;  %v8069_v35 = vpop.permute.xlu1 %8068 }
0x26da   : > { %v8144_v30 = vrot.slane %v8069_v35, %v11324_v53 }
0x26db   : > { %v8165_v47 = vsel %vm716_vm1, %v8092_v8, %v8088_v36 }
0x26dc   : > { %v8042_v22 = vpop.permute.xlu0 %8041 }
0x26e0   : > { %v8045_v44 = vpop.permute.xlu0 %8044 }
0x26e4   : > { %v8033_v4 = vpop.permute.xlu0 %8032 }
0x26e5   : > { %v8096_v0 = vrot.slane %v8033_v4, %v11324_v53  ;;  %v8112_v4 = vrot.slane %v8045_v44, %v11324_v53 }
0x26e7   : > { %v8166_v25 = vsel %vm719_vm2, %v8096_v0, %v8165_v47  ;;  %v8108_v0 = vrot.slane %v8042_v22, %v11324_v53 }
0x26e8   : > { %v8057_v9 = vpop.permute.xlu0 %8056 }
0x26e9   : > { %v8128_v2 = vrot.slane %v8057_v9, %v11324_v53  ;;  %v8169_v47 = vsel %vm716_vm1, %v8112_v4, %v8108_v0 }
0x26eb   : > { %v8173_v9 = vsel %vm716_vm1, %v8132_v46, %v8128_v2  ;;  %v8120_v46 = vrot.slane %v8051_v60, %v11324_v53 }
0x26ec   : > { %v8036_v12 = vpop.permute.xlu0 %8035 }
0x26ed   : > { %v8100_v5 = vrot.slane %v8036_v12, %v11324_v53 }
0x26ef   : > { %v8167_v7 = vsel %vm722_vm3, %v8100_v5, %v8166_v25  ;;  %v8116_v25 = vrot.slane %v8048_v63, %v11324_v53 }
0x26f0   : > { %v8063_v41 = vpop.permute.xlu0 %8062  ;;  %v8168_v45 = vsel %vm4002_vm9, %v8104_v18, %v8167_v7 }
0x26f1   : > { %v8136_v36 = vrot.slane %v8063_v41, %v11324_v53  ;;  %v13040_v8 = vsel %vm3696_vm7, %v8168_v45, 2147483647  ;;  %v8170_v2 = vsel %vm719_vm2, %v8116_v25, %v8169_v47 }
0x26f2   : > { %v8183_v12 = vshra.s32 %v13040_v8, 16  ;;  %v8171_v63 = vsel %vm722_vm3, %v8120_v46, %v8170_v2 }
0x26f3   : > { %v8174_v44 = vsel %vm719_vm2, %v8136_v36, %v8173_v9 }
0x26f4   : > { %v8175_v5 = vsel %vm722_vm3, %v8140_v59, %v8174_v44  ;;  %v8075_v41 = vpop.permute.xlu0 %8074  ;;  %v13050_v18 = vcvt.s32.f32 %v8183_v12  ;;  %v8084_v44 = vpop.permute.xlu1 %8083 }
0x26f5   : > { %v8176_v27 = vsel %vm4002_vm9, %v8144_v30, %v8175_v5  ;;  %v8152_v9 = vrot.slane %v8075_v41, %v11324_v53  ;;  %v8148_v30 = vrot.slane %v8072_v52, %v11324_v53  ;;  %v8164_v2 = vrot.slane %v8084_v44, %v11324_v53 }
0x26f6   : > { %8186 = vmin.xlane.f32.xlu0 %v13050_v18  ;;  %v13056_v22 = vsel %vm3696_vm7, %v8176_v27, 2147483647 }
0x26f7   : > { %v8213_v7 = vshra.s32 %v13056_v22, 16  ;;  %v8177_v25 = vsel %vm716_vm1, %v8152_v9, %v8148_v30 }
0x26f8   : > { %v8054_v35 = vpop.permute.xlu0 %8053 }
0x26f9   : > { %v8124_v4 = vrot.slane %v8054_v35, %v11324_v53  ;;  %v13062_v45 = vcvt.s32.f32 %v8213_v7 }
0x26fb   : > { %v8172_v36 = vsel %vm4002_vm9, %v8124_v4, %v8171_v63  ;;  %8216 = vmin.xlane.f32.xlu0 %v13062_v45 }
0x26fc   : > { %v8078_v59 = vpop.permute.xlu0 %8077  ;;  %v13068_v0 = vsel %vm3696_vm7, %v8172_v36, 2147483647 }
0x26fd   : > { %v8198_v12 = vshra.s32 %v13068_v0, 16  ;;  %v8156_v60 = vrot.slane %v8078_v59, %v11324_v53 }
0x26ff   : > { %v13074_v47 = vcvt.s32.f32 %v8198_v12  ;;  %v8178_v41 = vsel %vm719_vm2, %v8156_v60, %v8177_v25 }
0x2700   : > { %v8081_v5 = vpop.permute.xlu0 %8080 }
0x2701   : > { %v8160_v27 = vrot.slane %v8081_v5, %v11324_v53  ;;  %8201 = vmin.xlane.f32.xlu1 %v13074_v47 }
0x2703   : > { %v8179_v7 = vsel %vm722_vm3, %v8160_v27, %v8178_v41  ;;  %v14169_v27 = vld [vmem:[#allocation95_spill] sm:$0xff] }
0x2704   : > { %v8180_v46 = vsel %vm4002_vm9, %v8164_v2, %v8179_v7  ;;  %v6025_v2 = vrot.slane %v14169_v27, %v11008_v34  ;;  %v5981_v7 = vrot.slane %v14142_v21, %v11063_v16  ;;  %v6017_v21 = vrot.slane %v14148_v43, %v11161_v10 }
0x2705   : > { %v13084_v52 = vsel %vm3696_vm7, %v8180_v46, 2147483647  ;;  %v14170_v46 = vld [vmem:[#allocation74_spill] sm:$0xff] }
0x2706   : > { %v8228_v35 = vshra.s32 %v13084_v52, 16  ;;  %vm6077_vm12 = vcmp.eq.f32.partialorder %v14170_v46, %v6025_v2 }
0x2708   : > { %v13087_v4 = vcvt.s32.f32 %v8228_v35  ;;  %v6097_v35 = vsel %vm6077_vm12, %v11823_v15, 5 }
0x270a   : > { %8231 = vmin.xlane.f32.xlu0 %v13087_v4 }
0x272d   : > { %v13090_v63 = vpop.xlane.xlu0 %7549 }
0x2731   : > { %v13092_v36 = vpop.xlane.xlu0 %7579 }
0x2735   : > { %v13094_v59 = vpop.xlane.xlu0 %7594 }
0x2739   : > { %v8329_v9 = vpop.xlane.xlu0 %8328 }
0x273a   : > { %v8338_v12 = vrot.slane %v8329_v9, %v11047_v39  ;;  %v8334_v60 = vrot.slane %v8329_v9, %v11008_v34  ;;  %v8346_v30 = vrot.slane %v8329_v9, %v11161_v10  ;;  %v8342_v44 = vrot.slane %v8329_v9, %v11060_v62 }
0x273c   : > { %vm8352_vm5 = vcmp.eq.f32.partialorder %v12787_v14, %v8338_v12  ;;  %vm8351_vm8 = vcmp.eq.f32.partialorder %v12770_v33, %v8334_v60  ;;  %8666 = vst.msk [vmem:[%s375_s20] sm:$0x1] %vm8665_vm4, %v8334_v60  ;;  %8667 = vst.msk [vmem:[%s375_s20 + $0x1] sm:$0x1] %vm8665_vm4, %v8338_v12  ;;  %vm8354_vm10 = vcmp.eq.f32.partialorder %v12794_v49, %v8346_v30  ;;  %v14171_v49 = vld [vmem:[#allocation75_spill] sm:$0xff]  ;;  %v14172_v12 = vld [vmem:[#allocation76_spill] sm:$0xff] }
0x273d   : > { %v8356_v5 = vsel %vm8352_vm5, %v11823_v15, 5  ;;  %v8355_v25 = vsel %vm8351_vm8, %v11823_v15, 5  ;;  %vm8353_vm11 = vcmp.eq.f32.partialorder %v12782_v61, %v8342_v44  ;;  %8668 = vst.msk [vmem:[%s375_s20 + $0x2] sm:$0x1] %vm8665_vm4, %v8342_v44  ;;  %v6029_v33 = vrot.slane %v14169_v27, %v11047_v39  ;;  %8669 = vst.msk [vmem:[%s375_s20 + $0x3] sm:$0x1] %vm8665_vm4, %v8346_v30 }
0x273e   : > { %8363 = vperm.xlu1 %9163, %v8356_v5   ;;  %8360 = vperm.xlu0 %9164, %v8355_v25   ;;  %v8358_v14 = vsel %vm8354_vm10, %v11823_v15, 5  ;;  %v8357_v41 = vsel %vm8353_vm11, %v11823_v15, 5  ;;  %v6001_v61 = vrot.slane %v14144_v40, %v11063_v16  ;;  %vm6066_vm14 = vcmp.eq.f32.partialorder %v14172_v12, %v5981_v7  ;;  %v14173_v60 = vld [vmem:[#allocation77_spill] sm:$0xff]  ;;  %v14174_v5 = vld [vmem:[#allocation78_spill] sm:$0xff]  ;;  %v14175_v25 = vld [vmem:[#allocation79_spill] sm:$0xff]  ;;  %s9719_s20 = sshll.u32 %s9796_s23, 4  ;;  %s9720_s20 = int_to_ptr.vmem [resolvable:$false] %s9719_s20 }
0x273f   : > { %vm6078_vm13 = vcmp.eq.f32.partialorder %v14171_v49, %v6029_v33  ;;  %v6033_v30 = vrot.slane %v14169_v27, %v11060_v62  ;;  %v6086_v44 = vsel %vm6066_vm14, %v11823_v15, 5  ;;  %vm6075_vm4 = vcmp.eq.f32.partialorder %v14174_v5, %v6017_v21  ;;  %v13145_v49 = vpop.xlane.xlu1 %7564  ;;  %s9721_s16 = scalar_lea.vmem %s9720_s20, 128  ;;  %p9722_p10 = scmp.lt.s32.totalorder %s13824_s14, %s9720_s20 }
0x2740   : > { %v6098_v9 = vsel %vm6078_vm13, %v11823_v15, 5  ;;  %vm6071_vm15 = vcmp.eq.f32.partialorder %v14173_v60, %v6001_v61  ;;  %v6095_v2 = vsel %vm6075_vm4, %v11823_v15, 5  ;;  %v8197_v61 = vand.u32 65535, %v13068_v0  ;;  %p9723_p0 = scmp.lt.s32.totalorder %s9721_s16, %s9715_s25 }
0x2741   : > { %v6091_v40 = vsel %vm6071_vm15, %v11823_v15, 5  ;;  %vm6079_vm5 = vcmp.eq.f32.partialorder %v14175_v25, %v6033_v30  ;;  %v8212_v60 = vand.u32 65535, %v13056_v22  ;;  %v8227_v21 = vand.u32 65535, %v13084_v52 }
0x2742   : > { %8369 = vperm.xlu1 %9163, %v8358_v14   ;;  %8366 = vperm.xlu0 %9164, %v8357_v41   ;;  %v6099_v33 = vsel %vm6079_vm5, %v11823_v15, 5  ;;  %v8182_v14 = vand.u32 65535, %v13040_v8  ;;  %v8199_v12 = vcvt.s32.f32 %v8197_v61  ;;  %vm6906_vm14 = vcmp.eq.f32.partialorder %v12550_v54, %v12691_v29  ;;  %p9724_p2 = por %p9723_p0, %p9722_p10 }
0x2743   : > { %vm6936_vm15 = vcmp.eq.f32.partialorder %v12815_v23, %v12897_v3  ;;  %vm6951_vm4 = vcmp.eq.f32.partialorder %v12914_v19, %v13014_v56  ;;  %v6169_v19 = vrot.slane %v13016_v26, %v11324_v53 }
0x2744   : > { %v8184_v7 = vcvt.s32.f32 %v8182_v14  ;;  %p9725_p4 = pnand %p9724_p2, %p9718_p8 }
0x2746   : > { %6148 = vperm.xlu1 %9163, %v6097_v35   ;;  %6151 = vperm.xlu0 %9164, %v6098_v9  }
0x274a   : > { %6115 = vperm.xlu1 %9163, %v6086_v44   ;;  %6130 = vperm.xlu0 %9164, %v6091_v40   ;;  %v8229_v44 = vcvt.s32.f32 %v8227_v21  ;;  %v14176_v40 = vld [vmem:[#allocation81_spill] sm:$0xff]  ;;  %v6193_v21 = vrot.slane %v13008_v38, %v11324_v53 }
0x274e   : > { %6142 = vperm.xlu1 %9163, %v6095_v2   ;;  %6154 = vperm.xlu0 %9164, %v6099_v33  }
0x2783   : > { %v13141_v41 = vpop.xlane.xlu0 %8186 }
0x2784   : > { %vm8188_vm8 = vcmp.eq.f32.partialorder %v13050_v18, %v13141_v41  ;;  %v8214_v18 = vcvt.s32.f32 %v8212_v60  ;;  %v6189_v60 = vrot.slane %v13006_v6, %v11324_v53  ;;  %v6197_v6 = vrot.slane %v13012_v31, %v11324_v53 }
0x2785   : > { %v8189_v46 = vsel %vm8188_vm8, %v8184_v7, inf  ;;  %vm6921_vm8 = vcmp.eq.f32.partialorder %v12546_v13, %v12689_v50 }
0x2786   : > { %8190 = vmin.xlane.f32.xlu1 %v8189_v46  ;;  %v6900_v46 = vand.u32 65535, %v12544_v42 }
0x2788   : > { %v13148_v35 = vpop.xlane.xlu0 %8216 }
0x2789   : > { %vm8218_vm11 = vcmp.eq.f32.partialorder %v13062_v45, %v13148_v35 }
0x278a   : > { %v8219_v30 = vsel %vm8218_vm11, %v8214_v18, inf }
0x278e   : > { %v13150_v9 = vpop.xlane.xlu1 %8201 }
0x278f   : > { %vm8203_vm10 = vcmp.eq.f32.partialorder %v13074_v47, %v13150_v9  ;;  %v6037_v47 = vrot.slane %v14169_v27, %v11161_v10 }
0x2790   : > { %v8204_v8 = vsel %vm8203_vm10, %v8199_v12, inf }
0x2791   : > { %8205 = vmin.xlane.f32.xlu0 %v8204_v8  ;;  %vm6080_vm13 = vcmp.eq.f32.partialorder %v14176_v40, %v6037_v47  ;;  %v6930_v47 = vand.u32 65535, %v12812_v32  ;;  %v6945_v32 = vand.u32 65535, %v12911_v57  ;;  %v6021_v57 = vrot.slane %v14148_v43, %v11063_v16 }
0x2792   : > { %v6100_v45 = vsel %vm6080_vm13, %v11823_v15, 5  ;;  %v6177_v43 = vrot.slane %v13022_v1, %v11324_v53 }
0x2793   : > { %v6932_v31 = vcvt.s32.f32 %v6930_v47  ;;  %v6915_v47 = vand.u32 65535, %v12538_v17 }
0x2795   : > { %8220 = vmin.xlane.f32.xlu0 %v8219_v30  ;;  %v6902_v30 = vcvt.s32.f32 %v6900_v46  ;;  %v14177_v46 = vld [vmem:[#allocation80_spill] sm:$0xff] }
0x2796   : > { %vm6076_vm5 = vcmp.eq.f32.partialorder %v14177_v46, %v6021_v57 }
0x2797   : > { %v13158_v0 = vpop.xlane.xlu0 %8231 }
0x2798   : > { %vm8233_vm12 = vcmp.eq.f32.partialorder %v13087_v4, %v13158_v0 }
0x2799   : > { %v8234_v22 = vsel %vm8233_vm12, %v8229_v44, inf  ;;  %v6185_v44 = vrot.slane %v13002_v24, %v11324_v53 }
0x279a   : > { %8235 = vmin.xlane.f32.xlu1 %v8234_v22 }
0x279b   : > { %v6246_v40 = vsel %vm716_vm1, %v6189_v60, %v6185_v44 }
0x279c   : > { %v6247_v54 = vsel %vm719_vm2, %v6193_v21, %v6246_v40  ;;  %v6165_v21 = vrot.slane %v12993_v37, %v11324_v53  ;;  %v6917_v37 = vcvt.s32.f32 %v6915_v47 }
0x279d   : > { %v6248_v24 = vsel %vm722_vm3, %v6197_v6, %v6247_v54 }
0x279e   : > { %v6242_v44 = vsel %vm716_vm1, %v6169_v19, %v6165_v21  ;;  %v6922_v40 = vsel %vm6921_vm8, %v6917_v37, inf }
0x27ab   : > { %6157 = vperm.xlu0 %9164, %v6100_v45   ;;  %v6907_v45 = vsel %vm6906_vm14, %v6902_v30, inf }
0x27bd   : > { %v8364_v5 = vpop.permute.xlu1 %8363  ;;  %v8361_v52 = vpop.permute.xlu0 %8360 }
0x27be   : > { %v8378_v25 = vrot.slane %v8364_v5, %v11324_v53  ;;  %v8374_v2 = vrot.slane %v8361_v52, %v11324_v53 }
0x27c0   : > { %v8387_v61 = vsel %vm716_vm1, %v8378_v25, %v8374_v2  ;;  %v6937_v2 = vsel %vm6936_vm15, %v6932_v31, inf }
0x27c1   : > { %v8370_v33 = vpop.permute.xlu1 %8369  ;;  %v8367_v14 = vpop.permute.xlu0 %8366 }
0x27c2   : > { %v8386_v4 = vrot.slane %v8370_v33, %v11324_v53  ;;  %v8382_v7 = vrot.slane %v8367_v14, %v11324_v53  ;;  %v6947_v14 = vcvt.s32.f32 %v6945_v32 }
0x27c4   : > { %v8388_v12 = vsel %vm719_vm2, %v8382_v7, %v8387_v61  ;;  %v6096_v61 = vsel %vm6076_vm5, %v11823_v15, 5 }
0x27c5   : > { %v13175_v8 = vpop.permute.xlu0 %6151  ;;  %v8389_v18 = vsel %vm722_vm3, %v8386_v4, %v8388_v12  ;;  %v6952_v4 = vsel %vm6951_vm4, %v6947_v14, inf  ;;  %v13215_v12 = vpop.permute.xlu1 %6148 }
0x27c6   : > { %v13183_v42 = vsel %vm8326_vm0, %v8389_v18, 2147483647  ;;  %v6173_v18 = vrot.slane %v13018_v51, %v11324_v53 }
0x27c7   : > { %v8392_v22 = vshra.s32 %v13183_v42, 16  ;;  %v8391_v47 = vand.u32 65535, %v13183_v42 }
0x27c8   : > { %v6243_v6 = vsel %vm719_vm2, %v6173_v18, %v6242_v44 }
0x27c9   : > { %v6131_v38 = vpop.permute.xlu0 %6130  ;;  %v13192_v5 = vcvt.s32.f32 %v8392_v22  ;;  %v6116_v60 = vpop.permute.xlu1 %6115  ;;  %v6244_v22 = vsel %vm722_vm3, %v6177_v43, %v6243_v6 }
0x27ca   : > { %v6201_v52 = vrot.slane %v6131_v38, %v11324_v53  ;;  %6908 = vmin.xlane.f32.xlu0 %v6907_v45  ;;  %v6181_v30 = vrot.slane %v6116_v60, %v11324_v53  ;;  %v8238_v60 = vcvt.f32.s32 %v13158_v0  ;;  %v6205_v0 = vrot.slane %v13020_v58, %v11324_v53 }
0x27cb   : > { %8395 = vmin.xlane.f32.xlu1 %v13192_v5 }
0x27cc   : > { %v6249_v25 = vsel %vm4002_vm9, %v6201_v52, %v6248_v24  ;;  %v6245_v26 = vsel %vm4002_vm9, %v6181_v30, %v6244_v22  ;;  %v8193_v52 = vcvt.f32.s32 %v13141_v41  ;;  %v8208_v24 = vcvt.f32.s32 %v13150_v9 }
0x27cd   : > { %v13203_v33 = vsel %vm3696_vm7, %v6249_v25, 2147483647  ;;  %v13232_v51 = vsel %vm3696_vm7, %v6245_v26, 2147483647  ;;  %v6143_v45 = vpop.permute.xlu1 %6142  ;;  %v13241_v17 = vpop.permute.xlu0 %6154  ;;  %v8223_v25 = vcvt.f32.s32 %v13148_v35  ;;  %v8239_v35 = vshll.u32 %v8238_v60, 16  ;;  %v14182_v60 = vld [vmem:[#allocation40_spill] sm:$0xff] }
0x27ce   : > { %6938 = vmin.xlane.f32.xlu0 %v6937_v2  ;;  %v6275_v23 = vshra.s32 %v13203_v33, 16  ;;  %v6260_v1 = vshra.s32 %v13232_v51, 16  ;;  %v8194_v32 = vshll.u32 %v8193_v52, 16  ;;  %v8209_v2 = vshll.u32 %v8208_v24, 16 }
0x27cf   : > { %v8224_v46 = vshll.u32 %v8223_v25, 16  ;;  %v6217_v52 = vrot.slane %v6143_v45, %v11324_v53  ;;  %v6041_v45 = vrot.slane %v14169_v27, %v11063_v16 }
0x27d0   : > { %v13208_v7 = vcvt.s32.f32 %v6275_v23  ;;  %v13237_v38 = vcvt.s32.f32 %v6260_v1  ;;  %v8393_v1 = vcvt.s32.f32 %v8391_v47 }
0x27d2   : > { %6953 = vmin.xlane.f32.xlu0 %v6952_v4 }
0x27d6   : > { %6278 = vmin.xlane.f32.xlu0 %v13208_v7 }
0x27dc   : > { %6145 = vperm.xlu1 %9163, %v6096_v61  }
0x2800   : > { %6923 = vmin.xlane.f32.xlu1 %v6922_v40  ;;  %v6213_v40 = vrot.slane %v13024_v28, %v11324_v53 }
0x2804   : > { %6263 = vmin.xlane.f32.xlu1 %v13237_v38 }
0x2813   : > { %v8191_v54 = vpop.xlane.xlu1 %8190 }
0x2814   : > { %v8192_v31 = vcvt.f32.s32 %v8191_v54  ;;  %v6209_v54 = vrot.slane %v13010_v48, %v11324_v53 }
0x2816   : > { %v8195_v14 = vadd.s32 %v8194_v32, %v8192_v31  ;;  %v6250_v42 = vsel %vm716_vm1, %v6209_v54, %v6205_v0  ;;  %v6911_v0 = vcvt.f32.s32 %v12691_v29  ;;  %v6941_v54 = vcvt.f32.s32 %v12897_v3  ;;  %v14187_v29 = vld [vmem:[#allocation47_spill] sm:$0xff] }
0x2817   : > { %v6251_v58 = vsel %vm719_vm2, %v6213_v40, %v6250_v42 }
0x2818   : > { %v8409_v61 = vrot.slane %v8195_v14, %v11324_v53  ;;  %v14179_v14 = vld [vmem:[#allocation59_spill] sm:$0xff] }
0x281e   : > { %v8206_v13 = vpop.xlane.xlu0 %8205 }
0x281f   : > { %v8207_v23 = vcvt.f32.s32 %v8206_v13  ;;  %v6252_v13 = vsel %vm722_vm3, %v6217_v52, %v6251_v58  ;;  %v6956_v58 = vcvt.f32.s32 %v13014_v56 }
0x2821   : > { %v8210_v4 = vadd.s32 %v8209_v2, %v8207_v23  ;;  %v14178_v2 = vld [vmem:[#allocation82_spill] sm:$0xff]  ;;  %v5324_v23 = vrot.slane %v14179_v14, %v11008_v34 }
0x2822   : > { %v8221_v57 = vpop.xlane.xlu0 %8220  ;;  %vm6081_vm11 = vcmp.eq.f32.partialorder %v14178_v2, %v6041_v45  ;;  %v14188_v45 = vld [vmem:[#allocation70_spill] sm:$0xff] }
0x2823   : > { %v8413_v19 = vrot.slane %v8210_v4, %v11324_v53  ;;  %v8222_v41 = vcvt.f32.s32 %v8221_v57  ;;  %v6101_v4 = vsel %vm6081_vm11, %v11823_v15, 5  ;;  %v14180_v57 = vld [vmem:[#allocation37_spill] sm:$0xff]  ;;  %v5384_v2 = vrot.slane %v14188_v45, %v11008_v34 }
0x2824   : > { %vm5421_vm12 = vcmp.eq.f32.partialorder %v14180_v57, %v5324_v23  ;;  %v6942_v23 = vshll.u32 %v6941_v54, 16 }
0x2825   : > { %v8422_v9 = vsel %vm716_vm1, %v8413_v19, %v8409_v61  ;;  %v8225_v18 = vadd.s32 %v8224_v46, %v8222_v41  ;;  %v14181_v46 = vld [vmem:[#allocation62_spill] sm:$0xff]  ;;  %v5441_v41 = vsel %vm5421_vm12, %v11823_v15, 5 }
0x2826   : > { %v5344_v61 = vrot.slane %v14181_v46, %v11008_v34  ;;  %v5348_v27 = vrot.slane %v14181_v46, %v11047_v39  ;;  %v5356_v40 = vrot.slane %v14181_v46, %v11161_v10 }
0x2827   : > { %v8417_v21 = vrot.slane %v8225_v18, %v11324_v53  ;;  %v8236_v43 = vpop.xlane.xlu1 %8235 }
0x2828   : > { %v8237_v30 = vcvt.f32.s32 %v8236_v43  ;;  %vm5426_vm13 = vcmp.eq.f32.partialorder %v14182_v60, %v5344_v61  ;;  %v5352_v43 = vrot.slane %v14181_v46, %v11060_v62  ;;  %vm5429_vm5 = vcmp.eq.f32.partialorder %v14187_v29, %v5356_v40 }
0x2829   : > { %v8423_v44 = vsel %vm719_vm2, %v8417_v21, %v8422_v9  ;;  %v5446_v18 = vsel %vm5426_vm13, %v11823_v15, 5  ;;  %v14183_v21 = vld [vmem:[#allocation39_spill] sm:$0xff]  ;;  %v5449_v3 = vsel %vm5429_vm5, %v11823_v15, 5  ;;  %v6957_v61 = vshll.u32 %v6956_v58, 16 }
0x282a   : > { %v8240_v6 = vadd.s32 %v8239_v35, %v8237_v30  ;;  %v13290_v19 = vpop.permute.xlu0 %6157  ;;  %vm5427_vm14 = vcmp.eq.f32.partialorder %v14183_v21, %v5348_v27  ;;  %v6233_v29 = vrot.slane %v13241_v17, %v11324_v53 }
0x282b   : > { %v5447_v35 = vsel %vm5427_vm14, %v11823_v15, 5 }
0x282c   : > { %v8421_v22 = vrot.slane %v8240_v6, %v11324_v53  ;;  %v14185_v6 = vld [vmem:[#allocation67_spill] sm:$0xff] }
0x282e   : > { %v13253_v26 = vsel %vm722_vm3, %v8421_v22, %v8423_v44  ;;  %v14184_v44 = vld [vmem:[#allocation42_spill] sm:$0xff]  ;;  %v5368_v22 = vrot.slane %v14185_v6, %v11047_v39 }
0x282f   : > { %vm5428_vm15 = vcmp.eq.f32.partialorder %v14184_v44, %v5352_v43 }
0x2830   : > { %v5448_v47 = vsel %vm5428_vm15, %v11823_v15, 5 }
0x2857   : > { %v6909_v9 = vpop.xlane.xlu0 %6908 }
0x2858   : > { %v13258_v37 = vpop.xlane.xlu1 %8395 }
0x2859   : > { %vm8397_vm10 = vcmp.eq.f32.partialorder %v13192_v5, %v13258_v37 }
0x285a   : > { %v13267_v24 = vsel %vm8397_vm10, %v8393_v1, inf  ;;  %v14186_v1 = vld [vmem:[#allocation44_spill] sm:$0xff] }
0x285b   : > { %v6939_v30 = vpop.xlane.xlu0 %6938  ;;  %vm5432_vm4 = vcmp.eq.f32.partialorder %v14186_v1, %v5368_v22 }
0x285c   : > { %v6146_v31 = vpop.permute.xlu1 %6145  ;;  %v5452_v42 = vsel %vm5432_vm4, %v11823_v15, 5 }
0x285d   : > { %v6221_v32 = vrot.slane %v6146_v31, %v11324_v53  ;;  %v6926_v31 = vcvt.f32.s32 %v12689_v50 }
0x285f   : > { %v6253_v28 = vsel %vm4002_vm9, %v6221_v32, %v6252_v13  ;;  %v6954_v52 = vpop.xlane.xlu0 %6953  ;;  %v6910_v32 = vcvt.f32.s32 %v6909_v9  ;;  %v6940_v13 = vcvt.f32.s32 %v6939_v30  ;;  %v6927_v57 = vshll.u32 %v6926_v31, 16  ;;  %v14189_v9 = vld [vmem:[#allocation50_spill] sm:$0xff] }
0x2860   : > { %v13275_v5 = vsel %vm3696_vm7, %v6253_v28, 2147483647  ;;  %v6912_v28 = vshll.u32 %v6911_v0, 16  ;;  %vm5436_vm8 = vcmp.eq.f32.partialorder %v14189_v9, %v5384_v2  ;;  %v5376_v0 = vrot.slane %v14185_v6, %v11161_v10 }
0x2861   : > { %v6290_v48 = vshra.s32 %v13275_v5, 16  ;;  %v6943_v56 = vadd.s32 %v6942_v23, %v6940_v13  ;;  %v5456_v21 = vsel %vm5436_vm8, %v11823_v15, 5  ;;  %v6289_v58 = vand.u32 65535, %v13275_v5 }
0x2862   : > { %v6229_v13 = vrot.slane %v13175_v8, %v11324_v53  ;;  %v6237_v2 = vrot.slane %v13290_v19, %v11324_v53  ;;  %v5328_v19 = vrot.slane %v14179_v14, %v11047_v39 }
0x2863   : > { %v13278_v25 = vcvt.s32.f32 %v6290_v48  ;;  %v6955_v48 = vcvt.f32.s32 %v6954_v52  ;;  %v8485_v30 = vrot.slane %v6943_v56, %v11324_v53  ;;  %v14191_v52 = vld [vmem:[#allocation54_spill] sm:$0xff] }
0x2864   : > { %vm5434_vm11 = vcmp.eq.f32.partialorder %v14191_v52, %v5376_v0  ;;  %v14198_v52 = vld [vmem:[#allocation53_spill] sm:$0xff] }
0x2865   : > { %6293 = vmin.xlane.f32.xlu1 %v13278_v25  ;;  %v6958_v60 = vadd.s32 %v6957_v61, %v6955_v48  ;;  %v6291_v48 = vcvt.s32.f32 %v6289_v58  ;;  %v5392_v58 = vrot.slane %v14188_v45, %v11060_v62 }
0x2867   : > { %v8489_v44 = vrot.slane %v6958_v60, %v11324_v53  ;;  %v14193_v60 = vld [vmem:[#allocation43_spill] sm:$0xff] }
0x2876   : > { %6160 = vperm.xlu1 %9163, %v6101_v4  }
0x287a   : > { %5462 = vperm.xlu1 %9163, %v5441_v41   ;;  %v6913_v41 = vadd.s32 %v6912_v28, %v6910_v32  ;;  %v6225_v32 = vrot.slane %v13215_v12, %v11324_v53 }
0x287c   : > { %v8477_v43 = vrot.slane %v6913_v41, %v11324_v53  ;;  %v6254_v5 = vsel %vm716_vm1, %v6229_v13, %v6225_v32  ;;  %v14192_v41 = vld [vmem:[#allocation36_spill] sm:$0xff]  ;;  %v14199_v32 = vld [vmem:[#allocation55_spill] sm:$0xff] }
0x287d   : > { %vm5422_vm13 = vcmp.eq.f32.partialorder %v14192_v41, %v5328_v19 }
0x287e   : > { %5477 = vperm.xlu1 %9163, %v5446_v18   ;;  %v5340_v18 = vrot.slane %v14179_v14, %v11063_v16  ;;  %v5442_v56 = vsel %vm5422_vm13, %v11823_v15, 5 }
0x2882   : > { %5480 = vperm.xlu1 %9163, %v5447_v35  }
0x2886   : > { %5483 = vperm.xlu1 %9163, %v5448_v47   ;;  %v14190_v47 = vld [vmem:[#allocation52_spill] sm:$0xff] }
0x2887   : > { %vm5425_vm10 = vcmp.eq.f32.partialorder %v14190_v47, %v5340_v18  ;;  %v14194_v18 = vld [vmem:[#allocation45_spill] sm:$0xff]  ;;  %v5388_v47 = vrot.slane %v14188_v45, %v11047_v39 }
0x2888   : > { %v5445_v1 = vsel %vm5425_vm10, %v11823_v15, 5 }
0x288a   : > { %5495 = vperm.xlu1 %9163, %v5452_v42   ;;  %v5454_v42 = vsel %vm5434_vm11, %v11823_v15, 5  ;;  %vm5438_vm11 = vcmp.eq.f32.partialorder %v14199_v32, %v5392_v58 }
0x288b   : > { %v5458_v13 = vsel %vm5438_vm11, %v11823_v15, 5 }
0x288d   : > { %v6924_v4 = vpop.xlane.xlu1 %6923 }
0x288e   : > { %v6925_v50 = vcvt.f32.s32 %v6924_v4  ;;  %5486 = vperm.xlu1 %9163, %v5449_v3   ;;  %v6255_v4 = vsel %vm719_vm2, %v6233_v29, %v6254_v5 }
0x288f   : > { %v6256_v3 = vsel %vm722_vm3, %v6237_v2, %v6255_v4 }
0x2890   : > { %v6928_v27 = vadd.s32 %v6927_v57, %v6925_v50  ;;  %v5332_v50 = vrot.slane %v14179_v14, %v11060_v62 }
0x2891   : > { %v13336_v31 = vpop.xlane.xlu1 %6263 }
0x2892   : > { %v8481_v35 = vrot.slane %v6928_v27, %v11324_v53  ;;  %5507 = vperm.xlu1 %9163, %v5456_v21   ;;  %vm5423_vm14 = vcmp.eq.f32.partialorder %v14193_v60, %v5332_v50  ;;  %v5364_v27 = vrot.slane %v14185_v6, %v11008_v34  ;;  %v5336_v21 = vrot.slane %v14179_v14, %v11161_v10  ;;  %v14197_v14 = vld [vmem:[#allocation51_spill] sm:$0xff] }
0x2893   : > { %v5443_v9 = vsel %vm5423_vm14, %v11823_v15, 5  ;;  %vm5437_vm8 = vcmp.eq.f32.partialorder %v14197_v14, %v5388_v47 }
0x2894   : > { %v8490_v22 = vsel %vm716_vm1, %v8481_v35, %v8477_v43  ;;  %vm5431_vm15 = vcmp.eq.f32.partialorder %v14194_v18, %v5364_v27  ;;  %v14195_v35 = vld [vmem:[#allocation48_spill] sm:$0xff] }
0x2895   : > { %v8491_v40 = vsel %vm719_vm2, %v8485_v30, %v8490_v22  ;;  %v5451_v43 = vsel %vm5431_vm15, %v11823_v15, 5  ;;  %vm5424_vm4 = vcmp.eq.f32.partialorder %v14195_v35, %v5336_v21  ;;  %v5372_v30 = vrot.slane %v14185_v6, %v11060_v62  ;;  %v14196_v22 = vld [vmem:[#allocation49_spill] sm:$0xff] }
0x2896   : > { %5474 = vperm.xlu1 %9163, %v5445_v1   ;;  %v13332_v54 = vsel %vm722_vm3, %v8489_v44, %v8491_v40  ;;  %v5444_v44 = vsel %vm5424_vm4, %v11823_v15, 5  ;;  %v5360_v1 = vrot.slane %v14181_v46, %v11063_v16  ;;  %v5457_v40 = vsel %vm5437_vm8, %v11823_v15, 5  ;;  %v13392_v46 = vpop.xlane.xlu0 %6278 }
0x2897   : > { %vm5433_vm5 = vcmp.eq.f32.partialorder %v14196_v22, %v5372_v30  ;;  %vm6280_vm4 = vcmp.eq.f32.partialorder %v13208_v7, %v13392_v46 }
0x2898   : > { %v5453_v0 = vsel %vm5433_vm5, %v11823_v15, 5  ;;  %vm5430_vm10 = vcmp.eq.f32.partialorder %v14198_v52, %v5360_v1  ;;  %vm6265_vm5 = vcmp.eq.f32.partialorder %v13237_v38, %v13336_v31 }
0x289a   : > { %5501 = vperm.xlu1 %9163, %v5454_v42   ;;  %v5450_v42 = vsel %vm5430_vm10, %v11823_v15, 5 }
0x28f2   : > { %v13343_v28 = vpop.xlane.xlu1 %6293 }
0x28f3   : > { %vm6295_vm12 = vcmp.eq.f32.partialorder %v13278_v25, %v13343_v28 }
0x28f4   : > { %v13351_v23 = vsel %vm6295_vm12, %v6291_v48, inf }
0x28f6   : > { %v6161_v12 = vpop.permute.xlu1 %6160 }
0x28f7   : > { %v6241_v8 = vrot.slane %v6161_v12, %v11324_v53 }
0x28f9   : > { %v6257_v57 = vsel %vm4002_vm9, %v6241_v8, %v6256_v3 }
0x28fa   : > { %v6303_v17 = vsel %vm3696_vm7, %v6257_v57, 2147483647  ;;  %v5463_v48 = vpop.permute.xlu1 %5462 }
0x28fb   : > { %v6305_v61 = vshra.s32 %v6303_v17, 16  ;;  %v6304_v2 = vand.u32 65535, %v6303_v17 }
0x28fd   : > { %v6307_v25 = vcvt.s32.f32 %v6305_v61  ;;  %v6306_v12 = vcvt.s32.f32 %v6304_v2  ;;  %v5524_v61 = vrot.slane %v5463_v48, %v11324_v53  ;;  %v14200_v2 = vld [vmem:[#allocation10_spill] sm:$0xff] }
0x28fe   : > { %v13394_v29 = vpop.permute.xlu1 %5477 }
0x28ff   : > { %6308 = vmin.xlane.f32.xlu0 %v6307_v25 }
0x2915   : > { %5465 = vperm.xlu0 %9164, %v5442_v56  }
0x2919   : > { %5468 = vperm.xlu0 %9164, %v5443_v9  }
0x291d   : > { %5492 = vperm.xlu0 %9164, %v5451_v43  }
0x2921   : > { %5471 = vperm.xlu0 %9164, %v5444_v44  }
0x2925   : > { %5498 = vperm.xlu0 %9164, %v5453_v0  }
0x2929   : > { %5510 = vperm.xlu0 %9164, %v5457_v40  }
0x292d   : > { %5489 = vperm.xlu0 %9164, %v5450_v42   ;;  %v8402_v42 = vcvt.f32.s32 %v13258_v37  ;;  %v5380_v37 = vrot.slane %v14185_v6, %v11063_v16 }
0x292f   : > { %v8403_v32 = vshll.u32 %v8402_v42, 16 }
0x294c   : > { %8399 = vmin.xlane.f32.xlu0 %v13267_v24  ;;  %v13399_v24 = vpop.permute.xlu1 %5480 }
0x294d   : > { %v5548_v6 = vrot.slane %v13399_v24, %v11324_v53 }
0x2950   : > { %v13403_v8 = vpop.permute.xlu1 %5483 }
0x2954   : > { %v5496_v17 = vpop.permute.xlu1 %5495 }
0x2955   : > { %v5568_v60 = vrot.slane %v5496_v17, %v11324_v53  ;;  %v14201_v17 = vld [vmem:[#allocation56_spill] sm:$0xff] }
0x2956   : > { %vm5435_vm14 = vcmp.eq.f32.partialorder %v14201_v17, %v5380_v37  ;;  %v5400_v37 = vrot.slane %v14188_v45, %v11063_v16  ;;  %v14203_v17 = vld [vmem:[#allocation58_spill] sm:$0xff] }
0x2958   : > { %v5487_v18 = vpop.permute.xlu1 %5486  ;;  %vm5440_vm8 = vcmp.eq.f32.partialorder %v14203_v17, %v5400_v37 }
0x295c   : > { %v5508_v22 = vpop.permute.xlu1 %5507 }
0x295d   : > { %v5584_v14 = vrot.slane %v5508_v22, %v11324_v53  ;;  %v5556_v22 = vrot.slane %v5487_v18, %v11324_v53 }
0x2962   : > { %5513 = vperm.xlu0 %9164, %v5458_v13  }
0x298c   : > { %v13396_v5 = vpop.xlane.xlu0 %6308 }
0x298d   : > { %vm6310_vm12 = vcmp.eq.f32.partialorder %v6307_v25, %v13396_v5 }
0x298e   : > { %v13401_v4 = vsel %vm6310_vm12, %v6306_v12, inf }
0x2994   : > { %v5466_v3 = vpop.permute.xlu0 %5465 }
0x2995   : > { %v5528_v57 = vrot.slane %v5466_v3, %v11324_v53 }
0x2997   : > { %v5601_v50 = vsel %vm716_vm1, %v5528_v57, %v5524_v61 }
0x2998   : > { %v5469_v19 = vpop.permute.xlu0 %5468 }
0x2999   : > { %v5532_v41 = vrot.slane %v5469_v19, %v11324_v53 }
0x299b   : > { %v5602_v56 = vsel %vm719_vm2, %v5532_v41, %v5601_v50  ;;  %v5455_v50 = vsel %vm5435_vm14, %v11823_v15, 5 }
0x299c   : > { %v5493_v25 = vpop.permute.xlu0 %5492 }
0x299d   : > { %v5564_v27 = vrot.slane %v5493_v25, %v11324_v53 }
0x299f   : > { %v5609_v9 = vsel %vm716_vm1, %v5568_v60, %v5564_v27  ;;  %v5475_v60 = vpop.permute.xlu1 %5474 }
0x29a0   : > { %v5472_v21 = vpop.permute.xlu0 %5471  ;;  %v5540_v27 = vrot.slane %v5475_v60, %v11324_v53 }
0x29a1   : > { %v5536_v43 = vrot.slane %v5472_v21, %v11324_v53  ;;  %v6274_v21 = vand.u32 65535, %v13203_v33 }
0x29a3   : > { %v5603_v35 = vsel %vm722_vm3, %v5536_v43, %v5602_v56  ;;  %v5396_v56 = vrot.slane %v14188_v45, %v11161_v10  ;;  %v6259_v43 = vand.u32 65535, %v13232_v51  ;;  %v6276_v24 = vcvt.s32.f32 %v6274_v21  ;;  %v14208_v21 = vld [vmem:[#allocation17_spill] sm:$0xff] }
0x29a4   : > { %v5499_v30 = vpop.permute.xlu0 %5498 }
0x29a5   : > { %v5572_v44 = vrot.slane %v5499_v30, %v11324_v53  ;;  %v5552_v30 = vrot.slane %v13403_v8, %v11324_v53  ;;  %v6261_v8 = vcvt.s32.f32 %v6259_v43 }
0x29a7   : > { %v13417_v47 = vsel %vm719_vm2, %v5572_v44, %v5609_v9  ;;  %v5604_v9 = vsel %vm4002_vm9, %v5540_v27, %v5603_v35  ;;  %v5544_v44 = vrot.slane %v13394_v29, %v11324_v53 }
0x29a8   : > { %v5511_v0 = vpop.permute.xlu0 %5510 }
0x29a9   : > { %v5588_v1 = vrot.slane %v5511_v0, %v11324_v53  ;;  %v13451_v0 = vsel %vm3696_vm7, %v5604_v9, 2147483647  ;;  %v5605_v51 = vsel %vm716_vm1, %v5548_v6, %v5544_v44  ;;  %v14207_v9 = vld [vmem:[#allocation18_spill] sm:$0xff] }
0x29aa   : > { %v5606_v35 = vsel %vm719_vm2, %v5552_v30, %v5605_v51  ;;  %v5619_v29 = vshra.s32 %v13451_v0, 16  ;;  %v7582_v51 = vcvt.f32.s32 %v12889_v11  ;;  %v7596_v11 = vcvt.f32.s32 %v13094_v59 }
0x29ab   : > { %v13422_v40 = vsel %vm716_vm1, %v5588_v1, %v5584_v14  ;;  %v5607_v18 = vsel %vm722_vm3, %v5556_v22, %v5606_v35  ;;  %v6281_v14 = vsel %vm6280_vm4, %v6276_v24, inf  ;;  %v6266_v1 = vsel %vm6265_vm5, %v6261_v8, inf }
0x29ac   : > { %v5490_v52 = vpop.permute.xlu0 %5489  ;;  %v13463_v7 = vcvt.s32.f32 %v5619_v29  ;;  %v7552_v22 = vcvt.f32.s32 %v12887_v20  ;;  %v6285_v8 = vcvt.f32.s32 %v13392_v46  ;;  %v6270_v35 = vcvt.f32.s32 %v13336_v31  ;;  %v14209_v29 = vld [vmem:[#allocation97_spill] sm:$0xff] }
0x29ad   : > { %v5560_v33 = vrot.slane %v5490_v52, %v11324_v53  ;;  %v7583_v20 = vshll.u32 %v7582_v51, 16  ;;  %v6315_v59 = vcvt.f32.s32 %v13396_v5 }
0x29ae   : > { %v6271_v46 = vshll.u32 %v6270_v35, 16 }
0x29af   : > { %v5608_v42 = vsel %vm4002_vm9, %v5560_v33, %v5607_v18  ;;  %v7567_v33 = vcvt.f32.s32 %v12882_v55  ;;  %v7597_v18 = vcvt.f32.s32 %v14209_v29  ;;  %v7566_v55 = vcvt.f32.s32 %v13145_v49 }
0x29b0   : > { %v13466_v38 = vsel %vm3696_vm7, %v5608_v42, 2147483647  ;;  %v7553_v42 = vshll.u32 %v7552_v22, 16  ;;  %v6316_v51 = vshll.u32 %v6315_v59, 16 }
0x29b1   : > { %v5634_v52 = vshra.s32 %v13466_v38, 16 }
0x29d9   : > { %v8400_v58 = vpop.xlane.xlu0 %8399 }
0x29da   : > { %v8401_v13 = vcvt.f32.s32 %v8400_v58  ;;  %v13472_v58 = vcvt.s32.f32 %v5634_v52  ;;  %v7581_v52 = vcvt.f32.s32 %v13092_v36 }
0x29dc   : > { %v13425_v48 = vadd.s32 %v8403_v32, %v8401_v13  ;;  %v5502_v32 = vpop.permute.xlu1 %5501  ;;  %v7584_v37 = vadd.s32 %v7583_v20, %v7581_v52 }
0x29de   : > { %vm8405_vm13 = vcmp.eq.s32.totalorder %v14200_v2, %v13425_v48 }
0x29df   : > { %v8425_v12 = vsel %vm8405_vm13, %v13253_v26, 0  ;;  %v14202_v26 = vld [vmem:[#allocation57_spill] sm:$0xff] }
0x29e0   : > { %v8426_v3 = vsel %vm8326_vm0, %v8425_v12, 0  ;;  %vm5439_vm15 = vcmp.eq.f32.partialorder %v14202_v26, %v5396_v56  ;;  %v5576_v12 = vrot.slane %v5502_v32, %v11324_v53  ;;  %v14205_v26 = vld [vmem:[#allocation16_spill] sm:$0xff]  ;;  %v7568_v32 = vshll.u32 %v7567_v33, 16 }
0x29e1   : > { %v8428_v57 = vshrl.u32 %v8426_v3, 16  ;;  %v8427_v61 = vand.u32 65535, %v8426_v3  ;;  %v5459_v25 = vsel %vm5439_vm15, %v11823_v15, 5  ;;  %v13502_v43 = vpop.permute.xlu0 %5513 }
0x29e3   : > { %v8430_v19 = vcvt.s32.f32 %v8428_v57  ;;  %v8429_v41 = vcvt.s32.f32 %v8427_v61  ;;  %v5611_v61 = vsel %vm722_vm3, %v5576_v12, %v13417_v47  ;;  %v5460_v47 = vsel %vm5440_vm8, %v11823_v15, 5 }
0x29e5   : > { %8433 = vadd.xlane.f32.xlu1 %v8430_v19  ;;  %8431 = vadd.xlane.f32.xlu0 %v8429_v41 }
0x29f6   : > { %5504 = vperm.xlu1 %9163, %v5455_v50   ;;  %v14204_v50 = vld [vmem:[#allocation35_spill] sm:$0xff] }
0x29f7   : > { %v4683_v56 = vrot.slane %v14204_v50, %v11008_v34 }
0x29f9   : > { %vm4780_vm10 = vcmp.eq.f32.partialorder %v14205_v26, %v4683_v56  ;;  %v7569_v56 = vadd.s32 %v7568_v32, %v7566_v55 }
0x29fa   : > { %v4800_v27 = vsel %vm4780_vm10, %v11823_v15, 5 }
0x29fb   : > { %5516 = vperm.xlu0 %9164, %v5459_v25   ;;  %v14206_v25 = vld [vmem:[#allocation38_spill] sm:$0xff]  ;;  %v8447_v22 = vrot.slane %v7569_v56, %v11324_v53 }
0x29fc   : > { %v4703_v60 = vrot.slane %v14206_v25, %v11008_v34  ;;  %v4707_v45 = vrot.slane %v14206_v25, %v11047_v39  ;;  %v14215_v56 = vld [vmem:[#allocation26_spill] sm:$0xff] }
0x29fe   : > { %vm4785_vm11 = vcmp.eq.f32.partialorder %v14207_v9, %v4703_v60  ;;  %vm4786_vm12 = vcmp.eq.f32.partialorder %v14208_v21, %v4707_v45  ;;  %v8451_v21 = vrot.slane %v7584_v37, %v11324_v53  ;;  %v14214_v37 = vld [vmem:[#allocation46_spill] sm:$0xff] }
0x29ff   : > { %v4805_v6 = vsel %vm4785_vm11, %v11823_v15, 5  ;;  %v4806_v30 = vsel %vm4786_vm12, %v11823_v15, 5 }
0x2a1a   : > { %6282 = vmin.xlane.f32.xlu1 %v6281_v14  ;;  %6267 = vmin.xlane.f32.xlu0 %v6266_v1  ;;  %v7551_v14 = vcvt.f32.s32 %v13090_v63  ;;  %v6300_v63 = vcvt.f32.s32 %v13343_v28 }
0x2a1c   : > { %v6301_v45 = vshll.u32 %v6300_v63, 16 }
0x2a1e   : > { %5622 = vmin.xlane.f32.xlu1 %v13463_v7  ;;  %6297 = vmin.xlane.f32.xlu0 %v13351_v23 }
0x2a22   : > { %6312 = vmin.xlane.f32.xlu0 %v13401_v4 }
0x2a26   : > { %5637 = vmin.xlane.f32.xlu0 %v13472_v58 }
0x2a72   : > { %v8434_v13 = vpop.xlane.xlu1 %8433  ;;  %v8432_v44 = vpop.xlane.xlu0 %8431 }
0x2a73   : > { %v8436_v1 = vcvt.f32.s32 %v8434_v13  ;;  %v8435_v26 = vcvt.f32.s32 %v8432_v44 }
0x2a75   : > { %v8437_v13 = vshll.u32 %v8436_v1, 16 }
0x2a76   : > { %v5505_v3 = vpop.permute.xlu1 %5504 }
0x2a77   : > { %v5580_v57 = vrot.slane %v5505_v3, %v11324_v53 }
0x2a79   : > { %v5612_v23 = vsel %vm4002_vm9, %v5580_v57, %v5611_v61  ;;  %v6286_v57 = vshll.u32 %v6285_v8, 16 }
0x2a7a   : > { %v13481_v19 = vsel %vm3696_vm7, %v5612_v23, 2147483647  ;;  %v13508_v24 = vpop.permute.xlu0 %5516  ;;  %v7598_v23 = vshll.u32 %v7597_v18, 16 }
0x2a7b   : > { %v5649_v4 = vshra.s32 %v13481_v19, 16 }
0x2a7d   : > { %v13484_v41 = vcvt.s32.f32 %v5649_v4  ;;  %v7554_v4 = vadd.s32 %v7553_v42, %v7551_v14 }
0x2a7f   : > { %5652 = vmin.xlane.f32.xlu1 %v13484_v41  ;;  %v8443_v9 = vrot.slane %v7554_v4, %v11324_v53  ;;  %v4715_v4 = vrot.slane %v14206_v25, %v11161_v10 }
0x2a81   : > { %v8456_v35 = vsel %vm716_vm1, %v8447_v22, %v8443_v9  ;;  %v5648_v22 = vand.u32 65535, %v13481_v19 }
0x2a82   : > { %v8457_v18 = vsel %vm719_vm2, %v8451_v21, %v8456_v35 }
0x2a90   : > { %5519 = vperm.xlu1 %9163, %v5460_v47   ;;  %v7599_v47 = vadd.s32 %v7598_v23, %v7596_v11  ;;  %v14212_v23 = vld [vmem:[#allocation21_spill] sm:$0xff] }
0x2a92   : > { %v8455_v44 = vrot.slane %v7599_v47, %v11324_v53  ;;  %v4699_v47 = vrot.slane %v14204_v50, %v11063_v16 }
0x2a94   : > { %4821 = vperm.xlu1 %9163, %v4800_v27   ;;  %v8458_v1 = vsel %vm722_vm3, %v8455_v44, %v8457_v18 }
0x2a98   : > { %4836 = vperm.xlu1 %9163, %v4805_v6   ;;  %v13522_v6 = vadd.s32 %v8437_v13, %v8435_v26  ;;  %v14213_v13 = vld [vmem:[#allocation23_spill] sm:$0xff] }
0x2a99   : > { %vm4788_vm4 = vcmp.eq.f32.partialorder %v14213_v13, %v4715_v4  ;;  %v14220_v4 = vld [vmem:[#allocation20_spill] sm:$0xff] }
0x2a9a   : > { %vm8439_vm13 = vcmp.eq.s32.totalorder %v14200_v2, %v13522_v6 }
0x2a9b   : > { %v8459_v52 = vsel %vm8439_vm13, %v8458_v1, 0 }
0x2a9c   : > { %4839 = vperm.xlu1 %9163, %v4806_v30   ;;  %v8460_v55 = vsel %vm8326_vm0, %v8459_v52, 0 }
0x2a9d   : > { %v8462_v11 = vshrl.u32 %v8460_v55, 16 }
0x2aa7   : > { %v6283_v12 = vpop.xlane.xlu1 %6282  ;;  %v6268_v3 = vpop.xlane.xlu0 %6267 }
0x2aa8   : > { %v6284_v61 = vcvt.f32.s32 %v6283_v12  ;;  %v6269_v31 = vcvt.f32.s32 %v6268_v3  ;;  %v8464_v12 = vcvt.s32.f32 %v8462_v11  ;;  %v4711_v3 = vrot.slane %v14206_v25, %v11060_v62 }
0x2aaa   : > { %v6287_v17 = vadd.s32 %v6286_v57, %v6284_v61  ;;  %v6272_v36 = vadd.s32 %v6271_v46, %v6269_v31  ;;  %v14210_v57 = vld [vmem:[#allocation19_spill] sm:$0xff]  ;;  %v14211_v46 = vld [vmem:[#allocation41_spill] sm:$0xff] }
0x2aab   : > { %v6298_v49 = vpop.xlane.xlu0 %6297  ;;  %vm4787_vm14 = vcmp.eq.f32.partialorder %v14210_v57, %v4711_v3  ;;  %v4727_v61 = vrot.slane %v14211_v46, %v11047_v39  ;;  %v4735_v59 = vrot.slane %v14211_v46, %v11161_v10  ;;  %v4739_v9 = vrot.slane %v14211_v46, %v11063_v16  ;;  %v14219_v3 = vld [vmem:[#allocation15_spill] sm:$0xff] }
0x2aac   : > { %v8515_v60 = vrot.slane %v6287_v17, %v11324_v53  ;;  %v8511_v27 = vrot.slane %v6272_v36, %v11324_v53  ;;  %v6299_v28 = vcvt.f32.s32 %v6298_v49  ;;  %v4807_v31 = vsel %vm4787_vm14, %v11823_v15, 5  ;;  %v14216_v49 = vld [vmem:[#allocation28_spill] sm:$0xff] }
0x2aad   : > { %vm4791_vm15 = vcmp.eq.f32.partialorder %v14212_v23, %v4727_v61  ;;  %v4743_v17 = vrot.slane %v14214_v37, %v11008_v34  ;;  %v4808_v36 = vsel %vm4788_vm4, %v11823_v15, 5  ;;  %vm4784_vm8 = vcmp.eq.f32.partialorder %v14216_v49, %v4699_v47 }
0x2aae   : > { %v8524_v30 = vsel %vm716_vm1, %v8515_v60, %v8511_v27  ;;  %v6302_v33 = vadd.s32 %v6301_v45, %v6299_v28  ;;  %v4811_v63 = vsel %vm4791_vm15, %v11823_v15, 5  ;;  %v4804_v60 = vsel %vm4784_vm8, %v11823_v15, 5  ;;  %v14217_v27 = vld [vmem:[#allocation30_spill] sm:$0xff]  ;;  %v14218_v28 = vld [vmem:[#allocation32_spill] sm:$0xff] }
0x2aaf   : > { %v6313_v5 = vpop.xlane.xlu0 %6312  ;;  %vm4795_vm5 = vcmp.eq.f32.partialorder %v14215_v56, %v4743_v17  ;;  %vm4793_vm10 = vcmp.eq.f32.partialorder %v14217_v27, %v4735_v59  ;;  %vm4794_vm11 = vcmp.eq.f32.partialorder %v14218_v28, %v4739_v9  ;;  %v8461_v61 = vand.u32 65535, %v8460_v55  ;;  %v14221_v17 = vld [vmem:[#allocation22_spill] sm:$0xff]  ;;  %v14222_v56 = vld [vmem:[#allocation24_spill] sm:$0xff] }
0x2ab0   : > { %v6314_v8 = vcvt.f32.s32 %v6313_v5  ;;  %v8519_v29 = vrot.slane %v6302_v33, %v11324_v53  ;;  %v4815_v26 = vsel %vm4795_vm5, %v11823_v15, 5  ;;  %v4813_v45 = vsel %vm4793_vm10, %v11823_v15, 5 }
0x2ab1   : > { %v4814_v21 = vsel %vm4794_vm11, %v11823_v15, 5  ;;  %v5650_v33 = vcvt.s32.f32 %v5648_v22  ;;  %v5592_v5 = vrot.slane %v13502_v43, %v11324_v53  ;;  %v4691_v23 = vrot.slane %v14204_v50, %v11060_v62 }
0x2ab2   : > { %v6317_v14 = vadd.s32 %v6316_v51, %v6314_v8  ;;  %v8525_v42 = vsel %vm719_vm2, %v8519_v29, %v8524_v30  ;;  %v13568_v30 = vpop.xlane.xlu1 %5622  ;;  %v5596_v51 = vrot.slane %v13508_v24, %v11324_v53  ;;  %v4731_v47 = vrot.slane %v14211_v46, %v11060_v62 }
0x2ab3   : > { %v5614_v29 = vsel %vm719_vm2, %v5592_v5, %v13422_v40  ;;  %vm4782_vm14 = vcmp.eq.f32.partialorder %v14220_v4, %v4691_v23  ;;  %v4747_v49 = vrot.slane %v14214_v37, %v11047_v39  ;;  %v4751_v9 = vrot.slane %v14214_v37, %v11060_v62 }
0x2ab4   : > { %v8523_v32 = vrot.slane %v6317_v14, %v11324_v53  ;;  %v5615_v18 = vsel %vm722_vm3, %v5596_v51, %v5614_v29  ;;  %v4802_v13 = vsel %vm4782_vm14, %v11823_v15, 5  ;;  %v5633_v4 = vand.u32 65535, %v13466_v38 }
0x2ab6   : > { %v13537_v20 = vsel %vm722_vm3, %v8523_v32, %v8525_v42 }
0x2ac0   : > { %8467 = vadd.xlane.f32.xlu1 %v8464_v12  ;;  %v4687_v12 = vrot.slane %v14204_v50, %v11047_v39  ;;  %v14226_v39 = vld [vmem:[#allocation31_spill] sm:$0xff] }
0x2ac1   : > { %vm4797_vm11 = vcmp.eq.f32.partialorder %v14226_v39, %v4751_v9 }
0x2ac2   : > { %vm4781_vm13 = vcmp.eq.f32.partialorder %v14219_v3, %v4687_v12  ;;  %v4817_v28 = vsel %vm4797_vm11, %v11823_v15, 5  ;;  %v4759_v3 = vrot.slane %v14214_v37, %v11063_v16 }
0x2ac3   : > { %v4801_v57 = vsel %vm4781_vm13, %v11823_v15, 5 }
0x2ad1   : > { %4842 = vperm.xlu1 %9163, %v4807_v31   ;;  %v8463_v31 = vcvt.s32.f32 %v8461_v61 }
0x2ad5   : > { %4854 = vperm.xlu1 %9163, %v4811_v63   ;;  %v4723_v63 = vrot.slane %v14211_v46, %v11008_v34  ;;  %v14223_v34 = vld [vmem:[#allocation25_spill] sm:$0xff] }
0x2ad6   : > { %vm4792_vm5 = vcmp.eq.f32.partialorder %v14223_v34, %v4731_v47  ;;  %v14225_v46 = vld [vmem:[#allocation29_spill] sm:$0xff] }
0x2ad7   : > { %vm4790_vm15 = vcmp.eq.f32.partialorder %v14221_v17, %v4723_v63  ;;  %v4812_v59 = vsel %vm4792_vm5, %v11823_v15, 5  ;;  %v5618_v63 = vand.u32 65535, %v13451_v0 }
0x2ad8   : > { %v4810_v55 = vsel %vm4790_vm15, %v11823_v15, 5 }
0x2ad9   : > { %4845 = vperm.xlu1 %9163, %v4808_v36   ;;  %v4695_v36 = vrot.slane %v14204_v50, %v11161_v10  ;;  %v14224_v50 = vld [vmem:[#allocation27_spill] sm:$0xff] }
0x2ada   : > { %vm4796_vm8 = vcmp.eq.f32.partialorder %v14224_v50, %v4747_v49 }
0x2adb   : > { %vm4783_vm4 = vcmp.eq.f32.partialorder %v14222_v56, %v4695_v36  ;;  %v4816_v27 = vsel %vm4796_vm8, %v11823_v15, 5 }
0x2add   : > { %4866 = vperm.xlu1 %9163, %v4815_v26   ;;  %v4803_v26 = vsel %vm4783_vm4, %v11823_v15, 5  ;;  %vm5624_vm4 = vcmp.eq.f32.partialorder %v13463_v7, %v13568_v30 }
0x2ae1   : > { %4833 = vperm.xlu1 %9163, %v4804_v60   ;;  %v4719_v60 = vrot.slane %v14206_v25, %v11063_v16  ;;  %v5635_v16 = vcvt.s32.f32 %v5633_v4 }
0x2ae3   : > { %vm4789_vm10 = vcmp.eq.f32.partialorder %v14225_v46, %v4719_v60 }
0x2ae5   : > { %4860 = vperm.xlu1 %9163, %v4813_v45   ;;  %v4809_v45 = vsel %vm4789_vm10, %v11823_v15, 5 }
0x2ae9   : > { %4863 = vperm.xlu1 %9163, %v4814_v21   ;;  %v13624_v21 = vpop.xlane.xlu0 %5637 }
0x2aea   : > { %vm5639_vm5 = vcmp.eq.f32.partialorder %v13472_v58, %v13624_v21 }
0x2aeb   : > { %v5640_v17 = vsel %vm5639_vm5, %v5635_v16, inf }
0x2b0c   : > { %v13571_v44 = vpop.xlane.xlu1 %5652 }
0x2b0d   : > { %vm5654_vm12 = vcmp.eq.f32.partialorder %v13484_v41, %v13571_v44 }
0x2b0e   : > { %v13579_v8 = vsel %vm5654_vm12, %v5650_v33, inf }
0x2b10   : > { %v5520_v35 = vpop.permute.xlu1 %5519 }
0x2b11   : > { %v5600_v19 = vrot.slane %v5520_v35, %v11324_v53 }
0x2b13   : > { %v5616_v14 = vsel %vm4002_vm9, %v5600_v19, %v5615_v18 }
0x2b14   : > { %v4822_v1 = vpop.permute.xlu1 %4821  ;;  %v5662_v43 = vsel %vm3696_vm7, %v5616_v14, 2147483647 }
0x2b15   : > { %v5664_v42 = vshra.s32 %v5662_v43, 16  ;;  %v5663_v22 = vand.u32 65535, %v5662_v43  ;;  %v4883_v62 = vrot.slane %v4822_v1, %v11324_v53 }
0x2b17   : > { %v5666_v41 = vcvt.s32.f32 %v5664_v42  ;;  %v5665_v33 = vcvt.s32.f32 %v5663_v22 }
0x2b18   : > { %v4837_v52 = vpop.permute.xlu1 %4836 }
0x2b19   : > { %5667 = vmin.xlane.f32.xlu0 %v5666_v41  ;;  %v4903_v32 = vrot.slane %v4837_v52, %v11324_v53 }
0x2b1c   : > { %v4840_v24 = vpop.permute.xlu1 %4839 }
0x2b1d   : > { %v4907_v11 = vrot.slane %v4840_v24, %v11324_v53 }
0x2b1f   : > { %v13590_v40 = vsel %vm716_vm1, %v4907_v11, %v4903_v32 }
0x2b2f   : > { %4824 = vperm.xlu0 %9164, %v4801_v57   ;;  %v14227_v57 = vld [vmem:[#allocation34_spill] sm:$0xff] }
0x2b30   : > { %vm4799_vm14 = vcmp.eq.f32.partialorder %v14227_v57, %v4759_v3 }
0x2b31   : > { %v4819_v61 = vsel %vm4799_vm14, %v11823_v15, 5 }
0x2b4d   : > { %v8468_v19 = vpop.xlane.xlu1 %8467 }
0x2b4e   : > { %8465 = vadd.xlane.f32.xlu0 %v8463_v31  ;;  %v8470_v18 = vcvt.f32.s32 %v8468_v19  ;;  %v4755_v31 = vrot.slane %v14214_v37, %v11161_v10 }
0x2b50   : > { %v8471_v42 = vshll.u32 %v8470_v18, 16 }
0x2b64   : > { %4827 = vperm.xlu0 %9164, %v4802_v13   ;;  %v5620_v13 = vcvt.s32.f32 %v5618_v63 }
0x2b66   : > { %v5625_v10 = vsel %vm5624_vm4, %v5620_v13, inf }
0x2b68   : > { %4851 = vperm.xlu0 %9164, %v4810_v55  }
0x2b6c   : > { %4830 = vperm.xlu0 %9164, %v4803_v26  }
0x2b70   : > { %4857 = vperm.xlu0 %9164, %v4812_v59  }
0x2b74   : > { %4869 = vperm.xlu0 %9164, %v4816_v27  }
0x2b78   : > { %4848 = vperm.xlu0 %9164, %v4809_v45  }
0x2b7c   : > { %4872 = vperm.xlu0 %9164, %v4817_v28  }
0x2ba6   : > { %v13626_v25 = vpop.xlane.xlu0 %5667 }
0x2ba7   : > { %vm5669_vm12 = vcmp.eq.f32.partialorder %v5666_v41, %v13626_v25 }
0x2ba8   : > { %v5670_v5 = vsel %vm5669_vm12, %v5665_v33, inf }
0x2bae   : > { %v4825_v51 = vpop.permute.xlu0 %4824 }
0x2baf   : > { %v4887_v35 = vrot.slane %v4825_v51, %v11324_v53 }
0x2bb1   : > { %v4960_v29 = vsel %vm716_vm1, %v4887_v35, %v4883_v62 }
0x2bdb   : > { %v8466_v14 = vpop.xlane.xlu0 %8465 }
0x2bdc   : > { %v8469_v52 = vcvt.f32.s32 %v8466_v14 }
0x2bde   : > { %v13632_v24 = vadd.s32 %v8471_v42, %v8469_v52 }
0x2be0   : > { %vm8473_vm13 = vcmp.eq.s32.totalorder %v14200_v2, %v13632_v24 }
0x2be1   : > { %v8493_v43 = vsel %vm8473_vm13, %v13332_v54, 0  ;;  %v14228_v54 = vld [vmem:[#allocation33_spill] sm:$0xff] }
0x2be2   : > { %v8494_v41 = vsel %vm8326_vm0, %v8493_v43, 0  ;;  %vm4798_vm15 = vcmp.eq.f32.partialorder %v14228_v54, %v4755_v31 }
0x2be3   : > { %v8496_v32 = vshrl.u32 %v8494_v41, 16  ;;  %v8495_v1 = vand.u32 65535, %v8494_v41  ;;  %v4818_v23 = vsel %vm4798_vm15, %v11823_v15, 5  ;;  %v4843_v15 = vpop.permute.xlu1 %4842  ;;  %v4828_v37 = vpop.permute.xlu0 %4827 }
0x2be4   : > { %v4891_v50 = vrot.slane %v4828_v37, %v11324_v53 }
0x2be5   : > { %v8498_v11 = vcvt.s32.f32 %v8496_v32  ;;  %v8497_v12 = vcvt.s32.f32 %v8495_v1 }
0x2be6   : > { %v4961_v22 = vsel %vm719_vm2, %v4891_v50, %v4960_v29 }
0x2be7   : > { %8501 = vadd.xlane.f32.xlu1 %v8498_v11  ;;  %8499 = vadd.xlane.f32.xlu0 %v8497_v12  ;;  %v4855_v38 = vpop.permute.xlu1 %4854  ;;  %v4852_v36 = vpop.permute.xlu0 %4851 }
0x2be8   : > { %v4923_v60 = vrot.slane %v4852_v36, %v11324_v53  ;;  %v4927_v9 = vrot.slane %v4855_v38, %v11324_v53 }
0x2bea   : > { %v4968_v33 = vsel %vm716_vm1, %v4927_v9, %v4923_v60  ;;  %v5629_v60 = vcvt.f32.s32 %v13568_v30 }
0x2beb   : > { %v4846_v0 = vpop.permute.xlu1 %4845  ;;  %v4831_v55 = vpop.permute.xlu0 %4830 }
0x2bec   : > { %v4895_v27 = vrot.slane %v4831_v55, %v11324_v53  ;;  %v4915_v45 = vrot.slane %v4846_v0, %v11324_v53 }
0x2bee   : > { %v4962_v62 = vsel %vm722_vm3, %v4895_v27, %v4961_v22  ;;  %v5659_v27 = vcvt.f32.s32 %v13571_v44 }
0x2bef   : > { %v4867_v56 = vpop.permute.xlu1 %4866  ;;  %v4858_v7 = vpop.permute.xlu0 %4857 }
0x2bf0   : > { %v4931_v46 = vrot.slane %v4858_v7, %v11324_v53  ;;  %v4943_v3 = vrot.slane %v4867_v56, %v11324_v53 }
0x2bf2   : > { %v4969_v35 = vsel %vm719_vm2, %v4931_v46, %v4968_v33  ;;  %v5660_v33 = vshll.u32 %v5659_v27, 16 }
0x2bf3   : > { %v4834_v47 = vpop.permute.xlu1 %4833  ;;  %v4870_v26 = vpop.permute.xlu0 %4869 }
0x2bf4   : > { %v4899_v18 = vrot.slane %v4834_v47, %v11324_v53  ;;  %v4947_v41 = vrot.slane %v4870_v26, %v11324_v53 }
0x2bf6   : > { %v4972_v4 = vsel %vm716_vm1, %v4947_v41, %v4943_v3 }
0x2bf7   : > { %v4861_v58 = vpop.permute.xlu1 %4860  ;;  %v4849_v34 = vpop.permute.xlu0 %4848 }
0x2bf8   : > { %4878 = vperm.xlu1 %9163, %v4819_v61   ;;  %v4919_v19 = vrot.slane %v4849_v34, %v11324_v53  ;;  %v4935_v14 = vrot.slane %v4861_v58, %v11324_v53 }
0x2bfa   : > { %v4970_v43 = vsel %vm722_vm3, %v4935_v14, %v4969_v35 }
0x2bfb   : > { %v4864_v49 = vpop.permute.xlu1 %4863  ;;  %v4873_v59 = vpop.permute.xlu0 %4872 }
0x2bfc   : > { %v4939_v1 = vrot.slane %v4864_v49, %v11324_v53  ;;  %v4951_v12 = vrot.slane %v4873_v59, %v11324_v53 }
0x2bfd   : > { %4875 = vperm.xlu0 %9164, %v4818_v23  }
0x2bfe   : > { %v4971_v23 = vsel %vm4002_vm9, %v4939_v1, %v4970_v43  ;;  %v14229_v1 = vld [vmem:[#allocation12_spill] sm:$0xff] }
0x2bff   : > { %v13699_v7 = vsel %vm3696_vm7, %v4971_v23, 2147483647  ;;  %v14232_v23 = vld [vmem:[#allocation13_spill] sm:$0xff] }
0x2c00   : > { %v5008_v34 = vshra.s32 %v13699_v7, 16 }
0x2c02   : > { %v13712_v59 = vcvt.s32.f32 %v5008_v34 }
0x2c1c   : > { %5641 = vmin.xlane.f32.xlu1 %v5640_v17  ;;  %5626 = vmin.xlane.f32.xlu0 %v5625_v10  ;;  %v4973_v17 = vsel %vm719_vm2, %v4951_v12, %v4972_v4  ;;  %v14230_v12 = vld [vmem:[#allocation108_spill] sm:$0xff]  ;;  %v4294_v4 = vrot.slane %v14232_v23, %v11324_v53  ;;  %v14241_v23 = vld [vmem:[#allocation107_spill] sm:$0xff] }
0x2c1d   : > { %v4282_v3 = vrot.slane %v14230_v12, %v11324_v53 }
0x2c20   : > { %5656 = vmin.xlane.f32.xlu0 %v13579_v8  ;;  %v4911_v8 = vrot.slane %v4843_v15, %v11324_v53 }
0x2c22   : > { %v4965_v51 = vsel %vm719_vm2, %v4911_v8, %v13590_v40  ;;  %v4963_v40 = vsel %vm4002_vm9, %v4899_v18, %v4962_v62  ;;  %v5644_v8 = vcvt.f32.s32 %v13624_v21 }
0x2c23   : > { %v4966_v29 = vsel %vm722_vm3, %v4915_v45, %v4965_v51  ;;  %v13683_v54 = vsel %vm3696_vm7, %v4963_v40, 2147483647  ;;  %v5674_v51 = vcvt.f32.s32 %v13626_v25 }
0x2c24   : > { %5671 = vmin.xlane.f32.xlu0 %v5670_v5  ;;  %v4967_v11 = vsel %vm4002_vm9, %v4919_v19, %v4966_v29  ;;  %v4978_v38 = vshra.s32 %v13683_v54, 16  ;;  %v5645_v22 = vshll.u32 %v5644_v8, 16  ;;  %v14237_v8 = vld [vmem:[#allocation103_spill] sm:$0xff] }
0x2c25   : > { %v13690_v13 = vsel %vm3696_vm7, %v4967_v11, 2147483647  ;;  %v5675_v30 = vshll.u32 %v5674_v51, 16  ;;  %v4286_v11 = vrot.slane %v14229_v1, %v11324_v53  ;;  %v4314_v27 = vrot.slane %v14237_v8, %v11324_v53 }
0x2c26   : > { %v4993_v55 = vshra.s32 %v13690_v13, 16  ;;  %v13704_v26 = vcvt.s32.f32 %v4978_v38  ;;  %v14234_v38 = vld [vmem:[#allocation14_spill] sm:$0xff] }
0x2c28   : > { %v13706_v58 = vcvt.s32.f32 %v4993_v55 }
0x2c74   : > { %v8502_v39 = vpop.xlane.xlu1 %8501  ;;  %v8500_v28 = vpop.xlane.xlu0 %8499 }
0x2c75   : > { %v8504_v5 = vcvt.f32.s32 %v8502_v39  ;;  %v8503_v52 = vcvt.f32.s32 %v8500_v28  ;;  %v5630_v28 = vshll.u32 %v5629_v60, 16 }
0x2c77   : > { %v8505_v42 = vshll.u32 %v8504_v5, 16 }
0x2c78   : > { %v4879_v57 = vpop.permute.xlu1 %4878 }
0x2c79   : > { %v13672_v32 = vadd.s32 %v8505_v42, %v8503_v52  ;;  %v4959_v10 = vrot.slane %v4879_v57, %v11324_v53  ;;  %v14231_v57 = vld [vmem:[#allocation109_spill] sm:$0xff] }
0x2c7b   : > { %vm8507_vm8 = vcmp.eq.s32.totalorder %v14200_v2, %v13672_v32 }
0x2c7c   : > { %v8527_v61 = vsel %vm8507_vm8, %v13537_v20, 0  ;;  %v4876_v31 = vpop.permute.xlu0 %4875  ;;  %vm8656_vm8 = vcmp.eq.s32.totalorder %v14200_v2, 5 }
0x2c7d   : > { %v4955_v63 = vrot.slane %v4876_v31, %v11324_v53  ;;  %v8528_v16 = vsel %vm8326_vm0, %v8527_v61, 0  ;;  %v4290_v61 = vrot.slane %v14231_v57, %v11324_v53  ;;  %v4327_v31 = vsel %vm716_vm1, %v4286_v11, %v4282_v3 }
0x2c7e   : > { %v8530_v20 = vshrl.u32 %v8528_v16, 16  ;;  %v8529_v15 = vand.u32 65535, %v8528_v16 }
0x2c7f   : > { %v4974_v37 = vsel %vm722_vm3, %v4955_v63, %v4973_v17  ;;  %v14233_v63 = vld [vmem:[#allocation101_spill] sm:$0xff] }
0x2c80   : > { %v8532_v36 = vcvt.s32.f32 %v8530_v20  ;;  %v8531_v0 = vcvt.s32.f32 %v8529_v15  ;;  %v4975_v56 = vsel %vm4002_vm9, %v4959_v10, %v4974_v37  ;;  %v4306_v16 = vrot.slane %v14233_v63, %v11324_v53 }
0x2c81   : > { %v13702_v47 = vsel %vm3696_vm7, %v4975_v56, 2147483647  ;;  %v4977_v20 = vand.u32 65535, %v13683_v54  ;;  %v4992_v15 = vand.u32 65535, %v13690_v13  ;;  %v4328_v37 = vsel %vm719_vm2, %v4290_v61, %v4327_v31  ;;  %v14238_v13 = vld [vmem:[#allocation104_spill] sm:$0xff] }
0x2c82   : > { %8535 = vadd.xlane.f32.xlu1 %v8532_v36  ;;  %8533 = vadd.xlane.f32.xlu0 %v8531_v0  ;;  %v5023_v49 = vshra.s32 %v13702_v47, 16  ;;  %v4302_v36 = vrot.slane %v14234_v38, %v11324_v53  ;;  %v14235_v0 = vld [vmem:[#allocation102_spill] sm:$0xff]  ;;  %v4329_v34 = vsel %vm722_vm3, %v4294_v4, %v4328_v37  ;;  %v5022_v51 = vand.u32 65535, %v13702_v47  ;;  %v14240_v31 = vld [vmem:[#allocation112_spill] sm:$0xff] }
0x2c83   : > { %v4310_v55 = vrot.slane %v14235_v0, %v11324_v53 }
0x2c84   : > { %v13714_v50 = vcvt.s32.f32 %v5023_v49  ;;  %v14236_v49 = vld [vmem:[#allocation110_spill] sm:$0xff]  ;;  %v4331_v54 = vsel %vm716_vm1, %v4306_v16, %v4302_v36 }
0x2c85   : > { %v4298_v60 = vrot.slane %v14236_v49, %v11324_v53 }
0x2c86   : > { %4981 = vmin.xlane.f32.xlu1 %v13704_v26  ;;  %4996 = vmin.xlane.f32.xlu0 %v13706_v58 }
0x2c8a   : > { %5011 = vmin.xlane.f32.xlu1 %v13712_v59  ;;  %5026 = vmin.xlane.f32.xlu0 %v13714_v50 }
0x2ca9   : > { %v5642_v46 = vpop.xlane.xlu1 %5641  ;;  %v5627_v9 = vpop.xlane.xlu0 %5626 }
0x2caa   : > { %v5643_v45 = vcvt.f32.s32 %v5642_v46  ;;  %v5628_v39 = vcvt.f32.s32 %v5627_v9  ;;  %v4318_v46 = vrot.slane %v14238_v13, %v11324_v53 }
0x2cac   : > { %v5646_v62 = vadd.s32 %v5645_v22, %v5643_v45  ;;  %v5631_v35 = vadd.s32 %v5630_v28, %v5628_v39  ;;  %v4979_v22 = vcvt.s32.f32 %v4977_v20 }
0x2cad   : > { %v5657_v5 = vpop.xlane.xlu0 %5656 }
0x2cae   : > { %v5658_v19 = vcvt.f32.s32 %v5657_v5  ;;  %v8549_v21 = vrot.slane %v5646_v62, %v11324_v53  ;;  %v8545_v44 = vrot.slane %v5631_v35, %v11324_v53  ;;  %v5007_v5 = vand.u32 65535, %v13699_v7 }
0x2caf   : > { %v4332_v62 = vsel %vm719_vm2, %v4310_v55, %v4331_v54 }
0x2cb0   : > { %v5661_v18 = vadd.s32 %v5660_v33, %v5658_v19  ;;  %v8558_v43 = vsel %vm716_vm1, %v8549_v21, %v8545_v44  ;;  %v4994_v33 = vcvt.s32.f32 %v4992_v15  ;;  %v4330_v19 = vsel %vm4002_vm9, %v4298_v60, %v4329_v34 }
0x2cb1   : > { %v5672_v14 = vpop.xlane.xlu0 %5671 }
0x2cb2   : > { %v5673_v42 = vcvt.f32.s32 %v5672_v14  ;;  %v8553_v52 = vrot.slane %v5661_v18, %v11324_v53  ;;  %v4333_v18 = vsel %vm722_vm3, %v4314_v27, %v4332_v62 }
0x2cb3   : > { %v4334_v21 = vsel %vm4002_vm9, %v4318_v46, %v4333_v18  ;;  %vm4357_vm9 = vcmp.eq.f32.partialorder %v14241_v23, %v14240_v31  ;;  %v14243_v23 = vld [vmem:[#allocation111_spill] sm:$0xff] }
0x2cb4   : > { %v5676_v29 = vadd.s32 %v5675_v30, %v5673_v42  ;;  %v8559_v25 = vsel %vm719_vm2, %v8553_v52, %v8558_v43  ;;  %v5009_v42 = vcvt.s32.f32 %v5007_v5 }
0x2cb6   : > { %v8557_v41 = vrot.slane %v5676_v29, %v11324_v53 }
0x2cb8   : > { %v8560_v40 = vsel %vm722_vm3, %v8557_v41, %v8559_v25  ;;  %v4380_v41 = vsel %vm3696_vm7, %v4334_v21, 2147483647 }
0x2cb9   : > { %v4382_v3 = vshra.s32 %v4380_v41, 16 }
0x2cbb   : > { %v4384_v61 = vcvt.s32.f32 %v4382_v3  ;;  %v4362_v3 = vcvt.f32.s32 %v14240_v31 }
0x2d0f   : > { %v8536_v17 = vpop.xlane.xlu1 %8535  ;;  %v8534_v10 = vpop.xlane.xlu0 %8533 }
0x2d10   : > { %v8538_v56 = vcvt.f32.s32 %v8536_v17  ;;  %v8537_v45 = vcvt.f32.s32 %v8534_v10 }
0x2d12   : > { %v8539_v9 = vshll.u32 %v8538_v56, 16 }
0x2d13   : > { %v4982_v39 = vpop.xlane.xlu1 %4981  ;;  %v4997_v28 = vpop.xlane.xlu0 %4996 }
0x2d14   : > { %v13758_v35 = vadd.s32 %v8539_v9, %v8537_v45  ;;  %vm4983_vm10 = vcmp.eq.f32.partialorder %v13704_v26, %v4982_v39  ;;  %vm4998_vm11 = vcmp.eq.f32.partialorder %v13706_v58, %v4997_v28  ;;  %v5024_v26 = vcvt.s32.f32 %v5022_v51 }
0x2d15   : > { %v4984_v14 = vsel %vm4983_vm10, %v4979_v22, inf  ;;  %v4999_v30 = vsel %vm4998_vm11, %v4994_v33, inf  ;;  %v4365_v58 = vsel %vm3696_vm7, %v4330_v19, 2147483647  ;;  %v4988_v16 = vcvt.f32.s32 %v4982_v39 }
0x2d16   : > { %vm8541_vm12 = vcmp.eq.s32.totalorder %v14200_v2, %v13758_v35  ;;  %4985 = vmin.xlane.f32.xlu1 %v4984_v14  ;;  %5000 = vmin.xlane.f32.xlu0 %v4999_v30  ;;  %v4367_v12 = vshra.s32 %v4365_v58, 16  ;;  %v5003_v17 = vcvt.f32.s32 %v4997_v28  ;;  %v4366_v5 = vand.u32 65535, %v4365_v58 }
0x2d17   : > { %v8561_v7 = vsel %vm8541_vm12, %v8560_v40, 0  ;;  %v5012_v47 = vpop.xlane.xlu1 %5011  ;;  %v5027_v44 = vpop.xlane.xlu0 %5026  ;;  %v4989_v38 = vshll.u32 %v4988_v16, 16  ;;  %v4381_v51 = vand.u32 65535, %v4380_v41  ;;  %vm8659_vm10 = vcmp.eq.s32.totalorder %v14200_v2, 6 }
0x2d18   : > { %vm5013_vm13 = vcmp.eq.f32.partialorder %v13712_v59, %v5012_v47  ;;  %vm5028_vm14 = vcmp.eq.f32.partialorder %v13714_v50, %v5027_v44  ;;  %v8562_v43 = vsel %vm8326_vm0, %v8561_v7, 0  ;;  %v14239_v59 = vld [vmem:[#allocation105_spill] sm:$0xff]  ;;  %v4369_v57 = vcvt.s32.f32 %v4367_v12 }
0x2d19   : > { %v5014_v52 = vsel %vm5013_vm13, %v5009_v42, inf  ;;  %v5029_v29 = vsel %vm5028_vm14, %v5024_v26, inf  ;;  %v8564_v25 = vshrl.u32 %v8562_v43, 16  ;;  %v8563_v40 = vand.u32 65535, %v8562_v43 }
0x2d1a   : > { %5015 = vmin.xlane.f32.xlu1 %v5014_v52  ;;  %5030 = vmin.xlane.f32.xlu0 %v5029_v29  ;;  %v4351_v50 = vand.u32 65535, %v14239_v59  ;;  %v5018_v10 = vcvt.f32.s32 %v5012_v47  ;;  %v5033_v20 = vcvt.f32.s32 %v5027_v44  ;;  %v5004_v36 = vshll.u32 %v5003_v17, 16 }
0x2d1b   : > { %v8566_v1 = vcvt.s32.f32 %v8564_v25  ;;  %v8565_v11 = vcvt.s32.f32 %v8563_v40  ;;  %v4368_v44 = vcvt.s32.f32 %v4366_v5  ;;  %v4383_v42 = vcvt.s32.f32 %v4381_v51 }
0x2d1c   : > { %v4353_v4 = vcvt.s32.f32 %v4351_v50  ;;  %v5019_v49 = vshll.u32 %v5018_v10, 16  ;;  %v5034_v60 = vshll.u32 %v5033_v20, 16  ;;  %v14242_v50 = vld [vmem:[#allocation106_spill] sm:$0xff]  ;;  %vm8662_vm11 = vcmp.eq.s32.totalorder %v14200_v2, 7 }
0x2d1e   : > { %8569 = vadd.xlane.f32.xlu1 %v8566_v1  ;;  %8567 = vadd.xlane.f32.xlu0 %v8565_v11  ;;  %v4358_v63 = vsel %vm4357_vm9, %v4353_v4, inf  ;;  %v4346_v4 = vcvt.f32.s32 %v14243_v23 }
0x2d22   : > { %4370 = vmin.xlane.f32.xlu1 %v4369_v57  ;;  %4385 = vmin.xlane.f32.xlu0 %v4384_v61 }
0x2d26   : > { %4359 = vmin.xlane.f32.xlu1 %v4358_v63  ;;  %v4363_v63 = vshll.u32 %v4362_v3, 16  ;;  %v8663_v3 = vsel %vm8662_vm11, %v13425_v48, 0 }
0x2da3   : > { %v4986_v15 = vpop.xlane.xlu1 %4985  ;;  %v5001_v37 = vpop.xlane.xlu0 %5000 }
0x2da4   : > { %v4987_v0 = vcvt.f32.s32 %v4986_v15  ;;  %v5002_v55 = vcvt.f32.s32 %v5001_v37 }
0x2da6   : > { %v4990_v56 = vadd.s32 %v4989_v38, %v4987_v0  ;;  %v5005_v34 = vadd.s32 %v5004_v36, %v5002_v55 }
0x2da7   : > { %v5016_v8 = vpop.xlane.xlu1 %5015  ;;  %v5031_v27 = vpop.xlane.xlu0 %5030 }
0x2da8   : > { %v8579_v54 = vrot.slane %v4990_v56, %v11324_v53  ;;  %v8583_v13 = vrot.slane %v5005_v34, %v11324_v53  ;;  %v5017_v46 = vcvt.f32.s32 %v5016_v8  ;;  %v5032_v9 = vcvt.f32.s32 %v5031_v27 }
0x2daa   : > { %v8592_v45 = vsel %vm716_vm1, %v8583_v13, %v8579_v54  ;;  %v5020_v39 = vadd.s32 %v5019_v49, %v5017_v46  ;;  %v5035_v28 = vadd.s32 %v5034_v60, %v5032_v9 }
0x2dab   : > { %v8570_v22 = vpop.xlane.xlu1 %8569  ;;  %v8568_v33 = vpop.xlane.xlu0 %8567 }
0x2dac   : > { %v8587_v62 = vrot.slane %v5020_v39, %v11324_v53  ;;  %v8572_v19 = vcvt.f32.s32 %v8570_v22  ;;  %v8591_v18 = vrot.slane %v5035_v28, %v11324_v53  ;;  %v8571_v30 = vcvt.f32.s32 %v8568_v33 }
0x2dae   : > { %v8573_v14 = vshll.u32 %v8572_v19, 16  ;;  %v8593_v21 = vsel %vm719_vm2, %v8587_v62, %v8592_v45 }
0x2daf   : > { %v4371_v7 = vpop.xlane.xlu1 %4370  ;;  %v4386_v47 = vpop.xlane.xlu0 %4385  ;;  %v8594_v29 = vsel %vm722_vm3, %v8591_v18, %v8593_v21 }
0x2db0   : > { %v13781_v26 = vadd.s32 %v8573_v14, %v8571_v30  ;;  %vm4372_vm7 = vcmp.eq.f32.partialorder %v4369_v57, %v4371_v7  ;;  %vm4387_vm15 = vcmp.eq.f32.partialorder %v4384_v61, %v4386_v47  ;;  %v4377_v59 = vcvt.f32.s32 %v4371_v7 }
0x2db1   : > { %v4373_v52 = vsel %vm4372_vm7, %v4368_v44, inf  ;;  %v4388_v58 = vsel %vm4387_vm15, %v4383_v42, inf  ;;  %v4347_v57 = vcvt.f32.s32 %v14242_v50  ;;  %v4392_v16 = vcvt.f32.s32 %v4386_v47 }
0x2db2   : > { %vm8575_vm4 = vcmp.eq.s32.totalorder %v14200_v2, %v13781_v26  ;;  %4374 = vmin.xlane.f32.xlu0 %v4373_v52  ;;  %4389 = vmin.xlane.f32.xlu1 %v4388_v58  ;;  %v4378_v20 = vshll.u32 %v4377_v59, 16  ;;  %v14244_v59 = vld [vmem:[#allocation11_spill] sm:$0xff] }
0x2db3   : > { %v8595_v43 = vsel %vm8575_vm4, %v8594_v29, 0  ;;  %v4360_v12 = vpop.xlane.xlu1 %4359  ;;  %v4348_v37 = vshll.u32 %v4347_v57, 16  ;;  %v4393_v56 = vshll.u32 %v4392_v16, 16 }
0x2db4   : > { %v8596_v41 = vsel %vm8326_vm0, %v8595_v43, 0  ;;  %v4361_v61 = vcvt.f32.s32 %v4360_v12  ;;  %v8651_v43 = vsel %vm3611_vm6, %v13758_v35, 0  ;;  %vm8694_vm6 = vcmask 57344  }
0x2db5   : > { %v8598_v25 = vshrl.u32 %v8596_v41, 16  ;;  %v8597_v40 = vand.u32 65535, %v8596_v41  ;;  %v4349_v55 = vadd.s32 %v4348_v37, %v4346_v4 }
0x2db6   : > { %v4364_v38 = vadd.s32 %v4363_v63, %v4361_v61 }
0x2db7   : > { %v8600_v1 = vcvt.s32.f32 %v8598_v25  ;;  %v8599_v11 = vcvt.s32.f32 %v8597_v40  ;;  %v8613_v27 = vrot.slane %v4349_v55, %v11324_v53 }
0x2db8   : > { %v8617_v31 = vrot.slane %v4364_v38, %v11324_v53 }
0x2db9   : > { %8603 = vadd.xlane.f32.xlu0 %v8600_v1  ;;  %8601 = vadd.xlane.f32.xlu1 %v8599_v11  ;;  %v8657_v1 = vsel %vm8656_vm8, %v13632_v24, 0  ;;  %v8660_v11 = vsel %vm8659_vm10, %v13522_v6, 0 }
0x2dba   : > { %v8626_v13 = vsel %vm716_vm1, %v8617_v31, %v8613_v27  ;;  %vm8645_vm1 = vcmp.eq.s32.totalorder %v14200_v2, 1 }
0x2e3f   : > { %v4390_v17 = vpop.xlane.xlu1 %4389  ;;  %v4375_v10 = vpop.xlane.xlu0 %4374 }
0x2e40   : > { %v4376_v15 = vcvt.f32.s32 %v4375_v10  ;;  %v4391_v36 = vcvt.f32.s32 %v4390_v17 }
0x2e42   : > { %v4379_v0 = vadd.s32 %v4378_v20, %v4376_v15  ;;  %v4394_v34 = vadd.s32 %v4393_v56, %v4391_v36 }
0x2e44   : > { %v8621_v49 = vrot.slane %v4379_v0, %v11324_v53  ;;  %v8625_v46 = vrot.slane %v4394_v34, %v11324_v53 }
0x2e46   : > { %v8602_v60 = vpop.xlane.xlu1 %8601  ;;  %v8604_v8 = vpop.xlane.xlu0 %8603  ;;  %v8627_v39 = vsel %vm719_vm2, %v8621_v49, %v8626_v13  ;;  %vm8643_vm2 = vcmp.eq.s32.totalorder %v14200_v2, 0 }
0x2e47   : > { %v8606_v54 = vcvt.f32.s32 %v8604_v8  ;;  %v8605_v9 = vcvt.f32.s32 %v8602_v60  ;;  %v8628_v22 = vsel %vm722_vm3, %v8625_v46, %v8627_v39  ;;  %vm8648_vm3 = vcmp.eq.s32.totalorder %v14200_v2, 2 }
0x2e48   : > { %v8649_v58 = vsel %vm8648_vm3, %v13781_v26, 0 }
0x2e49   : > { %v8607_v45 = vshll.u32 %v8606_v54, 16 }
0x2e4b   : > { %v8608_v28 = vadd.s32 %v8607_v45, %v8605_v9 }
0x2e4d   : > { %vm8609_vm5 = vcmp.eq.s32.totalorder %v14200_v2, %v8608_v28  ;;  %v8646_v44 = vsel %vm8645_vm1, %v8608_v28, 0 }
0x2e4e   : > { %v8629_v33 = vsel %vm8609_vm5, %v8628_v22, 0 }
0x2e4f   : > { %v8630_v5 = vsel %vm8326_vm0, %v8629_v33, 0  ;;  %vm8653_vm0 = vcmp.eq.s32.totalorder %v14200_v2, 4 }
0x2e50   : > { %v8632_v51 = vshrl.u32 %v8630_v5, 16  ;;  %v8631_v62 = vand.u32 65535, %v8630_v5  ;;  %v8654_v25 = vsel %vm8653_vm0, %v13672_v32, 0 }
0x2e52   : > { %v8634_v19 = vcvt.s32.f32 %v8632_v51  ;;  %v8633_v18 = vcvt.s32.f32 %v8631_v62 }
0x2e54   : > { %8637 = vadd.xlane.f32.xlu0 %v8634_v19  ;;  %8635 = vadd.xlane.f32.xlu1 %v8633_v18 }
0x2ee1   : > { %v8638_v14 = vpop.xlane.xlu0 %8637  ;;  %v8636_v53 = vpop.xlane.xlu1 %8635 }
0x2ee2   : > { %v8640_v30 = vcvt.f32.s32 %v8638_v14  ;;  %v8639_v7 = vcvt.f32.s32 %v8636_v53 }
0x2ee4   : > { %v8641_v21 = vshll.u32 %v8640_v30, 16 }
0x2ee6   : > { %v8642_v47 = vadd.s32 %v8641_v21, %v8639_v7 }
0x2ee8   : > { %v8644_v42 = vsel %vm8643_vm2, %v8642_v47, 0 }
0x2ee9   : > { %v8647_v52 = vadd.s32 %v8646_v44, %v8644_v42 }
0x2eeb   : > { %v8650_v29 = vadd.s32 %v8649_v58, %v8647_v52 }
0x2eed   : > { %v8652_v41 = vadd.s32 %v8651_v43, %v8650_v29 }
0x2eef   : > { %v8655_v40 = vadd.s32 %v8654_v25, %v8652_v41 }
0x2ef1   : > { %v8658_v26 = vadd.s32 %v8657_v1, %v8655_v40 }
0x2ef3   : > { %v8661_v12 = vadd.s32 %v8660_v11, %v8658_v26 }
0x2ef5   : > { %v8664_v35 = vadd.s32 %v8663_v3, %v8661_v12 }
0x2ef7   : > { %v8676_v50 = vrot.slane %v8664_v35, %v14244_v59 }
0x2ef9   : > { %v8677_v32 = vcombine.high %v8676_v50, %v8676_v50  ;;  %v8684_v57 = vrot.slane %v8676_v50, %v14244_v59 }
0x2efb   : > { %v8691_v2 = vrot.slane %v8677_v32, %v14244_v59  ;;  %v8692_v24 = vcombine.high %v8684_v57, %v8684_v57  ;;  %8695 = vst.msk [vmem:[%s364_s28] sm:$0x1] %vm8694_vm6, %v8684_v57 }
0x2efd   : > { %v8693_v48 = vcombine.high %v8691_v2, %v8691_v2  ;;  %8696 = vst.msk [vmem:[%s364_s28 + $0x1] sm:$0x1] %vm8694_vm6, %v8691_v2  ;;  %8697 = vst.msk [vmem:[%s364_s28 + $0x2] sm:$0x1] %vm8694_vm6, %v8692_v24 }
0x2eff   : > { %8698 = vst.msk [vmem:[%s364_s28 + $0x3] sm:$0x1] %vm8694_vm6, %v8693_v48 }
0x2f00   : > { %9728 = shalt.err (!%p9725_p4)
}
0x2f01   : > { %s9729_s24 = scalar_lea.hbm %s13822_s27, 64  ;;  %s9733_s17 = scalar_lea.hbm %s13879_s9, 128 }
0x2f02   : > { %p9730_p5 = scmp.ne.s32.totalorder %s13822_s27, %s9729_s24  ;;  %p9734_p1 = scmp.lt.u32.totalorder %s13822_s27, %s13879_s9 }
0x2f03   : > { %p9735_p3 = scmp.lt.u32.totalorder %s9733_s17, %s9729_s24  ;;  %p9737_p11 = scmp.lt.u32.totalorder %s9729_s24, %s13822_s27 }
0x2f04   : > { %p9731_p7 = pnand %p9730_p5, %p14245_p12 }
0x2f05   : > { %p9736_p6 = por %p9735_p3, %p9734_p1 }
0x2f06   : > { %p9732_p9 = pneg %p9731_p7 }
0x2f07   : > { %p9738_p13 = por %p9737_p11, %p9736_p6 }
0x2f09   : > { %p9739_p8 = pnand %p9738_p13, %p9732_p9 }
0x2f0b   : > { %9742 = shalt.err (!%p9739_p8)
}
0x2f0c   : > { %s9797_s25 = smov 1  }
0x2f0d   : > { %9106 = dma.vmem_to_hbm [thread:$0]  (%p14245_p12), %s13824_s14, 64, %s13822_s27, %s8709_s13, %s9791_s26, %s9791_s26, %s9797_s25  }
0x2f0e PF: > { %s8760_s16 = sand.u32 1, %s9769_s30   ;;  %p14246_p10 = scmp.ne.s32.totalorder %s13996_s22, 0 }
0x2f0f   : > { %p14247_p0 = scmp.ge.s32.totalorder %s9781_s12, 2  ;;  %s8761_s24 = scalar_lea.sflag [#allocation6], %s8760_s16 }
0x2f11   : > { %p9113_p2 = pnand %p14247_p0, %p14246_p10 }
0x2f13   : > { %9764 = dma.done.wait (!%p9113_p2), %s8761_s24, 64  }
0x2f14   : > { %9766 = vsyncadd (!%p9113_p2), %s8761_s24, 4294967232  ;;  %p23_p4 = scmp.ge.s32.totalorder %s9873_s15, 4   ;;  %s14248_s30 = smov %s9773_s10 }
0x2f15   : > { %s14249_s10 = smov %s9777_s11  ;;  %s14250_s11 = smov %s9885_s18 }
0x2f16   : > { %s14251_s12 = smov %s9873_s15  ;;  %25 = sbr.rel (!%p23_p4) target bundleno = 5 (0x5), region = 117 }
0x2f1d   :  { %8766 = vsyncpa [#allocation5], 1 }
0x2f1e   :  { %8768 = vsyncpa [#allocation5 + $0x1], 1 }
0x2f1f   :  { %8769 = vsyncpa [#allocation6], 1 }
0x2f20   :  { %8771 = vsyncpa [#allocation6 + $0x1], 1 }

</bundles_post_ra>
